<compile_context>
chip_gen: v7x
topology: tpu7x:2x2x1
jax: 0.10.0
libtpu: 0.0.40
codegen_flags: <defaults>
</compile_context>

<pallas_src>
import functools

import jax
import jax.numpy as jnp
from jax import lax
from jax.experimental import pallas as pl
from jax.experimental.pallas import tpu as pltpu

EPS = 1e-5                       # PyTorch InstanceNorm2d default eps
MAX_HW_TILE = 1024               # rows per HW tile (multiple of 8)
VMEM_LIMIT = 32 * 1024 * 1024    # safe on v5e / v6e / v7x


def _round_up(n, m):
    return ((n + m - 1) // m) * m


def _pick_tile(hw, max_tile=MAX_HW_TILE):
    """Largest HW tile that divides hw, is a multiple of 8, and is <= max_tile.
    Falls back to the full extent (always a legal block)."""
    if hw <= max_tile:
        return hw
    start = max_tile - (max_tile % 8)
    for t in range(start, 7, -8):
        if hw % t == 0:
            return t
    return hw


# --------------------------------------------------------------------------- #
# Kernel A: tiled  y = patches @ W + b  (+ running InstanceNorm sums)
# --------------------------------------------------------------------------- #
def _conv_kernel(*refs, with_stats):
    if with_stats:
        p_ref, w_ref, b_ref, y_ref, sum_ref, ssq_ref = refs
    else:
        p_ref, w_ref, b_ref, y_ref = refs

    if with_stats:
        @pl.when(pl.program_id(1) == 0)
        def _():
            sum_ref[...] = jnp.zeros_like(sum_ref)
            ssq_ref[...] = jnp.zeros_like(ssq_ref)

    # bf16 operands on the MXU, f32 accumulation.
    y = jnp.dot(p_ref[0], w_ref[...], preferred_element_type=jnp.float32)
    y = y + b_ref[...]                      # (T, Cout) + (1, Cout)
    y_ref[0] = y

    if with_stats:
        sum_ref[0] = sum_ref[0] + jnp.sum(y, axis=0, keepdims=True)
        ssq_ref[0] = ssq_ref[0] + jnp.sum(y * y, axis=0, keepdims=True)


def conv_matmul_stats(patches, w2, bias, *, t_hw, with_stats):
    """patches: [B, HW, CKp] bf16, w2: [CKp, Cout] bf16, bias: [1, Cout] f32.
    Returns (y [B,HW,Cout] f32, sum [B,1,Cout] f32 | None, sumsq | None)."""
    B, HW, CKp = patches.shape
    Cout = w2.shape[1]
    n_t = HW // t_hw

    y_sd = jax.ShapeDtypeStruct((B, HW, Cout), jnp.float32)
    s_sd = jax.ShapeDtypeStruct((B, 1, Cout), jnp.float32)
    y_spec = pl.BlockSpec((1, t_hw, Cout), lambda b, t: (b, t, 0))
    s_spec = pl.BlockSpec((1, 1, Cout), lambda b, t: (b, 0, 0))

    if with_stats:
        out_shape = (y_sd, s_sd, s_sd)
        out_specs = [y_spec, s_spec, s_spec]
        dim_sem = ("parallel", "arbitrary")   # stats accumulate along the HW axis
    else:
        out_shape = y_sd
        out_specs = y_spec
        dim_sem = ("parallel", "parallel")

    flops = 2 * B * HW * CKp * Cout
    bytes_accessed = (patches.size * 2 + w2.size * 2 + bias.size * 4
                      + B * HW * Cout * 4 + (2 * B * Cout * 4 if with_stats else 0))

    kernel = functools.partial(_conv_kernel, with_stats=with_stats)
    out = pl.pallas_call(
        kernel,
        out_shape=out_shape,
        grid_spec=pltpu.PrefetchScalarGridSpec(
            num_scalar_prefetch=0,
            grid=(B, n_t),
            in_specs=[
                pl.BlockSpec((1, t_hw, CKp), lambda b, t: (b, t, 0)),
                pl.BlockSpec((CKp, Cout), lambda b, t: (0, 0)),
                pl.BlockSpec((1, Cout), lambda b, t: (0, 0)),
            ],
            out_specs=out_specs,
        ),
        compiler_params=pltpu.CompilerParams(
            dimension_semantics=dim_sem, vmem_limit_bytes=VMEM_LIMIT),
        cost_estimate=pl.CostEstimate(flops=flops, transcendentals=0,
                                      bytes_accessed=bytes_accessed),
    )(patches, w2, bias)

    if with_stats:
        y, ssum, ssq = out
        return y, ssum, ssq
    return out, None, None


# --------------------------------------------------------------------------- #
# Kernel B: tiled InstanceNorm (folded affine) + optional ReLU + optional residual
# --------------------------------------------------------------------------- #
def _norm_act_kernel(*refs, relu, residual, inv_hw):
    if residual:
        y_ref, sum_ref, ssq_ref, g_ref, bt_ref, r_ref, o_ref = refs
    else:
        y_ref, sum_ref, ssq_ref, g_ref, bt_ref, o_ref = refs

    y = y_ref[0]                                        # (T, Cout) f32
    mean = sum_ref[0] * inv_hw                          # (1, Cout)
    var = jnp.maximum(ssq_ref[0] * inv_hw - mean * mean, 0.0)
    scale = g_ref[...] * lax.rsqrt(var + EPS)           # folded affine (one FMA below)
    shift = bt_ref[...] - mean * scale
    out = y * scale + shift
    if relu:
        out = jnp.maximum(out, 0.0)
    if residual:
        out = out + r_ref[0]
    o_ref[0] = out


def norm_act(y, ssum, ssq, gamma, beta, residual=None, *, relu, t_hw):
    B, HW, Cout = y.shape
    n_t = HW // t_hw
    has_res = residual is not None
    kernel = functools.partial(_norm_act_kernel, relu=relu, residual=has_res,
                               inv_hw=1.0 / HW)

    yt_spec = pl.BlockSpec((1, t_hw, Cout), lambda b, t: (b, t, 0))
    s_spec = pl.BlockSpec((1, 1, Cout), lambda b, t: (b, 0, 0))
    c_spec = pl.BlockSpec((1, Cout), lambda b, t: (0, 0))

    in_specs = [yt_spec, s_spec, s_spec, c_spec, c_spec]
    args = [y, ssum, ssq, gamma, beta]
    if has_res:
        in_specs.append(pl.BlockSpec((1, t_hw, Cout), lambda b, t: (b, t, 0)))
        args.append(residual)

    return pl.pallas_call(
        kernel,
        out_shape=jax.ShapeDtypeStruct((B, HW, Cout), jnp.float32),
        grid_spec=pltpu.PrefetchScalarGridSpec(
            num_scalar_prefetch=0,
            grid=(B, n_t),
            in_specs=in_specs,
            out_specs=yt_spec,
        ),
        compiler_params=pltpu.CompilerParams(
            dimension_semantics=("parallel", "parallel"),
            vmem_limit_bytes=VMEM_LIMIT),
    )(*args)


# --------------------------------------------------------------------------- #
# JAX glue: channels-last reflection pad, im2col, deconv -> dilated-conv rewrite
# --------------------------------------------------------------------------- #
def im2col_nhwc(x, k, s):
    """x: [B, Hp, Wp, C] (already padded). Returns ([B, Ho*Wo, k*k*C], Ho, Wo).
    Patch order is (kh, kw, c)."""
    B, Hp, Wp, C = x.shape
    Ho = (Hp - k) // s + 1
    Wo = (Wp - k) // s + 1
    cols = []
    for i in range(k):
        for j in range(k):
            cols.append(x[:, i:i + s * (Ho - 1) + 1:s, j:j + s * (Wo - 1) + 1:s, :])
    p = jnp.stack(cols, axis=3)                       # [B, Ho, Wo, k*k, C]
    return p.reshape(B, Ho * Wo, k * k * C), Ho, Wo


def _pad_ck(patches, w2):
    ck = patches.shape[-1]
    ckp = _round_up(ck, 128)
    if ckp != ck:
        patches = jnp.pad(patches, ((0, 0), (0, 0), (0, ckp - ck)))
        w2 = jnp.pad(w2, ((0, ckp - ck), (0, 0)))
    return patches, w2


def conv_layer(x, prm, k, s, *, norm, relu, residual=None):
    """ConvLayer: ReflectionPad(k//2) + Conv2d(k, stride s) [+ InstanceNorm(+affine)]
    [+ ReLU] [+ residual].  x, residual: channels-last [B, H, W, C] f32."""
    B = x.shape[0]
    pad = k // 2
    xb = jnp.pad(x.astype(jnp.bfloat16),
                 ((0, 0), (pad, pad), (pad, pad), (0, 0)), mode="reflect")
    patches, Ho, Wo = im2col_nhwc(xb, k, s)           # [B, HW, k*k*Cin] bf16
    HW = Ho * Wo

    Wt = prm["w"]                                     # [Cout, Cin, k, k]
    Cout = Wt.shape[0]
    ck = patches.shape[-1]
    w2 = jnp.transpose(Wt, (2, 3, 1, 0)).reshape(ck, Cout).astype(jnp.bfloat16)
    patches, w2 = _pad_ck(patches, w2)
    bias = prm["b"].reshape(1, Cout).astype(jnp.float32)

    t_hw = _pick_tile(HW)
    y, ssum, ssq = conv_matmul_stats(patches, w2, bias, t_hw=t_hw, with_stats=norm)

    if norm:
        gamma = prm["gamma"].reshape(1, Cout).astype(jnp.float32)
        beta = prm["beta"].reshape(1, Cout).astype(jnp.float32)
        res = None if residual is None else residual.reshape(B, HW, Cout)
        y = norm_act(y, ssum, ssq, gamma, beta, res, relu=relu, t_hw=t_hw)
    else:
        if relu:
            y = jnp.maximum(y, 0.0)
        if residual is not None:
            y = y + residual.reshape(B, HW, Cout)
    return y.reshape(B, Ho, Wo, Cout)


def deconv_layer(x, prm, k, s, out_pad, *, relu):
    """DeConvLayer: ConvTranspose2d(k, stride s, padding k//2, output_padding out_pad)
    + InstanceNorm(affine) [+ ReLU], rewritten as zero-dilation + ordinary conv."""
    B, H, W, Cin = x.shape
    pad = k // 2
    xb = x.astype(jnp.bfloat16)
    Hd, Wd = (H - 1) * s + 1, (W - 1) * s + 1
    xd = jnp.zeros((B, Hd, Wd, Cin), jnp.bfloat16).at[:, ::s, ::s, :].set(xb)
    lo, hi = k - 1 - pad, k - 1 - pad + out_pad
    xp = jnp.pad(xd, ((0, 0), (lo, hi), (lo, hi), (0, 0)))

    patches, Ho, Wo = im2col_nhwc(xp, k, 1)
    HW = Ho * Wo

    Wt = prm["w"]                                     # ConvTranspose: [Cin, Cout, k, k]
    Cout = Wt.shape[1]
    ck = patches.shape[-1]
    w_flip = jnp.flip(Wt, axis=(2, 3))                # equivalent correlation weight
    w2 = jnp.transpose(w_flip, (2, 3, 0, 1)).reshape(ck, Cout).astype(jnp.bfloat16)
    patches, w2 = _pad_ck(patches, w2)
    bias = prm["b"].reshape(1, Cout).astype(jnp.float32)

    t_hw = _pick_tile(HW)
    y, ssum, ssq = conv_matmul_stats(patches, w2, bias, t_hw=t_hw, with_stats=True)
    gamma = prm["gamma"].reshape(1, Cout).astype(jnp.float32)
    beta = prm["beta"].reshape(1, Cout).astype(jnp.float32)
    y = norm_act(y, ssum, ssq, gamma, beta, None, relu=relu, t_hw=t_hw)
    return y.reshape(B, Ho, Wo, Cout)


# --------------------------------------------------------------------------- #
# TransformNet forward (Pallas path).  Input/output are NCHW like PyTorch.
# --------------------------------------------------------------------------- #
def transform_net(x, params):
    x = jnp.transpose(x, (0, 2, 3, 1))                # NCHW -> NHWC (once)
    # ConvBlock
    x = conv_layer(x, params["c1"], 9, 1, norm=True, relu=True)
    x = conv_layer(x, params["c2"], 3, 2, norm=True, relu=True)
    x = conv_layer(x, params["c3"], 3, 2, norm=True, relu=True)
    # ResidualBlock (x5): out = InstanceNorm(conv2(reflect_pad(x))) + x
    # (conv1/relu discarded in the PyTorch forward -> not executed)
    for i in range(5):
        x = conv_layer(x, params[f"res{i}"], 3, 1, norm=True, relu=False, residual=x)
    # DeConvBlock
    x = deconv_layer(x, params["d1"], 3, 2, 1, relu=True)
    x = deconv_layer(x, params["d2"], 3, 2, 1, relu=True)
    x = conv_layer(x, params["cout"], 9, 1, norm=False, relu=False)
    return jnp.transpose(x, (0, 3, 1, 2))             # NHWC -> NCHW (once)


# --------------------------------------------------------------------------- #
# Pure-JAX (XLA conv) reference, bf16 operands / f32 accumulation to match the
# kernel's MXU numerics (the module-level deviation accepted in the perf review).
# --------------------------------------------------------------------------- #
def _ref_norm_affine(y, prm):
    mean = y.mean(axis=(2, 3), keepdims=True)
    var = ((y - mean) ** 2).mean(axis=(2, 3), keepdims=True)
    y = (y - mean) * lax.rsqrt(var + EPS)
    return y * prm["gamma"][None, :, None, None] + prm["beta"][None, :, None, None]


def _ref_conv_layer(x, prm, k, s, *, norm, relu, residual=None):
    pad = k // 2
    xp = jnp.pad(x, ((0, 0), (0, 0), (pad, pad), (pad, pad)),
                 mode="reflect").astype(jnp.bfloat16)
    y = lax.conv_general_dilated(xp, prm["w"].astype(jnp.bfloat16), (s, s), "VALID",
                                 dimension_numbers=("NCHW", "OIHW", "NCHW"),
                                 preferred_element_type=jnp.float32)
    y = y + prm["b"][None, :, None, None]
    if norm:
        y = _ref_norm_affine(y, prm)
    if relu:
        y = jnp.maximum(y, 0.0)
    if residual is not None:
        y = y + residual
    return y


def _ref_deconv_layer(x, prm, k, s, out_pad, *, relu):
    pad = k // 2
    w_eq = jnp.transpose(jnp.flip(prm["w"], axis=(2, 3)), (1, 0, 2, 3))
    lo, hi = k - 1 - pad, k - 1 - pad + out_pad
    y = lax.conv_general_dilated(x.astype(jnp.bfloat16), w_eq.astype(jnp.bfloat16),
                                 (1, 1), padding=[(lo, hi), (lo, hi)],
                                 lhs_dilation=(s, s),
                                 dimension_numbers=("NCHW", "OIHW", "NCHW"),
                                 preferred_element_type=jnp.float32)
    y = y + prm["b"][None, :, None, None]
    y = _ref_norm_affine(y, prm)
    if relu:
        y = jnp.maximum(y, 0.0)
    return y


def transform_net_ref(x, params):
    x = _ref_conv_layer(x, params["c1"], 9, 1, norm=True, relu=True)
    x = _ref_conv_layer(x, params["c2"], 3, 2, norm=True, relu=True)
    x = _ref_conv_layer(x, params["c3"], 3, 2, norm=True, relu=True)
    for i in range(5):
        x = _ref_conv_layer(x, params[f"res{i}"], 3, 1, norm=True, relu=False, residual=x)
    x = _ref_deconv_layer(x, params["d1"], 3, 2, 1, relu=True)
    x = _ref_deconv_layer(x, params["d2"], 3, 2, 1, relu=True)
    x = _ref_conv_layer(x, params["cout"], 9, 1, norm=False, relu=False)
    return x


# --------------------------------------------------------------------------- #
# Deterministic parameter init (synthetic; shapes follow the PyTorch __init__).
# --------------------------------------------------------------------------- #
def _conv_params(key, cout, cin, k):
    k1, k2, k3, k4 = jax.random.split(key, 4)
    std = 1.0 / (cin * k * k) ** 0.5
    return {
        "w": jax.random.normal(k1, (cout, cin, k, k), jnp.float32) * std,
        "b": jax.random.normal(k2, (cout,), jnp.float32) * 0.05,
        "gamma": 1.0 + 0.1 * jax.random.normal(k3, (cout,), jnp.float32),
        "beta": 0.1 * jax.random.normal(k4, (cout,), jnp.float32),
    }


def _deconv_params(key, cin, cout, k):
    k1, k2, k3, k4 = jax.random.split(key, 4)
    std = 1.0 / (cin * k * k) ** 0.5
    return {
        "w": jax.random.normal(k1, (cin, cout, k, k), jnp.float32) * std,  # [Cin,Cout,k,k]
        "b": jax.random.normal(k2, (cout,), jnp.float32) * 0.05,
        "gamma": 1.0 + 0.1 * jax.random.normal(k3, (cout,), jnp.float32),
        "beta": 0.1 * jax.random.normal(k4, (cout,), jnp.float32),
    }


def init_params(key):
    keys = jax.random.split(key, 16)
    params = {
        "c1": _conv_params(keys[0], 32, 3, 9),
        "c2": _conv_params(keys[1], 64, 32, 3),
        "c3": _conv_params(keys[2], 128, 64, 3),
        "d1": _deconv_params(keys[8], 128, 64, 3),
        "d2": _deconv_params(keys[9], 64, 32, 3),
        "cout": _conv_params(keys[10], 3, 32, 9),    # norm='None' -> gamma/beta unused
    }
    for i in range(5):
        params[f"res{i}"] = _conv_params(keys[3 + i], 128, 128, 3)
    return params


if __name__ == "__main__":
    key = jax.random.PRNGKey(0)
    k_x, k_p = jax.random.split(key)
    x = jax.random.normal(k_x, (2, 3, 16, 16), jnp.float32)   # NCHW, small spatial
    params = init_params(k_p)

    out = jax.block_until_ready(jax.jit(transform_net)(x, params))
    ref = jax.block_until_ready(jax.jit(transform_net_ref)(x, params))

    assert out.shape == (2, 3, 16, 16), out.shape
    assert bool(jnp.all(jnp.isfinite(out)))
    max_err = float(jnp.max(jnp.abs(out - ref)))
    assert jnp.allclose(out, ref, atol=2e-2, rtol=2e-2), max_err

    print("KERNEL_OK")
</pallas_src>

<mosaic_0001>
module attributes {stable_mosaic.version = 11 : i64} {
  func.func @_conv_kernel(%arg0: i32, %arg1: i32, %arg2: memref<1x256x256xbf16, #tpu.memory_space<vmem>>, %arg3: memref<256x32xbf16, #tpu.memory_space<vmem>>, %arg4: memref<1x32xf32, #tpu.memory_space<vmem>>, %arg5: memref<1x256x32xf32, #tpu.memory_space<vmem>>, %arg6: memref<1x1x32xf32, #tpu.memory_space<vmem>>, %arg7: memref<1x1x32xf32, #tpu.memory_space<vmem>>) attributes {dimension_semantics = [#tpu.dimension_semantics<parallel>, #tpu.dimension_semantics<arbitrary>], iteration_bounds = array<i64: 2, 1>, scalar_prefetch = 0 : i64, scratch_operands = 0 : i64, tpu.core_type = #tpu.core_type<tc>, window_params = [{transform_indices = @transform_0, window_bounds = array<i64: 1, 256, 256>}, {pipeline_mode = #tpu.pipeline_mode<synchronous>, transform_indices = @transform_1, window_bounds = array<i64: 256, 32>}, {pipeline_mode = #tpu.pipeline_mode<synchronous>, transform_indices = @transform_2, window_bounds = array<i64: 1, 32>}, {transform_indices = @transform_3, window_bounds = array<i64: 1, 256, 32>}, {transform_indices = @transform_4, window_bounds = array<i64: 1, 1, 32>}, {transform_indices = @transform_5, window_bounds = array<i64: 1, 1, 32>}]} {
    %c0_i32 = arith.constant 0 : i32
    %0 = arith.cmpi eq, %arg1, %c0_i32 : i32
    %1 = arith.extui %0 : i1 to i32
    %c0_i32_0 = arith.constant 0 : i32
    %2 = arith.cmpi ne, %1, %c0_i32_0 : i32
    scf.if %2 {
      %cst_24 = arith.constant 0.000000e+00 : f32
      %30 = vector.broadcast %cst_24 : f32 to vector<1x1x32xf32>
      %c0_25 = arith.constant 0 : index
      %c0_26 = arith.constant 0 : index
      %c0_27 = arith.constant 0 : index
      %31 = vector.load %arg6[%c0_25, %c0_26, %c0_27] : memref<1x1x32xf32, #tpu.memory_space<vmem>>, vector<1x1x32xf32>
      tpu.vector_store %arg6[%c0_25, %c0_26, %c0_27], %30 {strides = array<i32>} : memref<1x1x32xf32, #tpu.memory_space<vmem>>, vector<1x1x32xf32>,
      %cst_28 = arith.constant 0.000000e+00 : f32
      %32 = vector.broadcast %cst_28 : f32 to vector<1x1x32xf32>
      %c0_29 = arith.constant 0 : index
      %c0_30 = arith.constant 0 : index
      %c0_31 = arith.constant 0 : index
      %33 = vector.load %arg7[%c0_29, %c0_30, %c0_31] : memref<1x1x32xf32, #tpu.memory_space<vmem>>, vector<1x1x32xf32>
      tpu.vector_store %arg7[%c0_29, %c0_30, %c0_31], %32 {strides = array<i32>} : memref<1x1x32xf32, #tpu.memory_space<vmem>>, vector<1x1x32xf32>,
    } else {
    }
    %c0 = arith.constant 0 : index
    %c0_1 = arith.constant 0 : index
    %c0_2 = arith.constant 0 : index
    %3 = vector.load %arg2[%c0, %c0_1, %c0_2] : memref<1x256x256xbf16, #tpu.memory_space<vmem>>, vector<1x256x256xbf16>
    %4 = vector.shape_cast %3 : vector<1x256x256xbf16> to vector<256x256xbf16>
    %c0_3 = arith.constant 0 : index
    %c0_4 = arith.constant 0 : index
    %5 = vector.load %arg3[%c0_3, %c0_4] : memref<256x32xbf16, #tpu.memory_space<vmem>>, vector<256x32xbf16>
    %cst = arith.constant dense<0.000000e+00> : vector<256x32xf32>
    %6 = tpu.matmul %4, %5, %cst {dimension_numbers = #tpu.dot_dimension_numbers<[1], [0], [0], [1], [0, 0, 1, 1], [], []>} : vector<256x256xbf16>, vector<256x32xbf16>, vector<256x32xf32> -> vector<256x32xf32>
    %c0_5 = arith.constant 0 : index
    %c0_6 = arith.constant 0 : index
    %7 = vector.load %arg4[%c0_5, %c0_6] : memref<1x32xf32, #tpu.memory_space<vmem>>, vector<1x32xf32>
    %8 = vector.broadcast %7 : vector<1x32xf32> to vector<256x32xf32>
    %9 = arith.addf %6, %8 : vector<256x32xf32>
    %c0_7 = arith.constant 0 : index
    %c0_8 = arith.constant 0 : index
    %c0_9 = arith.constant 0 : index
    %10 = vector.load %arg5[%c0_7, %c0_8, %c0_9] : memref<1x256x32xf32, #tpu.memory_space<vmem>>, vector<1x256x32xf32>
    %11 = vector.shape_cast %10 : vector<1x256x32xf32> to vector<256x32xf32>
    %12 = vector.shape_cast %9 : vector<256x32xf32> to vector<1x256x32xf32>
    tpu.vector_store %arg5[%c0_7, %c0_8, %c0_9], %12 {strides = array<i32>} : memref<1x256x32xf32, #tpu.memory_space<vmem>>, vector<1x256x32xf32>,
    %c0_10 = arith.constant 0 : index
    %c0_11 = arith.constant 0 : index
    %c0_12 = arith.constant 0 : index
    %13 = vector.load %arg6[%c0_10, %c0_11, %c0_12] : memref<1x1x32xf32, #tpu.memory_space<vmem>>, vector<1x1x32xf32>
    %14 = vector.shape_cast %13 : vector<1x1x32xf32> to vector<1x32xf32>
    %cst_13 = arith.constant dense<0.000000e+00> : vector<32xf32>
    %15 = vector.multi_reduction <add>, %9, %cst_13 [0] : vector<256x32xf32> to vector<32xf32>
    %16 = vector.shape_cast %15 : vector<32xf32> to vector<1x32xf32>
    %17 = arith.addf %14, %16 : vector<1x32xf32>
    %c0_14 = arith.constant 0 : index
    %c0_15 = arith.constant 0 : index
    %c0_16 = arith.constant 0 : index
    %18 = vector.load %arg6[%c0_14, %c0_15, %c0_16] : memref<1x1x32xf32, #tpu.memory_space<vmem>>, vector<1x1x32xf32>
    %19 = vector.shape_cast %18 : vector<1x1x32xf32> to vector<1x32xf32>
    %20 = vector.shape_cast %17 : vector<1x32xf32> to vector<1x1x32xf32>
    tpu.vector_store %arg6[%c0_14, %c0_15, %c0_16], %20 {strides = array<i32>} : memref<1x1x32xf32, #tpu.memory_space<vmem>>, vector<1x1x32xf32>,
    %c0_17 = arith.constant 0 : index
    %c0_18 = arith.constant 0 : index
    %c0_19 = arith.constant 0 : index
    %21 = vector.load %arg7[%c0_17, %c0_18, %c0_19] : memref<1x1x32xf32, #tpu.memory_space<vmem>>, vector<1x1x32xf32>
    %22 = vector.shape_cast %21 : vector<1x1x32xf32> to vector<1x32xf32>
    %23 = arith.mulf %9, %9 : vector<256x32xf32>
    %cst_20 = arith.constant dense<0.000000e+00> : vector<32xf32>
    %24 = vector.multi_reduction <add>, %23, %cst_20 [0] : vector<256x32xf32> to vector<32xf32>
    %25 = vector.shape_cast %24 : vector<32xf32> to vector<1x32xf32>
    %26 = arith.addf %22, %25 : vector<1x32xf32>
    %c0_21 = arith.constant 0 : index
    %c0_22 = arith.constant 0 : index
    %c0_23 = arith.constant 0 : index
    %27 = vector.load %arg7[%c0_21, %c0_22, %c0_23] : memref<1x1x32xf32, #tpu.memory_space<vmem>>, vector<1x1x32xf32>
    %28 = vector.shape_cast %27 : vector<1x1x32xf32> to vector<1x32xf32>
    %29 = vector.shape_cast %26 : vector<1x32xf32> to vector<1x1x32xf32>
    tpu.vector_store %arg7[%c0_21, %c0_22, %c0_23], %29 {strides = array<i32>} : memref<1x1x32xf32, #tpu.memory_space<vmem>>, vector<1x1x32xf32>,
    return
  }
  func.func @transform_0(%arg0: i32, %arg1: i32) -> (i32, i32, i32) {
    %c0_i32 = arith.constant 0 : i32
    %c0_i32_0 = arith.constant 0 : i32
    return %arg0, %arg1, %c0_i32 : i32, i32, i32
  }
  func.func @transform_1(%arg0: i32, %arg1: i32) -> (i32, i32) {
    %c0_i32 = arith.constant 0 : i32
    %c0_i32_0 = arith.constant 0 : i32
    %c0_i32_1 = arith.constant 0 : i32
    return %c0_i32, %c0_i32_0 : i32, i32
  }
  func.func @transform_2(%arg0: i32, %arg1: i32) -> (i32, i32) {
    %c0_i32 = arith.constant 0 : i32
    %c0_i32_0 = arith.constant 0 : i32
    %c0_i32_1 = arith.constant 0 : i32
    return %c0_i32, %c0_i32_0 : i32, i32
  }
  func.func @transform_3(%arg0: i32, %arg1: i32) -> (i32, i32, i32) {
    %c0_i32 = arith.constant 0 : i32
    %c0_i32_0 = arith.constant 0 : i32
    return %arg0, %arg1, %c0_i32 : i32, i32, i32
  }
  func.func @transform_4(%arg0: i32, %arg1: i32) -> (i32, i32, i32) {
    %c0_i32 = arith.constant 0 : i32
    %c0_i32_0 = arith.constant 0 : i32
    %c0_i32_1 = arith.constant 0 : i32
    return %arg0, %c0_i32, %c0_i32_0 : i32, i32, i32
  }
  func.func @transform_5(%arg0: i32, %arg1: i32) -> (i32, i32, i32) {
    %c0_i32 = arith.constant 0 : i32
    %c0_i32_0 = arith.constant 0 : i32
    %c0_i32_1 = arith.constant 0 : i32
    return %arg0, %c0_i32, %c0_i32_0 : i32, i32, i32
  }
}

module attributes {stable_mosaic.version = 11 : i64} {
  func.func @_norm_act_kernel(%arg0: i32, %arg1: i32, %arg2: memref<1x256x32xf32, #tpu.memory_space<vmem>>, %arg3: memref<1x1x32xf32, #tpu.memory_space<vmem>>, %arg4: memref<1x1x32xf32, #tpu.memory_space<vmem>>, %arg5: memref<1x32xf32, #tpu.memory_space<vmem>>, %arg6: memref<1x32xf32, #tpu.memory_space<vmem>>, %arg7: memref<1x256x32xf32, #tpu.memory_space<vmem>>) attributes {dimension_semantics = [#tpu.dimension_semantics<parallel>, #tpu.dimension_semantics<parallel>], iteration_bounds = array<i64: 2, 1>, scalar_prefetch = 0 : i64, scratch_operands = 0 : i64, tpu.core_type = #tpu.core_type<tc>, window_params = [{transform_indices = @transform_0, window_bounds = array<i64: 1, 256, 32>}, {transform_indices = @transform_1, window_bounds = array<i64: 1, 1, 32>}, {transform_indices = @transform_2, window_bounds = array<i64: 1, 1, 32>}, {pipeline_mode = #tpu.pipeline_mode<synchronous>, transform_indices = @transform_3, window_bounds = array<i64: 1, 32>}, {pipeline_mode = #tpu.pipeline_mode<synchronous>, transform_indices = @transform_4, window_bounds = array<i64: 1, 32>}, {transform_indices = @transform_5, window_bounds = array<i64: 1, 256, 32>}]} {
    %c0 = arith.constant 0 : index
    %c0_0 = arith.constant 0 : index
    %c0_1 = arith.constant 0 : index
    %0 = vector.load %arg2[%c0, %c0_0, %c0_1] : memref<1x256x32xf32, #tpu.memory_space<vmem>>, vector<1x256x32xf32>
    %1 = vector.shape_cast %0 : vector<1x256x32xf32> to vector<256x32xf32>
    %c0_2 = arith.constant 0 : index
    %c0_3 = arith.constant 0 : index
    %c0_4 = arith.constant 0 : index
    %2 = vector.load %arg3[%c0_2, %c0_3, %c0_4] : memref<1x1x32xf32, #tpu.memory_space<vmem>>, vector<1x1x32xf32>
    %3 = vector.shape_cast %2 : vector<1x1x32xf32> to vector<1x32xf32>
    %cst = arith.constant 3.906250e-03 : f32
    %4 = vector.broadcast %cst : f32 to vector<1x32xf32>
    %5 = arith.mulf %3, %4 : vector<1x32xf32>
    %c0_5 = arith.constant 0 : index
    %c0_6 = arith.constant 0 : index
    %c0_7 = arith.constant 0 : index
    %6 = vector.load %arg4[%c0_5, %c0_6, %c0_7] : memref<1x1x32xf32, #tpu.memory_space<vmem>>, vector<1x1x32xf32>
    %7 = vector.shape_cast %6 : vector<1x1x32xf32> to vector<1x32xf32>
    %cst_8 = arith.constant 3.906250e-03 : f32
    %8 = vector.broadcast %cst_8 : f32 to vector<1x32xf32>
    %9 = arith.mulf %7, %8 : vector<1x32xf32>
    %10 = arith.mulf %5, %5 : vector<1x32xf32>
    %11 = arith.subf %9, %10 : vector<1x32xf32>
    %cst_9 = arith.constant 0.000000e+00 : f32
    %12 = vector.broadcast %cst_9 : f32 to vector<1x32xf32>
    %13 = arith.maximumf %11, %12 : vector<1x32xf32>
    %c0_10 = arith.constant 0 : index
    %c0_11 = arith.constant 0 : index
    %14 = vector.load %arg5[%c0_10, %c0_11] : memref<1x32xf32, #tpu.memory_space<vmem>>, vector<1x32xf32>
    %cst_12 = arith.constant 9.99999974E-6 : f32
    %15 = vector.broadcast %cst_12 : f32 to vector<1x32xf32>
    %16 = arith.addf %13, %15 : vector<1x32xf32>
    %17 = math.rsqrt %16 : vector<1x32xf32>
    %18 = arith.mulf %14, %17 : vector<1x32xf32>
    %c0_13 = arith.constant 0 : index
    %c0_14 = arith.constant 0 : index
    %19 = vector.load %arg6[%c0_13, %c0_14] : memref<1x32xf32, #tpu.memory_space<vmem>>, vector<1x32xf32>
    %20 = arith.mulf %5, %18 : vector<1x32xf32>
    %21 = arith.subf %19, %20 : vector<1x32xf32>
    %22 = vector.broadcast %18 : vector<1x32xf32> to vector<256x32xf32>
    %23 = arith.mulf %1, %22 : vector<256x32xf32>
    %24 = vector.broadcast %21 : vector<1x32xf32> to vector<256x32xf32>
    %25 = arith.addf %23, %24 : vector<256x32xf32>
    %cst_15 = arith.constant 0.000000e+00 : f32
    %26 = vector.broadcast %cst_15 : f32 to vector<256x32xf32>
    %27 = arith.maximumf %25, %26 : vector<256x32xf32>
    %c0_16 = arith.constant 0 : index
    %c0_17 = arith.constant 0 : index
    %c0_18 = arith.constant 0 : index
    %28 = vector.load %arg7[%c0_16, %c0_17, %c0_18] : memref<1x256x32xf32, #tpu.memory_space<vmem>>, vector<1x256x32xf32>
    %29 = vector.shape_cast %28 : vector<1x256x32xf32> to vector<256x32xf32>
    %30 = vector.shape_cast %27 : vector<256x32xf32> to vector<1x256x32xf32>
    tpu.vector_store %arg7[%c0_16, %c0_17, %c0_18], %30 {strides = array<i32>} : memref<1x256x32xf32, #tpu.memory_space<vmem>>, vector<1x256x32xf32>,
    return
  }
  func.func @transform_0(%arg0: i32, %arg1: i32) -> (i32, i32, i32) {
    %c0_i32 = arith.constant 0 : i32
    %c0_i32_0 = arith.constant 0 : i32
    return %arg0, %arg1, %c0_i32 : i32, i32, i32
  }
  func.func @transform_1(%arg0: i32, %arg1: i32) -> (i32, i32, i32) {
    %c0_i32 = arith.constant 0 : i32
    %c0_i32_0 = arith.constant 0 : i32
    %c0_i32_1 = arith.constant 0 : i32
    return %arg0, %c0_i32, %c0_i32_0 : i32, i32, i32
  }
  func.func @transform_2(%arg0: i32, %arg1: i32) -> (i32, i32, i32) {
    %c0_i32 = arith.constant 0 : i32
    %c0_i32_0 = arith.constant 0 : i32
    %c0_i32_1 = arith.constant 0 : i32
    return %arg0, %c0_i32, %c0_i32_0 : i32, i32, i32
  }
  func.func @transform_3(%arg0: i32, %arg1: i32) -> (i32, i32) {
    %c0_i32 = arith.constant 0 : i32
    %c0_i32_0 = arith.constant 0 : i32
    %c0_i32_1 = arith.constant 0 : i32
    return %c0_i32, %c0_i32_0 : i32, i32
  }
  func.func @transform_4(%arg0: i32, %arg1: i32) -> (i32, i32) {
    %c0_i32 = arith.constant 0 : i32
    %c0_i32_0 = arith.constant 0 : i32
    %c0_i32_1 = arith.constant 0 : i32
    return %c0_i32, %c0_i32_0 : i32, i32
  }
  func.func @transform_5(%arg0: i32, %arg1: i32) -> (i32, i32, i32) {
    %c0_i32 = arith.constant 0 : i32
    %c0_i32_0 = arith.constant 0 : i32
    return %arg0, %arg1, %c0_i32 : i32, i32, i32
  }
}

module attributes {stable_mosaic.version = 11 : i64} {
  func.func @_conv_kernel(%arg0: i32, %arg1: i32, %arg2: memref<1x64x384xbf16, #tpu.memory_space<vmem>>, %arg3: memref<384x64xbf16, #tpu.memory_space<vmem>>, %arg4: memref<1x64xf32, #tpu.memory_space<vmem>>, %arg5: memref<1x64x64xf32, #tpu.memory_space<vmem>>, %arg6: memref<1x1x64xf32, #tpu.memory_space<vmem>>, %arg7: memref<1x1x64xf32, #tpu.memory_space<vmem>>) attributes {dimension_semantics = [#tpu.dimension_semantics<parallel>, #tpu.dimension_semantics<arbitrary>], iteration_bounds = array<i64: 2, 1>, scalar_prefetch = 0 : i64, scratch_operands = 0 : i64, tpu.core_type = #tpu.core_type<tc>, window_params = [{transform_indices = @transform_0, window_bounds = array<i64: 1, 64, 384>}, {pipeline_mode = #tpu.pipeline_mode<synchronous>, transform_indices = @transform_1, window_bounds = array<i64: 384, 64>}, {pipeline_mode = #tpu.pipeline_mode<synchronous>, transform_indices = @transform_2, window_bounds = array<i64: 1, 64>}, {transform_indices = @transform_3, window_bounds = array<i64: 1, 64, 64>}, {transform_indices = @transform_4, window_bounds = array<i64: 1, 1, 64>}, {transform_indices = @transform_5, window_bounds = array<i64: 1, 1, 64>}]} {
    %c0_i32 = arith.constant 0 : i32
    %0 = arith.cmpi eq, %arg1, %c0_i32 : i32
    %1 = arith.extui %0 : i1 to i32
    %c0_i32_0 = arith.constant 0 : i32
    %2 = arith.cmpi ne, %1, %c0_i32_0 : i32
    scf.if %2 {
      %cst_24 = arith.constant 0.000000e+00 : f32
      %30 = vector.broadcast %cst_24 : f32 to vector<1x1x64xf32>
      %c0_25 = arith.constant 0 : index
      %c0_26 = arith.constant 0 : index
      %c0_27 = arith.constant 0 : index
      %31 = vector.load %arg6[%c0_25, %c0_26, %c0_27] : memref<1x1x64xf32, #tpu.memory_space<vmem>>, vector<1x1x64xf32>
      tpu.vector_store %arg6[%c0_25, %c0_26, %c0_27], %30 {strides = array<i32>} : memref<1x1x64xf32, #tpu.memory_space<vmem>>, vector<1x1x64xf32>,
      %cst_28 = arith.constant 0.000000e+00 : f32
      %32 = vector.broadcast %cst_28 : f32 to vector<1x1x64xf32>
      %c0_29 = arith.constant 0 : index
      %c0_30 = arith.constant 0 : index
      %c0_31 = arith.constant 0 : index
      %33 = vector.load %arg7[%c0_29, %c0_30, %c0_31] : memref<1x1x64xf32, #tpu.memory_space<vmem>>, vector<1x1x64xf32>
      tpu.vector_store %arg7[%c0_29, %c0_30, %c0_31], %32 {strides = array<i32>} : memref<1x1x64xf32, #tpu.memory_space<vmem>>, vector<1x1x64xf32>,
    } else {
    }
    %c0 = arith.constant 0 : index
    %c0_1 = arith.constant 0 : index
    %c0_2 = arith.constant 0 : index
    %3 = vector.load %arg2[%c0, %c0_1, %c0_2] : memref<1x64x384xbf16, #tpu.memory_space<vmem>>, vector<1x64x384xbf16>
    %4 = vector.shape_cast %3 : vector<1x64x384xbf16> to vector<64x384xbf16>
    %c0_3 = arith.constant 0 : index
    %c0_4 = arith.constant 0 : index
    %5 = vector.load %arg3[%c0_3, %c0_4] : memref<384x64xbf16, #tpu.memory_space<vmem>>, vector<384x64xbf16>
    %cst = arith.constant dense<0.000000e+00> : vector<64x64xf32>
    %6 = tpu.matmul %4, %5, %cst {dimension_numbers = #tpu.dot_dimension_numbers<[1], [0], [0], [1], [0, 0, 1, 1], [], []>} : vector<64x384xbf16>, vector<384x64xbf16>, vector<64x64xf32> -> vector<64x64xf32>
    %c0_5 = arith.constant 0 : index
    %c0_6 = arith.constant 0 : index
    %7 = vector.load %arg4[%c0_5, %c0_6] : memref<1x64xf32, #tpu.memory_space<vmem>>, vector<1x64xf32>
    %8 = vector.broadcast %7 : vector<1x64xf32> to vector<64x64xf32>
    %9 = arith.addf %6, %8 : vector<64x64xf32>
    %c0_7 = arith.constant 0 : index
    %c0_8 = arith.constant 0 : index
    %c0_9 = arith.constant 0 : index
    %10 = vector.load %arg5[%c0_7, %c0_8, %c0_9] : memref<1x64x64xf32, #tpu.memory_space<vmem>>, vector<1x64x64xf32>
    %11 = vector.shape_cast %10 : vector<1x64x64xf32> to vector<64x64xf32>
    %12 = vector.shape_cast %9 : vector<64x64xf32> to vector<1x64x64xf32>
    tpu.vector_store %arg5[%c0_7, %c0_8, %c0_9], %12 {strides = array<i32>} : memref<1x64x64xf32, #tpu.memory_space<vmem>>, vector<1x64x64xf32>,
    %c0_10 = arith.constant 0 : index
    %c0_11 = arith.constant 0 : index
    %c0_12 = arith.constant 0 : index
    %13 = vector.load %arg6[%c0_10, %c0_11, %c0_12] : memref<1x1x64xf32, #tpu.memory_space<vmem>>, vector<1x1x64xf32>
    %14 = vector.shape_cast %13 : vector<1x1x64xf32> to vector<1x64xf32>
    %cst_13 = arith.constant dense<0.000000e+00> : vector<64xf32>
    %15 = vector.multi_reduction <add>, %9, %cst_13 [0] : vector<64x64xf32> to vector<64xf32>
    %16 = vector.shape_cast %15 : vector<64xf32> to vector<1x64xf32>
    %17 = arith.addf %14, %16 : vector<1x64xf32>
    %c0_14 = arith.constant 0 : index
    %c0_15 = arith.constant 0 : index
    %c0_16 = arith.constant 0 : index
    %18 = vector.load %arg6[%c0_14, %c0_15, %c0_16] : memref<1x1x64xf32, #tpu.memory_space<vmem>>, vector<1x1x64xf32>
    %19 = vector.shape_cast %18 : vector<1x1x64xf32> to vector<1x64xf32>
    %20 = vector.shape_cast %17 : vector<1x64xf32> to vector<1x1x64xf32>
    tpu.vector_store %arg6[%c0_14, %c0_15, %c0_16], %20 {strides = array<i32>} : memref<1x1x64xf32, #tpu.memory_space<vmem>>, vector<1x1x64xf32>,
    %c0_17 = arith.constant 0 : index
    %c0_18 = arith.constant 0 : index
    %c0_19 = arith.constant 0 : index
    %21 = vector.load %arg7[%c0_17, %c0_18, %c0_19] : memref<1x1x64xf32, #tpu.memory_space<vmem>>, vector<1x1x64xf32>
    %22 = vector.shape_cast %21 : vector<1x1x64xf32> to vector<1x64xf32>
    %23 = arith.mulf %9, %9 : vector<64x64xf32>
    %cst_20 = arith.constant dense<0.000000e+00> : vector<64xf32>
    %24 = vector.multi_reduction <add>, %23, %cst_20 [0] : vector<64x64xf32> to vector<64xf32>
    %25 = vector.shape_cast %24 : vector<64xf32> to vector<1x64xf32>
    %26 = arith.addf %22, %25 : vector<1x64xf32>
    %c0_21 = arith.constant 0 : index
    %c0_22 = arith.constant 0 : index
    %c0_23 = arith.constant 0 : index
    %27 = vector.load %arg7[%c0_21, %c0_22, %c0_23] : memref<1x1x64xf32, #tpu.memory_space<vmem>>, vector<1x1x64xf32>
    %28 = vector.shape_cast %27 : vector<1x1x64xf32> to vector<1x64xf32>
    %29 = vector.shape_cast %26 : vector<1x64xf32> to vector<1x1x64xf32>
    tpu.vector_store %arg7[%c0_21, %c0_22, %c0_23], %29 {strides = array<i32>} : memref<1x1x64xf32, #tpu.memory_space<vmem>>, vector<1x1x64xf32>,
    return
  }
  func.func @transform_0(%arg0: i32, %arg1: i32) -> (i32, i32, i32) {
    %c0_i32 = arith.constant 0 : i32
    %c0_i32_0 = arith.constant 0 : i32
    return %arg0, %arg1, %c0_i32 : i32, i32, i32
  }
  func.func @transform_1(%arg0: i32, %arg1: i32) -> (i32, i32) {
    %c0_i32 = arith.constant 0 : i32
    %c0_i32_0 = arith.constant 0 : i32
    %c0_i32_1 = arith.constant 0 : i32
    return %c0_i32, %c0_i32_0 : i32, i32
  }
  func.func @transform_2(%arg0: i32, %arg1: i32) -> (i32, i32) {
    %c0_i32 = arith.constant 0 : i32
    %c0_i32_0 = arith.constant 0 : i32
    %c0_i32_1 = arith.constant 0 : i32
    return %c0_i32, %c0_i32_0 : i32, i32
  }
  func.func @transform_3(%arg0: i32, %arg1: i32) -> (i32, i32, i32) {
    %c0_i32 = arith.constant 0 : i32
    %c0_i32_0 = arith.constant 0 : i32
    return %arg0, %arg1, %c0_i32 : i32, i32, i32
  }
  func.func @transform_4(%arg0: i32, %arg1: i32) -> (i32, i32, i32) {
    %c0_i32 = arith.constant 0 : i32
    %c0_i32_0 = arith.constant 0 : i32
    %c0_i32_1 = arith.constant 0 : i32
    return %arg0, %c0_i32, %c0_i32_0 : i32, i32, i32
  }
  func.func @transform_5(%arg0: i32, %arg1: i32) -> (i32, i32, i32) {
    %c0_i32 = arith.constant 0 : i32
    %c0_i32_0 = arith.constant 0 : i32
    %c0_i32_1 = arith.constant 0 : i32
    return %arg0, %c0_i32, %c0_i32_0 : i32, i32, i32
  }
}

module attributes {stable_mosaic.version = 11 : i64} {
  func.func @_norm_act_kernel(%arg0: i32, %arg1: i32, %arg2: memref<1x64x64xf32, #tpu.memory_space<vmem>>, %arg3: memref<1x1x64xf32, #tpu.memory_space<vmem>>, %arg4: memref<1x1x64xf32, #tpu.memory_space<vmem>>, %arg5: memref<1x64xf32, #tpu.memory_space<vmem>>, %arg6: memref<1x64xf32, #tpu.memory_space<vmem>>, %arg7: memref<1x64x64xf32, #tpu.memory_space<vmem>>) attributes {dimension_semantics = [#tpu.dimension_semantics<parallel>, #tpu.dimension_semantics<parallel>], iteration_bounds = array<i64: 2, 1>, scalar_prefetch = 0 : i64, scratch_operands = 0 : i64, tpu.core_type = #tpu.core_type<tc>, window_params = [{transform_indices = @transform_0, window_bounds = array<i64: 1, 64, 64>}, {transform_indices = @transform_1, window_bounds = array<i64: 1, 1, 64>}, {transform_indices = @transform_2, window_bounds = array<i64: 1, 1, 64>}, {pipeline_mode = #tpu.pipeline_mode<synchronous>, transform_indices = @transform_3, window_bounds = array<i64: 1, 64>}, {pipeline_mode = #tpu.pipeline_mode<synchronous>, transform_indices = @transform_4, window_bounds = array<i64: 1, 64>}, {transform_indices = @transform_5, window_bounds = array<i64: 1, 64, 64>}]} {
    %c0 = arith.constant 0 : index
    %c0_0 = arith.constant 0 : index
    %c0_1 = arith.constant 0 : index
    %0 = vector.load %arg2[%c0, %c0_0, %c0_1] : memref<1x64x64xf32, #tpu.memory_space<vmem>>, vector<1x64x64xf32>
    %1 = vector.shape_cast %0 : vector<1x64x64xf32> to vector<64x64xf32>
    %c0_2 = arith.constant 0 : index
    %c0_3 = arith.constant 0 : index
    %c0_4 = arith.constant 0 : index
    %2 = vector.load %arg3[%c0_2, %c0_3, %c0_4] : memref<1x1x64xf32, #tpu.memory_space<vmem>>, vector<1x1x64xf32>
    %3 = vector.shape_cast %2 : vector<1x1x64xf32> to vector<1x64xf32>
    %cst = arith.constant 1.562500e-02 : f32
    %4 = vector.broadcast %cst : f32 to vector<1x64xf32>
    %5 = arith.mulf %3, %4 : vector<1x64xf32>
    %c0_5 = arith.constant 0 : index
    %c0_6 = arith.constant 0 : index
    %c0_7 = arith.constant 0 : index
    %6 = vector.load %arg4[%c0_5, %c0_6, %c0_7] : memref<1x1x64xf32, #tpu.memory_space<vmem>>, vector<1x1x64xf32>
    %7 = vector.shape_cast %6 : vector<1x1x64xf32> to vector<1x64xf32>
    %cst_8 = arith.constant 1.562500e-02 : f32
    %8 = vector.broadcast %cst_8 : f32 to vector<1x64xf32>
    %9 = arith.mulf %7, %8 : vector<1x64xf32>
    %10 = arith.mulf %5, %5 : vector<1x64xf32>
    %11 = arith.subf %9, %10 : vector<1x64xf32>
    %cst_9 = arith.constant 0.000000e+00 : f32
    %12 = vector.broadcast %cst_9 : f32 to vector<1x64xf32>
    %13 = arith.maximumf %11, %12 : vector<1x64xf32>
    %c0_10 = arith.constant 0 : index
    %c0_11 = arith.constant 0 : index
    %14 = vector.load %arg5[%c0_10, %c0_11] : memref<1x64xf32, #tpu.memory_space<vmem>>, vector<1x64xf32>
    %cst_12 = arith.constant 9.99999974E-6 : f32
    %15 = vector.broadcast %cst_12 : f32 to vector<1x64xf32>
    %16 = arith.addf %13, %15 : vector<1x64xf32>
    %17 = math.rsqrt %16 : vector<1x64xf32>
    %18 = arith.mulf %14, %17 : vector<1x64xf32>
    %c0_13 = arith.constant 0 : index
    %c0_14 = arith.constant 0 : index
    %19 = vector.load %arg6[%c0_13, %c0_14] : memref<1x64xf32, #tpu.memory_space<vmem>>, vector<1x64xf32>
    %20 = arith.mulf %5, %18 : vector<1x64xf32>
    %21 = arith.subf %19, %20 : vector<1x64xf32>
    %22 = vector.broadcast %18 : vector<1x64xf32> to vector<64x64xf32>
    %23 = arith.mulf %1, %22 : vector<64x64xf32>
    %24 = vector.broadcast %21 : vector<1x64xf32> to vector<64x64xf32>
    %25 = arith.addf %23, %24 : vector<64x64xf32>
    %cst_15 = arith.constant 0.000000e+00 : f32
    %26 = vector.broadcast %cst_15 : f32 to vector<64x64xf32>
    %27 = arith.maximumf %25, %26 : vector<64x64xf32>
    %c0_16 = arith.constant 0 : index
    %c0_17 = arith.constant 0 : index
    %c0_18 = arith.constant 0 : index
    %28 = vector.load %arg7[%c0_16, %c0_17, %c0_18] : memref<1x64x64xf32, #tpu.memory_space<vmem>>, vector<1x64x64xf32>
    %29 = vector.shape_cast %28 : vector<1x64x64xf32> to vector<64x64xf32>
    %30 = vector.shape_cast %27 : vector<64x64xf32> to vector<1x64x64xf32>
    tpu.vector_store %arg7[%c0_16, %c0_17, %c0_18], %30 {strides = array<i32>} : memref<1x64x64xf32, #tpu.memory_space<vmem>>, vector<1x64x64xf32>,
    return
  }
  func.func @transform_0(%arg0: i32, %arg1: i32) -> (i32, i32, i32) {
    %c0_i32 = arith.constant 0 : i32
    %c0_i32_0 = arith.constant 0 : i32
    return %arg0, %arg1, %c0_i32 : i32, i32, i32
  }
  func.func @transform_1(%arg0: i32, %arg1: i32) -> (i32, i32, i32) {
    %c0_i32 = arith.constant 0 : i32
    %c0_i32_0 = arith.constant 0 : i32
    %c0_i32_1 = arith.constant 0 : i32
    return %arg0, %c0_i32, %c0_i32_0 : i32, i32, i32
  }
  func.func @transform_2(%arg0: i32, %arg1: i32) -> (i32, i32, i32) {
    %c0_i32 = arith.constant 0 : i32
    %c0_i32_0 = arith.constant 0 : i32
    %c0_i32_1 = arith.constant 0 : i32
    return %arg0, %c0_i32, %c0_i32_0 : i32, i32, i32
  }
  func.func @transform_3(%arg0: i32, %arg1: i32) -> (i32, i32) {
    %c0_i32 = arith.constant 0 : i32
    %c0_i32_0 = arith.constant 0 : i32
    %c0_i32_1 = arith.constant 0 : i32
    return %c0_i32, %c0_i32_0 : i32, i32
  }
  func.func @transform_4(%arg0: i32, %arg1: i32) -> (i32, i32) {
    %c0_i32 = arith.constant 0 : i32
    %c0_i32_0 = arith.constant 0 : i32
    %c0_i32_1 = arith.constant 0 : i32
    return %c0_i32, %c0_i32_0 : i32, i32
  }
  func.func @transform_5(%arg0: i32, %arg1: i32) -> (i32, i32, i32) {
    %c0_i32 = arith.constant 0 : i32
    %c0_i32_0 = arith.constant 0 : i32
    return %arg0, %arg1, %c0_i32 : i32, i32, i32
  }
}

module attributes {stable_mosaic.version = 11 : i64} {
  func.func @_conv_kernel(%arg0: i32, %arg1: i32, %arg2: memref<1x16x640xbf16, #tpu.memory_space<vmem>>, %arg3: memref<640x128xbf16, #tpu.memory_space<vmem>>, %arg4: memref<1x128xf32, #tpu.memory_space<vmem>>, %arg5: memref<1x16x128xf32, #tpu.memory_space<vmem>>, %arg6: memref<1x1x128xf32, #tpu.memory_space<vmem>>, %arg7: memref<1x1x128xf32, #tpu.memory_space<vmem>>) attributes {dimension_semantics = [#tpu.dimension_semantics<parallel>, #tpu.dimension_semantics<arbitrary>], iteration_bounds = array<i64: 2, 1>, scalar_prefetch = 0 : i64, scratch_operands = 0 : i64, tpu.core_type = #tpu.core_type<tc>, window_params = [{transform_indices = @transform_0, window_bounds = array<i64: 1, 16, 640>}, {pipeline_mode = #tpu.pipeline_mode<synchronous>, transform_indices = @transform_1, window_bounds = array<i64: 640, 128>}, {pipeline_mode = #tpu.pipeline_mode<synchronous>, transform_indices = @transform_2, window_bounds = array<i64: 1, 128>}, {transform_indices = @transform_3, window_bounds = array<i64: 1, 16, 128>}, {transform_indices = @transform_4, window_bounds = array<i64: 1, 1, 128>}, {transform_indices = @transform_5, window_bounds = array<i64: 1, 1, 128>}]} {
    %c0_i32 = arith.constant 0 : i32
    %0 = arith.cmpi eq, %arg1, %c0_i32 : i32
    %1 = arith.extui %0 : i1 to i32
    %c0_i32_0 = arith.constant 0 : i32
    %2 = arith.cmpi ne, %1, %c0_i32_0 : i32
    scf.if %2 {
      %cst_24 = arith.constant 0.000000e+00 : f32
      %30 = vector.broadcast %cst_24 : f32 to vector<1x1x128xf32>
      %c0_25 = arith.constant 0 : index
      %c0_26 = arith.constant 0 : index
      %c0_27 = arith.constant 0 : index
      %31 = vector.load %arg6[%c0_25, %c0_26, %c0_27] : memref<1x1x128xf32, #tpu.memory_space<vmem>>, vector<1x1x128xf32>
      tpu.vector_store %arg6[%c0_25, %c0_26, %c0_27], %30 {strides = array<i32>} : memref<1x1x128xf32, #tpu.memory_space<vmem>>, vector<1x1x128xf32>,
      %cst_28 = arith.constant 0.000000e+00 : f32
      %32 = vector.broadcast %cst_28 : f32 to vector<1x1x128xf32>
      %c0_29 = arith.constant 0 : index
      %c0_30 = arith.constant 0 : index
      %c0_31 = arith.constant 0 : index
      %33 = vector.load %arg7[%c0_29, %c0_30, %c0_31] : memref<1x1x128xf32, #tpu.memory_space<vmem>>, vector<1x1x128xf32>
      tpu.vector_store %arg7[%c0_29, %c0_30, %c0_31], %32 {strides = array<i32>} : memref<1x1x128xf32, #tpu.memory_space<vmem>>, vector<1x1x128xf32>,
    } else {
    }
    %c0 = arith.constant 0 : index
    %c0_1 = arith.constant 0 : index
    %c0_2 = arith.constant 0 : index
    %3 = vector.load %arg2[%c0, %c0_1, %c0_2] : memref<1x16x640xbf16, #tpu.memory_space<vmem>>, vector<1x16x640xbf16>
    %4 = vector.shape_cast %3 : vector<1x16x640xbf16> to vector<16x640xbf16>
    %c0_3 = arith.constant 0 : index
    %c0_4 = arith.constant 0 : index
    %5 = vector.load %arg3[%c0_3, %c0_4] : memref<640x128xbf16, #tpu.memory_space<vmem>>, vector<640x128xbf16>
    %cst = arith.constant dense<0.000000e+00> : vector<16x128xf32>
    %6 = tpu.matmul %4, %5, %cst {dimension_numbers = #tpu.dot_dimension_numbers<[1], [0], [0], [1], [0, 0, 1, 1], [], []>} : vector<16x640xbf16>, vector<640x128xbf16>, vector<16x128xf32> -> vector<16x128xf32>
    %c0_5 = arith.constant 0 : index
    %c0_6 = arith.constant 0 : index
    %7 = vector.load %arg4[%c0_5, %c0_6] : memref<1x128xf32, #tpu.memory_space<vmem>>, vector<1x128xf32>
    %8 = vector.broadcast %7 : vector<1x128xf32> to vector<16x128xf32>
    %9 = arith.addf %6, %8 : vector<16x128xf32>
    %c0_7 = arith.constant 0 : index
    %c0_8 = arith.constant 0 : index
    %c0_9 = arith.constant 0 : index
    %10 = vector.load %arg5[%c0_7, %c0_8, %c0_9] : memref<1x16x128xf32, #tpu.memory_space<vmem>>, vector<1x16x128xf32>
    %11 = vector.shape_cast %10 : vector<1x16x128xf32> to vector<16x128xf32>
    %12 = vector.shape_cast %9 : vector<16x128xf32> to vector<1x16x128xf32>
    tpu.vector_store %arg5[%c0_7, %c0_8, %c0_9], %12 {strides = array<i32>} : memref<1x16x128xf32, #tpu.memory_space<vmem>>, vector<1x16x128xf32>,
    %c0_10 = arith.constant 0 : index
    %c0_11 = arith.constant 0 : index
    %c0_12 = arith.constant 0 : index
    %13 = vector.load %arg6[%c0_10, %c0_11, %c0_12] : memref<1x1x128xf32, #tpu.memory_space<vmem>>, vector<1x1x128xf32>
    %14 = vector.shape_cast %13 : vector<1x1x128xf32> to vector<1x128xf32>
    %cst_13 = arith.constant dense<0.000000e+00> : vector<128xf32>
    %15 = vector.multi_reduction <add>, %9, %cst_13 [0] : vector<16x128xf32> to vector<128xf32>
    %16 = vector.shape_cast %15 : vector<128xf32> to vector<1x128xf32>
    %17 = arith.addf %14, %16 : vector<1x128xf32>
    %c0_14 = arith.constant 0 : index
    %c0_15 = arith.constant 0 : index
    %c0_16 = arith.constant 0 : index
    %18 = vector.load %arg6[%c0_14, %c0_15, %c0_16] : memref<1x1x128xf32, #tpu.memory_space<vmem>>, vector<1x1x128xf32>
    %19 = vector.shape_cast %18 : vector<1x1x128xf32> to vector<1x128xf32>
    %20 = vector.shape_cast %17 : vector<1x128xf32> to vector<1x1x128xf32>
    tpu.vector_store %arg6[%c0_14, %c0_15, %c0_16], %20 {strides = array<i32>} : memref<1x1x128xf32, #tpu.memory_space<vmem>>, vector<1x1x128xf32>,
    %c0_17 = arith.constant 0 : index
    %c0_18 = arith.constant 0 : index
    %c0_19 = arith.constant 0 : index
    %21 = vector.load %arg7[%c0_17, %c0_18, %c0_19] : memref<1x1x128xf32, #tpu.memory_space<vmem>>, vector<1x1x128xf32>
    %22 = vector.shape_cast %21 : vector<1x1x128xf32> to vector<1x128xf32>
    %23 = arith.mulf %9, %9 : vector<16x128xf32>
    %cst_20 = arith.constant dense<0.000000e+00> : vector<128xf32>
    %24 = vector.multi_reduction <add>, %23, %cst_20 [0] : vector<16x128xf32> to vector<128xf32>
    %25 = vector.shape_cast %24 : vector<128xf32> to vector<1x128xf32>
    %26 = arith.addf %22, %25 : vector<1x128xf32>
    %c0_21 = arith.constant 0 : index
    %c0_22 = arith.constant 0 : index
    %c0_23 = arith.constant 0 : index
    %27 = vector.load %arg7[%c0_21, %c0_22, %c0_23] : memref<1x1x128xf32, #tpu.memory_space<vmem>>, vector<1x1x128xf32>
    %28 = vector.shape_cast %27 : vector<1x1x128xf32> to vector<1x128xf32>
    %29 = vector.shape_cast %26 : vector<1x128xf32> to vector<1x1x128xf32>
    tpu.vector_store %arg7[%c0_21, %c0_22, %c0_23], %29 {strides = array<i32>} : memref<1x1x128xf32, #tpu.memory_space<vmem>>, vector<1x1x128xf32>,
    return
  }
  func.func @transform_0(%arg0: i32, %arg1: i32) -> (i32, i32, i32) {
    %c0_i32 = arith.constant 0 : i32
    %c0_i32_0 = arith.constant 0 : i32
    return %arg0, %arg1, %c0_i32 : i32, i32, i32
  }
  func.func @transform_1(%arg0: i32, %arg1: i32) -> (i32, i32) {
    %c0_i32 = arith.constant 0 : i32
    %c0_i32_0 = arith.constant 0 : i32
    %c0_i32_1 = arith.constant 0 : i32
    return %c0_i32, %c0_i32_0 : i32, i32
  }
  func.func @transform_2(%arg0: i32, %arg1: i32) -> (i32, i32) {
    %c0_i32 = arith.constant 0 : i32
    %c0_i32_0 = arith.constant 0 : i32
    %c0_i32_1 = arith.constant 0 : i32
    return %c0_i32, %c0_i32_0 : i32, i32
  }
  func.func @transform_3(%arg0: i32, %arg1: i32) -> (i32, i32, i32) {
    %c0_i32 = arith.constant 0 : i32
    %c0_i32_0 = arith.constant 0 : i32
    return %arg0, %arg1, %c0_i32 : i32, i32, i32
  }
  func.func @transform_4(%arg0: i32, %arg1: i32) -> (i32, i32, i32) {
    %c0_i32 = arith.constant 0 : i32
    %c0_i32_0 = arith.constant 0 : i32
    %c0_i32_1 = arith.constant 0 : i32
    return %arg0, %c0_i32, %c0_i32_0 : i32, i32, i32
  }
  func.func @transform_5(%arg0: i32, %arg1: i32) -> (i32, i32, i32) {
    %c0_i32 = arith.constant 0 : i32
    %c0_i32_0 = arith.constant 0 : i32
    %c0_i32_1 = arith.constant 0 : i32
    return %arg0, %c0_i32, %c0_i32_0 : i32, i32, i32
  }
}

module attributes {stable_mosaic.version = 11 : i64} {
  func.func @_norm_act_kernel(%arg0: i32, %arg1: i32, %arg2: memref<1x16x128xf32, #tpu.memory_space<vmem>>, %arg3: memref<1x1x128xf32, #tpu.memory_space<vmem>>, %arg4: memref<1x1x128xf32, #tpu.memory_space<vmem>>, %arg5: memref<1x128xf32, #tpu.memory_space<vmem>>, %arg6: memref<1x128xf32, #tpu.memory_space<vmem>>, %arg7: memref<1x16x128xf32, #tpu.memory_space<vmem>>) attributes {dimension_semantics = [#tpu.dimension_semantics<parallel>, #tpu.dimension_semantics<parallel>], iteration_bounds = array<i64: 2, 1>, scalar_prefetch = 0 : i64, scratch_operands = 0 : i64, tpu.core_type = #tpu.core_type<tc>, window_params = [{transform_indices = @transform_0, window_bounds = array<i64: 1, 16, 128>}, {transform_indices = @transform_1, window_bounds = array<i64: 1, 1, 128>}, {transform_indices = @transform_2, window_bounds = array<i64: 1, 1, 128>}, {pipeline_mode = #tpu.pipeline_mode<synchronous>, transform_indices = @transform_3, window_bounds = array<i64: 1, 128>}, {pipeline_mode = #tpu.pipeline_mode<synchronous>, transform_indices = @transform_4, window_bounds = array<i64: 1, 128>}, {transform_indices = @transform_5, window_bounds = array<i64: 1, 16, 128>}]} {
    %c0 = arith.constant 0 : index
    %c0_0 = arith.constant 0 : index
    %c0_1 = arith.constant 0 : index
    %0 = vector.load %arg2[%c0, %c0_0, %c0_1] : memref<1x16x128xf32, #tpu.memory_space<vmem>>, vector<1x16x128xf32>
    %1 = vector.shape_cast %0 : vector<1x16x128xf32> to vector<16x128xf32>
    %c0_2 = arith.constant 0 : index
    %c0_3 = arith.constant 0 : index
    %c0_4 = arith.constant 0 : index
    %2 = vector.load %arg3[%c0_2, %c0_3, %c0_4] : memref<1x1x128xf32, #tpu.memory_space<vmem>>, vector<1x1x128xf32>
    %3 = vector.shape_cast %2 : vector<1x1x128xf32> to vector<1x128xf32>
    %cst = arith.constant 6.250000e-02 : f32
    %4 = vector.broadcast %cst : f32 to vector<1x128xf32>
    %5 = arith.mulf %3, %4 : vector<1x128xf32>
    %c0_5 = arith.constant 0 : index
    %c0_6 = arith.constant 0 : index
    %c0_7 = arith.constant 0 : index
    %6 = vector.load %arg4[%c0_5, %c0_6, %c0_7] : memref<1x1x128xf32, #tpu.memory_space<vmem>>, vector<1x1x128xf32>
    %7 = vector.shape_cast %6 : vector<1x1x128xf32> to vector<1x128xf32>
    %cst_8 = arith.constant 6.250000e-02 : f32
    %8 = vector.broadcast %cst_8 : f32 to vector<1x128xf32>
    %9 = arith.mulf %7, %8 : vector<1x128xf32>
    %10 = arith.mulf %5, %5 : vector<1x128xf32>
    %11 = arith.subf %9, %10 : vector<1x128xf32>
    %cst_9 = arith.constant 0.000000e+00 : f32
    %12 = vector.broadcast %cst_9 : f32 to vector<1x128xf32>
    %13 = arith.maximumf %11, %12 : vector<1x128xf32>
    %c0_10 = arith.constant 0 : index
    %c0_11 = arith.constant 0 : index
    %14 = vector.load %arg5[%c0_10, %c0_11] : memref<1x128xf32, #tpu.memory_space<vmem>>, vector<1x128xf32>
    %cst_12 = arith.constant 9.99999974E-6 : f32
    %15 = vector.broadcast %cst_12 : f32 to vector<1x128xf32>
    %16 = arith.addf %13, %15 : vector<1x128xf32>
    %17 = math.rsqrt %16 : vector<1x128xf32>
    %18 = arith.mulf %14, %17 : vector<1x128xf32>
    %c0_13 = arith.constant 0 : index
    %c0_14 = arith.constant 0 : index
    %19 = vector.load %arg6[%c0_13, %c0_14] : memref<1x128xf32, #tpu.memory_space<vmem>>, vector<1x128xf32>
    %20 = arith.mulf %5, %18 : vector<1x128xf32>
    %21 = arith.subf %19, %20 : vector<1x128xf32>
    %22 = vector.broadcast %18 : vector<1x128xf32> to vector<16x128xf32>
    %23 = arith.mulf %1, %22 : vector<16x128xf32>
    %24 = vector.broadcast %21 : vector<1x128xf32> to vector<16x128xf32>
    %25 = arith.addf %23, %24 : vector<16x128xf32>
    %cst_15 = arith.constant 0.000000e+00 : f32
    %26 = vector.broadcast %cst_15 : f32 to vector<16x128xf32>
    %27 = arith.maximumf %25, %26 : vector<16x128xf32>
    %c0_16 = arith.constant 0 : index
    %c0_17 = arith.constant 0 : index
    %c0_18 = arith.constant 0 : index
    %28 = vector.load %arg7[%c0_16, %c0_17, %c0_18] : memref<1x16x128xf32, #tpu.memory_space<vmem>>, vector<1x16x128xf32>
    %29 = vector.shape_cast %28 : vector<1x16x128xf32> to vector<16x128xf32>
    %30 = vector.shape_cast %27 : vector<16x128xf32> to vector<1x16x128xf32>
    tpu.vector_store %arg7[%c0_16, %c0_17, %c0_18], %30 {strides = array<i32>} : memref<1x16x128xf32, #tpu.memory_space<vmem>>, vector<1x16x128xf32>,
    return
  }
  func.func @transform_0(%arg0: i32, %arg1: i32) -> (i32, i32, i32) {
    %c0_i32 = arith.constant 0 : i32
    %c0_i32_0 = arith.constant 0 : i32
    return %arg0, %arg1, %c0_i32 : i32, i32, i32
  }
  func.func @transform_1(%arg0: i32, %arg1: i32) -> (i32, i32, i32) {
    %c0_i32 = arith.constant 0 : i32
    %c0_i32_0 = arith.constant 0 : i32
    %c0_i32_1 = arith.constant 0 : i32
    return %arg0, %c0_i32, %c0_i32_0 : i32, i32, i32
  }
  func.func @transform_2(%arg0: i32, %arg1: i32) -> (i32, i32, i32) {
    %c0_i32 = arith.constant 0 : i32
    %c0_i32_0 = arith.constant 0 : i32
    %c0_i32_1 = arith.constant 0 : i32
    return %arg0, %c0_i32, %c0_i32_0 : i32, i32, i32
  }
  func.func @transform_3(%arg0: i32, %arg1: i32) -> (i32, i32) {
    %c0_i32 = arith.constant 0 : i32
    %c0_i32_0 = arith.constant 0 : i32
    %c0_i32_1 = arith.constant 0 : i32
    return %c0_i32, %c0_i32_0 : i32, i32
  }
  func.func @transform_4(%arg0: i32, %arg1: i32) -> (i32, i32) {
    %c0_i32 = arith.constant 0 : i32
    %c0_i32_0 = arith.constant 0 : i32
    %c0_i32_1 = arith.constant 0 : i32
    return %c0_i32, %c0_i32_0 : i32, i32
  }
  func.func @transform_5(%arg0: i32, %arg1: i32) -> (i32, i32, i32) {
    %c0_i32 = arith.constant 0 : i32
    %c0_i32_0 = arith.constant 0 : i32
    return %arg0, %arg1, %c0_i32 : i32, i32, i32
  }
}

module attributes {stable_mosaic.version = 11 : i64} {
  func.func @_conv_kernel(%arg0: i32, %arg1: i32, %arg2: memref<1x16x1152xbf16, #tpu.memory_space<vmem>>, %arg3: memref<1152x128xbf16, #tpu.memory_space<vmem>>, %arg4: memref<1x128xf32, #tpu.memory_space<vmem>>, %arg5: memref<1x16x128xf32, #tpu.memory_space<vmem>>, %arg6: memref<1x1x128xf32, #tpu.memory_space<vmem>>, %arg7: memref<1x1x128xf32, #tpu.memory_space<vmem>>) attributes {dimension_semantics = [#tpu.dimension_semantics<parallel>, #tpu.dimension_semantics<arbitrary>], iteration_bounds = array<i64: 2, 1>, scalar_prefetch = 0 : i64, scratch_operands = 0 : i64, tpu.core_type = #tpu.core_type<tc>, window_params = [{transform_indices = @transform_0, window_bounds = array<i64: 1, 16, 1152>}, {pipeline_mode = #tpu.pipeline_mode<synchronous>, transform_indices = @transform_1, window_bounds = array<i64: 1152, 128>}, {pipeline_mode = #tpu.pipeline_mode<synchronous>, transform_indices = @transform_2, window_bounds = array<i64: 1, 128>}, {transform_indices = @transform_3, window_bounds = array<i64: 1, 16, 128>}, {transform_indices = @transform_4, window_bounds = array<i64: 1, 1, 128>}, {transform_indices = @transform_5, window_bounds = array<i64: 1, 1, 128>}]} {
    %c0_i32 = arith.constant 0 : i32
    %0 = arith.cmpi eq, %arg1, %c0_i32 : i32
    %1 = arith.extui %0 : i1 to i32
    %c0_i32_0 = arith.constant 0 : i32
    %2 = arith.cmpi ne, %1, %c0_i32_0 : i32
    scf.if %2 {
      %cst_24 = arith.constant 0.000000e+00 : f32
      %30 = vector.broadcast %cst_24 : f32 to vector<1x1x128xf32>
      %c0_25 = arith.constant 0 : index
      %c0_26 = arith.constant 0 : index
      %c0_27 = arith.constant 0 : index
      %31 = vector.load %arg6[%c0_25, %c0_26, %c0_27] : memref<1x1x128xf32, #tpu.memory_space<vmem>>, vector<1x1x128xf32>
      tpu.vector_store %arg6[%c0_25, %c0_26, %c0_27], %30 {strides = array<i32>} : memref<1x1x128xf32, #tpu.memory_space<vmem>>, vector<1x1x128xf32>,
      %cst_28 = arith.constant 0.000000e+00 : f32
      %32 = vector.broadcast %cst_28 : f32 to vector<1x1x128xf32>
      %c0_29 = arith.constant 0 : index
      %c0_30 = arith.constant 0 : index
      %c0_31 = arith.constant 0 : index
      %33 = vector.load %arg7[%c0_29, %c0_30, %c0_31] : memref<1x1x128xf32, #tpu.memory_space<vmem>>, vector<1x1x128xf32>
      tpu.vector_store %arg7[%c0_29, %c0_30, %c0_31], %32 {strides = array<i32>} : memref<1x1x128xf32, #tpu.memory_space<vmem>>, vector<1x1x128xf32>,
    } else {
    }
    %c0 = arith.constant 0 : index
    %c0_1 = arith.constant 0 : index
    %c0_2 = arith.constant 0 : index
    %3 = vector.load %arg2[%c0, %c0_1, %c0_2] : memref<1x16x1152xbf16, #tpu.memory_space<vmem>>, vector<1x16x1152xbf16>
    %4 = vector.shape_cast %3 : vector<1x16x1152xbf16> to vector<16x1152xbf16>
    %c0_3 = arith.constant 0 : index
    %c0_4 = arith.constant 0 : index
    %5 = vector.load %arg3[%c0_3, %c0_4] : memref<1152x128xbf16, #tpu.memory_space<vmem>>, vector<1152x128xbf16>
    %cst = arith.constant dense<0.000000e+00> : vector<16x128xf32>
    %6 = tpu.matmul %4, %5, %cst {dimension_numbers = #tpu.dot_dimension_numbers<[1], [0], [0], [1], [0, 0, 1, 1], [], []>} : vector<16x1152xbf16>, vector<1152x128xbf16>, vector<16x128xf32> -> vector<16x128xf32>
    %c0_5 = arith.constant 0 : index
    %c0_6 = arith.constant 0 : index
    %7 = vector.load %arg4[%c0_5, %c0_6] : memref<1x128xf32, #tpu.memory_space<vmem>>, vector<1x128xf32>
    %8 = vector.broadcast %7 : vector<1x128xf32> to vector<16x128xf32>
    %9 = arith.addf %6, %8 : vector<16x128xf32>
    %c0_7 = arith.constant 0 : index
    %c0_8 = arith.constant 0 : index
    %c0_9 = arith.constant 0 : index
    %10 = vector.load %arg5[%c0_7, %c0_8, %c0_9] : memref<1x16x128xf32, #tpu.memory_space<vmem>>, vector<1x16x128xf32>
    %11 = vector.shape_cast %10 : vector<1x16x128xf32> to vector<16x128xf32>
    %12 = vector.shape_cast %9 : vector<16x128xf32> to vector<1x16x128xf32>
    tpu.vector_store %arg5[%c0_7, %c0_8, %c0_9], %12 {strides = array<i32>} : memref<1x16x128xf32, #tpu.memory_space<vmem>>, vector<1x16x128xf32>,
    %c0_10 = arith.constant 0 : index
    %c0_11 = arith.constant 0 : index
    %c0_12 = arith.constant 0 : index
    %13 = vector.load %arg6[%c0_10, %c0_11, %c0_12] : memref<1x1x128xf32, #tpu.memory_space<vmem>>, vector<1x1x128xf32>
    %14 = vector.shape_cast %13 : vector<1x1x128xf32> to vector<1x128xf32>
    %cst_13 = arith.constant dense<0.000000e+00> : vector<128xf32>
    %15 = vector.multi_reduction <add>, %9, %cst_13 [0] : vector<16x128xf32> to vector<128xf32>
    %16 = vector.shape_cast %15 : vector<128xf32> to vector<1x128xf32>
    %17 = arith.addf %14, %16 : vector<1x128xf32>
    %c0_14 = arith.constant 0 : index
    %c0_15 = arith.constant 0 : index
    %c0_16 = arith.constant 0 : index
    %18 = vector.load %arg6[%c0_14, %c0_15, %c0_16] : memref<1x1x128xf32, #tpu.memory_space<vmem>>, vector<1x1x128xf32>
    %19 = vector.shape_cast %18 : vector<1x1x128xf32> to vector<1x128xf32>
    %20 = vector.shape_cast %17 : vector<1x128xf32> to vector<1x1x128xf32>
    tpu.vector_store %arg6[%c0_14, %c0_15, %c0_16], %20 {strides = array<i32>} : memref<1x1x128xf32, #tpu.memory_space<vmem>>, vector<1x1x128xf32>,
    %c0_17 = arith.constant 0 : index
    %c0_18 = arith.constant 0 : index
    %c0_19 = arith.constant 0 : index
    %21 = vector.load %arg7[%c0_17, %c0_18, %c0_19] : memref<1x1x128xf32, #tpu.memory_space<vmem>>, vector<1x1x128xf32>
    %22 = vector.shape_cast %21 : vector<1x1x128xf32> to vector<1x128xf32>
    %23 = arith.mulf %9, %9 : vector<16x128xf32>
    %cst_20 = arith.constant dense<0.000000e+00> : vector<128xf32>
    %24 = vector.multi_reduction <add>, %23, %cst_20 [0] : vector<16x128xf32> to vector<128xf32>
    %25 = vector.shape_cast %24 : vector<128xf32> to vector<1x128xf32>
    %26 = arith.addf %22, %25 : vector<1x128xf32>
    %c0_21 = arith.constant 0 : index
    %c0_22 = arith.constant 0 : index
    %c0_23 = arith.constant 0 : index
    %27 = vector.load %arg7[%c0_21, %c0_22, %c0_23] : memref<1x1x128xf32, #tpu.memory_space<vmem>>, vector<1x1x128xf32>
    %28 = vector.shape_cast %27 : vector<1x1x128xf32> to vector<1x128xf32>
    %29 = vector.shape_cast %26 : vector<1x128xf32> to vector<1x1x128xf32>
    tpu.vector_store %arg7[%c0_21, %c0_22, %c0_23], %29 {strides = array<i32>} : memref<1x1x128xf32, #tpu.memory_space<vmem>>, vector<1x1x128xf32>,
    return
  }
  func.func @transform_0(%arg0: i32, %arg1: i32) -> (i32, i32, i32) {
    %c0_i32 = arith.constant 0 : i32
    %c0_i32_0 = arith.constant 0 : i32
    return %arg0, %arg1, %c0_i32 : i32, i32, i32
  }
  func.func @transform_1(%arg0: i32, %arg1: i32) -> (i32, i32) {
    %c0_i32 = arith.constant 0 : i32
    %c0_i32_0 = arith.constant 0 : i32
    %c0_i32_1 = arith.constant 0 : i32
    return %c0_i32, %c0_i32_0 : i32, i32
  }
  func.func @transform_2(%arg0: i32, %arg1: i32) -> (i32, i32) {
    %c0_i32 = arith.constant 0 : i32
    %c0_i32_0 = arith.constant 0 : i32
    %c0_i32_1 = arith.constant 0 : i32
    return %c0_i32, %c0_i32_0 : i32, i32
  }
  func.func @transform_3(%arg0: i32, %arg1: i32) -> (i32, i32, i32) {
    %c0_i32 = arith.constant 0 : i32
    %c0_i32_0 = arith.constant 0 : i32
    return %arg0, %arg1, %c0_i32 : i32, i32, i32
  }
  func.func @transform_4(%arg0: i32, %arg1: i32) -> (i32, i32, i32) {
    %c0_i32 = arith.constant 0 : i32
    %c0_i32_0 = arith.constant 0 : i32
    %c0_i32_1 = arith.constant 0 : i32
    return %arg0, %c0_i32, %c0_i32_0 : i32, i32, i32
  }
  func.func @transform_5(%arg0: i32, %arg1: i32) -> (i32, i32, i32) {
    %c0_i32 = arith.constant 0 : i32
    %c0_i32_0 = arith.constant 0 : i32
    %c0_i32_1 = arith.constant 0 : i32
    return %arg0, %c0_i32, %c0_i32_0 : i32, i32, i32
  }
}

module attributes {stable_mosaic.version = 11 : i64} {
  func.func @_norm_act_kernel(%arg0: i32, %arg1: i32, %arg2: memref<1x16x128xf32, #tpu.memory_space<vmem>>, %arg3: memref<1x1x128xf32, #tpu.memory_space<vmem>>, %arg4: memref<1x1x128xf32, #tpu.memory_space<vmem>>, %arg5: memref<1x128xf32, #tpu.memory_space<vmem>>, %arg6: memref<1x128xf32, #tpu.memory_space<vmem>>, %arg7: memref<1x16x128xf32, #tpu.memory_space<vmem>>, %arg8: memref<1x16x128xf32, #tpu.memory_space<vmem>>) attributes {dimension_semantics = [#tpu.dimension_semantics<parallel>, #tpu.dimension_semantics<parallel>], iteration_bounds = array<i64: 2, 1>, scalar_prefetch = 0 : i64, scratch_operands = 0 : i64, tpu.core_type = #tpu.core_type<tc>, window_params = [{transform_indices = @transform_0, window_bounds = array<i64: 1, 16, 128>}, {transform_indices = @transform_1, window_bounds = array<i64: 1, 1, 128>}, {transform_indices = @transform_2, window_bounds = array<i64: 1, 1, 128>}, {pipeline_mode = #tpu.pipeline_mode<synchronous>, transform_indices = @transform_3, window_bounds = array<i64: 1, 128>}, {pipeline_mode = #tpu.pipeline_mode<synchronous>, transform_indices = @transform_4, window_bounds = array<i64: 1, 128>}, {transform_indices = @transform_5, window_bounds = array<i64: 1, 16, 128>}, {transform_indices = @transform_6, window_bounds = array<i64: 1, 16, 128>}]} {
    %c0 = arith.constant 0 : index
    %c0_0 = arith.constant 0 : index
    %c0_1 = arith.constant 0 : index
    %0 = vector.load %arg2[%c0, %c0_0, %c0_1] : memref<1x16x128xf32, #tpu.memory_space<vmem>>, vector<1x16x128xf32>
    %1 = vector.shape_cast %0 : vector<1x16x128xf32> to vector<16x128xf32>
    %c0_2 = arith.constant 0 : index
    %c0_3 = arith.constant 0 : index
    %c0_4 = arith.constant 0 : index
    %2 = vector.load %arg3[%c0_2, %c0_3, %c0_4] : memref<1x1x128xf32, #tpu.memory_space<vmem>>, vector<1x1x128xf32>
    %3 = vector.shape_cast %2 : vector<1x1x128xf32> to vector<1x128xf32>
    %cst = arith.constant 6.250000e-02 : f32
    %4 = vector.broadcast %cst : f32 to vector<1x128xf32>
    %5 = arith.mulf %3, %4 : vector<1x128xf32>
    %c0_5 = arith.constant 0 : index
    %c0_6 = arith.constant 0 : index
    %c0_7 = arith.constant 0 : index
    %6 = vector.load %arg4[%c0_5, %c0_6, %c0_7] : memref<1x1x128xf32, #tpu.memory_space<vmem>>, vector<1x1x128xf32>
    %7 = vector.shape_cast %6 : vector<1x1x128xf32> to vector<1x128xf32>
    %cst_8 = arith.constant 6.250000e-02 : f32
    %8 = vector.broadcast %cst_8 : f32 to vector<1x128xf32>
    %9 = arith.mulf %7, %8 : vector<1x128xf32>
    %10 = arith.mulf %5, %5 : vector<1x128xf32>
    %11 = arith.subf %9, %10 : vector<1x128xf32>
    %cst_9 = arith.constant 0.000000e+00 : f32
    %12 = vector.broadcast %cst_9 : f32 to vector<1x128xf32>
    %13 = arith.maximumf %11, %12 : vector<1x128xf32>
    %c0_10 = arith.constant 0 : index
    %c0_11 = arith.constant 0 : index
    %14 = vector.load %arg5[%c0_10, %c0_11] : memref<1x128xf32, #tpu.memory_space<vmem>>, vector<1x128xf32>
    %cst_12 = arith.constant 9.99999974E-6 : f32
    %15 = vector.broadcast %cst_12 : f32 to vector<1x128xf32>
    %16 = arith.addf %13, %15 : vector<1x128xf32>
    %17 = math.rsqrt %16 : vector<1x128xf32>
    %18 = arith.mulf %14, %17 : vector<1x128xf32>
    %c0_13 = arith.constant 0 : index
    %c0_14 = arith.constant 0 : index
    %19 = vector.load %arg6[%c0_13, %c0_14] : memref<1x128xf32, #tpu.memory_space<vmem>>, vector<1x128xf32>
    %20 = arith.mulf %5, %18 : vector<1x128xf32>
    %21 = arith.subf %19, %20 : vector<1x128xf32>
    %22 = vector.broadcast %18 : vector<1x128xf32> to vector<16x128xf32>
    %23 = arith.mulf %1, %22 : vector<16x128xf32>
    %24 = vector.broadcast %21 : vector<1x128xf32> to vector<16x128xf32>
    %25 = arith.addf %23, %24 : vector<16x128xf32>
    %c0_15 = arith.constant 0 : index
    %c0_16 = arith.constant 0 : index
    %c0_17 = arith.constant 0 : index
    %26 = vector.load %arg7[%c0_15, %c0_16, %c0_17] : memref<1x16x128xf32, #tpu.memory_space<vmem>>, vector<1x16x128xf32>
    %27 = vector.shape_cast %26 : vector<1x16x128xf32> to vector<16x128xf32>
    %28 = arith.addf %25, %27 : vector<16x128xf32>
    %c0_18 = arith.constant 0 : index
    %c0_19 = arith.constant 0 : index
    %c0_20 = arith.constant 0 : index
    %29 = vector.load %arg8[%c0_18, %c0_19, %c0_20] : memref<1x16x128xf32, #tpu.memory_space<vmem>>, vector<1x16x128xf32>
    %30 = vector.shape_cast %29 : vector<1x16x128xf32> to vector<16x128xf32>
    %31 = vector.shape_cast %28 : vector<16x128xf32> to vector<1x16x128xf32>
    tpu.vector_store %arg8[%c0_18, %c0_19, %c0_20], %31 {strides = array<i32>} : memref<1x16x128xf32, #tpu.memory_space<vmem>>, vector<1x16x128xf32>,
    return
  }
  func.func @transform_0(%arg0: i32, %arg1: i32) -> (i32, i32, i32) {
    %c0_i32 = arith.constant 0 : i32
    %c0_i32_0 = arith.constant 0 : i32
    return %arg0, %arg1, %c0_i32 : i32, i32, i32
  }
  func.func @transform_1(%arg0: i32, %arg1: i32) -> (i32, i32, i32) {
    %c0_i32 = arith.constant 0 : i32
    %c0_i32_0 = arith.constant 0 : i32
    %c0_i32_1 = arith.constant 0 : i32
    return %arg0, %c0_i32, %c0_i32_0 : i32, i32, i32
  }
  func.func @transform_2(%arg0: i32, %arg1: i32) -> (i32, i32, i32) {
    %c0_i32 = arith.constant 0 : i32
    %c0_i32_0 = arith.constant 0 : i32
    %c0_i32_1 = arith.constant 0 : i32
    return %arg0, %c0_i32, %c0_i32_0 : i32, i32, i32
  }
  func.func @transform_3(%arg0: i32, %arg1: i32) -> (i32, i32) {
    %c0_i32 = arith.constant 0 : i32
    %c0_i32_0 = arith.constant 0 : i32
    %c0_i32_1 = arith.constant 0 : i32
    return %c0_i32, %c0_i32_0 : i32, i32
  }
  func.func @transform_4(%arg0: i32, %arg1: i32) -> (i32, i32) {
    %c0_i32 = arith.constant 0 : i32
    %c0_i32_0 = arith.constant 0 : i32
    %c0_i32_1 = arith.constant 0 : i32
    return %c0_i32, %c0_i32_0 : i32, i32
  }
  func.func @transform_5(%arg0: i32, %arg1: i32) -> (i32, i32, i32) {
    %c0_i32 = arith.constant 0 : i32
    %c0_i32_0 = arith.constant 0 : i32
    return %arg0, %arg1, %c0_i32 : i32, i32, i32
  }
  func.func @transform_6(%arg0: i32, %arg1: i32) -> (i32, i32, i32) {
    %c0_i32 = arith.constant 0 : i32
    %c0_i32_0 = arith.constant 0 : i32
    return %arg0, %arg1, %c0_i32 : i32, i32, i32
  }
}

module attributes {stable_mosaic.version = 11 : i64} {
  func.func @_conv_kernel(%arg0: i32, %arg1: i32, %arg2: memref<1x64x1152xbf16, #tpu.memory_space<vmem>>, %arg3: memref<1152x64xbf16, #tpu.memory_space<vmem>>, %arg4: memref<1x64xf32, #tpu.memory_space<vmem>>, %arg5: memref<1x64x64xf32, #tpu.memory_space<vmem>>, %arg6: memref<1x1x64xf32, #tpu.memory_space<vmem>>, %arg7: memref<1x1x64xf32, #tpu.memory_space<vmem>>) attributes {dimension_semantics = [#tpu.dimension_semantics<parallel>, #tpu.dimension_semantics<arbitrary>], iteration_bounds = array<i64: 2, 1>, scalar_prefetch = 0 : i64, scratch_operands = 0 : i64, tpu.core_type = #tpu.core_type<tc>, window_params = [{transform_indices = @transform_0, window_bounds = array<i64: 1, 64, 1152>}, {pipeline_mode = #tpu.pipeline_mode<synchronous>, transform_indices = @transform_1, window_bounds = array<i64: 1152, 64>}, {pipeline_mode = #tpu.pipeline_mode<synchronous>, transform_indices = @transform_2, window_bounds = array<i64: 1, 64>}, {transform_indices = @transform_3, window_bounds = array<i64: 1, 64, 64>}, {transform_indices = @transform_4, window_bounds = array<i64: 1, 1, 64>}, {transform_indices = @transform_5, window_bounds = array<i64: 1, 1, 64>}]} {
    %c0_i32 = arith.constant 0 : i32
    %0 = arith.cmpi eq, %arg1, %c0_i32 : i32
    %1 = arith.extui %0 : i1 to i32
    %c0_i32_0 = arith.constant 0 : i32
    %2 = arith.cmpi ne, %1, %c0_i32_0 : i32
    scf.if %2 {
      %cst_24 = arith.constant 0.000000e+00 : f32
      %30 = vector.broadcast %cst_24 : f32 to vector<1x1x64xf32>
      %c0_25 = arith.constant 0 : index
      %c0_26 = arith.constant 0 : index
      %c0_27 = arith.constant 0 : index
      %31 = vector.load %arg6[%c0_25, %c0_26, %c0_27] : memref<1x1x64xf32, #tpu.memory_space<vmem>>, vector<1x1x64xf32>
      tpu.vector_store %arg6[%c0_25, %c0_26, %c0_27], %30 {strides = array<i32>} : memref<1x1x64xf32, #tpu.memory_space<vmem>>, vector<1x1x64xf32>,
      %cst_28 = arith.constant 0.000000e+00 : f32
      %32 = vector.broadcast %cst_28 : f32 to vector<1x1x64xf32>
      %c0_29 = arith.constant 0 : index
      %c0_30 = arith.constant 0 : index
      %c0_31 = arith.constant 0 : index
      %33 = vector.load %arg7[%c0_29, %c0_30, %c0_31] : memref<1x1x64xf32, #tpu.memory_space<vmem>>, vector<1x1x64xf32>
      tpu.vector_store %arg7[%c0_29, %c0_30, %c0_31], %32 {strides = array<i32>} : memref<1x1x64xf32, #tpu.memory_space<vmem>>, vector<1x1x64xf32>,
    } else {
    }
    %c0 = arith.constant 0 : index
    %c0_1 = arith.constant 0 : index
    %c0_2 = arith.constant 0 : index
    %3 = vector.load %arg2[%c0, %c0_1, %c0_2] : memref<1x64x1152xbf16, #tpu.memory_space<vmem>>, vector<1x64x1152xbf16>
    %4 = vector.shape_cast %3 : vector<1x64x1152xbf16> to vector<64x1152xbf16>
    %c0_3 = arith.constant 0 : index
    %c0_4 = arith.constant 0 : index
    %5 = vector.load %arg3[%c0_3, %c0_4] : memref<1152x64xbf16, #tpu.memory_space<vmem>>, vector<1152x64xbf16>
    %cst = arith.constant dense<0.000000e+00> : vector<64x64xf32>
    %6 = tpu.matmul %4, %5, %cst {dimension_numbers = #tpu.dot_dimension_numbers<[1], [0], [0], [1], [0, 0, 1, 1], [], []>} : vector<64x1152xbf16>, vector<1152x64xbf16>, vector<64x64xf32> -> vector<64x64xf32>
    %c0_5 = arith.constant 0 : index
    %c0_6 = arith.constant 0 : index
    %7 = vector.load %arg4[%c0_5, %c0_6] : memref<1x64xf32, #tpu.memory_space<vmem>>, vector<1x64xf32>
    %8 = vector.broadcast %7 : vector<1x64xf32> to vector<64x64xf32>
    %9 = arith.addf %6, %8 : vector<64x64xf32>
    %c0_7 = arith.constant 0 : index
    %c0_8 = arith.constant 0 : index
    %c0_9 = arith.constant 0 : index
    %10 = vector.load %arg5[%c0_7, %c0_8, %c0_9] : memref<1x64x64xf32, #tpu.memory_space<vmem>>, vector<1x64x64xf32>
    %11 = vector.shape_cast %10 : vector<1x64x64xf32> to vector<64x64xf32>
    %12 = vector.shape_cast %9 : vector<64x64xf32> to vector<1x64x64xf32>
    tpu.vector_store %arg5[%c0_7, %c0_8, %c0_9], %12 {strides = array<i32>} : memref<1x64x64xf32, #tpu.memory_space<vmem>>, vector<1x64x64xf32>,
    %c0_10 = arith.constant 0 : index
    %c0_11 = arith.constant 0 : index
    %c0_12 = arith.constant 0 : index
    %13 = vector.load %arg6[%c0_10, %c0_11, %c0_12] : memref<1x1x64xf32, #tpu.memory_space<vmem>>, vector<1x1x64xf32>
    %14 = vector.shape_cast %13 : vector<1x1x64xf32> to vector<1x64xf32>
    %cst_13 = arith.constant dense<0.000000e+00> : vector<64xf32>
    %15 = vector.multi_reduction <add>, %9, %cst_13 [0] : vector<64x64xf32> to vector<64xf32>
    %16 = vector.shape_cast %15 : vector<64xf32> to vector<1x64xf32>
    %17 = arith.addf %14, %16 : vector<1x64xf32>
    %c0_14 = arith.constant 0 : index
    %c0_15 = arith.constant 0 : index
    %c0_16 = arith.constant 0 : index
    %18 = vector.load %arg6[%c0_14, %c0_15, %c0_16] : memref<1x1x64xf32, #tpu.memory_space<vmem>>, vector<1x1x64xf32>
    %19 = vector.shape_cast %18 : vector<1x1x64xf32> to vector<1x64xf32>
    %20 = vector.shape_cast %17 : vector<1x64xf32> to vector<1x1x64xf32>
    tpu.vector_store %arg6[%c0_14, %c0_15, %c0_16], %20 {strides = array<i32>} : memref<1x1x64xf32, #tpu.memory_space<vmem>>, vector<1x1x64xf32>,
    %c0_17 = arith.constant 0 : index
    %c0_18 = arith.constant 0 : index
    %c0_19 = arith.constant 0 : index
    %21 = vector.load %arg7[%c0_17, %c0_18, %c0_19] : memref<1x1x64xf32, #tpu.memory_space<vmem>>, vector<1x1x64xf32>
    %22 = vector.shape_cast %21 : vector<1x1x64xf32> to vector<1x64xf32>
    %23 = arith.mulf %9, %9 : vector<64x64xf32>
    %cst_20 = arith.constant dense<0.000000e+00> : vector<64xf32>
    %24 = vector.multi_reduction <add>, %23, %cst_20 [0] : vector<64x64xf32> to vector<64xf32>
    %25 = vector.shape_cast %24 : vector<64xf32> to vector<1x64xf32>
    %26 = arith.addf %22, %25 : vector<1x64xf32>
    %c0_21 = arith.constant 0 : index
    %c0_22 = arith.constant 0 : index
    %c0_23 = arith.constant 0 : index
    %27 = vector.load %arg7[%c0_21, %c0_22, %c0_23] : memref<1x1x64xf32, #tpu.memory_space<vmem>>, vector<1x1x64xf32>
    %28 = vector.shape_cast %27 : vector<1x1x64xf32> to vector<1x64xf32>
    %29 = vector.shape_cast %26 : vector<1x64xf32> to vector<1x1x64xf32>
    tpu.vector_store %arg7[%c0_21, %c0_22, %c0_23], %29 {strides = array<i32>} : memref<1x1x64xf32, #tpu.memory_space<vmem>>, vector<1x1x64xf32>,
    return
  }
  func.func @transform_0(%arg0: i32, %arg1: i32) -> (i32, i32, i32) {
    %c0_i32 = arith.constant 0 : i32
    %c0_i32_0 = arith.constant 0 : i32
    return %arg0, %arg1, %c0_i32 : i32, i32, i32
  }
  func.func @transform_1(%arg0: i32, %arg1: i32) -> (i32, i32) {
    %c0_i32 = arith.constant 0 : i32
    %c0_i32_0 = arith.constant 0 : i32
    %c0_i32_1 = arith.constant 0 : i32
    return %c0_i32, %c0_i32_0 : i32, i32
  }
  func.func @transform_2(%arg0: i32, %arg1: i32) -> (i32, i32) {
    %c0_i32 = arith.constant 0 : i32
    %c0_i32_0 = arith.constant 0 : i32
    %c0_i32_1 = arith.constant 0 : i32
    return %c0_i32, %c0_i32_0 : i32, i32
  }
  func.func @transform_3(%arg0: i32, %arg1: i32) -> (i32, i32, i32) {
    %c0_i32 = arith.constant 0 : i32
    %c0_i32_0 = arith.constant 0 : i32
    return %arg0, %arg1, %c0_i32 : i32, i32, i32
  }
  func.func @transform_4(%arg0: i32, %arg1: i32) -> (i32, i32, i32) {
    %c0_i32 = arith.constant 0 : i32
    %c0_i32_0 = arith.constant 0 : i32
    %c0_i32_1 = arith.constant 0 : i32
    return %arg0, %c0_i32, %c0_i32_0 : i32, i32, i32
  }
  func.func @transform_5(%arg0: i32, %arg1: i32) -> (i32, i32, i32) {
    %c0_i32 = arith.constant 0 : i32
    %c0_i32_0 = arith.constant 0 : i32
    %c0_i32_1 = arith.constant 0 : i32
    return %arg0, %c0_i32, %c0_i32_0 : i32, i32, i32
  }
}

module attributes {stable_mosaic.version = 11 : i64} {
  func.func @_conv_kernel(%arg0: i32, %arg1: i32, %arg2: memref<1x256x640xbf16, #tpu.memory_space<vmem>>, %arg3: memref<640x32xbf16, #tpu.memory_space<vmem>>, %arg4: memref<1x32xf32, #tpu.memory_space<vmem>>, %arg5: memref<1x256x32xf32, #tpu.memory_space<vmem>>, %arg6: memref<1x1x32xf32, #tpu.memory_space<vmem>>, %arg7: memref<1x1x32xf32, #tpu.memory_space<vmem>>) attributes {dimension_semantics = [#tpu.dimension_semantics<parallel>, #tpu.dimension_semantics<arbitrary>], iteration_bounds = array<i64: 2, 1>, scalar_prefetch = 0 : i64, scratch_operands = 0 : i64, tpu.core_type = #tpu.core_type<tc>, window_params = [{transform_indices = @transform_0, window_bounds = array<i64: 1, 256, 640>}, {pipeline_mode = #tpu.pipeline_mode<synchronous>, transform_indices = @transform_1, window_bounds = array<i64: 640, 32>}, {pipeline_mode = #tpu.pipeline_mode<synchronous>, transform_indices = @transform_2, window_bounds = array<i64: 1, 32>}, {transform_indices = @transform_3, window_bounds = array<i64: 1, 256, 32>}, {transform_indices = @transform_4, window_bounds = array<i64: 1, 1, 32>}, {transform_indices = @transform_5, window_bounds = array<i64: 1, 1, 32>}]} {
    %c0_i32 = arith.constant 0 : i32
    %0 = arith.cmpi eq, %arg1, %c0_i32 : i32
    %1 = arith.extui %0 : i1 to i32
    %c0_i32_0 = arith.constant 0 : i32
    %2 = arith.cmpi ne, %1, %c0_i32_0 : i32
    scf.if %2 {
      %cst_24 = arith.constant 0.000000e+00 : f32
      %30 = vector.broadcast %cst_24 : f32 to vector<1x1x32xf32>
      %c0_25 = arith.constant 0 : index
      %c0_26 = arith.constant 0 : index
      %c0_27 = arith.constant 0 : index
      %31 = vector.load %arg6[%c0_25, %c0_26, %c0_27] : memref<1x1x32xf32, #tpu.memory_space<vmem>>, vector<1x1x32xf32>
      tpu.vector_store %arg6[%c0_25, %c0_26, %c0_27], %30 {strides = array<i32>} : memref<1x1x32xf32, #tpu.memory_space<vmem>>, vector<1x1x32xf32>,
      %cst_28 = arith.constant 0.000000e+00 : f32
      %32 = vector.broadcast %cst_28 : f32 to vector<1x1x32xf32>
      %c0_29 = arith.constant 0 : index
      %c0_30 = arith.constant 0 : index
      %c0_31 = arith.constant 0 : index
      %33 = vector.load %arg7[%c0_29, %c0_30, %c0_31] : memref<1x1x32xf32, #tpu.memory_space<vmem>>, vector<1x1x32xf32>
      tpu.vector_store %arg7[%c0_29, %c0_30, %c0_31], %32 {strides = array<i32>} : memref<1x1x32xf32, #tpu.memory_space<vmem>>, vector<1x1x32xf32>,
    } else {
    }
    %c0 = arith.constant 0 : index
    %c0_1 = arith.constant 0 : index
    %c0_2 = arith.constant 0 : index
    %3 = vector.load %arg2[%c0, %c0_1, %c0_2] : memref<1x256x640xbf16, #tpu.memory_space<vmem>>, vector<1x256x640xbf16>
    %4 = vector.shape_cast %3 : vector<1x256x640xbf16> to vector<256x640xbf16>
    %c0_3 = arith.constant 0 : index
    %c0_4 = arith.constant 0 : index
    %5 = vector.load %arg3[%c0_3, %c0_4] : memref<640x32xbf16, #tpu.memory_space<vmem>>, vector<640x32xbf16>
    %cst = arith.constant dense<0.000000e+00> : vector<256x32xf32>
    %6 = tpu.matmul %4, %5, %cst {dimension_numbers = #tpu.dot_dimension_numbers<[1], [0], [0], [1], [0, 0, 1, 1], [], []>} : vector<256x640xbf16>, vector<640x32xbf16>, vector<256x32xf32> -> vector<256x32xf32>
    %c0_5 = arith.constant 0 : index
    %c0_6 = arith.constant 0 : index
    %7 = vector.load %arg4[%c0_5, %c0_6] : memref<1x32xf32, #tpu.memory_space<vmem>>, vector<1x32xf32>
    %8 = vector.broadcast %7 : vector<1x32xf32> to vector<256x32xf32>
    %9 = arith.addf %6, %8 : vector<256x32xf32>
    %c0_7 = arith.constant 0 : index
    %c0_8 = arith.constant 0 : index
    %c0_9 = arith.constant 0 : index
    %10 = vector.load %arg5[%c0_7, %c0_8, %c0_9] : memref<1x256x32xf32, #tpu.memory_space<vmem>>, vector<1x256x32xf32>
    %11 = vector.shape_cast %10 : vector<1x256x32xf32> to vector<256x32xf32>
    %12 = vector.shape_cast %9 : vector<256x32xf32> to vector<1x256x32xf32>
    tpu.vector_store %arg5[%c0_7, %c0_8, %c0_9], %12 {strides = array<i32>} : memref<1x256x32xf32, #tpu.memory_space<vmem>>, vector<1x256x32xf32>,
    %c0_10 = arith.constant 0 : index
    %c0_11 = arith.constant 0 : index
    %c0_12 = arith.constant 0 : index
    %13 = vector.load %arg6[%c0_10, %c0_11, %c0_12] : memref<1x1x32xf32, #tpu.memory_space<vmem>>, vector<1x1x32xf32>
    %14 = vector.shape_cast %13 : vector<1x1x32xf32> to vector<1x32xf32>
    %cst_13 = arith.constant dense<0.000000e+00> : vector<32xf32>
    %15 = vector.multi_reduction <add>, %9, %cst_13 [0] : vector<256x32xf32> to vector<32xf32>
    %16 = vector.shape_cast %15 : vector<32xf32> to vector<1x32xf32>
    %17 = arith.addf %14, %16 : vector<1x32xf32>
    %c0_14 = arith.constant 0 : index
    %c0_15 = arith.constant 0 : index
    %c0_16 = arith.constant 0 : index
    %18 = vector.load %arg6[%c0_14, %c0_15, %c0_16] : memref<1x1x32xf32, #tpu.memory_space<vmem>>, vector<1x1x32xf32>
    %19 = vector.shape_cast %18 : vector<1x1x32xf32> to vector<1x32xf32>
    %20 = vector.shape_cast %17 : vector<1x32xf32> to vector<1x1x32xf32>
    tpu.vector_store %arg6[%c0_14, %c0_15, %c0_16], %20 {strides = array<i32>} : memref<1x1x32xf32, #tpu.memory_space<vmem>>, vector<1x1x32xf32>,
    %c0_17 = arith.constant 0 : index
    %c0_18 = arith.constant 0 : index
    %c0_19 = arith.constant 0 : index
    %21 = vector.load %arg7[%c0_17, %c0_18, %c0_19] : memref<1x1x32xf32, #tpu.memory_space<vmem>>, vector<1x1x32xf32>
    %22 = vector.shape_cast %21 : vector<1x1x32xf32> to vector<1x32xf32>
    %23 = arith.mulf %9, %9 : vector<256x32xf32>
    %cst_20 = arith.constant dense<0.000000e+00> : vector<32xf32>
    %24 = vector.multi_reduction <add>, %23, %cst_20 [0] : vector<256x32xf32> to vector<32xf32>
    %25 = vector.shape_cast %24 : vector<32xf32> to vector<1x32xf32>
    %26 = arith.addf %22, %25 : vector<1x32xf32>
    %c0_21 = arith.constant 0 : index
    %c0_22 = arith.constant 0 : index
    %c0_23 = arith.constant 0 : index
    %27 = vector.load %arg7[%c0_21, %c0_22, %c0_23] : memref<1x1x32xf32, #tpu.memory_space<vmem>>, vector<1x1x32xf32>
    %28 = vector.shape_cast %27 : vector<1x1x32xf32> to vector<1x32xf32>
    %29 = vector.shape_cast %26 : vector<1x32xf32> to vector<1x1x32xf32>
    tpu.vector_store %arg7[%c0_21, %c0_22, %c0_23], %29 {strides = array<i32>} : memref<1x1x32xf32, #tpu.memory_space<vmem>>, vector<1x1x32xf32>,
    return
  }
  func.func @transform_0(%arg0: i32, %arg1: i32) -> (i32, i32, i32) {
    %c0_i32 = arith.constant 0 : i32
    %c0_i32_0 = arith.constant 0 : i32
    return %arg0, %arg1, %c0_i32 : i32, i32, i32
  }
  func.func @transform_1(%arg0: i32, %arg1: i32) -> (i32, i32) {
    %c0_i32 = arith.constant 0 : i32
    %c0_i32_0 = arith.constant 0 : i32
    %c0_i32_1 = arith.constant 0 : i32
    return %c0_i32, %c0_i32_0 : i32, i32
  }
  func.func @transform_2(%arg0: i32, %arg1: i32) -> (i32, i32) {
    %c0_i32 = arith.constant 0 : i32
    %c0_i32_0 = arith.constant 0 : i32
    %c0_i32_1 = arith.constant 0 : i32
    return %c0_i32, %c0_i32_0 : i32, i32
  }
  func.func @transform_3(%arg0: i32, %arg1: i32) -> (i32, i32, i32) {
    %c0_i32 = arith.constant 0 : i32
    %c0_i32_0 = arith.constant 0 : i32
    return %arg0, %arg1, %c0_i32 : i32, i32, i32
  }
  func.func @transform_4(%arg0: i32, %arg1: i32) -> (i32, i32, i32) {
    %c0_i32 = arith.constant 0 : i32
    %c0_i32_0 = arith.constant 0 : i32
    %c0_i32_1 = arith.constant 0 : i32
    return %arg0, %c0_i32, %c0_i32_0 : i32, i32, i32
  }
  func.func @transform_5(%arg0: i32, %arg1: i32) -> (i32, i32, i32) {
    %c0_i32 = arith.constant 0 : i32
    %c0_i32_0 = arith.constant 0 : i32
    %c0_i32_1 = arith.constant 0 : i32
    return %arg0, %c0_i32, %c0_i32_0 : i32, i32, i32
  }
}

module attributes {stable_mosaic.version = 11 : i64} {
  func.func @_conv_kernel(%arg0: i32, %arg1: i32, %arg2: memref<1x256x2688xbf16, #tpu.memory_space<vmem>>, %arg3: memref<2688x3xbf16, #tpu.memory_space<vmem>>, %arg4: memref<1x3xf32, #tpu.memory_space<vmem>>, %arg5: memref<1x256x3xf32, #tpu.memory_space<vmem>>) attributes {dimension_semantics = [#tpu.dimension_semantics<parallel>, #tpu.dimension_semantics<parallel>], iteration_bounds = array<i64: 2, 1>, scalar_prefetch = 0 : i64, scratch_operands = 0 : i64, tpu.core_type = #tpu.core_type<tc>, window_params = [{transform_indices = @transform_0, window_bounds = array<i64: 1, 256, 2688>}, {pipeline_mode = #tpu.pipeline_mode<synchronous>, transform_indices = @transform_1, window_bounds = array<i64: 2688, 3>}, {pipeline_mode = #tpu.pipeline_mode<synchronous>, transform_indices = @transform_2, window_bounds = array<i64: 1, 3>}, {transform_indices = @transform_3, window_bounds = array<i64: 1, 256, 3>}]} {
    %c0 = arith.constant 0 : index
    %c0_0 = arith.constant 0 : index
    %c0_1 = arith.constant 0 : index
    %0 = vector.load %arg2[%c0, %c0_0, %c0_1] : memref<1x256x2688xbf16, #tpu.memory_space<vmem>>, vector<1x256x2688xbf16>
    %1 = vector.shape_cast %0 : vector<1x256x2688xbf16> to vector<256x2688xbf16>
    %c0_2 = arith.constant 0 : index
    %c0_3 = arith.constant 0 : index
    %2 = vector.load %arg3[%c0_2, %c0_3] : memref<2688x3xbf16, #tpu.memory_space<vmem>>, vector<2688x3xbf16>
    %cst = arith.constant dense<0.000000e+00> : vector<256x3xf32>
    %3 = tpu.matmul %1, %2, %cst {dimension_numbers = #tpu.dot_dimension_numbers<[1], [0], [0], [1], [0, 0, 1, 1], [], []>} : vector<256x2688xbf16>, vector<2688x3xbf16>, vector<256x3xf32> -> vector<256x3xf32>
    %c0_4 = arith.constant 0 : index
    %c0_5 = arith.constant 0 : index
    %4 = vector.load %arg4[%c0_4, %c0_5] : memref<1x3xf32, #tpu.memory_space<vmem>>, vector<1x3xf32>
    %5 = vector.broadcast %4 : vector<1x3xf32> to vector<256x3xf32>
    %6 = arith.addf %3, %5 : vector<256x3xf32>
    %c0_6 = arith.constant 0 : index
    %c0_7 = arith.constant 0 : index
    %c0_8 = arith.constant 0 : index
    %7 = vector.load %arg5[%c0_6, %c0_7, %c0_8] : memref<1x256x3xf32, #tpu.memory_space<vmem>>, vector<1x256x3xf32>
    %8 = vector.shape_cast %7 : vector<1x256x3xf32> to vector<256x3xf32>
    %9 = vector.shape_cast %6 : vector<256x3xf32> to vector<1x256x3xf32>
    tpu.vector_store %arg5[%c0_6, %c0_7, %c0_8], %9 {strides = array<i32>} : memref<1x256x3xf32, #tpu.memory_space<vmem>>, vector<1x256x3xf32>,
    return
  }
  func.func @transform_0(%arg0: i32, %arg1: i32) -> (i32, i32, i32) {
    %c0_i32 = arith.constant 0 : i32
    %c0_i32_0 = arith.constant 0 : i32
    return %arg0, %arg1, %c0_i32 : i32, i32, i32
  }
  func.func @transform_1(%arg0: i32, %arg1: i32) -> (i32, i32) {
    %c0_i32 = arith.constant 0 : i32
    %c0_i32_0 = arith.constant 0 : i32
    %c0_i32_1 = arith.constant 0 : i32
    return %c0_i32, %c0_i32_0 : i32, i32
  }
  func.func @transform_2(%arg0: i32, %arg1: i32) -> (i32, i32) {
    %c0_i32 = arith.constant 0 : i32
    %c0_i32_0 = arith.constant 0 : i32
    %c0_i32_1 = arith.constant 0 : i32
    return %c0_i32, %c0_i32_0 : i32, i32
  }
  func.func @transform_3(%arg0: i32, %arg1: i32) -> (i32, i32, i32) {
    %c0_i32 = arith.constant 0 : i32
    %c0_i32_0 = arith.constant 0 : i32
    return %arg0, %arg1, %c0_i32 : i32, i32, i32
  }
}

</mosaic_0001>

<bundles_post_ra>
// kernel: transform_net.22
= control target key start
LH: loop header
LB: loop body
LE: loop exit
PB: predicated region body
PF: predicated region fallthrough
CT: control target
= control target key end

     0   :  { %s677_s18 = smov 0   ;;  %s679_s19 = smov 0   ;;  %s899_s0 = inlined_call_operand.vmem [shape: f32[2,256,32], index: 0, kind: input, shape index: {}]   ;;  %s900_s1 = inlined_call_operand.vmem [shape: f32[2,1,32], index: 1, kind: input, shape index: {}]   ;;  %s901_s2 = inlined_call_operand.vmem [shape: f32[2,1,32], index: 2, kind: input, shape index: {}]   ;;  %s902_s3 = inlined_call_operand.vmem [shape: f32[1,32], index: 3, kind: input, shape index: {}]   ;;  %s903_s4 = inlined_call_operand.vmem [shape: f32[1,32], index: 4, kind: input, shape index: {}]   ;;  %s904_s5 = inlined_call_operand.vmem [shape: f32[2,256,32], index: 5, kind: output, shape index: {}]  }
   0x1   :  { %s681_s20 = smov 0  }
   0x2 LB: > { %s27_s21 = sadd.s32 1, %s641_s19  ;;  %p588_p0 = scmp.ge.s32.totalorder %s645_s20, 1  ;;  %s645_s20 = sphi %s681_s20, %s15_s20   ;;  %s641_s19 = sphi %s679_s19, %s906_s19   ;;  %s637_s18 = sphi %s677_s18, %s905_s18  }
   0x3   : > { %p29_p1 = scmp.ge.s32.totalorder %s27_s21, 2  ;;  %p224_p2 = scmp.lt.s32.totalorder %s645_s20, 3 }
   0x5   : > { %s908_s21 = smov (%p29_p1, %s27_s21), 0  ;;  %p225_p3 = pnand %p588_p0, %p224_p2 }
   0x6   : > { %p267_p4 = scmp.lt.s32.totalorder (!%p225_p3), %s637_s18, 1  ;;  %v339_v8 = vlaneseq (!%p225_p3)  ;;  %v331_v10 = vld [vmem:[%s902_s3] sm:$0x1] (!%p225_p3)  ;;  %vm446_vm0 = vcmask (!%p225_p3), 261120  }
   0x7   : > { %228 = sbr.rel (%p225_p3) target bundleno = 72 (0x48), region = 40  ;;  %v335_v15 = vld [vmem:[%s903_s4] sm:$0x1] (!%p225_p3) }
   0x8   : > { %v340_v9 = vshrl.u32 (!%p225_p3), %v339_v8, 7 }
   0xa   : > { %v341_v11 = vsub.s32 (!%p225_p3), 0, %v340_v9 }
   0xe   : > { %s910_s18 = smov (!%p267_p4, %s637_s18), 1 }
   0xf   : > { %s278_s24 = scalar_lea.vmem %s900_s1, %s910_s18  ;;  %s281_s27 = scalar_lea.vmem %s901_s2, %s910_s18 }
  0x10   : > { %v324_v0 = vld [vmem:[%s278_s24] sm:$0x1]  ;;  %s595_s28 = sshll.u32 %s910_s18, 8 }
  0x11   : > { %v325_v1 = vmul.f32 0.00390625, %v324_v0  ;;  %v326_v2 = vld [vmem:[%s281_s27] sm:$0x1]  ;;  %s711_s6 = scalar_lea.vmem %s899_s0, %s595_s28  ;;  %s760_s13 = scalar_lea.vmem %s904_s5, %s595_s28 }
  0x12   : > { %v327_v3 = vmul.f32 0.00390625, %v326_v2  ;;  %v292_v13 = vld [vmem:[%s711_s6] sm:$0xff]  ;;  %v293_v16 = vld [vmem:[%s711_s6 + $0x8] sm:$0xff]  ;;  %v294_v17 = vld [vmem:[%s711_s6 + $0x10] sm:$0xff] }
  0x13   : > { %v328_v4 = vmul.f32 %v325_v1, %v325_v1  ;;  %v295_v18 = vld [vmem:[%s711_s6 + $0x18] sm:$0xff]  ;;  %v296_v19 = vld [vmem:[%s711_s6 + $0x20] sm:$0xff]  ;;  %v297_v22 = vld [vmem:[%s711_s6 + $0x28] sm:$0xff] }
  0x14   : > { %v298_v23 = vld [vmem:[%s711_s6 + $0x30] sm:$0xff]  ;;  %v299_v24 = vld [vmem:[%s711_s6 + $0x38] sm:$0xff]  ;;  %v300_v25 = vld [vmem:[%s711_s6 + $0x40] sm:$0xff] }
  0x15   : > { %v329_v5 = vsub.f32 %v327_v3, %v328_v4  ;;  %v301_v26 = vld [vmem:[%s711_s6 + $0x48] sm:$0xff]  ;;  %v302_v27 = vld [vmem:[%s711_s6 + $0x50] sm:$0xff]  ;;  %v303_v32 = vld [vmem:[%s711_s6 + $0x58] sm:$0xff] }
  0x16   : > { %v304_v33 = vld [vmem:[%s711_s6 + $0x60] sm:$0xff]  ;;  %v305_v34 = vld [vmem:[%s711_s6 + $0x68] sm:$0xff]  ;;  %v306_v59 = vld [vmem:[%s711_s6 + $0x70] sm:$0xff] }
  0x17   : > { %v330_v6 = vmax.f32 %v329_v5, 0.0  ;;  %v307_v60 = vld [vmem:[%s711_s6 + $0x78] sm:$0xff]  ;;  %v308_v5 = vld [vmem:[%s711_s6 + $0x80] sm:$0xff] }
  0x19   : > { %v332_v7 = vadd.f32 1e-05, %v330_v6 }
  0x1b   : > { %621 = vrsqrt.f32 %v332_v7 }
  0x25   : > { %v622_v12 = vpop.eup %621 }
  0x26   : > { %v334_v14 = vmul.f32 %v622_v12, %v331_v10  ;;  %v309_v10 = vld [vmem:[%s711_s6 + $0x88] sm:$0xff]  ;;  %v311_v12 = vld [vmem:[%s711_s6 + $0x98] sm:$0xff] }
  0x28   : > { %v336_v20 = vmul.f32 %v334_v14, %v325_v1  ;;  %v724_v21 = vrot.slane %v334_v14, %v341_v11 }
  0x2a   : > { %v337_v28 = vsub.f32 %v335_v15, %v336_v20  ;;  %v344_v29 = vmul.f32 %v724_v21, %v292_v13  ;;  %v345_v30 = vmul.f32 %v724_v21, %v293_v16  ;;  %v346_v31 = vmul.f32 %v724_v21, %v294_v17  ;;  %v312_v17 = vld [vmem:[%s711_s6 + $0xa0] sm:$0xff] }
  0x2b   : > { %v347_v35 = vmul.f32 %v724_v21, %v295_v18  ;;  %v348_v36 = vmul.f32 %v724_v21, %v296_v19  ;;  %v349_v37 = vmul.f32 %v724_v21, %v297_v22  ;;  %v350_v38 = vmul.f32 %v724_v21, %v298_v23  ;;  %v313_v18 = vld [vmem:[%s711_s6 + $0xa8] sm:$0xff] }
  0x2c   : > { %v742_v39 = vrot.slane %v337_v28, %v341_v11  ;;  %v351_v40 = vmul.f32 %v724_v21, %v299_v24  ;;  %v352_v41 = vmul.f32 %v724_v21, %v300_v25  ;;  %v353_v42 = vmul.f32 %v724_v21, %v301_v26  ;;  %v310_v11 = vld [vmem:[%s711_s6 + $0x90] sm:$0xff] }
  0x2d   : > { %v354_v43 = vmul.f32 %v724_v21, %v302_v27  ;;  %v355_v44 = vmul.f32 %v724_v21, %v303_v32  ;;  %v356_v45 = vmul.f32 %v724_v21, %v304_v33  ;;  %v357_v46 = vmul.f32 %v724_v21, %v305_v34  ;;  %v314_v28 = vld [vmem:[%s711_s6 + $0xb0] sm:$0xff] }
  0x2e   : > { %v382_v47 = vadd.f32 %v742_v39, %v344_v29  ;;  %v383_v48 = vadd.f32 %v742_v39, %v345_v30  ;;  %v384_v49 = vadd.f32 %v742_v39, %v346_v31  ;;  %v385_v50 = vadd.f32 %v742_v39, %v347_v35  ;;  %v315_v29 = vld [vmem:[%s711_s6 + $0xb8] sm:$0xff] }
  0x2f   : > { %v386_v51 = vadd.f32 %v742_v39, %v348_v36  ;;  %v387_v52 = vadd.f32 %v742_v39, %v349_v37  ;;  %v388_v53 = vadd.f32 %v742_v39, %v350_v38  ;;  %v389_v54 = vadd.f32 %v742_v39, %v351_v40  ;;  %v316_v38 = vld [vmem:[%s711_s6 + $0xc0] sm:$0xff] }
  0x30   : > { %v414_v55 = vmax.f32 %v382_v47, 0.0  ;;  %v415_v56 = vmax.f32 %v383_v48, 0.0  ;;  %v416_v57 = vmax.f32 %v384_v49, 0.0  ;;  %v417_v58 = vmax.f32 %v385_v50, 0.0 }
  0x31   : > { %v418_v61 = vmax.f32 %v386_v51, 0.0  ;;  %v419_v62 = vmax.f32 %v387_v52, 0.0  ;;  %v420_v63 = vmax.f32 %v388_v53, 0.0  ;;  %v421_v0 = vmax.f32 %v389_v54, 0.0  ;;  %v320_v51 = vld [vmem:[%s711_s6 + $0xe0] sm:$0xff]  ;;  %v321_v52 = vld [vmem:[%s711_s6 + $0xe8] sm:$0xff] }
  0x32   : > { %447 = vst.msk [vmem:[%s760_s13] sm:$0xff] %vm446_vm0, %v414_v55  ;;  %448 = vst.msk [vmem:[%s760_s13 + $0x8] sm:$0xff] %vm446_vm0, %v415_v56  ;;  %v390_v1 = vadd.f32 %v742_v39, %v352_v41  ;;  %v391_v2 = vadd.f32 %v742_v39, %v353_v42  ;;  %v392_v3 = vadd.f32 %v742_v39, %v354_v43 }
  0x33   : > { %449 = vst.msk [vmem:[%s760_s13 + $0x10] sm:$0xff] %vm446_vm0, %v416_v57  ;;  %450 = vst.msk [vmem:[%s760_s13 + $0x18] sm:$0xff] %vm446_vm0, %v417_v58  ;;  %v393_v4 = vadd.f32 %v742_v39, %v355_v44  ;;  %v394_v6 = vadd.f32 %v742_v39, %v356_v45  ;;  %v395_v7 = vadd.f32 %v742_v39, %v357_v46  ;;  %v317_v44 = vld [vmem:[%s711_s6 + $0xc8] sm:$0xff]  ;;  %v318_v45 = vld [vmem:[%s711_s6 + $0xd0] sm:$0xff] }
  0x34   : > { %451 = vst.msk [vmem:[%s760_s13 + $0x20] sm:$0xff] %vm446_vm0, %v418_v61  ;;  %452 = vst.msk [vmem:[%s760_s13 + $0x28] sm:$0xff] %vm446_vm0, %v419_v62  ;;  %v358_v8 = vmul.f32 %v724_v21, %v306_v59  ;;  %v359_v9 = vmul.f32 %v724_v21, %v307_v60  ;;  %v422_v13 = vmax.f32 %v390_v1, 0.0  ;;  %v423_v14 = vmax.f32 %v391_v2, 0.0  ;;  %v319_v46 = vld [vmem:[%s711_s6 + $0xd8] sm:$0xff]  ;;  %v322_v61 = vld [vmem:[%s711_s6 + $0xf0] sm:$0xff] }
  0x35   : > { %453 = vst.msk [vmem:[%s760_s13 + $0x30] sm:$0xff] %vm446_vm0, %v420_v63  ;;  %454 = vst.msk [vmem:[%s760_s13 + $0x38] sm:$0xff] %vm446_vm0, %v421_v0  ;;  %v424_v15 = vmax.f32 %v392_v3, 0.0  ;;  %v425_v16 = vmax.f32 %v393_v4, 0.0  ;;  %v426_v19 = vmax.f32 %v394_v6, 0.0  ;;  %v427_v20 = vmax.f32 %v395_v7, 0.0 }
  0x36   : > { %v396_v22 = vadd.f32 %v742_v39, %v358_v8  ;;  %v397_v23 = vadd.f32 %v742_v39, %v359_v9  ;;  %455 = vst.msk [vmem:[%s760_s13 + $0x40] sm:$0xff] %vm446_vm0, %v422_v13  ;;  %456 = vst.msk [vmem:[%s760_s13 + $0x48] sm:$0xff] %vm446_vm0, %v423_v14  ;;  %v360_v24 = vmul.f32 %v724_v21, %v308_v5  ;;  %v323_v62 = vld [vmem:[%s711_s6 + $0xf8] sm:$0xff] }
  0x37   : > { %457 = vst.msk [vmem:[%s760_s13 + $0x50] sm:$0xff] %vm446_vm0, %v424_v15  ;;  %458 = vst.msk [vmem:[%s760_s13 + $0x58] sm:$0xff] %vm446_vm0, %v425_v16  ;;  %v361_v25 = vmul.f32 %v724_v21, %v309_v10  ;;  %v362_v26 = vmul.f32 %v724_v21, %v310_v11  ;;  %v363_v27 = vmul.f32 %v724_v21, %v311_v12 }
  0x38   : > { %459 = vst.msk [vmem:[%s760_s13 + $0x60] sm:$0xff] %vm446_vm0, %v426_v19  ;;  %460 = vst.msk [vmem:[%s760_s13 + $0x68] sm:$0xff] %vm446_vm0, %v427_v20  ;;  %v428_v30 = vmax.f32 %v396_v22, 0.0  ;;  %v429_v31 = vmax.f32 %v397_v23, 0.0  ;;  %v364_v32 = vmul.f32 %v724_v21, %v312_v17  ;;  %v365_v33 = vmul.f32 %v724_v21, %v313_v18 }
  0x39   : > { %v398_v34 = vadd.f32 %v742_v39, %v360_v24  ;;  %v399_v35 = vadd.f32 %v742_v39, %v361_v25  ;;  %v400_v36 = vadd.f32 %v742_v39, %v362_v26  ;;  %v401_v37 = vadd.f32 %v742_v39, %v363_v27 }
  0x3a   : > { %461 = vst.msk [vmem:[%s760_s13 + $0x70] sm:$0xff] %vm446_vm0, %v428_v30  ;;  %462 = vst.msk [vmem:[%s760_s13 + $0x78] sm:$0xff] %vm446_vm0, %v429_v31  ;;  %v402_v40 = vadd.f32 %v742_v39, %v364_v32  ;;  %v403_v41 = vadd.f32 %v742_v39, %v365_v33  ;;  %v366_v42 = vmul.f32 %v724_v21, %v314_v28 }
  0x3b   : > { %v367_v43 = vmul.f32 %v724_v21, %v315_v29  ;;  %v430_v47 = vmax.f32 %v398_v34, 0.0  ;;  %v431_v48 = vmax.f32 %v399_v35, 0.0  ;;  %v432_v49 = vmax.f32 %v400_v36, 0.0 }
  0x3c   : > { %v433_v50 = vmax.f32 %v401_v37, 0.0  ;;  %v434_v53 = vmax.f32 %v402_v40, 0.0  ;;  %v435_v54 = vmax.f32 %v403_v41, 0.0  ;;  %v404_v55 = vadd.f32 %v742_v39, %v366_v42 }
  0x3d   : > { %v405_v56 = vadd.f32 %v742_v39, %v367_v43  ;;  %463 = vst.msk [vmem:[%s760_s13 + $0x80] sm:$0xff] %vm446_vm0, %v430_v47  ;;  %464 = vst.msk [vmem:[%s760_s13 + $0x88] sm:$0xff] %vm446_vm0, %v431_v48  ;;  %v368_v57 = vmul.f32 %v724_v21, %v316_v38  ;;  %v369_v58 = vmul.f32 %v724_v21, %v317_v44 }
  0x3e   : > { %465 = vst.msk [vmem:[%s760_s13 + $0x90] sm:$0xff] %vm446_vm0, %v432_v49  ;;  %466 = vst.msk [vmem:[%s760_s13 + $0x98] sm:$0xff] %vm446_vm0, %v433_v50  ;;  %v370_v59 = vmul.f32 %v724_v21, %v318_v45  ;;  %v371_v60 = vmul.f32 %v724_v21, %v319_v46  ;;  %v436_v63 = vmax.f32 %v404_v55, 0.0  ;;  %v372_v1 = vmul.f32 %v724_v21, %v320_v51 }
  0x3f   : > { %467 = vst.msk [vmem:[%s760_s13 + $0xa0] sm:$0xff] %vm446_vm0, %v434_v53  ;;  %468 = vst.msk [vmem:[%s760_s13 + $0xa8] sm:$0xff] %vm446_vm0, %v435_v54  ;;  %v437_v0 = vmax.f32 %v405_v56, 0.0  ;;  %v373_v2 = vmul.f32 %v724_v21, %v321_v52  ;;  %v406_v3 = vadd.f32 %v742_v39, %v368_v57  ;;  %v407_v4 = vadd.f32 %v742_v39, %v369_v58 }
  0x40   : > { %v408_v5 = vadd.f32 %v742_v39, %v370_v59  ;;  %v409_v6 = vadd.f32 %v742_v39, %v371_v60  ;;  %469 = vst.msk [vmem:[%s760_s13 + $0xb0] sm:$0xff] %vm446_vm0, %v436_v63  ;;  %v410_v7 = vadd.f32 %v742_v39, %v372_v1  ;;  %v374_v9 = vmul.f32 %v724_v21, %v322_v61 }
  0x41   : > { %470 = vst.msk [vmem:[%s760_s13 + $0xb8] sm:$0xff] %vm446_vm0, %v437_v0  ;;  %v411_v8 = vadd.f32 %v742_v39, %v373_v2  ;;  %v375_v10 = vmul.f32 %v724_v21, %v323_v62  ;;  %v438_v11 = vmax.f32 %v406_v3, 0.0  ;;  %v439_v12 = vmax.f32 %v407_v4, 0.0 }
  0x42   : > { %v440_v13 = vmax.f32 %v408_v5, 0.0  ;;  %v441_v14 = vmax.f32 %v409_v6, 0.0  ;;  %v442_v15 = vmax.f32 %v410_v7, 0.0  ;;  %v412_v17 = vadd.f32 %v742_v39, %v374_v9 }
  0x43   : > { %v443_v16 = vmax.f32 %v411_v8, 0.0  ;;  %v413_v18 = vadd.f32 %v742_v39, %v375_v10  ;;  %471 = vst.msk [vmem:[%s760_s13 + $0xc0] sm:$0xff] %vm446_vm0, %v438_v11  ;;  %472 = vst.msk [vmem:[%s760_s13 + $0xc8] sm:$0xff] %vm446_vm0, %v439_v12 }
  0x44   : > { %473 = vst.msk [vmem:[%s760_s13 + $0xd0] sm:$0xff] %vm446_vm0, %v440_v13  ;;  %474 = vst.msk [vmem:[%s760_s13 + $0xd8] sm:$0xff] %vm446_vm0, %v441_v14  ;;  %v444_v21 = vmax.f32 %v412_v17, 0.0 }
  0x45   : > { %475 = vst.msk [vmem:[%s760_s13 + $0xe0] sm:$0xff] %vm446_vm0, %v442_v15  ;;  %476 = vst.msk [vmem:[%s760_s13 + $0xe8] sm:$0xff] %vm446_vm0, %v443_v16  ;;  %v445_v19 = vmax.f32 %v413_v18, 0.0 }
  0x46   : > { %477 = vst.msk [vmem:[%s760_s13 + $0xf0] sm:$0xff] %vm446_vm0, %v444_v21 }
  0x47   : > { %478 = vst.msk [vmem:[%s760_s13 + $0xf8] sm:$0xff] %vm446_vm0, %v445_v19 }
  0x48 PF: > { %s15_s20 = sadd.s32 1, %s645_s20   ;;  %s905_s18 = smov %s641_s19 }
  0x49   : > { %p12_p5 = scmp.ge.s32.totalorder %s15_s20, 4   ;;  %s906_s19 = smov %s908_s21 }
  0x4b   :  { %14 = sbr.rel (!%p12_p5) target bundleno = 2 (0x2), region = 76 }

// kernel: transform_net.21
= control target key start
LH: loop header
LB: loop body
LE: loop exit
PB: predicated region body
PF: predicated region fallthrough
CT: control target
= control target key end

     0   :  { %s1464_s18 = smov 0   ;;  %s1466_s19 = smov 0   ;;  %s1859_s0 = inlined_call_operand.vmem [shape: bf16[2,256,256], index: 0, kind: input, shape index: {}]   ;;  %s1860_s1 = inlined_call_operand.vmem [shape: bf16[256,32], index: 1, kind: input, shape index: {}]   ;;  %s1861_s2 = inlined_call_operand.vmem [shape: f32[1,32], index: 2, kind: input, shape index: {}]   ;;  %s1862_s3 = inlined_call_operand.vmem [shape: f32[2,256,32], index: 3, kind: output, shape index: {0}]   ;;  %s1863_s4 = inlined_call_operand.vmem [shape: f32[2,1,32], index: 4, kind: output, shape index: {1}]   ;;  %s1864_s5 = inlined_call_operand.vmem [shape: f32[2,1,32], index: 5, kind: output, shape index: {2}]  }
   0x1   :  { %s1468_s20 = smov 0  }
   0x2 LB: > { %s28_s21 = sadd.s32 1, %s1427_s19  ;;  %p1134_p0 = scmp.ge.s32.totalorder %s1431_s20, 1  ;;  %s1431_s20 = sphi %s1468_s20, %s16_s20   ;;  %s1427_s19 = sphi %s1466_s19, %s1866_s19   ;;  %s1423_s18 = sphi %s1464_s18, %s1865_s18  }
   0x3   : > { %p30_p1 = scmp.ge.s32.totalorder %s28_s21, 2  ;;  %p214_p2 = scmp.lt.s32.totalorder %s1431_s20, 3 }
   0x5   : > { %s1868_s21 = smov (%p30_p1, %s28_s21), 0  ;;  %p215_p3 = pnand %p1134_p0, %p214_p2 }
   0x6   : > { %v1345_v0 = vld [vmem:[%s1860_s1 + $0x40] sm:$0xff] (!%p215_p3)   ;;  %v1347_v2 = vld [vmem:[%s1860_s1 + $0x48] sm:$0xff] (!%p215_p3)   ;;  %p258_p4 = scmp.lt.s32.totalorder (!%p215_p3), %s1423_s18, 1  ;;  %v1349_v4 = vld [vmem:[%s1860_s1 + $0x50] sm:$0xff] (!%p215_p3)   ;;  %vm289_vm0 = vcmask (!%p215_p3), 253952   ;;  %v1433_v48 = vmov (!%p215_p3), 0.0  }
   0x7   : > { %218 = sbr.rel (%p215_p3) target bundleno = 366 (0x16e), region = 32  ;;  %v1346_v1 = vld [vmem:[%s1860_s1] sm:$0xff] (!%p215_p3)   ;;  %1192 = vmatprep.subr.bf16.mxu0 (!%p215_p3), %v1345_v0  ;;  %1304 = vmatprep.subr.bf16.mxu1 (!%p215_p3), %v1345_v0  ;;  %v1348_v3 = vld [vmem:[%s1860_s1 + $0x8] sm:$0xff] (!%p215_p3)   ;;  %v1350_v5 = vld [vmem:[%s1860_s1 + $0x10] sm:$0xff] (!%p215_p3)   ;;  %vm780_vm1 = vcmask (!%p215_p3), 261120  }
   0x8   : > { %1193 = vmatpush3.bf16.msra.mxu0 (!%p215_p3), %v1346_v1  ;;  %1312 = vmatpush3.bf16.msra.mxu1 (!%p215_p3), %v1346_v1  ;;  %v1351_v6 = vld [vmem:[%s1860_s1 + $0x58] sm:$0xff] (!%p215_p3)   ;;  %v1353_v8 = vld [vmem:[%s1860_s1 + $0x60] sm:$0xff] (!%p215_p3)   ;;  %v1355_v10 = vld [vmem:[%s1860_s1 + $0x68] sm:$0xff] (!%p215_p3)  }
   0x9   : > { %1194 = vmatprep.subr.bf16.mxu0 (!%p215_p3), %v1347_v2  ;;  %1305 = vmatprep.subr.bf16.mxu1 (!%p215_p3), %v1347_v2  ;;  %v1352_v7 = vld [vmem:[%s1860_s1 + $0x18] sm:$0xff] (!%p215_p3)   ;;  %v1354_v9 = vld [vmem:[%s1860_s1 + $0x20] sm:$0xff] (!%p215_p3)   ;;  %v1356_v12 = vld [vmem:[%s1860_s1 + $0x28] sm:$0xff] (!%p215_p3)  }
   0xa   : > { %v1357_v13 = vld [vmem:[%s1860_s1 + $0x70] sm:$0xff] (!%p215_p3)   ;;  %v1359_v16 = vld [vmem:[%s1860_s1 + $0x78] sm:$0xff] (!%p215_p3)   ;;  %v1591_v50 = vld [vmem:[%s1861_s2] ss:$0 sm:$0xff] (!%p215_p3) }
   0xb   : > { %v1358_v15 = vld [vmem:[%s1860_s1 + $0x30] sm:$0xff] (!%p215_p3)   ;;  %v1360_v17 = vld [vmem:[%s1860_s1 + $0x38] sm:$0xff] (!%p215_p3)  }
   0xc   : > { %1195 = vmatpush3.bf16.msra.mxu0 (!%p215_p3), %v1348_v3  ;;  %1313 = vmatpush3.bf16.msra.mxu1 (!%p215_p3), %v1348_v3 }
   0xd   : > { %1196 = vmatprep.subr.bf16.mxu0 (!%p215_p3), %v1349_v4  ;;  %1306 = vmatprep.subr.bf16.mxu1 (!%p215_p3), %v1349_v4 }
   0xe   : > { %s1870_s18 = smov (!%p258_p4, %s1423_s18), 1 }
   0xf   : > { %s1190_s13 = sshll.u32 %s1870_s18, 8  ;;  %s1576_s15 = scalar_lea.vmem %s1863_s4, %s1870_s18 }
  0x10   : > { %1197 = vmatpush3.bf16.msra.mxu0 %v1350_v5  ;;  %1314 = vmatpush3.bf16.msra.mxu1 %v1350_v5  ;;  %s1517_s22 = scalar_lea.vmem %s1859_s0, %s1190_s13  ;;  %s1582_s23 = scalar_lea.vmem %s1864_s5, %s1870_s18  ;;  %290 = vst.msk [vmem:[%s1576_s15] sm:$0x1] %vm289_vm0, %v1433_v48 }
  0x11   : > { %1198 = vmatprep.subr.bf16.mxu0 %v1351_v6  ;;  %1307 = vmatprep.subr.bf16.mxu1 %v1351_v6  ;;  %v1363_v11 = vld [vmem:[%s1517_s22 + $0x4] ss:$8 sps:$4 sm:$0xff]   ;;  %v1361_v18 = vld [vmem:[%s1517_s22] ss:$8 sps:$4 sm:$0xff]   ;;  %v1364_v19 = vld [vmem:[%s1517_s22 + $0x14] ss:$8 sps:$4 sm:$0xff]   ;;  %s1598_s27 = scalar_lea.vmem %s1862_s3, %s1190_s13 }
  0x12   : > { %651 = vmatprep.mubr.bf16.mxu0 %v1363_v11  ;;  %v1375_v14 = vld [vmem:[%s1517_s22 + $0x84] ss:$8 sps:$4 sm:$0xff]   ;;  %v1373_v20 = vld [vmem:[%s1517_s22 + $0x80] ss:$8 sps:$4 sm:$0xff]   ;;  %v1379_v21 = vld [vmem:[%s1517_s22 + $0x94] ss:$8 sps:$4 sm:$0xff]  }
  0x13   : > { %715 = vmatprep.mubr.bf16.mxu1 %v1375_v14  ;;  %v1366_v22 = vld [vmem:[%s1517_s22 + $0x10] ss:$8 sps:$4 sm:$0xff]   ;;  %v1367_v23 = vld [vmem:[%s1517_s22 + $0x24] ss:$8 sps:$4 sm:$0xff]   ;;  %v1369_v26 = vld [vmem:[%s1517_s22 + $0x20] ss:$8 sps:$4 sm:$0xff]  }
  0x14   : > { %1199 = vmatpush3.bf16.msra.mxu0 %v1352_v7  ;;  %1315 = vmatpush3.bf16.msra.mxu1 %v1352_v7  ;;  %v1381_v24 = vld [vmem:[%s1517_s22 + $0x90] ss:$8 sps:$4 sm:$0xff]   ;;  %v1385_v25 = vld [vmem:[%s1517_s22 + $0xa4] ss:$8 sps:$4 sm:$0xff]   ;;  %v1370_v27 = vld [vmem:[%s1517_s22 + $0x34] ss:$8 sps:$4 sm:$0xff]  }
  0x15   : > { %1200 = vmatprep.subr.bf16.mxu0 %v1353_v8  ;;  %1308 = vmatprep.subr.bf16.mxu1 %v1353_v8  ;;  %v1387_v28 = vld [vmem:[%s1517_s22 + $0xa0] ss:$8 sps:$4 sm:$0xff]   ;;  %v1391_v29 = vld [vmem:[%s1517_s22 + $0xb4] ss:$8 sps:$4 sm:$0xff]   ;;  %v1372_v30 = vld [vmem:[%s1517_s22 + $0x30] ss:$8 sps:$4 sm:$0xff]  }
  0x16   : > { %v1376_v31 = vld [vmem:[%s1517_s22 + $0x44] ss:$8 sps:$4 sm:$0xff]   ;;  %v1393_v32 = vld [vmem:[%s1517_s22 + $0xb0] ss:$8 sps:$4 sm:$0xff]   ;;  %v1378_v34 = vld [vmem:[%s1517_s22 + $0x40] ss:$8 sps:$4 sm:$0xff]  }
  0x17   : > { %v1397_v33 = vld [vmem:[%s1517_s22 + $0xc4] ss:$8 sps:$4 sm:$0xff]   ;;  %v1382_v35 = vld [vmem:[%s1517_s22 + $0x54] ss:$8 sps:$4 sm:$0xff]   ;;  %v1399_v36 = vld [vmem:[%s1517_s22 + $0xc0] ss:$8 sps:$4 sm:$0xff]  }
  0x18   : > { %1201 = vmatpush3.bf16.msra.mxu0 %v1354_v9  ;;  %1316 = vmatpush3.bf16.msra.mxu1 %v1354_v9  ;;  %v1400_v37 = vld [vmem:[%s1517_s22 + $0xd4] ss:$8 sps:$4 sm:$0xff]   ;;  %v1384_v38 = vld [vmem:[%s1517_s22 + $0x50] ss:$8 sps:$4 sm:$0xff]   ;;  %v1388_v39 = vld [vmem:[%s1517_s22 + $0x64] ss:$8 sps:$4 sm:$0xff]  }
  0x19   : > { %1202 = vmatprep.subr.bf16.mxu0 %v1355_v10  ;;  %1309 = vmatprep.subr.bf16.mxu1 %v1355_v10  ;;  %v1402_v40 = vld [vmem:[%s1517_s22 + $0xd0] ss:$8 sps:$4 sm:$0xff]   ;;  %v1403_v41 = vld [vmem:[%s1517_s22 + $0xe4] ss:$8 sps:$4 sm:$0xff]   ;;  %v1390_v42 = vld [vmem:[%s1517_s22 + $0x60] ss:$8 sps:$4 sm:$0xff]  }
  0x1a   : > { %v1394_v43 = vld [vmem:[%s1517_s22 + $0x74] ss:$8 sps:$4 sm:$0xff]   ;;  %v1405_v44 = vld [vmem:[%s1517_s22 + $0xe0] ss:$8 sps:$4 sm:$0xff]   ;;  %v1396_v46 = vld [vmem:[%s1517_s22 + $0x70] ss:$8 sps:$4 sm:$0xff]  }
  0x1b   : > { %v1406_v45 = vld [vmem:[%s1517_s22 + $0xf4] ss:$8 sps:$4 sm:$0xff]   ;;  %v1408_v47 = vld [vmem:[%s1517_s22 + $0xf0] ss:$8 sps:$4 sm:$0xff]   ;;  %291 = vst.msk [vmem:[%s1582_s23] sm:$0x1] %vm289_vm0, %v1433_v48 }
  0x1c   : > { %1203 = vmatpush3.bf16.msra.mxu0 %v1356_v12  ;;  %1317 = vmatpush3.bf16.msra.mxu1 %v1356_v12 }
  0x1d   : > { %1204 = vmatprep.subr.bf16.mxu0 %v1357_v13  ;;  %1310 = vmatprep.subr.bf16.mxu1 %v1357_v13 }
  0x20   : > { %1205 = vmatpush3.bf16.msra.mxu0 %v1358_v15  ;;  %1318 = vmatpush3.bf16.msra.mxu1 %v1358_v15 }
  0x21   : > { %1206 = vmatprep.subr.bf16.mxu0 %v1359_v16  ;;  %1311 = vmatprep.subr.bf16.mxu1 %v1359_v16 }
  0x24   : > { %1207 = vmatpush3.bf16.msra.mxu0 %v1360_v17  ;;  %1319 = vmatpush3.bf16.msra.mxu1 %v1360_v17 }
  0x27   : > { %652 = vmatmul.mubr.bf16.vlgmr.msra.gmra.mrb[0].mxu0 %v1361_v18  ;;  %716 = vmatmul.mubr.bf16.vlgmr.msra.gmra.mrb[0].mxu1 %v1373_v20 }
  0x28   : > { %659 = vmatprep.mubr.bf16.mxu0 %v1364_v19  ;;  %723 = vmatprep.mubr.bf16.mxu1 %v1379_v21 }
  0x2f   : > { %660 = vmatmul.mubr.bf16.gmra.mrb[4].mxu0 %v1366_v22  ;;  %724 = vmatmul.mubr.bf16.gmra.mrb[4].mxu1 %v1381_v24 }
  0x30   : > { %667 = vmatprep.mubr.bf16.mxu0 %v1367_v23  ;;  %731 = vmatprep.mubr.bf16.mxu1 %v1385_v25 }
  0x37   : > { %668 = vmatmul.mubr.bf16.gmra.mrb[8].mxu0 %v1369_v26  ;;  %732 = vmatmul.mubr.bf16.gmra.mrb[8].mxu1 %v1387_v28 }
  0x38   : > { %675 = vmatprep.mubr.bf16.mxu0 %v1370_v27  ;;  %739 = vmatprep.mubr.bf16.mxu1 %v1391_v29 }
  0x3f   : > { %676 = vmatmul.mubr.bf16.gmra.mrb[12].mxu0 %v1372_v30  ;;  %740 = vmatmul.mubr.bf16.gmra.mrb[12].mxu1 %v1393_v32 }
  0x40   : > { %683 = vmatprep.mubr.bf16.mxu0 %v1376_v31  ;;  %747 = vmatprep.mubr.bf16.mxu1 %v1397_v33 }
  0x47   : > { %684 = vmatmul.mubr.bf16.gmra.mrb[16].mxu0 %v1378_v34  ;;  %748 = vmatmul.mubr.bf16.gmra.mrb[16].mxu1 %v1399_v36 }
  0x48   : > { %691 = vmatprep.mubr.bf16.mxu0 %v1382_v35  ;;  %755 = vmatprep.mubr.bf16.mxu1 %v1400_v37 }
  0x4f   : > { %692 = vmatmul.mubr.bf16.gmra.mrb[20].mxu0 %v1384_v38  ;;  %756 = vmatmul.mubr.bf16.gmra.mrb[20].mxu1 %v1402_v40 }
  0x50   : > { %699 = vmatprep.mubr.bf16.mxu0 %v1388_v39  ;;  %763 = vmatprep.mubr.bf16.mxu1 %v1403_v41 }
  0x57   : > { %700 = vmatmul.mubr.bf16.gmra.mrb[24].mxu0 %v1390_v42  ;;  %764 = vmatmul.mubr.bf16.gmra.mrb[24].mxu1 %v1405_v44 }
  0x58   : > { %707 = vmatprep.mubr.bf16.mxu0 %v1394_v43  ;;  %771 = vmatprep.mubr.bf16.mxu1 %v1406_v45 }
  0x5f   : > { %708 = vmatmul.mubr.bf16.gmra.mrb[28].mxu0 %v1396_v46  ;;  %772 = vmatmul.mubr.bf16.gmra.mrb[28].mxu1 %v1408_v47 }
  0xfa   : > { %v1208_v49 = vpop.f32.mrb[0].mxu0  ;;  %v1256_v52 = vpop.f32.mrb[0].mxu1 }
  0xfb   : > { %v1209_v51 = vpop.f32.mrb[1].mxu0  ;;  %v1257_v55 = vpop.f32.mrb[1].mxu1 }
  0xfc   : > { %v1210_v53 = vadd.f32 %v1209_v51, %v1208_v49  ;;  %v1211_v54 = vpop.f32.mrb[2].mxu0  ;;  %v1258_v57 = vadd.f32 %v1257_v55, %v1256_v52  ;;  %v1259_v58 = vpop.f32.mrb[2].mxu1 }
  0xfd   : > { %v1212_v56 = vpop.f32.mrb[3].mxu0  ;;  %v1260_v61 = vpop.f32.mrb[3].mxu1 }
  0xfe   : > { %v654_v59 = vadd.f32 %v1210_v53, %v1591_v50  ;;  %v1213_v60 = vadd.f32 %v1212_v56, %v1211_v54  ;;  %v1602_v62 = vadd.f32 %v1258_v57, %v1591_v50  ;;  %v1261_v63 = vadd.f32 %v1260_v61, %v1259_v58 }
 0x100   : > { %781 = vst.msk [vmem:[%s1598_s27] sm:$0xff] %vm780_vm1, %v654_v59  ;;  %v887_v0 = vmul.f32 %v654_v59, %v654_v59  ;;  %v657_v1 = vadd.f32 %v1213_v60, %v1591_v50  ;;  %797 = vst.msk [vmem:[%s1598_s27 + $0x80] sm:$0xff] %vm780_vm1, %v1602_v62  ;;  %v1611_v2 = vadd.f32 %v1261_v63, %v1591_v50  ;;  %v814_v3 = vsel %vm780_vm1, %v654_v59, 0.0 }
 0x102   : > { %782 = vst.msk [vmem:[%s1598_s27 + $0x8] sm:$0xff] %vm780_vm1, %v657_v1  ;;  %v815_v4 = vsel %vm780_vm1, %v657_v1, 0.0  ;;  %v888_v5 = vmul.f32 %v657_v1, %v657_v1  ;;  %v1214_v6 = vpop.f32.mrb[4].mxu0  ;;  %798 = vst.msk [vmem:[%s1598_s27 + $0x88] sm:$0xff] %vm780_vm1, %v1611_v2  ;;  %v904_v9 = vmul.f32 %v1611_v2, %v1611_v2  ;;  %v1262_v10 = vpop.f32.mrb[4].mxu1  ;;  %v919_v11 = vsel %vm780_vm1, %v887_v0, 0.0 }
 0x103   : > { %v816_v7 = vadd.f32 %v815_v4, %v814_v3  ;;  %v1215_v8 = vpop.f32.mrb[5].mxu0  ;;  %v1263_v15 = vpop.f32.mrb[5].mxu1 }
 0x104   : > { %v920_v12 = vsel %vm780_vm1, %v888_v5, 0.0  ;;  %v1216_v13 = vadd.f32 %v1215_v8, %v1214_v6  ;;  %v1217_v14 = vpop.f32.mrb[6].mxu0  ;;  %v1625_v18 = vsel %vm780_vm1, %v904_v9, 0.0  ;;  %v1264_v19 = vadd.f32 %v1263_v15, %v1262_v10  ;;  %v1265_v20 = vpop.f32.mrb[6].mxu1 }
 0x105   : > { %v921_v16 = vadd.f32 %v920_v12, %v919_v11  ;;  %v1218_v17 = vpop.f32.mrb[7].mxu0  ;;  %v1266_v23 = vpop.f32.mrb[7].mxu1 }
 0x106   : > { %v662_v21 = vadd.f32 %v1216_v13, %v1591_v50  ;;  %v1219_v22 = vadd.f32 %v1218_v17, %v1217_v14  ;;  %v726_v24 = vadd.f32 %v1264_v19, %v1591_v50  ;;  %v1267_v25 = vadd.f32 %v1266_v23, %v1265_v20 }
 0x108   : > { %783 = vst.msk [vmem:[%s1598_s27 + $0x10] sm:$0xff] %vm780_vm1, %v662_v21  ;;  %v817_v26 = vsel %vm780_vm1, %v662_v21, 0.0  ;;  %v889_v27 = vmul.f32 %v662_v21, %v662_v21  ;;  %v665_v28 = vadd.f32 %v1219_v22, %v1591_v50  ;;  %799 = vst.msk [vmem:[%s1598_s27 + $0x90] sm:$0xff] %vm780_vm1, %v726_v24  ;;  %v1636_v30 = vsel %vm780_vm1, %v726_v24, 0.0 }
 0x109   : > { %v818_v29 = vadd.f32 %v817_v26, %v816_v7  ;;  %v905_v31 = vmul.f32 %v726_v24, %v726_v24  ;;  %v729_v32 = vadd.f32 %v1267_v25, %v1591_v50 }
 0x10a   : > { %v922_v33 = vsel %vm780_vm1, %v889_v27, 0.0  ;;  %784 = vst.msk [vmem:[%s1598_s27 + $0x18] sm:$0xff] %vm780_vm1, %v665_v28  ;;  %v819_v34 = vsel %vm780_vm1, %v665_v28, 0.0  ;;  %v890_v35 = vmul.f32 %v665_v28, %v665_v28  ;;  %v1220_v36 = vpop.f32.mrb[8].mxu0  ;;  %v1268_v42 = vpop.f32.mrb[8].mxu1 }
 0x10b   : > { %v923_v37 = vadd.f32 %v922_v33, %v921_v16  ;;  %v820_v38 = vadd.f32 %v819_v34, %v818_v29  ;;  %v1221_v39 = vpop.f32.mrb[9].mxu0  ;;  %v1644_v40 = vsel %vm780_vm1, %v905_v31, 0.0  ;;  %800 = vst.msk [vmem:[%s1598_s27 + $0x98] sm:$0xff] %vm780_vm1, %v729_v32  ;;  %v1649_v41 = vsel %vm780_vm1, %v729_v32, 0.0  ;;  %v1269_v47 = vpop.f32.mrb[9].mxu1 }
 0x10c   : > { %v924_v43 = vsel %vm780_vm1, %v890_v35, 0.0  ;;  %v1222_v44 = vadd.f32 %v1221_v39, %v1220_v36  ;;  %v1223_v45 = vpop.f32.mrb[10].mxu0  ;;  %v906_v46 = vmul.f32 %v729_v32, %v729_v32  ;;  %v1270_v51 = vadd.f32 %v1269_v47, %v1268_v42  ;;  %v1271_v52 = vpop.f32.mrb[10].mxu1 }
 0x10d   : > { %v925_v48 = vadd.f32 %v924_v43, %v923_v37  ;;  %v1224_v49 = vpop.f32.mrb[11].mxu0  ;;  %v1272_v56 = vpop.f32.mrb[11].mxu1 }
 0x10e   : > { %v670_v53 = vadd.f32 %v1222_v44, %v1591_v50  ;;  %v1225_v54 = vadd.f32 %v1224_v49, %v1223_v45  ;;  %v1654_v55 = vsel %vm780_vm1, %v906_v46, 0.0  ;;  %v734_v57 = vadd.f32 %v1270_v51, %v1591_v50 }
 0x10f   : > { %v1273_v58 = vadd.f32 %v1272_v56, %v1271_v52 }
 0x110   : > { %785 = vst.msk [vmem:[%s1598_s27 + $0x20] sm:$0xff] %vm780_vm1, %v670_v53  ;;  %v821_v59 = vsel %vm780_vm1, %v670_v53, 0.0  ;;  %v891_v60 = vmul.f32 %v670_v53, %v670_v53  ;;  %v673_v61 = vadd.f32 %v1225_v54, %v1591_v50  ;;  %801 = vst.msk [vmem:[%s1598_s27 + $0xa0] sm:$0xff] %vm780_vm1, %v734_v57  ;;  %v1664_v0 = vsel %vm780_vm1, %v734_v57, 0.0 }
 0x111   : > { %v822_v63 = vadd.f32 %v821_v59, %v820_v38  ;;  %v907_v1 = vmul.f32 %v734_v57, %v734_v57  ;;  %v737_v3 = vadd.f32 %v1273_v58, %v1591_v50 }
 0x112   : > { %v926_v4 = vsel %vm780_vm1, %v891_v60, 0.0  ;;  %786 = vst.msk [vmem:[%s1598_s27 + $0x28] sm:$0xff] %vm780_vm1, %v673_v61  ;;  %v823_v5 = vsel %vm780_vm1, %v673_v61, 0.0  ;;  %v892_v6 = vmul.f32 %v673_v61, %v673_v61  ;;  %v1226_v7 = vpop.f32.mrb[12].mxu0  ;;  %v1274_v13 = vpop.f32.mrb[12].mxu1 }
 0x113   : > { %v927_v8 = vadd.f32 %v926_v4, %v925_v48  ;;  %v824_v9 = vadd.f32 %v823_v5, %v822_v63  ;;  %v1227_v10 = vpop.f32.mrb[13].mxu0  ;;  %v1672_v11 = vsel %vm780_vm1, %v907_v1, 0.0  ;;  %802 = vst.msk [vmem:[%s1598_s27 + $0xa8] sm:$0xff] %vm780_vm1, %v737_v3  ;;  %v1677_v12 = vsel %vm780_vm1, %v737_v3, 0.0  ;;  %v1275_v19 = vpop.f32.mrb[13].mxu1 }
 0x114   : > { %v928_v14 = vsel %vm780_vm1, %v892_v6, 0.0  ;;  %v1228_v15 = vadd.f32 %v1227_v10, %v1226_v7  ;;  %v1229_v16 = vpop.f32.mrb[14].mxu0  ;;  %v908_v17 = vmul.f32 %v737_v3, %v737_v3  ;;  %v1276_v22 = vadd.f32 %v1275_v19, %v1274_v13  ;;  %v1277_v23 = vpop.f32.mrb[14].mxu1 }
 0x115   : > { %v929_v20 = vadd.f32 %v928_v14, %v927_v8  ;;  %v1230_v21 = vpop.f32.mrb[15].mxu0  ;;  %v1278_v27 = vpop.f32.mrb[15].mxu1 }
 0x116   : > { %v678_v24 = vadd.f32 %v1228_v15, %v1591_v50  ;;  %v1231_v25 = vadd.f32 %v1230_v21, %v1229_v16  ;;  %v1682_v26 = vsel %vm780_vm1, %v908_v17, 0.0  ;;  %v742_v28 = vadd.f32 %v1276_v22, %v1591_v50 }
 0x117   : > { %v1279_v29 = vadd.f32 %v1278_v27, %v1277_v23 }
 0x118   : > { %787 = vst.msk [vmem:[%s1598_s27 + $0x30] sm:$0xff] %vm780_vm1, %v678_v24  ;;  %v825_v31 = vsel %vm780_vm1, %v678_v24, 0.0  ;;  %v893_v32 = vmul.f32 %v678_v24, %v678_v24  ;;  %v681_v33 = vadd.f32 %v1231_v25, %v1591_v50  ;;  %803 = vst.msk [vmem:[%s1598_s27 + $0xb0] sm:$0xff] %vm780_vm1, %v742_v28  ;;  %v1692_v35 = vsel %vm780_vm1, %v742_v28, 0.0 }
 0x119   : > { %v826_v34 = vadd.f32 %v825_v31, %v824_v9  ;;  %v909_v36 = vmul.f32 %v742_v28, %v742_v28  ;;  %v745_v37 = vadd.f32 %v1279_v29, %v1591_v50 }
 0x11a   : > { %v930_v38 = vsel %vm780_vm1, %v893_v32, 0.0  ;;  %788 = vst.msk [vmem:[%s1598_s27 + $0x38] sm:$0xff] %vm780_vm1, %v681_v33  ;;  %v827_v39 = vsel %vm780_vm1, %v681_v33, 0.0  ;;  %v894_v42 = vmul.f32 %v681_v33, %v681_v33  ;;  %v1232_v43 = vpop.f32.mrb[16].mxu0  ;;  %v1280_v49 = vpop.f32.mrb[16].mxu1 }
 0x11b   : > { %v931_v44 = vadd.f32 %v930_v38, %v929_v20  ;;  %v828_v45 = vadd.f32 %v827_v39, %v826_v34  ;;  %v1233_v46 = vpop.f32.mrb[17].mxu0  ;;  %v1700_v47 = vsel %vm780_vm1, %v909_v36, 0.0  ;;  %804 = vst.msk [vmem:[%s1598_s27 + $0xb8] sm:$0xff] %vm780_vm1, %v745_v37  ;;  %v1705_v48 = vsel %vm780_vm1, %v745_v37, 0.0  ;;  %v1281_v56 = vpop.f32.mrb[17].mxu1 }
 0x11c   : > { %v932_v51 = vsel %vm780_vm1, %v894_v42, 0.0  ;;  %v1234_v52 = vadd.f32 %v1233_v46, %v1232_v43  ;;  %v1235_v53 = vpop.f32.mrb[18].mxu0  ;;  %v910_v54 = vmul.f32 %v745_v37, %v745_v37  ;;  %v1282_v59 = vadd.f32 %v1281_v56, %v1280_v49  ;;  %v1283_v60 = vpop.f32.mrb[18].mxu1 }
 0x11d   : > { %v933_v57 = vadd.f32 %v932_v51, %v931_v44  ;;  %v1236_v58 = vpop.f32.mrb[19].mxu0  ;;  %v1284_v3 = vpop.f32.mrb[19].mxu1 }
 0x11e   : > { %v686_v61 = vadd.f32 %v1234_v52, %v1591_v50  ;;  %v1237_v63 = vadd.f32 %v1236_v58, %v1235_v53  ;;  %v1710_v1 = vsel %vm780_vm1, %v910_v54, 0.0  ;;  %v750_v4 = vadd.f32 %v1282_v59, %v1591_v50 }
 0x11f   : > { %v1285_v5 = vadd.f32 %v1284_v3, %v1283_v60 }
 0x120   : > { %789 = vst.msk [vmem:[%s1598_s27 + $0x40] sm:$0xff] %vm780_vm1, %v686_v61  ;;  %v829_v6 = vsel %vm780_vm1, %v686_v61, 0.0  ;;  %v895_v7 = vmul.f32 %v686_v61, %v686_v61  ;;  %v689_v8 = vadd.f32 %v1237_v63, %v1591_v50  ;;  %805 = vst.msk [vmem:[%s1598_s27 + $0xc0] sm:$0xff] %vm780_vm1, %v750_v4  ;;  %v1720_v10 = vsel %vm780_vm1, %v750_v4, 0.0 }
 0x121   : > { %v830_v9 = vadd.f32 %v829_v6, %v828_v45  ;;  %v911_v13 = vmul.f32 %v750_v4, %v750_v4  ;;  %v753_v14 = vadd.f32 %v1285_v5, %v1591_v50 }
 0x122   : > { %v934_v15 = vsel %vm780_vm1, %v895_v7, 0.0  ;;  %790 = vst.msk [vmem:[%s1598_s27 + $0x48] sm:$0xff] %vm780_vm1, %v689_v8  ;;  %v831_v16 = vsel %vm780_vm1, %v689_v8, 0.0  ;;  %v896_v17 = vmul.f32 %v689_v8, %v689_v8  ;;  %v1238_v19 = vpop.f32.mrb[20].mxu0  ;;  %v1286_v25 = vpop.f32.mrb[20].mxu1 }
 0x123   : > { %v935_v20 = vadd.f32 %v934_v15, %v933_v57  ;;  %v832_v21 = vadd.f32 %v831_v16, %v830_v9  ;;  %v1239_v22 = vpop.f32.mrb[21].mxu0  ;;  %v1728_v23 = vsel %vm780_vm1, %v911_v13, 0.0  ;;  %806 = vst.msk [vmem:[%s1598_s27 + $0xc8] sm:$0xff] %vm780_vm1, %v753_v14  ;;  %v1733_v24 = vsel %vm780_vm1, %v753_v14, 0.0  ;;  %v1287_v32 = vpop.f32.mrb[21].mxu1 }
 0x124   : > { %v936_v27 = vsel %vm780_vm1, %v896_v17, 0.0  ;;  %v1240_v28 = vadd.f32 %v1239_v22, %v1238_v19  ;;  %v1241_v29 = vpop.f32.mrb[22].mxu0  ;;  %v912_v31 = vmul.f32 %v753_v14, %v753_v14  ;;  %v1288_v36 = vadd.f32 %v1287_v32, %v1286_v25  ;;  %v1289_v37 = vpop.f32.mrb[22].mxu1 }
 0x125   : > { %v937_v33 = vadd.f32 %v936_v27, %v935_v20  ;;  %v1242_v34 = vpop.f32.mrb[23].mxu0  ;;  %v1290_v43 = vpop.f32.mrb[23].mxu1 }
 0x126   : > { %v694_v38 = vadd.f32 %v1240_v28, %v1591_v50  ;;  %v1243_v39 = vadd.f32 %v1242_v34, %v1241_v29  ;;  %v1738_v42 = vsel %vm780_vm1, %v912_v31, 0.0  ;;  %v758_v44 = vadd.f32 %v1288_v36, %v1591_v50 }
 0x127   : > { %v1291_v45 = vadd.f32 %v1290_v43, %v1289_v37 }
 0x128   : > { %791 = vst.msk [vmem:[%s1598_s27 + $0x50] sm:$0xff] %vm780_vm1, %v694_v38  ;;  %v833_v46 = vsel %vm780_vm1, %v694_v38, 0.0  ;;  %v897_v49 = vmul.f32 %v694_v38, %v694_v38  ;;  %v697_v51 = vadd.f32 %v1243_v39, %v1591_v50  ;;  %807 = vst.msk [vmem:[%s1598_s27 + $0xd0] sm:$0xff] %vm780_vm1, %v758_v44  ;;  %v1748_v53 = vsel %vm780_vm1, %v758_v44, 0.0 }
 0x129   : > { %v834_v52 = vadd.f32 %v833_v46, %v832_v21  ;;  %v913_v54 = vmul.f32 %v758_v44, %v758_v44  ;;  %v761_v56 = vadd.f32 %v1291_v45, %v1591_v50 }
 0x12a   : > { %v938_v57 = vsel %vm780_vm1, %v897_v49, 0.0  ;;  %792 = vst.msk [vmem:[%s1598_s27 + $0x58] sm:$0xff] %vm780_vm1, %v697_v51  ;;  %v835_v58 = vsel %vm780_vm1, %v697_v51, 0.0  ;;  %v898_v59 = vmul.f32 %v697_v51, %v697_v51  ;;  %v1244_v60 = vpop.f32.mrb[24].mxu0  ;;  %v1292_v6 = vpop.f32.mrb[24].mxu1 }
 0x12b   : > { %v939_v61 = vadd.f32 %v938_v57, %v937_v33  ;;  %v836_v63 = vadd.f32 %v835_v58, %v834_v52  ;;  %v1245_v3 = vpop.f32.mrb[25].mxu0  ;;  %v1756_v4 = vsel %vm780_vm1, %v913_v54, 0.0  ;;  %808 = vst.msk [vmem:[%s1598_s27 + $0xd8] sm:$0xff] %vm780_vm1, %v761_v56  ;;  %v1761_v5 = vsel %vm780_vm1, %v761_v56, 0.0  ;;  %v1293_v14 = vpop.f32.mrb[25].mxu1 }
 0x12c   : > { %v940_v7 = vsel %vm780_vm1, %v898_v59, 0.0  ;;  %v1246_v8 = vadd.f32 %v1245_v3, %v1244_v60  ;;  %v1247_v9 = vpop.f32.mrb[26].mxu0  ;;  %v914_v13 = vmul.f32 %v761_v56, %v761_v56  ;;  %v1294_v17 = vadd.f32 %v1293_v14, %v1292_v6  ;;  %v1295_v19 = vpop.f32.mrb[26].mxu1 }
 0x12d   : > { %v941_v15 = vadd.f32 %v940_v7, %v939_v61  ;;  %v1248_v16 = vpop.f32.mrb[27].mxu0  ;;  %v1296_v25 = vpop.f32.mrb[27].mxu1 }
 0x12e   : > { %v702_v20 = vadd.f32 %v1246_v8, %v1591_v50  ;;  %v1249_v21 = vadd.f32 %v1248_v16, %v1247_v9  ;;  %v1766_v22 = vsel %vm780_vm1, %v914_v13, 0.0  ;;  %v766_v27 = vadd.f32 %v1294_v17, %v1591_v50 }
 0x12f   : > { %v1297_v28 = vadd.f32 %v1296_v25, %v1295_v19 }
 0x130   : > { %793 = vst.msk [vmem:[%s1598_s27 + $0x60] sm:$0xff] %vm780_vm1, %v702_v20  ;;  %v837_v29 = vsel %vm780_vm1, %v702_v20, 0.0  ;;  %v899_v31 = vmul.f32 %v702_v20, %v702_v20  ;;  %v705_v32 = vadd.f32 %v1249_v21, %v1591_v50  ;;  %809 = vst.msk [vmem:[%s1598_s27 + $0xe0] sm:$0xff] %vm780_vm1, %v766_v27  ;;  %v1776_v34 = vsel %vm780_vm1, %v766_v27, 0.0 }
 0x131   : > { %v838_v33 = vadd.f32 %v837_v29, %v836_v63  ;;  %v915_v36 = vmul.f32 %v766_v27, %v766_v27  ;;  %v769_v37 = vadd.f32 %v1297_v28, %v1591_v50  ;;  %v903_v28 = vmul.f32 %v1602_v62, %v1602_v62 }
 0x132   : > { %v942_v38 = vsel %vm780_vm1, %v899_v31, 0.0  ;;  %794 = vst.msk [vmem:[%s1598_s27 + $0x68] sm:$0xff] %vm780_vm1, %v705_v32  ;;  %v839_v39 = vsel %vm780_vm1, %v705_v32, 0.0  ;;  %v900_v43 = vmul.f32 %v705_v32, %v705_v32  ;;  %v1250_v44 = vpop.f32.mrb[28].mxu0  ;;  %v1298_v54 = vpop.f32.mrb[28].mxu1 }
 0x133   : > { %v943_v45 = vadd.f32 %v942_v38, %v941_v15  ;;  %v840_v46 = vadd.f32 %v839_v39, %v838_v33  ;;  %v1251_v49 = vpop.f32.mrb[29].mxu0  ;;  %v1784_v51 = vsel %vm780_vm1, %v915_v36, 0.0  ;;  %810 = vst.msk [vmem:[%s1598_s27 + $0xe8] sm:$0xff] %vm780_vm1, %v769_v37  ;;  %v1789_v52 = vsel %vm780_vm1, %v769_v37, 0.0  ;;  %v1299_v60 = vpop.f32.mrb[29].mxu1 }
 0x134   : > { %v944_v56 = vsel %vm780_vm1, %v900_v43, 0.0  ;;  %v1252_v57 = vadd.f32 %v1251_v49, %v1250_v44  ;;  %v1253_v58 = vpop.f32.mrb[30].mxu0  ;;  %v916_v59 = vmul.f32 %v769_v37, %v769_v37  ;;  %v1300_v3 = vadd.f32 %v1299_v60, %v1298_v54  ;;  %v1301_v6 = vpop.f32.mrb[30].mxu1 }
 0x135   : > { %v945_v61 = vadd.f32 %v944_v56, %v943_v45  ;;  %v1254_v63 = vpop.f32.mrb[31].mxu0  ;;  %v1302_v13 = vpop.f32.mrb[31].mxu1  ;;  %v847_v49 = vsel %vm780_vm1, %v1611_v2, 0.0 }
 0x136   : > { %v710_v7 = vadd.f32 %v1252_v57, %v1591_v50  ;;  %v1255_v8 = vadd.f32 %v1254_v63, %v1253_v58  ;;  %v976_v9 = vsel %vm780_vm1, %v916_v59, 0.0  ;;  %v774_v14 = vadd.f32 %v1300_v3, %v1591_v50 }
 0x137   : > { %v1303_v15 = vadd.f32 %v1302_v13, %v1301_v6 }
 0x138   : > { %795 = vst.msk [vmem:[%s1598_s27 + $0x70] sm:$0xff] %vm780_vm1, %v710_v7  ;;  %v841_v16 = vsel %vm780_vm1, %v710_v7, 0.0  ;;  %v901_v17 = vmul.f32 %v710_v7, %v710_v7  ;;  %v713_v19 = vadd.f32 %v1255_v8, %v1591_v50  ;;  %811 = vst.msk [vmem:[%s1598_s27 + $0xf0] sm:$0xff] %vm780_vm1, %v774_v14  ;;  %v873_v21 = vsel %vm780_vm1, %v774_v14, 0.0 }
 0x139   : > { %v842_v20 = vadd.f32 %v841_v16, %v840_v46  ;;  %v917_v25 = vmul.f32 %v774_v14, %v774_v14  ;;  %v777_v27 = vadd.f32 %v1303_v15, %v1591_v50  ;;  %v845_v50 = vsel %vm780_vm1, %v1602_v62, 0.0 }
 0x13a   : > { %v946_v29 = vsel %vm780_vm1, %v901_v17, 0.0  ;;  %796 = vst.msk [vmem:[%s1598_s27 + $0x78] sm:$0xff] %vm780_vm1, %v713_v19  ;;  %v843_v31 = vsel %vm780_vm1, %v713_v19, 0.0  ;;  %v902_v32 = vmul.f32 %v713_v19, %v713_v19  ;;  %v950_v46 = vsel %vm780_vm1, %v903_v28, 0.0  ;;  %v813_v17 = vld [vmem:[%s1576_s15] sm:$0x1] }
 0x13b   : > { %v947_v33 = vadd.f32 %v946_v29, %v945_v61  ;;  %v844_v36 = vadd.f32 %v843_v31, %v842_v20  ;;  %v978_v37 = vsel %vm780_vm1, %v917_v25, 0.0  ;;  %812 = vst.msk [vmem:[%s1598_s27 + $0xf8] sm:$0xff] %vm780_vm1, %v777_v27  ;;  %v875_v38 = vsel %vm780_vm1, %v777_v27, 0.0 }
 0x13c   : > { %v948_v39 = vsel %vm780_vm1, %v902_v32, 0.0  ;;  %v918_v43 = vmul.f32 %v777_v27, %v777_v27 }
 0x13d   : > { %v846_v44 = vadd.f32 %v845_v50, %v844_v36  ;;  %v949_v45 = vadd.f32 %v948_v39, %v947_v33 }
 0x13e   : > { %v980_v54 = vsel %vm780_vm1, %v918_v43, 0.0 }
 0x13f   : > { %v848_v56 = vadd.f32 %v847_v49, %v846_v44  ;;  %v951_v57 = vadd.f32 %v950_v46, %v949_v45 }
 0x141   : > { %v850_v58 = vadd.f32 %v1636_v30, %v848_v56  ;;  %v953_v59 = vadd.f32 %v1625_v18, %v951_v57 }
 0x143   : > { %v852_v62 = vadd.f32 %v1649_v41, %v850_v58  ;;  %v955_v60 = vadd.f32 %v1644_v40, %v953_v59 }
 0x145   : > { %v957_v61 = vadd.f32 %v1654_v55, %v955_v60  ;;  %v854_v63 = vadd.f32 %v1664_v0, %v852_v62 }
 0x147   : > { %v856_v3 = vadd.f32 %v1677_v12, %v854_v63  ;;  %v959_v2 = vadd.f32 %v1672_v11, %v957_v61 }
 0x149   : > { %v858_v6 = vadd.f32 %v1692_v35, %v856_v3  ;;  %v961_v7 = vadd.f32 %v1682_v26, %v959_v2 }
 0x14b   : > { %v860_v30 = vadd.f32 %v1705_v48, %v858_v6  ;;  %v963_v18 = vadd.f32 %v1700_v47, %v961_v7 }
 0x14d   : > { %v862_v41 = vadd.f32 %v1720_v10, %v860_v30  ;;  %v965_v40 = vadd.f32 %v1710_v1, %v963_v18 }
 0x14f   : > { %v967_v55 = vadd.f32 %v1728_v23, %v965_v40  ;;  %v864_v0 = vadd.f32 %v1733_v24, %v862_v41 }
 0x151   : > { %v969_v12 = vadd.f32 %v1738_v42, %v967_v55  ;;  %v866_v11 = vadd.f32 %v1748_v53, %v864_v0 }
 0x153   : > { %v971_v35 = vadd.f32 %v1756_v4, %v969_v12  ;;  %v868_v26 = vadd.f32 %v1761_v5, %v866_v11 }
 0x155   : > { %v973_v48 = vadd.f32 %v1766_v22, %v971_v35  ;;  %v870_v47 = vadd.f32 %v1776_v34, %v868_v26 }
 0x157   : > { %v975_v10 = vadd.f32 %v1784_v51, %v973_v48  ;;  %v872_v1 = vadd.f32 %v1789_v52, %v870_v47 }
 0x159   : > { %v977_v23 = vadd.f32 %v976_v9, %v975_v10  ;;  %v874_v8 = vadd.f32 %v873_v21, %v872_v1  ;;  %v886_v9 = vld [vmem:[%s1582_s23] sm:$0x1] }
 0x15b   : > { %v979_v24 = vadd.f32 %v978_v37, %v977_v23  ;;  %v876_v42 = vadd.f32 %v875_v38, %v874_v8 }
 0x15d   : > { %v877_v13 = vrot.slane %v876_v42, 4  ;;  %v981_v53 = vadd.f32 %v980_v54, %v979_v24 }
 0x15f   : > { %v878_v4 = vadd.f32 %v877_v13, %v876_v42  ;;  %v982_v5 = vrot.slane %v981_v53, 4 }
 0x161   : > { %v879_v14 = vrot.slane %v878_v4, 2  ;;  %v983_v22 = vadd.f32 %v982_v5, %v981_v53 }
 0x163   : > { %v880_v15 = vadd.f32 %v879_v14, %v878_v4  ;;  %v984_v34 = vrot.slane %v983_v22, 2 }
 0x165   : > { %v881_v16 = vrot.slane %v880_v15, 1  ;;  %v985_v51 = vadd.f32 %v984_v34, %v983_v22 }
 0x167   : > { %v882_v19 = vadd.f32 %v881_v16, %v880_v15  ;;  %v986_v52 = vrot.slane %v985_v51, 1 }
 0x169   : > { %v883_v20 = vadd.f32 %v882_v19, %v813_v17  ;;  %v987_v21 = vadd.f32 %v986_v52, %v985_v51 }
 0x16b   : > { %885 = vst.msk [vmem:[%s1576_s15] sm:$0x1] %vm289_vm0, %v883_v20  ;;  %v988_v25 = vadd.f32 %v987_v21, %v886_v9 }
 0x16d   : > { %989 = vst.msk [vmem:[%s1582_s23] sm:$0x1] %vm289_vm0, %v988_v25 }
 0x16e PF: > { %s16_s20 = sadd.s32 1, %s1431_s20   ;;  %s1865_s18 = smov %s1427_s19 }
 0x16f   : > { %p13_p5 = scmp.ge.s32.totalorder %s16_s20, 4   ;;  %s1866_s19 = smov %s1868_s21 }
 0x171   :  { %15 = sbr.rel (!%p13_p5) target bundleno = 2 (0x2), region = 90 }

// kernel: transform_net.23
= control target key start
LH: loop header
LB: loop body
LE: loop exit
PB: predicated region body
PF: predicated region fallthrough
CT: control target
= control target key end

     0   :  { %s1152_s18 = smov 0   ;;  %s1154_s19 = smov 0   ;;  %s1348_s0 = inlined_call_operand.vmem [shape: bf16[2,64,384], index: 0, kind: input, shape index: {}]   ;;  %s1349_s1 = inlined_call_operand.vmem [shape: bf16[384,64], index: 1, kind: input, shape index: {}]   ;;  %s1350_s2 = inlined_call_operand.vmem [shape: f32[1,64], index: 2, kind: input, shape index: {}]   ;;  %s1351_s3 = inlined_call_operand.vmem [shape: f32[2,64,64], index: 3, kind: output, shape index: {0}]   ;;  %s1352_s4 = inlined_call_operand.vmem [shape: f32[2,1,64], index: 4, kind: output, shape index: {1}]   ;;  %s1353_s5 = inlined_call_operand.vmem [shape: f32[2,1,64], index: 5, kind: output, shape index: {2}]  }
   0x1   :  { %s1156_s20 = smov 0  }
   0x2 LB: > { %s28_s21 = sadd.s32 1, %s1115_s19  ;;  %p911_p0 = scmp.ge.s32.totalorder %s1119_s20, 1  ;;  %s1119_s20 = sphi %s1156_s20, %s16_s20   ;;  %s1115_s19 = sphi %s1154_s19, %s1355_s19   ;;  %s1111_s18 = sphi %s1152_s18, %s1354_s18  }
   0x3   : > { %p30_p1 = scmp.ge.s32.totalorder %s28_s21, 2  ;;  %p214_p2 = scmp.lt.s32.totalorder %s1119_s20, 3 }
   0x5   : > { %s1357_s21 = smov (%p30_p1, %s28_s21), 0  ;;  %p215_p3 = pnand %p911_p0, %p214_p2 }
   0x6   : > { %v1057_v0 = vld [vmem:[%s1349_s1 + $0x40] sm:$0xff] (!%p215_p3)   ;;  %v1059_v2 = vld [vmem:[%s1349_s1 + $0x48] sm:$0xff] (!%p215_p3)   ;;  %v1062_v5 = vld [vmem:[%s1349_s1 + $0x50] sm:$0xff] (!%p215_p3)   ;;  %p258_p4 = scmp.lt.s32.totalorder (!%p215_p3), %s1111_s18, 1  ;;  %vm289_vm0 = vcmask (!%p215_p3), 516096   ;;  %v1121_v36 = vmov (!%p215_p3), 0.0  }
   0x7   : > { %218 = sbr.rel (%p215_p3) target bundleno = 304 (0x130), region = 32  ;;  %v1058_v1 = vld [vmem:[%s1349_s1] sm:$0xff] (!%p215_p3)   ;;  %955 = vmatprep.subr.bf16.mxu0 (!%p215_p3), %v1057_v0  ;;  %v1061_v4 = vld [vmem:[%s1349_s1 + $0x8] sm:$0xff] (!%p215_p3)   ;;  %v1064_v7 = vld [vmem:[%s1349_s1 + $0x10] sm:$0xff] (!%p215_p3)   ;;  %vm701_vm1 = vcmask (!%p215_p3), 523264  }
   0x8   : > { %956 = vmatpush3.bf16.msra.mxu0 (!%p215_p3), %v1058_v1  ;;  %v1060_v3 = vld [vmem:[%s1349_s1 + $0x80] sm:$0xff] (!%p215_p3)   ;;  %v1063_v6 = vld [vmem:[%s1349_s1 + $0x88] sm:$0xff] (!%p215_p3)   ;;  %v1065_v8 = vld [vmem:[%s1349_s1 + $0x58] sm:$0xff] (!%p215_p3)  }
   0x9   : > { %957 = vmatprep.subr.bf16.mxu0 (!%p215_p3), %v1059_v2  ;;  %1007 = vmatprep.subr.bf16.mxu1 (!%p215_p3), %v1060_v3  ;;  %v1066_v9 = vld [vmem:[%s1349_s1 + $0x90] sm:$0xff] (!%p215_p3)   ;;  %v1067_v10 = vld [vmem:[%s1349_s1 + $0x18] sm:$0xff] (!%p215_p3)   ;;  %v1068_v11 = vld [vmem:[%s1349_s1 + $0x60] sm:$0xff] (!%p215_p3)  }
   0xa   : > { %1008 = vmatpush3.bf16.msra.mxu1 (!%p215_p3), %v1060_v3  ;;  %v1069_v12 = vld [vmem:[%s1349_s1 + $0x98] sm:$0xff] (!%p215_p3)   ;;  %v1070_v13 = vld [vmem:[%s1349_s1 + $0x20] sm:$0xff] (!%p215_p3)   ;;  %v1071_v15 = vld [vmem:[%s1349_s1 + $0x68] sm:$0xff] (!%p215_p3)  }
   0xb   : > { %1009 = vmatprep.subr.bf16.mxu1 (!%p215_p3), %v1063_v6  ;;  %v1072_v14 = vld [vmem:[%s1349_s1 + $0xa0] sm:$0xff] (!%p215_p3)   ;;  %v1073_v16 = vld [vmem:[%s1349_s1 + $0x28] sm:$0xff] (!%p215_p3)   ;;  %v1074_v18 = vld [vmem:[%s1349_s1 + $0x70] sm:$0xff] (!%p215_p3)  }
   0xc   : > { %958 = vmatpush3.bf16.msra.mxu0 (!%p215_p3), %v1061_v4  ;;  %v1075_v17 = vld [vmem:[%s1349_s1 + $0xa8] sm:$0xff] (!%p215_p3)   ;;  %v1076_v19 = vld [vmem:[%s1349_s1 + $0x30] sm:$0xff] (!%p215_p3)   ;;  %v1077_v20 = vld [vmem:[%s1349_s1 + $0x78] sm:$0xff] (!%p215_p3)  }
   0xd   : > { %959 = vmatprep.subr.bf16.mxu0 (!%p215_p3), %v1062_v5  ;;  %v1078_v21 = vld [vmem:[%s1349_s1 + $0xb0] sm:$0xff] (!%p215_p3)   ;;  %v1079_v23 = vld [vmem:[%s1349_s1 + $0x38] sm:$0xff] (!%p215_p3)   ;;  %v1285_v39 = vld [vmem:[%s1350_s2] ss:$0 sm:$0xff] (!%p215_p3) }
   0xe   : > { %1010 = vmatpush3.bf16.msra.mxu1 %v1063_v6  ;;  %s1359_s18 = smov (!%p258_p4, %s1111_s18), 1  ;;  %v1083_v25 = vld [vmem:[%s1349_s1 + $0xb8] sm:$0xff]  }
   0xf   : > { %1011 = vmatprep.subr.bf16.mxu1 %v1066_v9  ;;  %s1031_s8 = smul.u32 96, %s1359_s18  ;;  %s1270_s9 = scalar_lea.vmem %s1352_s4, %s1359_s18 }
  0x10   : > { %960 = vmatpush3.bf16.msra.mxu0 %v1064_v7  ;;  %s1276_s12 = scalar_lea.vmem %s1353_s5, %s1359_s18  ;;  %290 = vst.msk [vmem:[%s1270_s9] sm:$0x1] %vm289_vm0, %v1121_v36  ;;  %s954_s15 = sshll.u32 %s1359_s18, 6 }
  0x11   : > { %961 = vmatprep.subr.bf16.mxu0 %v1065_v8  ;;  %s1240_s23 = scalar_lea.vmem %s1348_s0, %s1031_s8  ;;  %291 = vst.msk [vmem:[%s1276_s12] sm:$0x1] %vm289_vm0, %v1121_v36  ;;  %s1292_s22 = scalar_lea.vmem %s1351_s3, %s954_s15 }
  0x12   : > { %1012 = vmatpush3.bf16.msra.mxu1 %v1066_v9  ;;  %v1082_v22 = vld [vmem:[%s1240_s23 + $0x4] ss:$12 sps:$4 sm:$0xff]   ;;  %v1084_v24 = vld [vmem:[%s1240_s23 + $0x8] ss:$12 sps:$4 sm:$0xff]   ;;  %v1080_v26 = vld [vmem:[%s1240_s23] ss:$12 sps:$4 sm:$0xff]  }
  0x13   : > { %1013 = vmatprep.subr.bf16.mxu1 %v1069_v12  ;;  %603 = vmatprep.mubr.bf16.mxu0 %v1082_v22  ;;  %v1086_v27 = vld [vmem:[%s1240_s23 + $0x1c] ss:$12 sps:$4 sm:$0xff]   ;;  %v1085_v28 = vld [vmem:[%s1240_s23 + $0x20] ss:$12 sps:$4 sm:$0xff]   ;;  %v1092_v29 = vld [vmem:[%s1240_s23 + $0x38] ss:$12 sps:$4 sm:$0xff]  }
  0x14   : > { %962 = vmatpush3.bf16.msra.mxu0 %v1067_v10  ;;  %1023 = vmatprep.mubr.bf16.mxu1 %v1084_v24  ;;  %v1088_v30 = vld [vmem:[%s1240_s23 + $0x18] ss:$12 sps:$4 sm:$0xff]   ;;  %v1089_v31 = vld [vmem:[%s1240_s23 + $0x34] ss:$12 sps:$4 sm:$0xff]   ;;  %v1093_v32 = vld [vmem:[%s1240_s23 + $0x50] ss:$12 sps:$4 sm:$0xff]  }
  0x15   : > { %963 = vmatprep.subr.bf16.mxu0 %v1068_v11  ;;  %v1091_v33 = vld [vmem:[%s1240_s23 + $0x30] ss:$12 sps:$4 sm:$0xff]   ;;  %v1094_v34 = vld [vmem:[%s1240_s23 + $0x4c] ss:$12 sps:$4 sm:$0xff]   ;;  %v1096_v35 = vld [vmem:[%s1240_s23 + $0x48] ss:$12 sps:$4 sm:$0xff]  }
  0x16   : > { %1014 = vmatpush3.bf16.msra.mxu1 %v1069_v12 }
  0x17   : > { %1015 = vmatprep.subr.bf16.mxu1 %v1072_v14 }
  0x18   : > { %964 = vmatpush3.bf16.msra.mxu0 %v1070_v13 }
  0x19   : > { %965 = vmatprep.subr.bf16.mxu0 %v1071_v15 }
  0x1a   : > { %1016 = vmatpush3.bf16.msra.mxu1 %v1072_v14 }
  0x1b   : > { %1017 = vmatprep.subr.bf16.mxu1 %v1075_v17 }
  0x1c   : > { %966 = vmatpush3.bf16.msra.mxu0 %v1073_v16 }
  0x1d   : > { %967 = vmatprep.subr.bf16.mxu0 %v1074_v18 }
  0x1e   : > { %1018 = vmatpush3.bf16.msra.mxu1 %v1075_v17 }
  0x1f   : > { %1019 = vmatprep.subr.bf16.mxu1 %v1078_v21 }
  0x20   : > { %968 = vmatpush3.bf16.msra.mxu0 %v1076_v19 }
  0x21   : > { %969 = vmatprep.subr.bf16.mxu0 %v1077_v20 }
  0x22   : > { %1020 = vmatpush3.bf16.msra.mxu1 %v1078_v21 }
  0x23   : > { %1021 = vmatprep.subr.bf16.mxu1 %v1083_v25 }
  0x24   : > { %970 = vmatpush3.bf16.msra.mxu0 %v1079_v23 }
  0x26   : > { %1022 = vmatpush3.bf16.msra.mxu1 %v1083_v25 }
  0x27   : > { %604 = vmatmul.mubr.bf16.vlgmr.msra.gmra.mrb[0].mxu0 %v1080_v26 }
  0x28   : > { %611 = vmatprep.mubr.bf16.mxu0 %v1086_v27 }
  0x29   : > { %1024 = vmatmul.mubr.bf16.vlgmr.msra.gmra.mrb[0].mxu1 %v1085_v28 }
  0x2a   : > { %1027 = vmatprep.mubr.bf16.mxu1 %v1092_v29 }
  0x2f   : > { %612 = vmatmul.mubr.bf16.gmra.mrb[4].mxu0 %v1088_v30 }
  0x30   : > { %619 = vmatprep.mubr.bf16.mxu0 %v1089_v31 }
  0x31   : > { %1028 = vmatmul.mubr.bf16.gmra.mrb[4].mxu1 %v1093_v32 }
  0x37   : > { %620 = vmatmul.mubr.bf16.gmra.mrb[8].mxu0 %v1091_v33 }
  0x38   : > { %627 = vmatprep.mubr.bf16.mxu0 %v1094_v34 }
  0x3f   : > { %628 = vmatmul.mubr.bf16.gmra.mrb[12].mxu0 %v1096_v35 }
  0xfa   : > { %v971_v37 = vpop.f32.mrb[0].mxu0 }
  0xfb   : > { %v972_v38 = vpop.f32.mrb[1].mxu0 }
  0xfc   : > { %v973_v40 = vadd.f32 %v972_v38, %v971_v37  ;;  %v974_v41 = vpop.f32.mrb[2].mxu0  ;;  %v1025_v43 = vpop.f32.mrb[0].mxu1 }
  0xfd   : > { %v975_v42 = vpop.f32.mrb[3].mxu0  ;;  %v670_v46 = vpop.f32.mrb[1].mxu1 }
  0xfe   : > { %v976_v44 = vadd.f32 %v975_v42, %v974_v41  ;;  %v606_v45 = vadd.f32 %v973_v40, %v1285_v39  ;;  %v1026_v47 = vpop.f32.mrb[2].mxu1 }
  0xff   : > { %v673_v50 = vpop.f32.mrb[3].mxu1 }
 0x100   : > { %v671_v48 = vadd.f32 %v670_v46, %v606_v45  ;;  %v609_v49 = vadd.f32 %v976_v44, %v1285_v39 }
 0x102   : > { %702 = vst.msk [vmem:[%s1292_s22] sm:$0xff] %vm701_vm1, %v671_v48  ;;  %v736_v51 = vmul.f32 %v671_v48, %v671_v48  ;;  %v674_v52 = vadd.f32 %v673_v50, %v609_v49  ;;  %v977_v53 = vpop.f32.mrb[4].mxu0  ;;  %v711_v55 = vsel %vm701_vm1, %v671_v48, 0.0 }
 0x103   : > { %v978_v54 = vpop.f32.mrb[5].mxu0 }
 0x104   : > { %703 = vst.msk [vmem:[%s1292_s22 + $0x8] sm:$0xff] %vm701_vm1, %v674_v52  ;;  %v712_v56 = vsel %vm701_vm1, %v674_v52, 0.0  ;;  %v737_v57 = vmul.f32 %v674_v52, %v674_v52  ;;  %v979_v58 = vadd.f32 %v978_v54, %v977_v53  ;;  %v980_v59 = vpop.f32.mrb[6].mxu0  ;;  %v1029_v62 = vpop.f32.mrb[4].mxu1  ;;  %v744_v63 = vsel %vm701_vm1, %v736_v51, 0.0 }
 0x105   : > { %v713_v60 = vadd.f32 %v712_v56, %v711_v55  ;;  %v981_v61 = vpop.f32.mrb[7].mxu0  ;;  %v686_v3 = vpop.f32.mrb[5].mxu1 }
 0x106   : > { %v745_v0 = vsel %vm701_vm1, %v737_v57, 0.0  ;;  %v614_v1 = vadd.f32 %v979_v58, %v1285_v39  ;;  %v982_v2 = vadd.f32 %v981_v61, %v980_v59  ;;  %v1030_v5 = vpop.f32.mrb[6].mxu1 }
 0x107   : > { %v746_v4 = vadd.f32 %v745_v0, %v744_v63  ;;  %v689_v8 = vpop.f32.mrb[7].mxu1 }
 0x108   : > { %v679_v6 = vadd.f32 %v1025_v43, %v614_v1  ;;  %v617_v7 = vadd.f32 %v982_v2, %v1285_v39 }
 0x10a   : > { %704 = vst.msk [vmem:[%s1292_s22 + $0x10] sm:$0xff] %vm701_vm1, %v679_v6  ;;  %v714_v9 = vsel %vm701_vm1, %v679_v6, 0.0  ;;  %v738_v10 = vmul.f32 %v679_v6, %v679_v6  ;;  %v682_v11 = vadd.f32 %v1026_v47, %v617_v7  ;;  %v983_v12 = vpop.f32.mrb[8].mxu0 }
 0x10b   : > { %v984_v13 = vpop.f32.mrb[9].mxu0  ;;  %v715_v14 = vadd.f32 %v714_v9, %v713_v60 }
 0x10c   : > { %v747_v15 = vsel %vm701_vm1, %v738_v10, 0.0  ;;  %705 = vst.msk [vmem:[%s1292_s22 + $0x18] sm:$0xff] %vm701_vm1, %v682_v11  ;;  %v739_v16 = vmul.f32 %v682_v11, %v682_v11  ;;  %v985_v17 = vadd.f32 %v984_v13, %v983_v12  ;;  %v986_v18 = vpop.f32.mrb[10].mxu0  ;;  %v716_v19 = vsel %vm701_vm1, %v682_v11, 0.0 }
 0x10d   : > { %v987_v20 = vpop.f32.mrb[11].mxu0  ;;  %v717_v21 = vadd.f32 %v716_v19, %v715_v14  ;;  %v748_v22 = vadd.f32 %v747_v15, %v746_v4 }
 0x10e   : > { %v988_v23 = vadd.f32 %v987_v20, %v986_v18  ;;  %v622_v24 = vadd.f32 %v985_v17, %v1285_v39  ;;  %v749_v25 = vsel %vm701_vm1, %v739_v16, 0.0 }
 0x10f   : > { %v750_v26 = vadd.f32 %v749_v25, %v748_v22 }
 0x110   : > { %v687_v27 = vadd.f32 %v686_v3, %v622_v24  ;;  %v625_v28 = vadd.f32 %v988_v23, %v1285_v39 }
 0x112   : > { %706 = vst.msk [vmem:[%s1292_s22 + $0x20] sm:$0xff] %vm701_vm1, %v687_v27  ;;  %v718_v29 = vsel %vm701_vm1, %v687_v27, 0.0  ;;  %v740_v30 = vmul.f32 %v687_v27, %v687_v27  ;;  %v690_v31 = vadd.f32 %v689_v8, %v625_v28  ;;  %v989_v32 = vpop.f32.mrb[12].mxu0  ;;  %v735_v8 = vld [vmem:[%s1276_s12] sm:$0x1] }
 0x113   : > { %v719_v33 = vadd.f32 %v718_v29, %v717_v21  ;;  %v990_v34 = vpop.f32.mrb[13].mxu0 }
 0x114   : > { %v751_v35 = vsel %vm701_vm1, %v740_v30, 0.0  ;;  %707 = vst.msk [vmem:[%s1292_s22 + $0x28] sm:$0xff] %vm701_vm1, %v690_v31  ;;  %v720_v36 = vsel %vm701_vm1, %v690_v31, 0.0  ;;  %v741_v37 = vmul.f32 %v690_v31, %v690_v31  ;;  %v991_v38 = vadd.f32 %v990_v34, %v989_v32  ;;  %v992_v40 = vpop.f32.mrb[14].mxu0 }
 0x115   : > { %v752_v41 = vadd.f32 %v751_v35, %v750_v26  ;;  %v721_v42 = vadd.f32 %v720_v36, %v719_v33  ;;  %v993_v43 = vpop.f32.mrb[15].mxu0 }
 0x116   : > { %v753_v44 = vsel %vm701_vm1, %v741_v37, 0.0  ;;  %v630_v45 = vadd.f32 %v991_v38, %v1285_v39  ;;  %v994_v46 = vadd.f32 %v993_v43, %v992_v40 }
 0x117   : > { %v754_v47 = vadd.f32 %v753_v44, %v752_v41 }
 0x118   : > { %v695_v48 = vadd.f32 %v1029_v62, %v630_v45  ;;  %v633_v49 = vadd.f32 %v994_v46, %v1285_v39 }
 0x11a   : > { %708 = vst.msk [vmem:[%s1292_s22 + $0x30] sm:$0xff] %vm701_vm1, %v695_v48  ;;  %v722_v50 = vsel %vm701_vm1, %v695_v48, 0.0  ;;  %v742_v51 = vmul.f32 %v695_v48, %v695_v48  ;;  %v698_v52 = vadd.f32 %v1030_v5, %v633_v49  ;;  %v710_v5 = vld [vmem:[%s1270_s9] sm:$0x1] }
 0x11b   : > { %v723_v53 = vadd.f32 %v722_v50, %v721_v42 }
 0x11c   : > { %v755_v54 = vsel %vm701_vm1, %v742_v51, 0.0  ;;  %709 = vst.msk [vmem:[%s1292_s22 + $0x38] sm:$0xff] %vm701_vm1, %v698_v52  ;;  %v724_v55 = vsel %vm701_vm1, %v698_v52, 0.0  ;;  %v743_v56 = vmul.f32 %v698_v52, %v698_v52 }
 0x11d   : > { %v756_v57 = vadd.f32 %v755_v54, %v754_v47  ;;  %v725_v58 = vadd.f32 %v724_v55, %v723_v53 }
 0x11e   : > { %v757_v39 = vsel %vm701_vm1, %v743_v56, 0.0 }
 0x11f   : > { %v726_v59 = vrot.slane %v725_v58, 4  ;;  %v758_v60 = vadd.f32 %v757_v39, %v756_v57 }
 0x121   : > { %v727_v61 = vadd.f32 %v726_v59, %v725_v58  ;;  %v759_v62 = vrot.slane %v758_v60, 4 }
 0x123   : > { %v728_v63 = vrot.slane %v727_v61, 2  ;;  %v760_v0 = vadd.f32 %v759_v62, %v758_v60 }
 0x125   : > { %v729_v1 = vadd.f32 %v728_v63, %v727_v61  ;;  %v761_v2 = vrot.slane %v760_v0, 2 }
 0x127   : > { %v730_v3 = vrot.slane %v729_v1, 1  ;;  %v762_v4 = vadd.f32 %v761_v2, %v760_v0 }
 0x129   : > { %v731_v6 = vadd.f32 %v730_v3, %v729_v1  ;;  %v763_v7 = vrot.slane %v762_v4, 1 }
 0x12b   : > { %v732_v9 = vadd.f32 %v731_v6, %v710_v5  ;;  %v764_v10 = vadd.f32 %v763_v7, %v762_v4 }
 0x12d   : > { %734 = vst.msk [vmem:[%s1270_s9] sm:$0x1] %vm289_vm0, %v732_v9  ;;  %v765_v11 = vadd.f32 %v764_v10, %v735_v8 }
 0x12f   : > { %766 = vst.msk [vmem:[%s1276_s12] sm:$0x1] %vm289_vm0, %v765_v11 }
 0x130 PF: > { %s16_s20 = sadd.s32 1, %s1119_s20   ;;  %s1354_s18 = smov %s1115_s19 }
 0x131   : > { %p13_p5 = scmp.ge.s32.totalorder %s16_s20, 4   ;;  %s1355_s19 = smov %s1357_s21 }
 0x133   :  { %15 = sbr.rel (!%p13_p5) target bundleno = 2 (0x2), region = 90 }

// kernel: transform_net.24
= control target key start
LH: loop header
LB: loop body
LE: loop exit
PB: predicated region body
PF: predicated region fallthrough
CT: control target
= control target key end

     0   :  { %s557_s18 = smov 0   ;;  %s559_s19 = smov 0   ;;  %s619_s0 = inlined_call_operand.vmem [shape: f32[2,64,64], index: 0, kind: input, shape index: {}]   ;;  %s620_s1 = inlined_call_operand.vmem [shape: f32[2,1,64], index: 1, kind: input, shape index: {}]   ;;  %s621_s2 = inlined_call_operand.vmem [shape: f32[2,1,64], index: 2, kind: input, shape index: {}]   ;;  %s622_s3 = inlined_call_operand.vmem [shape: f32[1,64], index: 3, kind: input, shape index: {}]   ;;  %s623_s4 = inlined_call_operand.vmem [shape: f32[1,64], index: 4, kind: input, shape index: {}]   ;;  %s624_s5 = inlined_call_operand.vmem [shape: f32[2,64,64], index: 5, kind: output, shape index: {}]  }
   0x1   :  { %s561_s20 = smov 0  }
   0x2 LB: > { %s27_s21 = sadd.s32 1, %s521_s19  ;;  %p468_p0 = scmp.ge.s32.totalorder %s525_s20, 1  ;;  %s525_s20 = sphi %s561_s20, %s15_s20   ;;  %s521_s19 = sphi %s559_s19, %s626_s19   ;;  %s517_s18 = sphi %s557_s18, %s625_s18  }
   0x3   : > { %p29_p1 = scmp.ge.s32.totalorder %s27_s21, 2  ;;  %p224_p2 = scmp.lt.s32.totalorder %s525_s20, 3 }
   0x5   : > { %s628_s21 = smov (%p29_p1, %s27_s21), 0  ;;  %p225_p3 = pnand %p468_p0, %p224_p2 }
   0x6   : > { %p267_p4 = scmp.lt.s32.totalorder (!%p225_p3), %s517_s18, 1  ;;  %v315_v8 = vlaneseq (!%p225_p3)  ;;  %v307_v10 = vld [vmem:[%s622_s3] sm:$0x1] (!%p225_p3)  ;;  %vm350_vm0 = vcmask (!%p225_p3), 523264  }
   0x7   : > { %228 = sbr.rel (%p225_p3) target bundleno = 54 (0x36), region = 40  ;;  %v311_v15 = vld [vmem:[%s623_s4] sm:$0x1] (!%p225_p3) }
   0x8   : > { %v316_v9 = vshrl.u32 (!%p225_p3), %v315_v8, 7 }
   0xa   : > { %v317_v11 = vsub.s32 (!%p225_p3), 0, %v316_v9 }
   0xe   : > { %s630_s18 = smov (!%p267_p4, %s517_s18), 1 }
   0xf   : > { %s278_s24 = scalar_lea.vmem %s620_s1, %s630_s18  ;;  %s281_s27 = scalar_lea.vmem %s621_s2, %s630_s18 }
  0x10   : > { %v300_v0 = vld [vmem:[%s278_s24] sm:$0x1]  ;;  %s475_s28 = sshll.u32 %s630_s18, 6 }
  0x11   : > { %v301_v1 = vmul.f32 0.015625, %v300_v0  ;;  %v302_v2 = vld [vmem:[%s281_s27] sm:$0x1]  ;;  %s274_s6 = scalar_lea.vmem %s619_s0, %s475_s28  ;;  %s290_s13 = scalar_lea.vmem %s624_s5, %s475_s28 }
  0x12   : > { %v303_v3 = vmul.f32 0.015625, %v302_v2  ;;  %v292_v13 = vld [vmem:[%s274_s6] sm:$0xff]  ;;  %v293_v16 = vld [vmem:[%s274_s6 + $0x8] sm:$0xff]  ;;  %v294_v17 = vld [vmem:[%s274_s6 + $0x10] sm:$0xff] }
  0x13   : > { %v304_v4 = vmul.f32 %v301_v1, %v301_v1  ;;  %v295_v18 = vld [vmem:[%s274_s6 + $0x18] sm:$0xff]  ;;  %v296_v21 = vld [vmem:[%s274_s6 + $0x20] sm:$0xff]  ;;  %v297_v22 = vld [vmem:[%s274_s6 + $0x28] sm:$0xff] }
  0x14   : > { %v298_v23 = vld [vmem:[%s274_s6 + $0x30] sm:$0xff]  ;;  %v299_v24 = vld [vmem:[%s274_s6 + $0x38] sm:$0xff] }
  0x15   : > { %v305_v5 = vsub.f32 %v303_v3, %v304_v4 }
  0x17   : > { %v306_v6 = vmax.f32 %v305_v5, 0.0 }
  0x19   : > { %v308_v7 = vadd.f32 1e-05, %v306_v6 }
  0x1b   : > { %501 = vrsqrt.f32 %v308_v7 }
  0x25   : > { %v502_v12 = vpop.eup %501 }
  0x26   : > { %v310_v14 = vmul.f32 %v502_v12, %v307_v10 }
  0x28   : > { %v312_v19 = vmul.f32 %v310_v14, %v301_v1  ;;  %v318_v20 = vrot.slane %v310_v14, %v317_v11 }
  0x2a   : > { %v313_v25 = vsub.f32 %v311_v15, %v312_v19  ;;  %v320_v26 = vmul.f32 %v318_v20, %v292_v13  ;;  %v321_v27 = vmul.f32 %v318_v20, %v293_v16  ;;  %v322_v28 = vmul.f32 %v318_v20, %v294_v17 }
  0x2b   : > { %v323_v29 = vmul.f32 %v318_v20, %v295_v18  ;;  %v324_v30 = vmul.f32 %v318_v20, %v296_v21  ;;  %v325_v31 = vmul.f32 %v318_v20, %v297_v22  ;;  %v326_v32 = vmul.f32 %v318_v20, %v298_v23 }
  0x2c   : > { %v332_v33 = vrot.slane %v313_v25, %v317_v11  ;;  %v327_v34 = vmul.f32 %v318_v20, %v299_v24 }
  0x2e   : > { %v334_v35 = vadd.f32 %v332_v33, %v320_v26  ;;  %v335_v36 = vadd.f32 %v332_v33, %v321_v27  ;;  %v336_v37 = vadd.f32 %v332_v33, %v322_v28  ;;  %v337_v38 = vadd.f32 %v332_v33, %v323_v29 }
  0x2f   : > { %v338_v39 = vadd.f32 %v332_v33, %v324_v30  ;;  %v339_v40 = vadd.f32 %v332_v33, %v325_v31  ;;  %v340_v41 = vadd.f32 %v332_v33, %v326_v32  ;;  %v341_v42 = vadd.f32 %v332_v33, %v327_v34 }
  0x30   : > { %v342_v43 = vmax.f32 %v334_v35, 0.0  ;;  %v343_v44 = vmax.f32 %v335_v36, 0.0  ;;  %v344_v45 = vmax.f32 %v336_v37, 0.0  ;;  %v345_v46 = vmax.f32 %v337_v38, 0.0 }
  0x31   : > { %v346_v47 = vmax.f32 %v338_v39, 0.0  ;;  %v347_v48 = vmax.f32 %v339_v40, 0.0  ;;  %v348_v49 = vmax.f32 %v340_v41, 0.0  ;;  %v349_v50 = vmax.f32 %v341_v42, 0.0 }
  0x32   : > { %351 = vst.msk [vmem:[%s290_s13] sm:$0xff] %vm350_vm0, %v342_v43  ;;  %352 = vst.msk [vmem:[%s290_s13 + $0x8] sm:$0xff] %vm350_vm0, %v343_v44 }
  0x33   : > { %353 = vst.msk [vmem:[%s290_s13 + $0x10] sm:$0xff] %vm350_vm0, %v344_v45  ;;  %354 = vst.msk [vmem:[%s290_s13 + $0x18] sm:$0xff] %vm350_vm0, %v345_v46 }
  0x34   : > { %355 = vst.msk [vmem:[%s290_s13 + $0x20] sm:$0xff] %vm350_vm0, %v346_v47  ;;  %356 = vst.msk [vmem:[%s290_s13 + $0x28] sm:$0xff] %vm350_vm0, %v347_v48 }
  0x35   : > { %357 = vst.msk [vmem:[%s290_s13 + $0x30] sm:$0xff] %vm350_vm0, %v348_v49  ;;  %358 = vst.msk [vmem:[%s290_s13 + $0x38] sm:$0xff] %vm350_vm0, %v349_v50 }
  0x36 PF: > { %s15_s20 = sadd.s32 1, %s525_s20   ;;  %s625_s18 = smov %s521_s19 }
  0x37   : > { %p12_p5 = scmp.ge.s32.totalorder %s15_s20, 4   ;;  %s626_s19 = smov %s628_s21 }
  0x39   :  { %14 = sbr.rel (!%p12_p5) target bundleno = 2 (0x2), region = 76 }

// kernel: transform_net.25
= control target key start
LH: loop header
LB: loop body
LE: loop exit
PB: predicated region body
PF: predicated region fallthrough
CT: control target
= control target key end

     0   :  { %s1197_s18 = smov 0   ;;  %s1199_s19 = smov 0   ;;  %s1386_s0 = inlined_call_operand.vmem [shape: bf16[2,16,640], index: 0, kind: input, shape index: {}]   ;;  %s1387_s1 = inlined_call_operand.vmem [shape: bf16[640,128], index: 1, kind: input, shape index: {}]   ;;  %s1388_s2 = inlined_call_operand.vmem [shape: f32[1,128], index: 2, kind: input, shape index: {}]   ;;  %s1389_s3 = inlined_call_operand.vmem [shape: f32[2,16,128], index: 3, kind: output, shape index: {0}]   ;;  %s1390_s4 = inlined_call_operand.vmem [shape: f32[2,1,128], index: 4, kind: output, shape index: {1}]   ;;  %s1391_s5 = inlined_call_operand.vmem [shape: f32[2,1,128], index: 5, kind: output, shape index: {2}]  }
   0x1   :  { %s1201_s20 = smov 0  }
   0x2 LB: > { %s28_s21 = sadd.s32 1, %s1159_s19  ;;  %p941_p0 = scmp.ge.s32.totalorder %s1163_s20, 1  ;;  %s1163_s20 = sphi %s1201_s20, %s16_s20   ;;  %s1159_s19 = sphi %s1199_s19, %s1393_s19   ;;  %s1155_s18 = sphi %s1197_s18, %s1392_s18  }
   0x3   : > { %p30_p1 = scmp.ge.s32.totalorder %s28_s21, 2  ;;  %p214_p2 = scmp.lt.s32.totalorder %s1163_s20, 3 }
   0x5   : > { %s1395_s21 = smov (%p30_p1, %s28_s21), 0  ;;  %p215_p3 = pnand %p941_p0, %p214_p2 }
   0x6   : > { %v1094_v0 = vld [vmem:[%s1387_s1 + $0x40] sm:$0xff] (!%p215_p3)   ;;  %v1098_v4 = vld [vmem:[%s1387_s1 + $0x48] sm:$0xff] (!%p215_p3)   ;;  %v1102_v8 = vld [vmem:[%s1387_s1 + $0x50] sm:$0xff] (!%p215_p3)   ;;  %p258_p4 = scmp.lt.s32.totalorder (!%p215_p3), %s1155_s18, 1  ;;  %v1165_v33 = vmov (!%p215_p3), 0.0   ;;  %vm1166_vm0 = vmmov (!%p215_p3), 0  }
   0x7   : > { %218 = sbr.rel (%p215_p3) target bundleno = 306 (0x132), region = 32  ;;  %v1095_v1 = vld [vmem:[%s1387_s1] sm:$0xff] (!%p215_p3)   ;;  %994 = vmatprep.subr.bf16.mxu0 (!%p215_p3), %v1094_v0  ;;  %v1099_v5 = vld [vmem:[%s1387_s1 + $0x8] sm:$0xff] (!%p215_p3)   ;;  %v1103_v9 = vld [vmem:[%s1387_s1 + $0x10] sm:$0xff] (!%p215_p3)  }
   0x8   : > { %v1096_v2 = vld [vmem:[%s1387_s1 + $0xc0] sm:$0xff] (!%p215_p3)   ;;  %995 = vmatpush3.bf16.msra.mxu0 (!%p215_p3), %v1095_v1  ;;  %v1100_v6 = vld [vmem:[%s1387_s1 + $0xc8] sm:$0xff] (!%p215_p3)   ;;  %v1104_v10 = vld [vmem:[%s1387_s1 + $0xd0] sm:$0xff] (!%p215_p3)  }
   0x9   : > { %v1097_v3 = vld [vmem:[%s1387_s1 + $0x80] sm:$0xff] (!%p215_p3)   ;;  %1016 = vmatprep.subr.bf16.mxu1 (!%p215_p3), %v1096_v2  ;;  %996 = vmatprep.subr.bf16.mxu0 (!%p215_p3), %v1098_v4  ;;  %v1101_v7 = vld [vmem:[%s1387_s1 + $0x88] sm:$0xff] (!%p215_p3)   ;;  %v1105_v11 = vld [vmem:[%s1387_s1 + $0x90] sm:$0xff] (!%p215_p3)  }
   0xa   : > { %1017 = vmatpush3.bf16.msra.mxu1 (!%p215_p3), %v1097_v3  ;;  %v1106_v12 = vld [vmem:[%s1387_s1 + $0x58] sm:$0xff] (!%p215_p3)   ;;  %v1110_v16 = vld [vmem:[%s1387_s1 + $0x60] sm:$0xff] (!%p215_p3)   ;;  %v1114_v20 = vld [vmem:[%s1387_s1 + $0x68] sm:$0xff] (!%p215_p3)  }
   0xb   : > { %1018 = vmatprep.subr.bf16.mxu1 (!%p215_p3), %v1100_v6  ;;  %v1107_v13 = vld [vmem:[%s1387_s1 + $0x18] sm:$0xff] (!%p215_p3)   ;;  %v1111_v17 = vld [vmem:[%s1387_s1 + $0x20] sm:$0xff] (!%p215_p3)   ;;  %v1115_v21 = vld [vmem:[%s1387_s1 + $0x28] sm:$0xff] (!%p215_p3)  }
   0xc   : > { %997 = vmatpush3.bf16.msra.mxu0 (!%p215_p3), %v1099_v5  ;;  %v1108_v14 = vld [vmem:[%s1387_s1 + $0xd8] sm:$0xff] (!%p215_p3)   ;;  %v1112_v18 = vld [vmem:[%s1387_s1 + $0xe0] sm:$0xff] (!%p215_p3)   ;;  %v1116_v22 = vld [vmem:[%s1387_s1 + $0xe8] sm:$0xff] (!%p215_p3)  }
   0xd   : > { %998 = vmatprep.subr.bf16.mxu0 (!%p215_p3), %v1102_v8  ;;  %v1109_v15 = vld [vmem:[%s1387_s1 + $0x98] sm:$0xff] (!%p215_p3)   ;;  %v1113_v19 = vld [vmem:[%s1387_s1 + $0xa0] sm:$0xff] (!%p215_p3)   ;;  %v1117_v23 = vld [vmem:[%s1387_s1 + $0xa8] sm:$0xff] (!%p215_p3)  }
   0xe   : > { %1019 = vmatpush3.bf16.msra.mxu1 %v1101_v7  ;;  %s1397_s18 = smov (!%p258_p4, %s1155_s18), 1  ;;  %v1118_v24 = vld [vmem:[%s1387_s1 + $0x70] sm:$0xff]   ;;  %v1122_v28 = vld [vmem:[%s1387_s1 + $0x78] sm:$0xff]   ;;  %v1132_v37 = vld [vmem:[%s1387_s1 + $0x100] sm:$0xff]  }
   0xf   : > { %1020 = vmatprep.subr.bf16.mxu1 %v1104_v10  ;;  %s1067_s30 = smul.u32 40, %s1397_s18  ;;  %v1119_v25 = vld [vmem:[%s1387_s1 + $0x30] sm:$0xff]   ;;  %v1123_v29 = vld [vmem:[%s1387_s1 + $0x38] sm:$0xff]   ;;  %v1133_v38 = vld [vmem:[%s1387_s1 + $0x108] sm:$0xff]   ;;  %s1356_s25 = scalar_lea.vmem %s1390_s4, %s1397_s18 }
  0x10   : > { %999 = vmatpush3.bf16.msra.mxu0 %v1103_v9  ;;  %v1120_v26 = vld [vmem:[%s1387_s1 + $0xf0] sm:$0xff]   ;;  %v1124_v30 = vld [vmem:[%s1387_s1 + $0xf8] sm:$0xff]   ;;  %v1136_v41 = vld [vmem:[%s1387_s1 + $0x120] sm:$0xff]   ;;  %s1362_s28 = scalar_lea.vmem %s1391_s5, %s1397_s18  ;;  %289 = vst [vmem:[%s1356_s25] sm:$0x1] %v1165_v33 }
  0x11   : > { %1000 = vmatprep.subr.bf16.mxu0 %v1106_v12  ;;  %v1121_v27 = vld [vmem:[%s1387_s1 + $0xb0] sm:$0xff]   ;;  %s1312_s16 = scalar_lea.vmem %s1386_s0, %s1067_s30  ;;  %v1128_v34 = vld [vmem:[%s1387_s1 + $0xb8] sm:$0xff]   ;;  %v1137_v42 = vld [vmem:[%s1387_s1 + $0x128] sm:$0xff]   ;;  %290 = vst [vmem:[%s1362_s28] sm:$0x1] %v1165_v33 }
  0x12   : > { %1021 = vmatpush3.bf16.msra.mxu1 %v1105_v11  ;;  %v1125_v31 = vld [vmem:[%s1312_s16] ss:$20 sps:$4 sm:$0xff]   ;;  %v1127_v32 = vld [vmem:[%s1312_s16 + $0x4] ss:$20 sps:$4 sm:$0xff]   ;;  %v1129_v35 = vld [vmem:[%s1312_s16 + $0x8] ss:$20 sps:$4 sm:$0xff]  }
  0x13   : > { %1022 = vmatprep.subr.bf16.mxu1 %v1108_v14  ;;  %682 = vmatprep.mubr.bf16.mxu0 %v1127_v32  ;;  %v1131_v36 = vld [vmem:[%s1312_s16 + $0xc] ss:$20 sps:$4 sm:$0xff]   ;;  %v1134_v39 = vld [vmem:[%s1387_s1 + $0x110] sm:$0xff]   ;;  %v1135_v40 = vld [vmem:[%s1387_s1 + $0x118] sm:$0xff]  }
  0x14   : > { %1001 = vmatpush3.bf16.msra.mxu0 %v1107_v13  ;;  %723 = vmatprep.mubr.bf16.mxu1 %v1131_v36  ;;  %v1138_v43 = vld [vmem:[%s1387_s1 + $0x130] sm:$0xff]   ;;  %v1139_v44 = vld [vmem:[%s1387_s1 + $0x138] sm:$0xff]   ;;  %v945_v47 = vld [vmem:[%s1388_s2] ss:$0 sm:$0xff] }
  0x15   : > { %1002 = vmatprep.subr.bf16.mxu0 %v1110_v16  ;;  %v1140_v45 = vld [vmem:[%s1312_s16 + $0x10] ss:$20 sps:$4 sm:$0xff]   ;;  %s993_s16 = sshll.u32 %s1397_s18, 4 }
  0x16   : > { %1023 = vmatpush3.bf16.msra.mxu1 %v1109_v15  ;;  %s276_s8 = scalar_lea.vmem %s1389_s3, %s993_s16 }
  0x17   : > { %1024 = vmatprep.subr.bf16.mxu1 %v1112_v18  ;;  %v775_v18 = vld [vmem:[%s1356_s25] sm:$0x1] }
  0x18   : > { %1003 = vmatpush3.bf16.msra.mxu0 %v1111_v17 }
  0x19   : > { %1004 = vmatprep.subr.bf16.mxu0 %v1114_v20 }
  0x1a   : > { %1025 = vmatpush3.bf16.msra.mxu1 %v1113_v19 }
  0x1b   : > { %1026 = vmatprep.subr.bf16.mxu1 %v1116_v22 }
  0x1c   : > { %1005 = vmatpush3.bf16.msra.mxu0 %v1115_v21  ;;  %v785_v21 = vld [vmem:[%s1362_s28] sm:$0x1] }
  0x1d   : > { %1006 = vmatprep.subr.bf16.mxu0 %v1118_v24 }
  0x1e   : > { %1027 = vmatpush3.bf16.msra.mxu1 %v1117_v23 }
  0x1f   : > { %1028 = vmatprep.subr.bf16.mxu1 %v1120_v26 }
  0x20   : > { %1007 = vmatpush3.bf16.msra.mxu0 %v1119_v25 }
  0x21   : > { %1008 = vmatprep.subr.bf16.mxu0 %v1122_v28 }
  0x22   : > { %1029 = vmatpush3.bf16.msra.mxu1 %v1121_v27 }
  0x23   : > { %1030 = vmatprep.subr.bf16.mxu1 %v1124_v30 }
  0x24   : > { %1009 = vmatpush3.bf16.msra.mxu0 %v1123_v29 }
  0x25   : > { %1047 = vmatprep.subr.bf16.mxu0 %v1165_v33 }
  0x26   : > { %1031 = vmatpush3.bf16.msra.mxu1 %v1128_v34 }
  0x27   : > { %683 = vmatmul.mubr.bf16.vlgmr.msra.gmra.mrb[0].mxu0 %v1125_v31 }
  0x28   : > { %1063 = vmatprep.mubr.msk.bf16.mxu0 %vm1166_vm0, %v1165_v33  ;;  %1048 = vmatpush3.bf16.msra.mxu0 %v1132_v37 }
  0x29   : > { %724 = vmatmul.mubr.bf16.vlgmr.msra.gmra.mrb[0].mxu1 %v1129_v35  ;;  %1049 = vmatprep.subr.bf16.mxu0 %v1165_v33 }
  0x2c   : > { %1050 = vmatpush3.bf16.msra.mxu0 %v1133_v38 }
  0x2d   : > { %1051 = vmatprep.subr.bf16.mxu0 %v1165_v33 }
  0x30   : > { %1052 = vmatpush3.bf16.msra.mxu0 %v1134_v39 }
  0x31   : > { %1053 = vmatprep.subr.bf16.mxu0 %v1165_v33 }
  0x34   : > { %1054 = vmatpush3.bf16.msra.mxu0 %v1135_v40 }
  0x35   : > { %1055 = vmatprep.subr.bf16.mxu0 %v1165_v33 }
  0x38   : > { %1056 = vmatpush3.bf16.msra.mxu0 %v1136_v41 }
  0x39   : > { %1057 = vmatprep.subr.bf16.mxu0 %v1165_v33 }
  0x3c   : > { %1058 = vmatpush3.bf16.msra.mxu0 %v1137_v42 }
  0x3d   : > { %1059 = vmatprep.subr.bf16.mxu0 %v1165_v33 }
  0x40   : > { %1060 = vmatpush3.bf16.msra.mxu0 %v1138_v43 }
  0x41   : > { %1061 = vmatprep.subr.bf16.mxu0 %v1165_v33 }
  0x44   : > { %1062 = vmatpush3.bf16.msra.mxu0 %v1139_v44 }
  0x47   : > { %1064 = vmatmul.mubr.bf16.vlgmr.msra.gmra.mrb[4].mxu0 %v1140_v45 }
  0xfa   : > { %v1010_v46 = vpop.f32.mrb[0].mxu0 }
  0xfb   : > { %v1011_v48 = vpop.f32.mrb[1].mxu0 }
  0xfc   : > { %v1012_v49 = vadd.f32 %v1011_v48, %v1010_v46  ;;  %v1013_v50 = vpop.f32.mrb[2].mxu0  ;;  %v1032_v51 = vpop.f32.mrb[0].mxu1 }
  0xfd   : > { %v1014_v52 = vpop.f32.mrb[3].mxu0  ;;  %v1033_v55 = vpop.f32.mrb[1].mxu1 }
  0xfe   : > { %v685_v53 = vadd.f32 %v1012_v49, %v945_v47  ;;  %v1015_v54 = vadd.f32 %v1014_v52, %v1013_v50  ;;  %v1034_v56 = vadd.f32 %v1033_v55, %v1032_v51  ;;  %v1035_v57 = vpop.f32.mrb[2].mxu1 }
  0xff   : > { %v1036_v59 = vpop.f32.mrb[3].mxu1 }
 0x100   : > { %v688_v58 = vadd.f32 %v1015_v54, %v945_v47  ;;  %v1037_v60 = vadd.f32 %v1036_v59, %v1035_v57  ;;  %v726_v61 = vadd.f32 %v1034_v56, %v685_v53 }
 0x102   : > { %v729_v62 = vadd.f32 %v1037_v60, %v688_v58 }
 0x11a   : > { %v766_v63 = vpop.f32.mrb[4].mxu0 }
 0x11b   : > { %v767_v0 = vadd.f32 %v766_v63, %v726_v61  ;;  %v1065_v1 = vpop.f32.mrb[5].mxu0 }
 0x11c   : > { %v769_v2 = vpop.f32.mrb[6].mxu0 }
 0x11d   : > { %773 = vst [vmem:[%s276_s8] sm:$0xff] %v767_v0  ;;  %v770_v3 = vadd.f32 %v769_v2, %v729_v62  ;;  %v1066_v4 = vpop.f32.mrb[7].mxu0  ;;  %v786_v5 = vmul.f32 %v767_v0, %v767_v0 }
 0x11f   : > { %774 = vst [vmem:[%s276_s8 + $0x8] sm:$0xff] %v770_v3  ;;  %v776_v6 = vadd.f32 %v770_v3, %v767_v0  ;;  %v787_v7 = vmul.f32 %v770_v3, %v770_v3 }
 0x121   : > { %v777_v8 = vrot.slane %v776_v6, 4  ;;  %v788_v9 = vadd.f32 %v787_v7, %v786_v5 }
 0x123   : > { %v778_v10 = vadd.f32 %v777_v8, %v776_v6  ;;  %v789_v11 = vrot.slane %v788_v9, 4 }
 0x125   : > { %v779_v12 = vrot.slane %v778_v10, 2  ;;  %v790_v13 = vadd.f32 %v789_v11, %v788_v9 }
 0x127   : > { %v780_v14 = vadd.f32 %v779_v12, %v778_v10  ;;  %v791_v15 = vrot.slane %v790_v13, 2 }
 0x129   : > { %v781_v16 = vrot.slane %v780_v14, 1  ;;  %v792_v17 = vadd.f32 %v791_v15, %v790_v13 }
 0x12b   : > { %v782_v19 = vadd.f32 %v781_v16, %v780_v14  ;;  %v793_v20 = vrot.slane %v792_v17, 1 }
 0x12d   : > { %v783_v22 = vadd.f32 %v782_v19, %v775_v18  ;;  %v794_v23 = vadd.f32 %v793_v20, %v792_v17 }
 0x12f   : > { %784 = vst [vmem:[%s1356_s25] sm:$0x1] %v783_v22  ;;  %v795_v24 = vadd.f32 %v794_v23, %v785_v21 }
 0x131   : > { %796 = vst [vmem:[%s1362_s28] sm:$0x1] %v795_v24 }
 0x132 PF: > { %s16_s20 = sadd.s32 1, %s1163_s20   ;;  %s1392_s18 = smov %s1159_s19 }
 0x133   : > { %p13_p5 = scmp.ge.s32.totalorder %s16_s20, 4   ;;  %s1393_s19 = smov %s1395_s21 }
 0x135   :  { %15 = sbr.rel (!%p13_p5) target bundleno = 2 (0x2), region = 90 }

// kernel: transform_net.26
= control target key start
LH: loop header
LB: loop body
LE: loop exit
PB: predicated region body
PF: predicated region fallthrough
CT: control target
= control target key end

     0   :  { %s526_s18 = smov 0   ;;  %s528_s19 = smov 0   ;;  %s576_s0 = inlined_call_operand.vmem [shape: f32[2,16,128], index: 0, kind: input, shape index: {}]   ;;  %s577_s1 = inlined_call_operand.vmem [shape: f32[2,1,128], index: 1, kind: input, shape index: {}]   ;;  %s578_s2 = inlined_call_operand.vmem [shape: f32[2,1,128], index: 2, kind: input, shape index: {}]   ;;  %s579_s3 = inlined_call_operand.vmem [shape: f32[1,128], index: 3, kind: input, shape index: {}]   ;;  %s580_s4 = inlined_call_operand.vmem [shape: f32[1,128], index: 4, kind: input, shape index: {}]   ;;  %s581_s5 = inlined_call_operand.vmem [shape: f32[2,16,128], index: 5, kind: output, shape index: {}]  }
   0x1   :  { %s530_s20 = smov 0  }
   0x2 LB: > { %s27_s21 = sadd.s32 1, %s490_s19  ;;  %p437_p0 = scmp.ge.s32.totalorder %s494_s20, 1  ;;  %s494_s20 = sphi %s530_s20, %s15_s20   ;;  %s490_s19 = sphi %s528_s19, %s583_s19   ;;  %s486_s18 = sphi %s526_s18, %s582_s18  }
   0x3   : > { %p29_p1 = scmp.ge.s32.totalorder %s27_s21, 2  ;;  %p224_p2 = scmp.lt.s32.totalorder %s494_s20, 3 }
   0x5   : > { %s585_s21 = smov (%p29_p1, %s27_s21), 0  ;;  %p225_p3 = pnand %p437_p0, %p224_p2 }
   0x6   : > { %p267_p4 = scmp.lt.s32.totalorder (!%p225_p3), %s486_s18, 1  ;;  %v309_v8 = vlaneseq (!%p225_p3)  ;;  %v301_v10 = vld [vmem:[%s579_s3] sm:$0x1] (!%p225_p3) }
   0x7   : > { %228 = sbr.rel (%p225_p3) target bundleno = 51 (0x33), region = 40  ;;  %v305_v16 = vld [vmem:[%s580_s4] sm:$0x1] (!%p225_p3) }
   0x8   : > { %v310_v9 = vshrl.u32 (!%p225_p3), %v309_v8, 7 }
   0xa   : > { %v311_v11 = vsub.s32 (!%p225_p3), 0, %v310_v9 }
   0xe   : > { %s587_s18 = smov (!%p267_p4, %s486_s18), 1 }
   0xf   : > { %s278_s24 = scalar_lea.vmem %s577_s1, %s587_s18  ;;  %s281_s27 = scalar_lea.vmem %s578_s2, %s587_s18 }
  0x10   : > { %v294_v0 = vld [vmem:[%s278_s24] sm:$0x1]  ;;  %s444_s28 = sshll.u32 %s587_s18, 4 }
  0x11   : > { %v295_v1 = vmul.f32 0.0625, %v294_v0  ;;  %v296_v2 = vld [vmem:[%s281_s27] sm:$0x1]  ;;  %s274_s8 = scalar_lea.vmem %s576_s0, %s444_s28  ;;  %s290_s13 = scalar_lea.vmem %s581_s5, %s444_s28 }
  0x12   : > { %v297_v3 = vmul.f32 0.0625, %v296_v2  ;;  %v292_v14 = vld [vmem:[%s274_s8] sm:$0xff]  ;;  %v293_v15 = vld [vmem:[%s274_s8 + $0x8] sm:$0xff] }
  0x13   : > { %v298_v4 = vmul.f32 %v295_v1, %v295_v1 }
  0x15   : > { %v299_v5 = vsub.f32 %v297_v3, %v298_v4 }
  0x17   : > { %v300_v6 = vmax.f32 %v299_v5, 0.0 }
  0x19   : > { %v302_v7 = vadd.f32 1e-05, %v300_v6 }
  0x1b   : > { %470 = vrsqrt.f32 %v302_v7 }
  0x25   : > { %v471_v12 = vpop.eup %470 }
  0x26   : > { %v304_v13 = vmul.f32 %v471_v12, %v301_v10 }
  0x28   : > { %v306_v17 = vmul.f32 %v304_v13, %v295_v1  ;;  %v312_v18 = vrot.slane %v304_v13, %v311_v11 }
  0x2a   : > { %v307_v19 = vsub.f32 %v305_v16, %v306_v17  ;;  %v314_v20 = vmul.f32 %v312_v18, %v292_v14  ;;  %v315_v21 = vmul.f32 %v312_v18, %v293_v15 }
  0x2c   : > { %v320_v22 = vrot.slane %v307_v19, %v311_v11 }
  0x2e   : > { %v322_v23 = vadd.f32 %v320_v22, %v314_v20  ;;  %v323_v24 = vadd.f32 %v320_v22, %v315_v21 }
  0x30   : > { %v324_v25 = vmax.f32 %v322_v23, 0.0  ;;  %v325_v26 = vmax.f32 %v323_v24, 0.0 }
  0x32   : > { %326 = vst [vmem:[%s290_s13] sm:$0xff] %v324_v25  ;;  %327 = vst [vmem:[%s290_s13 + $0x8] sm:$0xff] %v325_v26 }
  0x33 PF: > { %s15_s20 = sadd.s32 1, %s494_s20   ;;  %s582_s18 = smov %s490_s19 }
  0x34   : > { %p12_p5 = scmp.ge.s32.totalorder %s15_s20, 4   ;;  %s583_s19 = smov %s585_s21 }
  0x36   :  { %14 = sbr.rel (!%p12_p5) target bundleno = 2 (0x2), region = 76 }

// kernel: transform_net.28
= control target key start
LH: loop header
LB: loop body
LE: loop exit
PB: predicated region body
PF: predicated region fallthrough
CT: control target
= control target key end

     0   :  { %s617_s21 = smov 0   ;;  %s619_s22 = smov 0   ;;  %s665_s0 = inlined_call_operand.vmem [shape: f32[2,16,128], index: 0, kind: input, shape index: {}]   ;;  %s666_s1 = inlined_call_operand.vmem [shape: f32[2,1,128], index: 1, kind: input, shape index: {}]   ;;  %s667_s2 = inlined_call_operand.vmem [shape: f32[2,1,128], index: 2, kind: input, shape index: {}]   ;;  %s668_s3 = inlined_call_operand.vmem [shape: f32[1,128], index: 3, kind: input, shape index: {}]   ;;  %s669_s4 = inlined_call_operand.vmem [shape: f32[1,128], index: 4, kind: input, shape index: {}]   ;;  %s670_s5 = inlined_call_operand.vmem [shape: f32[2,16,128], index: 5, kind: input, shape index: {}]   ;;  %s671_s6 = inlined_call_operand.vmem [shape: f32[2,16,128], index: 6, kind: output, shape index: {}]  }
   0x1   :  { %s621_s23 = smov 0  }
   0x2 LB: > { %s28_s24 = sadd.s32 1, %s576_s22  ;;  %p520_p0 = scmp.ge.s32.totalorder %s580_s23, 1  ;;  %s580_s23 = sphi %s621_s23, %s16_s23   ;;  %s576_s22 = sphi %s619_s22, %s673_s22   ;;  %s572_s21 = sphi %s617_s21, %s672_s21  }
   0x3   : > { %p30_p1 = scmp.ge.s32.totalorder %s28_s24, 2  ;;  %p266_p2 = scmp.lt.s32.totalorder %s580_s23, 3 }
   0x5   : > { %s675_s24 = smov (%p30_p1, %s28_s24), 0  ;;  %p267_p3 = pnand %p520_p0, %p266_p2 }
   0x6   : > { %p320_p4 = scmp.lt.s32.totalorder (!%p267_p3), %s572_s21, 1  ;;  %v372_v8 = vlaneseq (!%p267_p3)  ;;  %v364_v10 = vld [vmem:[%s668_s3] sm:$0x1] (!%p267_p3) }
   0x7   : > { %270 = sbr.rel (%p267_p3) target bundleno = 51 (0x33), region = 44  ;;  %v368_v16 = vld [vmem:[%s669_s4] sm:$0x1] (!%p267_p3) }
   0x8   : > { %v373_v9 = vshrl.u32 (!%p267_p3), %v372_v8, 7 }
   0xa   : > { %v374_v11 = vsub.s32 (!%p267_p3), 0, %v373_v9 }
   0xe   : > { %s677_s21 = smov (!%p320_p4, %s572_s21), 1 }
   0xf   : > { %s331_s27 = scalar_lea.vmem %s666_s1, %s677_s21  ;;  %s334_s30 = scalar_lea.vmem %s667_s2, %s677_s21 }
  0x10   : > { %v357_v0 = vld [vmem:[%s331_s27] sm:$0x1]  ;;  %s529_s7 = sshll.u32 %s677_s21, 4 }
  0x11   : > { %v358_v1 = vmul.f32 0.0625, %v357_v0  ;;  %v359_v2 = vld [vmem:[%s334_s30] sm:$0x1]  ;;  %s327_s12 = scalar_lea.vmem %s665_s0, %s529_s7  ;;  %s343_s17 = scalar_lea.vmem %s670_s5, %s529_s7 }
  0x12   : > { %v360_v3 = vmul.f32 0.0625, %v359_v2  ;;  %v355_v14 = vld [vmem:[%s327_s12] sm:$0xff]  ;;  %v356_v15 = vld [vmem:[%s327_s12 + $0x8] sm:$0xff]  ;;  %s353_s20 = scalar_lea.vmem %s671_s6, %s529_s7 }
  0x13   : > { %v361_v4 = vmul.f32 %v358_v1, %v358_v1  ;;  %v387_v23 = vld [vmem:[%s343_s17] sm:$0xff]  ;;  %v388_v24 = vld [vmem:[%s343_s17 + $0x8] sm:$0xff] }
  0x15   : > { %v362_v5 = vsub.f32 %v360_v3, %v361_v4 }
  0x17   : > { %v363_v6 = vmax.f32 %v362_v5, 0.0 }
  0x19   : > { %v365_v7 = vadd.f32 1e-05, %v363_v6 }
  0x1b   : > { %556 = vrsqrt.f32 %v365_v7 }
  0x25   : > { %v557_v12 = vpop.eup %556 }
  0x26   : > { %v367_v13 = vmul.f32 %v557_v12, %v364_v10 }
  0x28   : > { %v369_v17 = vmul.f32 %v367_v13, %v358_v1  ;;  %v375_v18 = vrot.slane %v367_v13, %v374_v11 }
  0x2a   : > { %v370_v19 = vsub.f32 %v368_v16, %v369_v17  ;;  %v377_v20 = vmul.f32 %v375_v18, %v355_v14  ;;  %v378_v21 = vmul.f32 %v375_v18, %v356_v15 }
  0x2c   : > { %v383_v22 = vrot.slane %v370_v19, %v374_v11 }
  0x2e   : > { %v385_v25 = vadd.f32 %v383_v22, %v377_v20  ;;  %v386_v26 = vadd.f32 %v383_v22, %v378_v21 }
  0x30   : > { %v389_v27 = vadd.f32 %v387_v23, %v385_v25  ;;  %v390_v28 = vadd.f32 %v388_v24, %v386_v26 }
  0x32   : > { %391 = vst [vmem:[%s353_s20] sm:$0xff] %v389_v27  ;;  %392 = vst [vmem:[%s353_s20 + $0x8] sm:$0xff] %v390_v28 }
  0x33 PF: > { %s16_s23 = sadd.s32 1, %s580_s23   ;;  %s672_s21 = smov %s576_s22 }
  0x34   : > { %p13_p5 = scmp.ge.s32.totalorder %s16_s23, 4   ;;  %s673_s22 = smov %s675_s24 }
  0x36   :  { %15 = sbr.rel (!%p13_p5) target bundleno = 2 (0x2), region = 83 }

// kernel: transform_net.27
= control target key start
LH: loop header
LB: loop body
LE: loop exit
PB: predicated region body
PF: predicated region fallthrough
CT: control target
= control target key end

     0   :  { %s1677_s18 = smov 0   ;;  %s1679_s19 = smov 0   ;;  %s1966_s0 = inlined_call_operand.vmem [shape: bf16[2,16,1152], index: 0, kind: input, shape index: {}]   ;;  %s1967_s1 = inlined_call_operand.vmem [shape: bf16[1152,128], index: 1, kind: input, shape index: {}]   ;;  %s1968_s2 = inlined_call_operand.vmem [shape: f32[1,128], index: 2, kind: input, shape index: {}]   ;;  %s1969_s3 = inlined_call_operand.vmem [shape: f32[2,16,128], index: 3, kind: output, shape index: {0}]   ;;  %s1970_s4 = inlined_call_operand.vmem [shape: f32[2,1,128], index: 4, kind: output, shape index: {1}]   ;;  %s1971_s5 = inlined_call_operand.vmem [shape: f32[2,1,128], index: 5, kind: output, shape index: {2}]  }
   0x1   :  { %s1681_s20 = smov 0  }
   0x2 LB: > { %s28_s21 = sadd.s32 1, %s1639_s19  ;;  %p1303_p0 = scmp.ge.s32.totalorder %s1643_s20, 1  ;;  %s1643_s20 = sphi %s1681_s20, %s16_s20   ;;  %s1639_s19 = sphi %s1679_s19, %s1973_s19   ;;  %s1635_s18 = sphi %s1677_s18, %s1972_s18  }
   0x3   : > { %p30_p1 = scmp.ge.s32.totalorder %s28_s21, 2  ;;  %p214_p2 = scmp.lt.s32.totalorder %s1643_s20, 3 }
   0x5   : > { %s1975_s21 = smov (%p30_p1, %s28_s21), 0  ;;  %p215_p3 = pnand %p1303_p0, %p214_p2 }
   0x6   : > { %v1536_v0 = vld [vmem:[%s1967_s1 + $0x40] sm:$0xff] (!%p215_p3)   ;;  %v1540_v4 = vld [vmem:[%s1967_s1 + $0x48] sm:$0xff] (!%p215_p3)   ;;  %v1544_v8 = vld [vmem:[%s1967_s1 + $0x50] sm:$0xff] (!%p215_p3)   ;;  %p258_p4 = scmp.lt.s32.totalorder (!%p215_p3), %s1635_s18, 1  ;;  %vm1646_vm0 = vmmov (!%p215_p3), 0  }
   0x7   : > { %218 = sbr.rel (%p215_p3) target bundleno = 338 (0x152), region = 32  ;;  %v1537_v1 = vld [vmem:[%s1967_s1] sm:$0xff] (!%p215_p3)   ;;  %1392 = vmatprep.subr.bf16.mxu0 (!%p215_p3), %v1536_v0  ;;  %v1541_v5 = vld [vmem:[%s1967_s1 + $0x8] sm:$0xff] (!%p215_p3)   ;;  %v1545_v9 = vld [vmem:[%s1967_s1 + $0x10] sm:$0xff] (!%p215_p3)  }
   0x8   : > { %v1538_v2 = vld [vmem:[%s1967_s1 + $0xc0] sm:$0xff] (!%p215_p3)   ;;  %1393 = vmatpush3.bf16.msra.mxu0 (!%p215_p3), %v1537_v1  ;;  %v1542_v6 = vld [vmem:[%s1967_s1 + $0xc8] sm:$0xff] (!%p215_p3)   ;;  %v1546_v10 = vld [vmem:[%s1967_s1 + $0xd0] sm:$0xff] (!%p215_p3)  }
   0x9   : > { %v1539_v3 = vld [vmem:[%s1967_s1 + $0x80] sm:$0xff] (!%p215_p3)   ;;  %1414 = vmatprep.subr.bf16.mxu1 (!%p215_p3), %v1538_v2  ;;  %1394 = vmatprep.subr.bf16.mxu0 (!%p215_p3), %v1540_v4  ;;  %v1543_v7 = vld [vmem:[%s1967_s1 + $0x88] sm:$0xff] (!%p215_p3)   ;;  %v1547_v11 = vld [vmem:[%s1967_s1 + $0x90] sm:$0xff] (!%p215_p3)  }
   0xa   : > { %1415 = vmatpush3.bf16.msra.mxu1 (!%p215_p3), %v1539_v3  ;;  %v1548_v12 = vld [vmem:[%s1967_s1 + $0x58] sm:$0xff] (!%p215_p3)   ;;  %v1552_v16 = vld [vmem:[%s1967_s1 + $0x60] sm:$0xff] (!%p215_p3)   ;;  %v1556_v20 = vld [vmem:[%s1967_s1 + $0x68] sm:$0xff] (!%p215_p3)  }
   0xb   : > { %1416 = vmatprep.subr.bf16.mxu1 (!%p215_p3), %v1542_v6  ;;  %v1549_v13 = vld [vmem:[%s1967_s1 + $0x18] sm:$0xff] (!%p215_p3)   ;;  %v1553_v17 = vld [vmem:[%s1967_s1 + $0x20] sm:$0xff] (!%p215_p3)   ;;  %v1557_v21 = vld [vmem:[%s1967_s1 + $0x28] sm:$0xff] (!%p215_p3)   ;;  %v1645_v6 = vmov (!%p215_p3), 0.0  }
   0xc   : > { %1395 = vmatpush3.bf16.msra.mxu0 (!%p215_p3), %v1541_v5  ;;  %v1550_v14 = vld [vmem:[%s1967_s1 + $0xd8] sm:$0xff] (!%p215_p3)   ;;  %v1554_v18 = vld [vmem:[%s1967_s1 + $0xe0] sm:$0xff] (!%p215_p3)   ;;  %v1558_v22 = vld [vmem:[%s1967_s1 + $0xe8] sm:$0xff] (!%p215_p3)  }
   0xd   : > { %1396 = vmatprep.subr.bf16.mxu0 (!%p215_p3), %v1544_v8  ;;  %v1551_v15 = vld [vmem:[%s1967_s1 + $0x98] sm:$0xff] (!%p215_p3)   ;;  %v1555_v19 = vld [vmem:[%s1967_s1 + $0xa0] sm:$0xff] (!%p215_p3)   ;;  %v1559_v23 = vld [vmem:[%s1967_s1 + $0xa8] sm:$0xff] (!%p215_p3)  }
   0xe   : > { %1417 = vmatpush3.bf16.msra.mxu1 %v1543_v7  ;;  %s1977_s18 = smov (!%p258_p4, %s1635_s18), 1  ;;  %v1560_v24 = vld [vmem:[%s1967_s1 + $0x70] sm:$0xff]   ;;  %v1564_v28 = vld [vmem:[%s1967_s1 + $0x78] sm:$0xff]   ;;  %v1571_v34 = vld [vmem:[%s1967_s1 + $0x140] sm:$0xff]  }
   0xf   : > { %1418 = vmatprep.subr.bf16.mxu1 %v1546_v10  ;;  %s1509_s30 = smul.u32 72, %s1977_s18  ;;  %v1561_v25 = vld [vmem:[%s1967_s1 + $0x30] sm:$0xff]   ;;  %v1565_v29 = vld [vmem:[%s1967_s1 + $0x38] sm:$0xff]   ;;  %v1575_v37 = vld [vmem:[%s1967_s1 + $0x100] sm:$0xff]   ;;  %s1936_s29 = scalar_lea.vmem %s1970_s4, %s1977_s18 }
  0x10   : > { %1397 = vmatpush3.bf16.msra.mxu0 %v1545_v9  ;;  %v1562_v26 = vld [vmem:[%s1967_s1 + $0xf0] sm:$0xff]   ;;  %v1566_v30 = vld [vmem:[%s1967_s1 + $0xf8] sm:$0xff]   ;;  %v1576_v38 = vld [vmem:[%s1967_s1 + $0x1c0] sm:$0xff]   ;;  %s1942_s7 = scalar_lea.vmem %s1971_s5, %s1977_s18  ;;  %289 = vst [vmem:[%s1936_s29] sm:$0x1] %v1645_v6 }
  0x11   : > { %1398 = vmatprep.subr.bf16.mxu0 %v1548_v12  ;;  %v1563_v27 = vld [vmem:[%s1967_s1 + $0xb0] sm:$0xff]   ;;  %s1792_s16 = scalar_lea.vmem %s1966_s0, %s1509_s30  ;;  %v1570_v33 = vld [vmem:[%s1967_s1 + $0xb8] sm:$0xff]   ;;  %v1577_v39 = vld [vmem:[%s1967_s1 + $0x180] sm:$0xff]   ;;  %290 = vst [vmem:[%s1942_s7] sm:$0x1] %v1645_v6 }
  0x12   : > { %1419 = vmatpush3.bf16.msra.mxu1 %v1547_v11  ;;  %v1567_v31 = vld [vmem:[%s1792_s16] ss:$36 sps:$4 sm:$0xff]   ;;  %v1572_v35 = vld [vmem:[%s1792_s16 + $0x8] ss:$36 sps:$4 sm:$0xff]   ;;  %v1582_v44 = vld [vmem:[%s1967_s1 + $0x150] sm:$0xff]  }
  0x13   : > { %1420 = vmatprep.subr.bf16.mxu1 %v1550_v14  ;;  %v1569_v32 = vld [vmem:[%s1792_s16 + $0x4] ss:$36 sps:$4 sm:$0xff]   ;;  %v1574_v36 = vld [vmem:[%s1792_s16 + $0xc] ss:$36 sps:$4 sm:$0xff]   ;;  %v1586_v48 = vld [vmem:[%s1967_s1 + $0x158] sm:$0xff]  }
  0x14   : > { %1399 = vmatpush3.bf16.msra.mxu0 %v1549_v13  ;;  %962 = vmatprep.mubr.bf16.mxu0 %v1569_v32  ;;  %v1578_v40 = vld [vmem:[%s1967_s1 + $0x148] sm:$0xff]   ;;  %v1583_v45 = vld [vmem:[%s1967_s1 + $0x110] sm:$0xff]   ;;  %v1587_v49 = vld [vmem:[%s1967_s1 + $0x118] sm:$0xff]  }
  0x15   : > { %1400 = vmatprep.subr.bf16.mxu0 %v1552_v16  ;;  %1003 = vmatprep.mubr.bf16.mxu1 %v1574_v36  ;;  %v1579_v41 = vld [vmem:[%s1967_s1 + $0x108] sm:$0xff]   ;;  %v1584_v46 = vld [vmem:[%s1967_s1 + $0x1d0] sm:$0xff]   ;;  %v1588_v50 = vld [vmem:[%s1967_s1 + $0x1d8] sm:$0xff]  }
  0x16   : > { %1421 = vmatpush3.bf16.msra.mxu1 %v1551_v15  ;;  %v1580_v42 = vld [vmem:[%s1967_s1 + $0x1c8] sm:$0xff]   ;;  %v1585_v47 = vld [vmem:[%s1967_s1 + $0x190] sm:$0xff]   ;;  %v1589_v51 = vld [vmem:[%s1967_s1 + $0x198] sm:$0xff]  }
  0x17   : > { %1422 = vmatprep.subr.bf16.mxu1 %v1554_v18  ;;  %v1581_v43 = vld [vmem:[%s1967_s1 + $0x188] sm:$0xff]   ;;  %v1590_v52 = vld [vmem:[%s1967_s1 + $0x160] sm:$0xff]   ;;  %v1598_v60 = vld [vmem:[%s1967_s1 + $0x170] sm:$0xff]  }
  0x18   : > { %1401 = vmatpush3.bf16.msra.mxu0 %v1553_v17  ;;  %v1591_v53 = vld [vmem:[%s1967_s1 + $0x120] sm:$0xff]   ;;  %v1594_v56 = vld [vmem:[%s1967_s1 + $0x168] sm:$0xff]   ;;  %v1599_v61 = vld [vmem:[%s1967_s1 + $0x130] sm:$0xff]  }
  0x19   : > { %1402 = vmatprep.subr.bf16.mxu0 %v1556_v20  ;;  %v1592_v54 = vld [vmem:[%s1967_s1 + $0x1e0] sm:$0xff]   ;;  %v1595_v57 = vld [vmem:[%s1967_s1 + $0x128] sm:$0xff]   ;;  %v1600_v62 = vld [vmem:[%s1967_s1 + $0x1f0] sm:$0xff]  }
  0x1a   : > { %1423 = vmatpush3.bf16.msra.mxu1 %v1555_v19  ;;  %v1593_v55 = vld [vmem:[%s1967_s1 + $0x1a0] sm:$0xff]   ;;  %v1596_v58 = vld [vmem:[%s1967_s1 + $0x1e8] sm:$0xff]   ;;  %v1601_v63 = vld [vmem:[%s1967_s1 + $0x1b0] sm:$0xff]  }
  0x1b   : > { %1424 = vmatprep.subr.bf16.mxu1 %v1558_v22  ;;  %v1597_v59 = vld [vmem:[%s1967_s1 + $0x1a8] sm:$0xff]   ;;  %v1602_v0 = vld [vmem:[%s1967_s1 + $0x178] sm:$0xff]   ;;  %v1605_v3 = vld [vmem:[%s1792_s16 + $0x10] ss:$36 sps:$4 sm:$0xff]  }
  0x1c   : > { %1403 = vmatpush3.bf16.msra.mxu0 %v1557_v21  ;;  %v1603_v1 = vld [vmem:[%s1967_s1 + $0x138] sm:$0xff]   ;;  %v1612_v9 = vld [vmem:[%s1967_s1 + $0x200] sm:$0xff]   ;;  %v1613_v10 = vld [vmem:[%s1967_s1 + $0x208] sm:$0xff]  }
  0x1d   : > { %1404 = vmatprep.subr.bf16.mxu0 %v1560_v24  ;;  %v1604_v2 = vld [vmem:[%s1967_s1 + $0x1f8] sm:$0xff]   ;;  %v1614_v11 = vld [vmem:[%s1967_s1 + $0x210] sm:$0xff]   ;;  %v1616_v13 = vld [vmem:[%s1967_s1 + $0x220] sm:$0xff]  }
  0x1e   : > { %1425 = vmatpush3.bf16.msra.mxu1 %v1559_v23  ;;  %v1607_v4 = vld [vmem:[%s1792_s16 + $0x14] ss:$36 sps:$4 sm:$0xff]   ;;  %v1611_v8 = vld [vmem:[%s1792_s16 + $0x1c] ss:$36 sps:$4 sm:$0xff]   ;;  %v1617_v14 = vld [vmem:[%s1967_s1 + $0x228] sm:$0xff]  }
  0x1f   : > { %1426 = vmatprep.subr.bf16.mxu1 %v1562_v26  ;;  %v1608_v5 = vld [vmem:[%s1967_s1 + $0x1b8] sm:$0xff]   ;;  %v1618_v15 = vld [vmem:[%s1967_s1 + $0x230] sm:$0xff]   ;;  %v1620_v17 = vld [vmem:[%s1792_s16 + $0x20] ss:$36 sps:$4 sm:$0xff]  }
  0x20   : > { %1405 = vmatpush3.bf16.msra.mxu0 %v1561_v25  ;;  %v1609_v7 = vld [vmem:[%s1792_s16 + $0x18] ss:$36 sps:$4 sm:$0xff]   ;;  %v1307_v19 = vld [vmem:[%s1968_s2] ss:$0 sm:$0xff]  ;;  %s1391_s16 = sshll.u32 %s1977_s18, 4 }
  0x21   : > { %1406 = vmatprep.subr.bf16.mxu0 %v1564_v28  ;;  %v1615_v12 = vld [vmem:[%s1967_s1 + $0x218] sm:$0xff]   ;;  %s276_s12 = scalar_lea.vmem %s1969_s3, %s1391_s16 }
  0x22   : > { %1427 = vmatpush3.bf16.msra.mxu1 %v1563_v27  ;;  %v1619_v16 = vld [vmem:[%s1967_s1 + $0x238] sm:$0xff]  }
  0x23   : > { %1428 = vmatprep.subr.bf16.mxu1 %v1566_v30 }
  0x24   : > { %1407 = vmatpush3.bf16.msra.mxu0 %v1565_v29 }
  0x25   : > { %1436 = vmatprep.subr.bf16.mxu0 %v1571_v34 }
  0x26   : > { %1429 = vmatpush3.bf16.msra.mxu1 %v1570_v33 }
  0x27   : > { %963 = vmatmul.mubr.bf16.vlgmr.msra.gmra.mrb[0].mxu0 %v1567_v31  ;;  %1458 = vmatprep.subr.bf16.mxu1 %v1576_v38 }
  0x28   : > { %1437 = vmatpush3.bf16.msra.mxu0 %v1575_v37  ;;  %1044 = vmatprep.mubr.bf16.mxu0 %v1607_v4 }
  0x29   : > { %1004 = vmatmul.mubr.bf16.vlgmr.msra.gmra.mrb[0].mxu1 %v1572_v35  ;;  %1438 = vmatprep.subr.bf16.mxu0 %v1578_v40 }
  0x2a   : > { %1459 = vmatpush3.bf16.msra.mxu1 %v1577_v39  ;;  %1085 = vmatprep.mubr.bf16.mxu1 %v1611_v8 }
  0x2b   : > { %1460 = vmatprep.subr.bf16.mxu1 %v1580_v42 }
  0x2c   : > { %1439 = vmatpush3.bf16.msra.mxu0 %v1579_v41 }
  0x2d   : > { %1440 = vmatprep.subr.bf16.mxu0 %v1582_v44 }
  0x2e   : > { %1461 = vmatpush3.bf16.msra.mxu1 %v1581_v43 }
  0x2f   : > { %1462 = vmatprep.subr.bf16.mxu1 %v1584_v46 }
  0x30   : > { %1441 = vmatpush3.bf16.msra.mxu0 %v1583_v45 }
  0x31   : > { %1442 = vmatprep.subr.bf16.mxu0 %v1586_v48 }
  0x32   : > { %1463 = vmatpush3.bf16.msra.mxu1 %v1585_v47 }
  0x33   : > { %1464 = vmatprep.subr.bf16.mxu1 %v1588_v50 }
  0x34   : > { %1443 = vmatpush3.bf16.msra.mxu0 %v1587_v49 }
  0x35   : > { %1444 = vmatprep.subr.bf16.mxu0 %v1590_v52 }
  0x36   : > { %1465 = vmatpush3.bf16.msra.mxu1 %v1589_v51 }
  0x37   : > { %1466 = vmatprep.subr.bf16.mxu1 %v1592_v54 }
  0x38   : > { %1445 = vmatpush3.bf16.msra.mxu0 %v1591_v53 }
  0x39   : > { %1446 = vmatprep.subr.bf16.mxu0 %v1594_v56 }
  0x3a   : > { %1467 = vmatpush3.bf16.msra.mxu1 %v1593_v55 }
  0x3b   : > { %1468 = vmatprep.subr.bf16.mxu1 %v1596_v58 }
  0x3c   : > { %1447 = vmatpush3.bf16.msra.mxu0 %v1595_v57 }
  0x3d   : > { %1448 = vmatprep.subr.bf16.mxu0 %v1598_v60 }
  0x3e   : > { %1469 = vmatpush3.bf16.msra.mxu1 %v1597_v59 }
  0x3f   : > { %1470 = vmatprep.subr.bf16.mxu1 %v1600_v62 }
  0x40   : > { %1449 = vmatpush3.bf16.msra.mxu0 %v1599_v61 }
  0x41   : > { %1450 = vmatprep.subr.bf16.mxu0 %v1602_v0 }
  0x42   : > { %1471 = vmatpush3.bf16.msra.mxu1 %v1601_v63 }
  0x43   : > { %1472 = vmatprep.subr.bf16.mxu1 %v1604_v2 }
  0x44   : > { %1451 = vmatpush3.bf16.msra.mxu0 %v1603_v1 }
  0x45   : > { %1489 = vmatprep.subr.bf16.mxu0 %v1645_v6 }
  0x46   : > { %1473 = vmatpush3.bf16.msra.mxu1 %v1608_v5 }
  0x47   : > { %1045 = vmatmul.mubr.bf16.vlgmr.msra.gmra.mrb[4].mxu0 %v1605_v3 }
  0x48   : > { %1505 = vmatprep.mubr.msk.bf16.mxu0 %vm1646_vm0, %v1645_v6  ;;  %1490 = vmatpush3.bf16.msra.mxu0 %v1612_v9  ;;  %v1147_v9 = vld [vmem:[%s1942_s7] sm:$0x1] }
  0x49   : > { %1086 = vmatmul.mubr.bf16.vlgmr.msra.gmra.mrb[4].mxu1 %v1609_v7  ;;  %1491 = vmatprep.subr.bf16.mxu0 %v1645_v6 }
  0x4c   : > { %1492 = vmatpush3.bf16.msra.mxu0 %v1613_v10 }
  0x4d   : > { %1493 = vmatprep.subr.bf16.mxu0 %v1645_v6 }
  0x50   : > { %1494 = vmatpush3.bf16.msra.mxu0 %v1614_v11 }
  0x51   : > { %1495 = vmatprep.subr.bf16.mxu0 %v1645_v6 }
  0x54   : > { %1496 = vmatpush3.bf16.msra.mxu0 %v1615_v12 }
  0x55   : > { %1497 = vmatprep.subr.bf16.mxu0 %v1645_v6 }
  0x58   : > { %1498 = vmatpush3.bf16.msra.mxu0 %v1616_v13 }
  0x59   : > { %1499 = vmatprep.subr.bf16.mxu0 %v1645_v6 }
  0x5c   : > { %1500 = vmatpush3.bf16.msra.mxu0 %v1617_v14 }
  0x5d   : > { %1501 = vmatprep.subr.bf16.mxu0 %v1645_v6 }
  0x60   : > { %1502 = vmatpush3.bf16.msra.mxu0 %v1618_v15 }
  0x61   : > { %1503 = vmatprep.subr.bf16.mxu0 %v1645_v6  ;;  %v1137_v6 = vld [vmem:[%s1936_s29] sm:$0x1] }
  0x64   : > { %1504 = vmatpush3.bf16.msra.mxu0 %v1619_v16 }
  0x67   : > { %1506 = vmatmul.mubr.bf16.vlgmr.msra.gmra.mrb[8].mxu0 %v1620_v17 }
  0xfa   : > { %v1408_v18 = vpop.f32.mrb[0].mxu0 }
  0xfb   : > { %v1409_v20 = vpop.f32.mrb[1].mxu0 }
  0xfc   : > { %v1410_v21 = vadd.f32 %v1409_v20, %v1408_v18  ;;  %v1411_v22 = vpop.f32.mrb[2].mxu0  ;;  %v1430_v23 = vpop.f32.mrb[0].mxu1 }
  0xfd   : > { %v1412_v24 = vpop.f32.mrb[3].mxu0  ;;  %v1431_v27 = vpop.f32.mrb[1].mxu1 }
  0xfe   : > { %v965_v25 = vadd.f32 %v1410_v21, %v1307_v19  ;;  %v1413_v26 = vadd.f32 %v1412_v24, %v1411_v22  ;;  %v1432_v28 = vadd.f32 %v1431_v27, %v1430_v23  ;;  %v1433_v29 = vpop.f32.mrb[2].mxu1 }
  0xff   : > { %v1434_v31 = vpop.f32.mrb[3].mxu1 }
 0x100   : > { %v968_v30 = vadd.f32 %v1413_v26, %v1307_v19  ;;  %v1006_v32 = vadd.f32 %v1432_v28, %v965_v25  ;;  %v1435_v33 = vadd.f32 %v1434_v31, %v1433_v29 }
 0x102   : > { %v1009_v34 = vadd.f32 %v1435_v33, %v968_v30 }
 0x11a   : > { %v1452_v35 = vpop.f32.mrb[4].mxu0 }
 0x11b   : > { %v1453_v36 = vpop.f32.mrb[5].mxu0 }
 0x11c   : > { %v1454_v37 = vadd.f32 %v1453_v36, %v1452_v35  ;;  %v1455_v38 = vpop.f32.mrb[6].mxu0  ;;  %v1474_v39 = vpop.f32.mrb[4].mxu1 }
 0x11d   : > { %v1456_v40 = vpop.f32.mrb[7].mxu0  ;;  %v1475_v43 = vpop.f32.mrb[5].mxu1 }
 0x11e   : > { %v1047_v41 = vadd.f32 %v1454_v37, %v1006_v32  ;;  %v1457_v42 = vadd.f32 %v1456_v40, %v1455_v38  ;;  %v1476_v44 = vadd.f32 %v1475_v43, %v1474_v39  ;;  %v1477_v45 = vpop.f32.mrb[6].mxu1 }
 0x11f   : > { %v1478_v47 = vpop.f32.mrb[7].mxu1 }
 0x120   : > { %v1050_v46 = vadd.f32 %v1457_v42, %v1009_v34  ;;  %v1479_v48 = vadd.f32 %v1478_v47, %v1477_v45  ;;  %v1088_v49 = vadd.f32 %v1476_v44, %v1047_v41 }
 0x122   : > { %v1091_v50 = vadd.f32 %v1479_v48, %v1050_v46 }
 0x13a   : > { %v1128_v51 = vpop.f32.mrb[8].mxu0 }
 0x13b   : > { %v1129_v52 = vadd.f32 %v1128_v51, %v1088_v49  ;;  %v1507_v53 = vpop.f32.mrb[9].mxu0 }
 0x13c   : > { %v1131_v54 = vpop.f32.mrb[10].mxu0 }
 0x13d   : > { %1135 = vst [vmem:[%s276_s12] sm:$0xff] %v1129_v52  ;;  %v1132_v55 = vadd.f32 %v1131_v54, %v1091_v50  ;;  %v1508_v56 = vpop.f32.mrb[11].mxu0  ;;  %v1148_v57 = vmul.f32 %v1129_v52, %v1129_v52 }
 0x13f   : > { %1136 = vst [vmem:[%s276_s12 + $0x8] sm:$0xff] %v1132_v55  ;;  %v1138_v58 = vadd.f32 %v1132_v55, %v1129_v52  ;;  %v1149_v59 = vmul.f32 %v1132_v55, %v1132_v55 }
 0x141   : > { %v1139_v60 = vrot.slane %v1138_v58, 4  ;;  %v1150_v61 = vadd.f32 %v1149_v59, %v1148_v57 }
 0x143   : > { %v1140_v62 = vadd.f32 %v1139_v60, %v1138_v58  ;;  %v1151_v63 = vrot.slane %v1150_v61, 4 }
 0x145   : > { %v1141_v0 = vrot.slane %v1140_v62, 2  ;;  %v1152_v1 = vadd.f32 %v1151_v63, %v1150_v61 }
 0x147   : > { %v1142_v2 = vadd.f32 %v1141_v0, %v1140_v62  ;;  %v1153_v3 = vrot.slane %v1152_v1, 2 }
 0x149   : > { %v1143_v4 = vrot.slane %v1142_v2, 1  ;;  %v1154_v5 = vadd.f32 %v1153_v3, %v1152_v1 }
 0x14b   : > { %v1144_v7 = vadd.f32 %v1143_v4, %v1142_v2  ;;  %v1155_v8 = vrot.slane %v1154_v5, 1 }
 0x14d   : > { %v1145_v10 = vadd.f32 %v1144_v7, %v1137_v6  ;;  %v1156_v11 = vadd.f32 %v1155_v8, %v1154_v5 }
 0x14f   : > { %1146 = vst [vmem:[%s1936_s29] sm:$0x1] %v1145_v10  ;;  %v1157_v12 = vadd.f32 %v1156_v11, %v1147_v9 }
 0x151   : > { %1158 = vst [vmem:[%s1942_s7] sm:$0x1] %v1157_v12 }
 0x152 PF: > { %s16_s20 = sadd.s32 1, %s1643_s20   ;;  %s1972_s18 = smov %s1639_s19 }
 0x153   : > { %p13_p5 = scmp.ge.s32.totalorder %s16_s20, 4   ;;  %s1973_s19 = smov %s1975_s21 }
 0x155   :  { %15 = sbr.rel (!%p13_p5) target bundleno = 2 (0x2), region = 90 }

// kernel: transform_net.37
= control target key start
LH: loop header
LB: loop body
LE: loop exit
PB: predicated region body
PF: predicated region fallthrough
CT: control target
= control target key end

     0   :  { %s2167_s18 = smov 0   ;;  %s2169_s19 = smov 0   ;;  %s2514_s0 = inlined_call_operand.vmem [shape: bf16[2,64,1152], index: 0, kind: input, shape index: {}]   ;;  %s2515_s1 = inlined_call_operand.vmem [shape: bf16[1152,64], index: 1, kind: input, shape index: {}]   ;;  %s2516_s2 = inlined_call_operand.vmem [shape: f32[1,64], index: 2, kind: input, shape index: {}]   ;;  %s2517_s3 = inlined_call_operand.vmem [shape: f32[2,64,64], index: 3, kind: output, shape index: {0}]   ;;  %s2518_s4 = inlined_call_operand.vmem [shape: f32[2,1,64], index: 4, kind: output, shape index: {1}]   ;;  %s2519_s5 = inlined_call_operand.vmem [shape: f32[2,1,64], index: 5, kind: output, shape index: {2}]  }
   0x1   :  { %s2171_s20 = smov 0  }
   0x2 LB: > { %s28_s21 = sadd.s32 1, %s2130_s19  ;;  %p1634_p0 = scmp.ge.s32.totalorder %s2134_s20, 1  ;;  %s2134_s20 = sphi %s2171_s20, %s16_s20   ;;  %s2130_s19 = sphi %s2169_s19, %s2521_s19   ;;  %s2126_s18 = sphi %s2167_s18, %s2520_s18  }
   0x3   : > { %p30_p1 = scmp.ge.s32.totalorder %s28_s21, 2  ;;  %p214_p2 = scmp.lt.s32.totalorder %s2134_s20, 3 }
   0x5   : > { %s2523_s21 = smov (%p30_p1, %s28_s21), 0  ;;  %p215_p3 = pnand %p1634_p0, %p214_p2 }
   0x6   : > { %v1988_v0 = vld [vmem:[%s2515_s1 + $0x40] sm:$0xff] (!%p215_p3)   ;;  %v1992_v4 = vld [vmem:[%s2515_s1 + $0x48] sm:$0xff] (!%p215_p3)   ;;  %v1996_v8 = vld [vmem:[%s2515_s1 + $0x50] sm:$0xff] (!%p215_p3)   ;;  %p258_p4 = scmp.lt.s32.totalorder (!%p215_p3), %s2126_s18, 1  ;;  %vm289_vm0 = vcmask (!%p215_p3), 516096   ;;  %vm1424_vm1 = vcmask (!%p215_p3), 523264  }
   0x7   : > { %218 = sbr.rel (%p215_p3) target bundleno = 354 (0x162), region = 32  ;;  %v1989_v1 = vld [vmem:[%s2515_s1 + $0xc0] sm:$0xff] (!%p215_p3)   ;;  %1750 = vmatprep.subr.bf16.mxu0 (!%p215_p3), %v1988_v0  ;;  %v1993_v5 = vld [vmem:[%s2515_s1 + $0xc8] sm:$0xff] (!%p215_p3)   ;;  %v1997_v9 = vld [vmem:[%s2515_s1 + $0xd0] sm:$0xff] (!%p215_p3)  }
   0x8   : > { %v1990_v2 = vld [vmem:[%s2515_s1] sm:$0xff] (!%p215_p3)   ;;  %1790 = vmatprep.subr.bf16.mxu1 (!%p215_p3), %v1989_v1  ;;  %v1994_v6 = vld [vmem:[%s2515_s1 + $0x8] sm:$0xff] (!%p215_p3)   ;;  %v1998_v10 = vld [vmem:[%s2515_s1 + $0x10] sm:$0xff] (!%p215_p3)  }
   0x9   : > { %v1991_v3 = vld [vmem:[%s2515_s1 + $0x80] sm:$0xff] (!%p215_p3)   ;;  %1751 = vmatpush3.bf16.msra.mxu0 (!%p215_p3), %v1990_v2  ;;  %v1995_v7 = vld [vmem:[%s2515_s1 + $0x88] sm:$0xff] (!%p215_p3)   ;;  %v1999_v11 = vld [vmem:[%s2515_s1 + $0x90] sm:$0xff] (!%p215_p3)  }
   0xa   : > { %1791 = vmatpush3.bf16.msra.mxu1 (!%p215_p3), %v1991_v3  ;;  %1752 = vmatprep.subr.bf16.mxu0 (!%p215_p3), %v1992_v4  ;;  %v2000_v12 = vld [vmem:[%s2515_s1 + $0x58] sm:$0xff] (!%p215_p3)   ;;  %v2004_v16 = vld [vmem:[%s2515_s1 + $0x60] sm:$0xff] (!%p215_p3)   ;;  %v2008_v20 = vld [vmem:[%s2515_s1 + $0x68] sm:$0xff] (!%p215_p3)  }
   0xb   : > { %1792 = vmatprep.subr.bf16.mxu1 (!%p215_p3), %v1993_v5  ;;  %v2001_v13 = vld [vmem:[%s2515_s1 + $0xd8] sm:$0xff] (!%p215_p3)   ;;  %v2005_v17 = vld [vmem:[%s2515_s1 + $0xe0] sm:$0xff] (!%p215_p3)   ;;  %v2009_v21 = vld [vmem:[%s2515_s1 + $0xe8] sm:$0xff] (!%p215_p3)  }
   0xc   : > { %v2002_v14 = vld [vmem:[%s2515_s1 + $0x18] sm:$0xff] (!%p215_p3)   ;;  %v2006_v18 = vld [vmem:[%s2515_s1 + $0x20] sm:$0xff] (!%p215_p3)   ;;  %v2010_v22 = vld [vmem:[%s2515_s1 + $0x28] sm:$0xff] (!%p215_p3)  }
   0xd   : > { %1753 = vmatpush3.bf16.msra.mxu0 (!%p215_p3), %v1994_v6  ;;  %v2003_v15 = vld [vmem:[%s2515_s1 + $0x98] sm:$0xff] (!%p215_p3)   ;;  %v2007_v19 = vld [vmem:[%s2515_s1 + $0xa0] sm:$0xff] (!%p215_p3)   ;;  %v2011_v23 = vld [vmem:[%s2515_s1 + $0xa8] sm:$0xff] (!%p215_p3)  }
   0xe   : > { %1793 = vmatpush3.bf16.msra.mxu1 %v1995_v7  ;;  %1754 = vmatprep.subr.bf16.mxu0 %v1996_v8  ;;  %s2525_s18 = smov (!%p258_p4, %s2126_s18), 1  ;;  %v2012_v24 = vld [vmem:[%s2515_s1 + $0x70] sm:$0xff]   ;;  %v2016_v28 = vld [vmem:[%s2515_s1 + $0x78] sm:$0xff]   ;;  %v2026_v36 = vld [vmem:[%s2515_s1 + $0x140] sm:$0xff]  }
   0xf   : > { %1794 = vmatprep.subr.bf16.mxu1 %v1997_v9  ;;  %v2013_v25 = vld [vmem:[%s2515_s1 + $0xf0] sm:$0xff]   ;;  %s1962_s7 = smul.u32 288, %s2525_s18  ;;  %v2017_v29 = vld [vmem:[%s2515_s1 + $0xf8] sm:$0xff]   ;;  %v2027_v37 = vld [vmem:[%s2515_s1 + $0x1c0] sm:$0xff]   ;;  %s2453_s29 = scalar_lea.vmem %s2518_s4, %s2525_s18 }
  0x10   : > { %v2014_v26 = vld [vmem:[%s2515_s1 + $0x30] sm:$0xff]   ;;  %v2018_v30 = vld [vmem:[%s2515_s1 + $0x38] sm:$0xff]   ;;  %v2028_v38 = vld [vmem:[%s2515_s1 + $0x100] sm:$0xff]   ;;  %s1749_s9 = sshll.u32 %s2525_s18, 6 }
  0x11   : > { %1755 = vmatpush3.bf16.msra.mxu0 %v1998_v10  ;;  %v2015_v27 = vld [vmem:[%s2515_s1 + $0xb0] sm:$0xff]   ;;  %s2285_s22 = scalar_lea.vmem %s2514_s0, %s1962_s7  ;;  %v2019_v31 = vld [vmem:[%s2515_s1 + $0xb8] sm:$0xff]   ;;  %v2029_v39 = vld [vmem:[%s2515_s1 + $0x180] sm:$0xff]   ;;  %s2459_s7 = scalar_lea.vmem %s2519_s5, %s2525_s18 }
  0x12   : > { %1795 = vmatpush3.bf16.msra.mxu1 %v1999_v11  ;;  %1756 = vmatprep.subr.bf16.mxu0 %v2000_v12  ;;  %v2020_v32 = vld [vmem:[%s2285_s22] ss:$36 sps:$4 sm:$0xff]   ;;  %v2023_v34 = vld [vmem:[%s2285_s22 + $0x8] ss:$36 sps:$4 sm:$0xff]   ;;  %v2036_v45 = vld [vmem:[%s2285_s22 + $0x54] ss:$36 sps:$4 sm:$0xff]   ;;  %s276_s12 = scalar_lea.vmem %s2517_s3, %s1749_s9 }
  0x13   : > { %1796 = vmatprep.subr.bf16.mxu1 %v2001_v13  ;;  %v2022_v33 = vld [vmem:[%s2285_s22 + $0x4] ss:$36 sps:$4 sm:$0xff]   ;;  %v2025_v35 = vld [vmem:[%s2285_s22 + $0xc] ss:$36 sps:$4 sm:$0xff]   ;;  %v2044_v52 = vld [vmem:[%s2515_s1 + $0x158] sm:$0xff]  }
  0x14   : > { %1131 = vmatprep.mubr.bf16.mxu0 %v2022_v33  ;;  %1196 = vmatprep.mubr.bf16.mxu1 %v2025_v35  ;;  %v2030_v40 = vld [vmem:[%s2515_s1 + $0x148] sm:$0xff]   ;;  %v2039_v47 = vld [vmem:[%s2285_s22 + $0x50] ss:$36 sps:$4 sm:$0xff]   ;;  %v2045_v53 = vld [vmem:[%s2515_s1 + $0x1d8] sm:$0xff]  }
  0x15   : > { %1757 = vmatpush3.bf16.msra.mxu0 %v2002_v14  ;;  %v2031_v41 = vld [vmem:[%s2515_s1 + $0x1c8] sm:$0xff]   ;;  %v2040_v48 = vld [vmem:[%s2515_s1 + $0x150] sm:$0xff]   ;;  %v2046_v54 = vld [vmem:[%s2515_s1 + $0x118] sm:$0xff]  }
  0x16   : > { %1797 = vmatpush3.bf16.msra.mxu1 %v2003_v15  ;;  %1758 = vmatprep.subr.bf16.mxu0 %v2004_v16  ;;  %v2032_v42 = vld [vmem:[%s2515_s1 + $0x108] sm:$0xff]   ;;  %v2041_v49 = vld [vmem:[%s2515_s1 + $0x1d0] sm:$0xff]   ;;  %v2047_v55 = vld [vmem:[%s2515_s1 + $0x198] sm:$0xff]  }
  0x17   : > { %1798 = vmatprep.subr.bf16.mxu1 %v2005_v17  ;;  %v2033_v43 = vld [vmem:[%s2515_s1 + $0x188] sm:$0xff]   ;;  %v2042_v50 = vld [vmem:[%s2515_s1 + $0x110] sm:$0xff]   ;;  %v2050_v57 = vld [vmem:[%s2285_s22 + $0x9c] ss:$36 sps:$4 sm:$0xff]  }
  0x18   : > { %v2034_v44 = vld [vmem:[%s2285_s22 + $0x4c] ss:$36 sps:$4 sm:$0xff]   ;;  %v2048_v56 = vld [vmem:[%s2285_s22 + $0x94] ss:$36 sps:$4 sm:$0xff]   ;;  %v2054_v60 = vld [vmem:[%s2515_s1 + $0x160] sm:$0xff]  }
  0x19   : > { %1759 = vmatpush3.bf16.msra.mxu0 %v2006_v18  ;;  %v2038_v46 = vld [vmem:[%s2285_s22 + $0x48] ss:$36 sps:$4 sm:$0xff]   ;;  %v2043_v51 = vld [vmem:[%s2515_s1 + $0x190] sm:$0xff]   ;;  %v2053_v59 = vld [vmem:[%s2285_s22 + $0x98] ss:$36 sps:$4 sm:$0xff]  }
  0x1a   : > { %1799 = vmatpush3.bf16.msra.mxu1 %v2007_v19  ;;  %1760 = vmatprep.subr.bf16.mxu0 %v2008_v20  ;;  %v2052_v58 = vld [vmem:[%s2285_s22 + $0x90] ss:$36 sps:$4 sm:$0xff]   ;;  %v2055_v61 = vld [vmem:[%s2515_s1 + $0x1e0] sm:$0xff]   ;;  %v2058_v0 = vld [vmem:[%s2515_s1 + $0x168] sm:$0xff]  }
  0x1b   : > { %1800 = vmatprep.subr.bf16.mxu1 %v2009_v21  ;;  %v2056_v62 = vld [vmem:[%s2515_s1 + $0x120] sm:$0xff]   ;;  %v2059_v1 = vld [vmem:[%s2515_s1 + $0x1e8] sm:$0xff]   ;;  %v2066_v6 = vld [vmem:[%s2285_s22 + $0xd8] ss:$36 sps:$4 sm:$0xff]  }
  0x1c   : > { %v2057_v63 = vld [vmem:[%s2515_s1 + $0x1a0] sm:$0xff]   ;;  %v2060_v2 = vld [vmem:[%s2515_s1 + $0x128] sm:$0xff]   ;;  %v2068_v8 = vld [vmem:[%s2515_s1 + $0x170] sm:$0xff]  }
  0x1d   : > { %1761 = vmatpush3.bf16.msra.mxu0 %v2010_v22  ;;  %v2061_v3 = vld [vmem:[%s2515_s1 + $0x1a8] sm:$0xff]   ;;  %v2062_v4 = vld [vmem:[%s2285_s22 + $0xdc] ss:$36 sps:$4 sm:$0xff]   ;;  %v2069_v9 = vld [vmem:[%s2515_s1 + $0x1f0] sm:$0xff]  }
  0x1e   : > { %1801 = vmatpush3.bf16.msra.mxu1 %v2011_v23  ;;  %1762 = vmatprep.subr.bf16.mxu0 %v2012_v24  ;;  %v2064_v5 = vld [vmem:[%s2285_s22 + $0xe4] ss:$36 sps:$4 sm:$0xff]   ;;  %v2070_v10 = vld [vmem:[%s2515_s1 + $0x130] sm:$0xff]   ;;  %v2072_v12 = vld [vmem:[%s2515_s1 + $0x178] sm:$0xff]  }
  0x1f   : > { %1802 = vmatprep.subr.bf16.mxu1 %v2013_v25  ;;  %v2067_v7 = vld [vmem:[%s2285_s22 + $0xe0] ss:$36 sps:$4 sm:$0xff]   ;;  %v2071_v11 = vld [vmem:[%s2515_s1 + $0x1b0] sm:$0xff]   ;;  %v2073_v13 = vld [vmem:[%s2515_s1 + $0x1f8] sm:$0xff]  }
  0x20   : > { %v2074_v14 = vld [vmem:[%s2515_s1 + $0x138] sm:$0xff]   ;;  %v2076_v16 = vld [vmem:[%s2285_s22 + $0x10] ss:$36 sps:$4 sm:$0xff]   ;;  %v2082_v20 = vld [vmem:[%s2515_s1 + $0x200] sm:$0xff]  }
  0x21   : > { %1763 = vmatpush3.bf16.msra.mxu0 %v2014_v26  ;;  %v2075_v15 = vld [vmem:[%s2515_s1 + $0x1b8] sm:$0xff]   ;;  %v2083_v21 = vld [vmem:[%s2515_s1 + $0x208] sm:$0xff]   ;;  %v2089_v25 = vld [vmem:[%s2285_s22 + $0x60] ss:$36 sps:$4 sm:$0xff]  }
  0x22   : > { %1803 = vmatpush3.bf16.msra.mxu1 %v2015_v27  ;;  %1764 = vmatprep.subr.bf16.mxu0 %v2016_v28  ;;  %v2078_v17 = vld [vmem:[%s2285_s22 + $0x14] ss:$36 sps:$4 sm:$0xff]   ;;  %v2081_v19 = vld [vmem:[%s2285_s22 + $0x1c] ss:$36 sps:$4 sm:$0xff]   ;;  %v2086_v23 = vld [vmem:[%s2285_s22 + $0x64] ss:$36 sps:$4 sm:$0xff]  }
  0x23   : > { %1804 = vmatprep.subr.bf16.mxu1 %v2017_v29  ;;  %v2079_v18 = vld [vmem:[%s2285_s22 + $0x18] ss:$36 sps:$4 sm:$0xff]   ;;  %v2090_v26 = vld [vmem:[%s2515_s1 + $0x210] sm:$0xff]   ;;  %v2092_v27 = vld [vmem:[%s2285_s22 + $0xa4] ss:$36 sps:$4 sm:$0xff]  }
  0x24   : > { %v2084_v22 = vld [vmem:[%s2285_s22 + $0x5c] ss:$36 sps:$4 sm:$0xff]   ;;  %v2094_v28 = vld [vmem:[%s2285_s22 + $0xac] ss:$36 sps:$4 sm:$0xff]  }
  0x25   : > { %1765 = vmatpush3.bf16.msra.mxu0 %v2018_v30  ;;  %v2088_v24 = vld [vmem:[%s2285_s22 + $0x58] ss:$36 sps:$4 sm:$0xff]   ;;  %v2096_v30 = vld [vmem:[%s2285_s22 + $0xa0] ss:$36 sps:$4 sm:$0xff]   ;;  %v2100_v33 = vld [vmem:[%s2285_s22 + $0xec] ss:$36 sps:$4 sm:$0xff]  }
  0x26   : > { %1805 = vmatpush3.bf16.msra.mxu1 %v2019_v31  ;;  %1830 = vmatprep.subr.bf16.mxu0 %v2026_v36  ;;  %v2091_v29 = vld [vmem:[%s2515_s1 + $0x218] sm:$0xff]   ;;  %v2097_v31 = vld [vmem:[%s2285_s22 + $0xa8] ss:$36 sps:$4 sm:$0xff]  }
  0x27   : > { %1870 = vmatprep.subr.bf16.mxu1 %v2027_v37  ;;  %v2099_v35 = vld [vmem:[%s2515_s1 + $0x228] sm:$0xff]   ;;  %v2106_v37 = vld [vmem:[%s2515_s1 + $0x230] sm:$0xff]  }
  0x28   : > { %1132 = vmatmul.mubr.bf16.vlgmr.msra.gmra.mrb[0].mxu0 %v2020_v32  ;;  %v2098_v32 = vld [vmem:[%s2515_s1 + $0x220] sm:$0xff]   ;;  %v2104_v36 = vld [vmem:[%s2285_s22 + $0xe8] ss:$36 sps:$4 sm:$0xff]  }
  0x29   : > { %1197 = vmatmul.mubr.bf16.vlgmr.msra.gmra.mrb[0].mxu1 %v2023_v34  ;;  %1831 = vmatpush3.bf16.msra.mxu0 %v2028_v38  ;;  %v2102_v34 = vld [vmem:[%s2285_s22 + $0xf4] ss:$36 sps:$4 sm:$0xff]  }
  0x2a   : > { %1871 = vmatpush3.bf16.msra.mxu1 %v2029_v39  ;;  %1832 = vmatprep.subr.bf16.mxu0 %v2030_v40  ;;  %v2105_v38 = vld [vmem:[%s2285_s22 + $0xf0] ss:$36 sps:$4 sm:$0xff]   ;;  %v2108_v39 = vld [vmem:[%s2285_s22 + $0x20] ss:$36 sps:$4 sm:$0xff]  }
  0x2b   : > { %1872 = vmatprep.subr.bf16.mxu1 %v2031_v41  ;;  %1139 = vmatprep.mubr.bf16.mxu0 %v2034_v44  ;;  %v2109_v40 = vld [vmem:[%s2285_s22 + $0xb0] ss:$36 sps:$4 sm:$0xff]   ;;  %v2107_v41 = vld [vmem:[%s2515_s1 + $0x238] sm:$0xff]   ;;  %v2136_v44 = vmov 0.0  }
  0x2c   : > { %1204 = vmatprep.mubr.bf16.mxu1 %v2036_v45  ;;  %290 = vst.msk [vmem:[%s2453_s29] sm:$0x1] %vm289_vm0, %v2136_v44  ;;  %291 = vst.msk [vmem:[%s2459_s7] sm:$0x1] %vm289_vm0, %v2136_v44 }
  0x2d   : > { %1833 = vmatpush3.bf16.msra.mxu0 %v2032_v42  ;;  %v2110_v42 = vld [vmem:[%s2285_s22 + $0x68] ss:$36 sps:$4 sm:$0xff]  }
  0x2e   : > { %1873 = vmatpush3.bf16.msra.mxu1 %v2033_v43  ;;  %1834 = vmatprep.subr.bf16.mxu0 %v2040_v48  ;;  %v2111_v43 = vld [vmem:[%s2285_s22 + $0xf8] ss:$36 sps:$4 sm:$0xff]  }
  0x2f   : > { %1874 = vmatprep.subr.bf16.mxu1 %v2041_v49 }
  0x30   : > { %1140 = vmatmul.mubr.bf16.gmra.mrb[4].mxu0 %v2038_v46  ;;  %v1638_v46 = vld [vmem:[%s2516_s2] ss:$0 sm:$0xff] }
  0x31   : > { %1205 = vmatmul.mubr.bf16.gmra.mrb[4].mxu1 %v2039_v47  ;;  %1835 = vmatpush3.bf16.msra.mxu0 %v2042_v50 }
  0x32   : > { %1875 = vmatpush3.bf16.msra.mxu1 %v2043_v51  ;;  %1836 = vmatprep.subr.bf16.mxu0 %v2044_v52 }
  0x33   : > { %1876 = vmatprep.subr.bf16.mxu1 %v2045_v53  ;;  %1147 = vmatprep.mubr.bf16.mxu0 %v2048_v56 }
  0x34   : > { %1212 = vmatprep.mubr.bf16.mxu1 %v2050_v57 }
  0x35   : > { %1837 = vmatpush3.bf16.msra.mxu0 %v2046_v54 }
  0x36   : > { %1877 = vmatpush3.bf16.msra.mxu1 %v2047_v55  ;;  %1838 = vmatprep.subr.bf16.mxu0 %v2054_v60 }
  0x37   : > { %1878 = vmatprep.subr.bf16.mxu1 %v2055_v61 }
  0x38   : > { %1148 = vmatmul.mubr.bf16.gmra.mrb[8].mxu0 %v2052_v58 }
  0x39   : > { %1213 = vmatmul.mubr.bf16.gmra.mrb[8].mxu1 %v2053_v59  ;;  %1839 = vmatpush3.bf16.msra.mxu0 %v2056_v62 }
  0x3a   : > { %1879 = vmatpush3.bf16.msra.mxu1 %v2057_v63  ;;  %1840 = vmatprep.subr.bf16.mxu0 %v2058_v0 }
  0x3b   : > { %1880 = vmatprep.subr.bf16.mxu1 %v2059_v1  ;;  %1155 = vmatprep.mubr.bf16.mxu0 %v2062_v4 }
  0x3c   : > { %1220 = vmatprep.mubr.bf16.mxu1 %v2064_v5 }
  0x3d   : > { %1841 = vmatpush3.bf16.msra.mxu0 %v2060_v2 }
  0x3e   : > { %1881 = vmatpush3.bf16.msra.mxu1 %v2061_v3  ;;  %1842 = vmatprep.subr.bf16.mxu0 %v2068_v8 }
  0x3f   : > { %1882 = vmatprep.subr.bf16.mxu1 %v2069_v9 }
  0x40   : > { %1156 = vmatmul.mubr.bf16.gmra.mrb[12].mxu0 %v2066_v6 }
  0x41   : > { %1221 = vmatmul.mubr.bf16.gmra.mrb[12].mxu1 %v2067_v7  ;;  %1843 = vmatpush3.bf16.msra.mxu0 %v2070_v10 }
  0x42   : > { %1883 = vmatpush3.bf16.msra.mxu1 %v2071_v11  ;;  %1844 = vmatprep.subr.bf16.mxu0 %v2072_v12 }
  0x43   : > { %1884 = vmatprep.subr.bf16.mxu1 %v2073_v13  ;;  %1261 = vmatprep.mubr.bf16.mxu0 %v2078_v17 }
  0x44   : > { %1326 = vmatprep.mubr.bf16.mxu1 %v2081_v19 }
  0x45   : > { %1845 = vmatpush3.bf16.msra.mxu0 %v2074_v14 }
  0x46   : > { %1885 = vmatpush3.bf16.msra.mxu1 %v2075_v15  ;;  %1922 = vmatprep.subr.bf16.mxu0 %v2082_v20 }
  0x47   : > { %1946 = vmatprep.subr.bf16.mxu1 %v2082_v20 }
  0x48   : > { %1262 = vmatmul.mubr.bf16.vlgmr.msra.gmra.mrb[16].mxu0 %v2076_v16 }
  0x49   : > { %1327 = vmatmul.mubr.bf16.vlgmr.msra.gmra.mrb[16].mxu1 %v2079_v18  ;;  %1923 = vmatpush3.bf16.msra.mxu0 %v2082_v20 }
  0x4a   : > { %1954 = vmatpush3.bf16.msra.mxu1 %v2082_v20  ;;  %1924 = vmatprep.subr.bf16.mxu0 %v2083_v21 }
  0x4b   : > { %1947 = vmatprep.subr.bf16.mxu1 %v2083_v21  ;;  %1269 = vmatprep.mubr.bf16.mxu0 %v2084_v22 }
  0x4c   : > { %1334 = vmatprep.mubr.bf16.mxu1 %v2086_v23 }
  0x4d   : > { %1925 = vmatpush3.bf16.msra.mxu0 %v2083_v21 }
  0x4e   : > { %1955 = vmatpush3.bf16.msra.mxu1 %v2083_v21  ;;  %1926 = vmatprep.subr.bf16.mxu0 %v2090_v26 }
  0x4f   : > { %1948 = vmatprep.subr.bf16.mxu1 %v2090_v26 }
  0x50   : > { %1270 = vmatmul.mubr.bf16.gmra.mrb[20].mxu0 %v2088_v24 }
  0x51   : > { %1335 = vmatmul.mubr.bf16.gmra.mrb[20].mxu1 %v2089_v25  ;;  %1277 = vmatprep.mubr.bf16.mxu0 %v2092_v27 }
  0x52   : > { %1927 = vmatpush3.bf16.msra.mxu0 %v2090_v26  ;;  %1342 = vmatprep.mubr.bf16.mxu1 %v2094_v28 }
  0x53   : > { %1956 = vmatpush3.bf16.msra.mxu1 %v2090_v26  ;;  %1928 = vmatprep.subr.bf16.mxu0 %v2091_v29 }
  0x54   : > { %1949 = vmatprep.subr.bf16.mxu1 %v2091_v29 }
  0x56   : > { %1929 = vmatpush3.bf16.msra.mxu0 %v2091_v29 }
  0x57   : > { %1957 = vmatpush3.bf16.msra.mxu1 %v2091_v29  ;;  %1930 = vmatprep.subr.bf16.mxu0 %v2098_v32 }
  0x58   : > { %1278 = vmatmul.mubr.bf16.gmra.mrb[24].mxu0 %v2096_v30  ;;  %1950 = vmatprep.subr.bf16.mxu1 %v2098_v32 }
  0x59   : > { %1343 = vmatmul.mubr.bf16.gmra.mrb[24].mxu1 %v2097_v31  ;;  %1285 = vmatprep.mubr.bf16.mxu0 %v2100_v33 }
  0x5a   : > { %1931 = vmatpush3.bf16.msra.mxu0 %v2098_v32  ;;  %1350 = vmatprep.mubr.bf16.mxu1 %v2102_v34 }
  0x5b   : > { %1958 = vmatpush3.bf16.msra.mxu1 %v2098_v32  ;;  %1932 = vmatprep.subr.bf16.mxu0 %v2099_v35 }
  0x5c   : > { %1951 = vmatprep.subr.bf16.mxu1 %v2099_v35 }
  0x5e   : > { %1933 = vmatpush3.bf16.msra.mxu0 %v2099_v35 }
  0x5f   : > { %1959 = vmatpush3.bf16.msra.mxu1 %v2099_v35  ;;  %1934 = vmatprep.subr.bf16.mxu0 %v2106_v37 }
  0x60   : > { %1286 = vmatmul.mubr.bf16.gmra.mrb[28].mxu0 %v2104_v36  ;;  %1952 = vmatprep.subr.bf16.mxu1 %v2106_v37 }
  0x61   : > { %1351 = vmatmul.mubr.bf16.gmra.mrb[28].mxu1 %v2105_v38  ;;  %1938 = vmatprep.mubr.bf16.mxu0 %v2108_v39 }
  0x62   : > { %1935 = vmatpush3.bf16.msra.mxu0 %v2106_v37  ;;  %1942 = vmatprep.mubr.bf16.mxu1 %v2109_v40 }
  0x63   : > { %1960 = vmatpush3.bf16.msra.mxu1 %v2106_v37  ;;  %1936 = vmatprep.subr.bf16.mxu0 %v2107_v41 }
  0x64   : > { %1953 = vmatprep.subr.bf16.mxu1 %v2107_v41 }
  0x66   : > { %1937 = vmatpush3.bf16.msra.mxu0 %v2107_v41 }
  0x67   : > { %1961 = vmatpush3.bf16.msra.mxu1 %v2107_v41 }
  0x69   : > { %1939 = vmatmul.mubr.bf16.vlgmr.msra.gmra.mrb[32].mxu0 %v2110_v42 }
  0x6a   : > { %1943 = vmatmul.mubr.bf16.vlgmr.msra.gmra.mrb[32].mxu1 %v2111_v43 }
  0xfb   : > { %v1766_v45 = vpop.f32.mrb[0].mxu0 }
  0xfc   : > { %v1767_v47 = vpop.f32.mrb[1].mxu0  ;;  %v1806_v48 = vpop.f32.mrb[0].mxu1 }
  0xfd   : > { %v1768_v49 = vadd.f32 %v1767_v47, %v1766_v45  ;;  %v1769_v50 = vpop.f32.mrb[2].mxu0  ;;  %v1807_v51 = vpop.f32.mrb[1].mxu1 }
  0xfe   : > { %v1770_v52 = vpop.f32.mrb[3].mxu0  ;;  %v1808_v53 = vadd.f32 %v1807_v51, %v1806_v48  ;;  %v1809_v54 = vpop.f32.mrb[2].mxu1 }
  0xff   : > { %v1134_v55 = vadd.f32 %v1768_v49, %v1638_v46  ;;  %v1771_v56 = vadd.f32 %v1770_v52, %v1769_v50  ;;  %v1810_v57 = vpop.f32.mrb[3].mxu1 }
 0x100   : > { %v1811_v58 = vadd.f32 %v1810_v57, %v1809_v54 }
 0x101   : > { %v1137_v59 = vadd.f32 %v1771_v56, %v1638_v46  ;;  %v1199_v60 = vadd.f32 %v1808_v53, %v1134_v55 }
 0x103   : > { %v1202_v61 = vadd.f32 %v1811_v58, %v1137_v59  ;;  %v1772_v62 = vpop.f32.mrb[4].mxu0 }
 0x104   : > { %v1773_v63 = vpop.f32.mrb[5].mxu0  ;;  %v1812_v0 = vpop.f32.mrb[4].mxu1 }
 0x105   : > { %v1774_v1 = vadd.f32 %v1773_v63, %v1772_v62  ;;  %v1775_v2 = vpop.f32.mrb[6].mxu0  ;;  %v1813_v3 = vpop.f32.mrb[5].mxu1 }
 0x106   : > { %v1776_v4 = vpop.f32.mrb[7].mxu0  ;;  %v1814_v5 = vadd.f32 %v1813_v3, %v1812_v0  ;;  %v1815_v6 = vpop.f32.mrb[6].mxu1 }
 0x107   : > { %v1142_v7 = vadd.f32 %v1774_v1, %v1638_v46  ;;  %v1777_v8 = vadd.f32 %v1776_v4, %v1775_v2  ;;  %v1816_v9 = vpop.f32.mrb[7].mxu1 }
 0x108   : > { %v1817_v10 = vadd.f32 %v1816_v9, %v1815_v6 }
 0x109   : > { %v1145_v11 = vadd.f32 %v1777_v8, %v1638_v46  ;;  %v1207_v12 = vadd.f32 %v1814_v5, %v1142_v7 }
 0x10b   : > { %v1210_v13 = vadd.f32 %v1817_v10, %v1145_v11  ;;  %v1778_v14 = vpop.f32.mrb[8].mxu0 }
 0x10c   : > { %v1779_v15 = vpop.f32.mrb[9].mxu0  ;;  %v1818_v16 = vpop.f32.mrb[8].mxu1 }
 0x10d   : > { %v1780_v17 = vadd.f32 %v1779_v15, %v1778_v14  ;;  %v1781_v18 = vpop.f32.mrb[10].mxu0  ;;  %v1819_v19 = vpop.f32.mrb[9].mxu1 }
 0x10e   : > { %v1782_v20 = vpop.f32.mrb[11].mxu0  ;;  %v1820_v21 = vadd.f32 %v1819_v19, %v1818_v16  ;;  %v1821_v22 = vpop.f32.mrb[10].mxu1 }
 0x10f   : > { %v1150_v23 = vadd.f32 %v1780_v17, %v1638_v46  ;;  %v1783_v24 = vadd.f32 %v1782_v20, %v1781_v18  ;;  %v1822_v25 = vpop.f32.mrb[11].mxu1 }
 0x110   : > { %v1823_v26 = vadd.f32 %v1822_v25, %v1821_v22 }
 0x111   : > { %v1153_v27 = vadd.f32 %v1783_v24, %v1638_v46  ;;  %v1215_v28 = vadd.f32 %v1820_v21, %v1150_v23 }
 0x113   : > { %v1218_v29 = vadd.f32 %v1823_v26, %v1153_v27  ;;  %v1784_v30 = vpop.f32.mrb[12].mxu0 }
 0x114   : > { %v1824_v31 = vpop.f32.mrb[12].mxu1  ;;  %v1785_v32 = vpop.f32.mrb[13].mxu0 }
 0x115   : > { %v1825_v33 = vpop.f32.mrb[13].mxu1  ;;  %v1786_v34 = vadd.f32 %v1785_v32, %v1784_v30  ;;  %v1787_v35 = vpop.f32.mrb[14].mxu0 }
 0x116   : > { %v1826_v36 = vadd.f32 %v1825_v33, %v1824_v31  ;;  %v1827_v37 = vpop.f32.mrb[14].mxu1  ;;  %v1788_v38 = vpop.f32.mrb[15].mxu0 }
 0x117   : > { %v1828_v39 = vpop.f32.mrb[15].mxu1  ;;  %v1158_v40 = vadd.f32 %v1786_v34, %v1638_v46  ;;  %v1789_v41 = vadd.f32 %v1788_v38, %v1787_v35 }
 0x118   : > { %v1829_v42 = vadd.f32 %v1828_v39, %v1827_v37 }
 0x119   : > { %v1161_v43 = vadd.f32 %v1789_v41, %v1638_v46  ;;  %v1223_v44 = vadd.f32 %v1826_v36, %v1158_v40 }
 0x11b   : > { %v1226_v45 = vadd.f32 %v1829_v42, %v1161_v43  ;;  %v1846_v47 = vpop.f32.mrb[16].mxu0 }
 0x11c   : > { %v1847_v48 = vpop.f32.mrb[17].mxu0  ;;  %v1886_v51 = vpop.f32.mrb[16].mxu1 }
 0x11d   : > { %v1848_v49 = vadd.f32 %v1847_v48, %v1846_v47  ;;  %v1849_v50 = vpop.f32.mrb[18].mxu0  ;;  %v1887_v53 = vpop.f32.mrb[17].mxu1 }
 0x11e   : > { %v1850_v52 = vpop.f32.mrb[19].mxu0  ;;  %v1888_v56 = vadd.f32 %v1887_v53, %v1886_v51  ;;  %v1889_v57 = vpop.f32.mrb[18].mxu1 }
 0x11f   : > { %v1264_v54 = vadd.f32 %v1848_v49, %v1199_v60  ;;  %v1851_v55 = vadd.f32 %v1850_v52, %v1849_v50  ;;  %v1890_v58 = vpop.f32.mrb[19].mxu1 }
 0x120   : > { %v1891_v62 = vadd.f32 %v1890_v58, %v1889_v57 }
 0x121   : > { %v1267_v59 = vadd.f32 %v1851_v55, %v1202_v61  ;;  %v1329_v63 = vadd.f32 %v1888_v56, %v1264_v54 }
 0x123   : > { %v1852_v0 = vpop.f32.mrb[20].mxu0  ;;  %v2468_v1 = vadd.f32 %v1891_v62, %v1267_v59 }
 0x124   : > { %v1853_v46 = vpop.f32.mrb[21].mxu0  ;;  %v1892_v4 = vpop.f32.mrb[20].mxu1 }
 0x125   : > { %v1854_v2 = vadd.f32 %v1853_v46, %v1852_v0  ;;  %v1855_v3 = vpop.f32.mrb[22].mxu0  ;;  %v1893_v6 = vpop.f32.mrb[21].mxu1 }
 0x126   : > { %v1856_v5 = vpop.f32.mrb[23].mxu0  ;;  %v1894_v9 = vadd.f32 %v1893_v6, %v1892_v4  ;;  %v1895_v60 = vpop.f32.mrb[22].mxu1 }
 0x127   : > { %v1272_v7 = vadd.f32 %v1854_v2, %v1207_v12  ;;  %v1857_v8 = vadd.f32 %v1856_v5, %v1855_v3  ;;  %v1896_v10 = vpop.f32.mrb[23].mxu1 }
 0x128   : > { %v1897_v14 = vadd.f32 %v1896_v10, %v1895_v60 }
 0x129   : > { %v1275_v11 = vadd.f32 %v1857_v8, %v1210_v13  ;;  %v1337_v15 = vadd.f32 %v1894_v9, %v1272_v7 }
 0x12b   : > { %v1858_v61 = vpop.f32.mrb[24].mxu0  ;;  %v1340_v16 = vadd.f32 %v1897_v14, %v1275_v11 }
 0x12c   : > { %v1859_v17 = vpop.f32.mrb[25].mxu0  ;;  %v1898_v20 = vpop.f32.mrb[24].mxu1 }
 0x12d   : > { %v1860_v18 = vadd.f32 %v1859_v17, %v1858_v61  ;;  %v1861_v19 = vpop.f32.mrb[26].mxu0  ;;  %v1899_v22 = vpop.f32.mrb[25].mxu1 }
 0x12e   : > { %v1862_v21 = vpop.f32.mrb[27].mxu0  ;;  %v1900_v25 = vadd.f32 %v1899_v22, %v1898_v20  ;;  %v1901_v26 = vpop.f32.mrb[26].mxu1 }
 0x12f   : > { %v1280_v23 = vadd.f32 %v1860_v18, %v1215_v28  ;;  %v1863_v24 = vadd.f32 %v1862_v21, %v1861_v19  ;;  %v1902_v12 = vpop.f32.mrb[27].mxu1 }
 0x130   : > { %v1903_v30 = vadd.f32 %v1902_v12, %v1901_v26 }
 0x131   : > { %v1283_v27 = vadd.f32 %v1863_v24, %v1218_v29  ;;  %v1345_v31 = vadd.f32 %v1900_v25, %v1280_v23 }
 0x133   : > { %v1864_v32 = vpop.f32.mrb[28].mxu0  ;;  %v1348_v13 = vadd.f32 %v1903_v30, %v1283_v27 }
 0x134   : > { %v1865_v33 = vpop.f32.mrb[29].mxu0  ;;  %v1904_v36 = vpop.f32.mrb[28].mxu1 }
 0x135   : > { %v1866_v34 = vadd.f32 %v1865_v33, %v1864_v32  ;;  %v1867_v35 = vpop.f32.mrb[30].mxu0  ;;  %v1905_v38 = vpop.f32.mrb[29].mxu1 }
 0x136   : > { %v1868_v37 = vpop.f32.mrb[31].mxu0  ;;  %v1906_v41 = vadd.f32 %v1905_v38, %v1904_v36  ;;  %v1907_v28 = vpop.f32.mrb[30].mxu1 }
 0x137   : > { %v1288_v39 = vadd.f32 %v1866_v34, %v1223_v44  ;;  %v1869_v40 = vadd.f32 %v1868_v37, %v1867_v35  ;;  %v1908_v42 = vpop.f32.mrb[31].mxu1 }
 0x138   : > { %v1909_v47 = vadd.f32 %v1908_v42, %v1907_v28 }
 0x139   : > { %v1291_v43 = vadd.f32 %v1869_v40, %v1226_v45  ;;  %v1353_v48 = vadd.f32 %v1906_v41, %v1288_v39 }
 0x13b   : > { %v1356_v29 = vadd.f32 %v1909_v47, %v1291_v43 }
 0x13c   : > { %v1940_v49 = vpop.f32.mrb[32].mxu0 }
 0x13d   : > { %v1402_v50 = vadd.f32 %v1940_v49, %v1337_v15  ;;  %v1944_v51 = vpop.f32.mrb[32].mxu1  ;;  %v1393_v52 = vpop.f32.mrb[33].mxu0 }
 0x13e   : > { %v1418_v53 = vadd.f32 %v1944_v51, %v1353_v48  ;;  %v1394_v44 = vadd.f32 %v1393_v52, %v1329_v63  ;;  %v1409_v54 = vpop.f32.mrb[33].mxu1  ;;  %v1941_v55 = vpop.f32.mrb[34].mxu0  ;;  %v1458_v51 = vld [vmem:[%s2459_s7] sm:$0x1] }
 0x13f   : > { %1427 = vst.msk [vmem:[%s276_s12 + $0x10] sm:$0xff] %vm1424_vm1, %v1402_v50  ;;  %v1410_v45 = vadd.f32 %v1409_v54, %v1345_v31  ;;  %v1405_v56 = vadd.f32 %v1941_v55, %v1340_v16  ;;  %v1945_v57 = vpop.f32.mrb[34].mxu1  ;;  %v1396_v58 = vpop.f32.mrb[35].mxu0  ;;  %v1461_v2 = vmul.f32 %v1402_v50, %v1402_v50  ;;  %v1437_v7 = vsel %vm1424_vm1, %v1402_v50, 0.0 }
 0x140   : > { %1431 = vst.msk [vmem:[%s276_s12 + $0x30] sm:$0xff] %vm1424_vm1, %v1418_v53  ;;  %1425 = vst.msk [vmem:[%s276_s12] sm:$0xff] %vm1424_vm1, %v1394_v44  ;;  %v1412_v59 = vpop.f32.mrb[35].mxu1  ;;  %v1421_v62 = vadd.f32 %v1945_v57, %v1356_v29  ;;  %v1459_v0 = vmul.f32 %v1394_v44, %v1394_v44  ;;  %v1397_v63 = vadd.f32 %v1396_v58, %v2468_v1  ;;  %v1434_v3 = vsel %vm1424_vm1, %v1394_v44, 0.0  ;;  %v1433_v29 = vld [vmem:[%s2453_s29] sm:$0x1] }
 0x141   : > { %1429 = vst.msk [vmem:[%s276_s12 + $0x20] sm:$0xff] %vm1424_vm1, %v1410_v45  ;;  %1428 = vst.msk [vmem:[%s276_s12 + $0x18] sm:$0xff] %vm1424_vm1, %v1405_v56  ;;  %v1413_v46 = vadd.f32 %v1412_v59, %v1348_v13  ;;  %v1462_v9 = vmul.f32 %v1405_v56, %v1405_v56  ;;  %v1470_v11 = vsel %vm1424_vm1, %v1461_v2, 0.0  ;;  %v1463_v14 = vmul.f32 %v1410_v45, %v1410_v45 }
 0x142   : > { %1432 = vst.msk [vmem:[%s276_s12 + $0x38] sm:$0xff] %vm1424_vm1, %v1421_v62  ;;  %1426 = vst.msk [vmem:[%s276_s12 + $0x8] sm:$0xff] %vm1424_vm1, %v1397_v63  ;;  %v1435_v4 = vsel %vm1424_vm1, %v1397_v63, 0.0  ;;  %v1460_v5 = vmul.f32 %v1397_v63, %v1397_v63  ;;  %v1467_v8 = vsel %vm1424_vm1, %v1459_v0, 0.0  ;;  %v1439_v15 = vsel %vm1424_vm1, %v1405_v56, 0.0 }
 0x143   : > { %1430 = vst.msk [vmem:[%s276_s12 + $0x28] sm:$0xff] %vm1424_vm1, %v1413_v46  ;;  %v1436_v6 = vadd.f32 %v1435_v4, %v1434_v3  ;;  %v1441_v17 = vsel %vm1424_vm1, %v1410_v45, 0.0  ;;  %v1472_v18 = vsel %vm1424_vm1, %v1462_v9, 0.0  ;;  %v1464_v19 = vmul.f32 %v1413_v46, %v1413_v46 }
 0x144   : > { %v1468_v1 = vsel %vm1424_vm1, %v1460_v5, 0.0  ;;  %v1465_v22 = vmul.f32 %v1418_v53, %v1418_v53  ;;  %v1474_v23 = vsel %vm1424_vm1, %v1463_v14, 0.0  ;;  %v1443_v24 = vsel %vm1424_vm1, %v1413_v46, 0.0 }
 0x145   : > { %v1438_v60 = vadd.f32 %v1437_v7, %v1436_v6  ;;  %v1469_v10 = vadd.f32 %v1468_v1, %v1467_v8  ;;  %v1445_v12 = vsel %vm1424_vm1, %v1418_v53, 0.0  ;;  %v1466_v27 = vmul.f32 %v1421_v62, %v1421_v62 }
 0x146   : > { %v1476_v30 = vsel %vm1424_vm1, %v1464_v19, 0.0  ;;  %v1478_v13 = vsel %vm1424_vm1, %v1465_v22, 0.0  ;;  %v1447_v33 = vsel %vm1424_vm1, %v1421_v62, 0.0 }
 0x147   : > { %v1471_v61 = vadd.f32 %v1470_v11, %v1469_v10  ;;  %v1440_v16 = vadd.f32 %v1439_v15, %v1438_v60  ;;  %v1480_v36 = vsel %vm1424_vm1, %v1466_v27, 0.0 }
 0x149   : > { %v1442_v20 = vadd.f32 %v1441_v17, %v1440_v16  ;;  %v1473_v21 = vadd.f32 %v1472_v18, %v1471_v61 }
 0x14b   : > { %v1444_v25 = vadd.f32 %v1443_v24, %v1442_v20  ;;  %v1475_v26 = vadd.f32 %v1474_v23, %v1473_v21 }
 0x14d   : > { %v1446_v31 = vadd.f32 %v1445_v12, %v1444_v25  ;;  %v1477_v32 = vadd.f32 %v1476_v30, %v1475_v26 }
 0x14f   : > { %v1448_v34 = vadd.f32 %v1447_v33, %v1446_v31  ;;  %v1479_v35 = vadd.f32 %v1478_v13, %v1477_v32 }
 0x151   : > { %v1449_v37 = vrot.slane %v1448_v34, 4  ;;  %v1481_v38 = vadd.f32 %v1480_v36, %v1479_v35 }
 0x153   : > { %v1450_v39 = vadd.f32 %v1449_v37, %v1448_v34  ;;  %v1482_v40 = vrot.slane %v1481_v38, 4 }
 0x155   : > { %v1451_v41 = vrot.slane %v1450_v39, 2  ;;  %v1483_v28 = vadd.f32 %v1482_v40, %v1481_v38 }
 0x157   : > { %v1452_v42 = vadd.f32 %v1451_v41, %v1450_v39  ;;  %v1484_v43 = vrot.slane %v1483_v28, 2 }
 0x159   : > { %v1453_v47 = vrot.slane %v1452_v42, 1  ;;  %v1485_v48 = vadd.f32 %v1484_v43, %v1483_v28 }
 0x15b   : > { %v1454_v49 = vadd.f32 %v1453_v47, %v1452_v42  ;;  %v1486_v50 = vrot.slane %v1485_v48, 1 }
 0x15d   : > { %v1455_v52 = vadd.f32 %v1454_v49, %v1433_v29  ;;  %v1487_v53 = vadd.f32 %v1486_v50, %v1485_v48 }
 0x15f   : > { %1457 = vst.msk [vmem:[%s2453_s29] sm:$0x1] %vm289_vm0, %v1455_v52  ;;  %v1488_v44 = vadd.f32 %v1487_v53, %v1458_v51 }
 0x161   : > { %1489 = vst.msk [vmem:[%s2459_s7] sm:$0x1] %vm289_vm0, %v1488_v44 }
 0x162 PF: > { %s16_s20 = sadd.s32 1, %s2134_s20   ;;  %s2520_s18 = smov %s2130_s19 }
 0x163   : > { %p13_p5 = scmp.ge.s32.totalorder %s16_s20, 4   ;;  %s2521_s19 = smov %s2523_s21 }
 0x165   :  { %15 = sbr.rel (!%p13_p5) target bundleno = 2 (0x2), region = 90 }

// kernel: transform_net.39
= control target key start
LH: loop header
LB: loop body
LE: loop exit
PB: predicated region body
PF: predicated region fallthrough
CT: control target
= control target key end

     0   :  { %s2641_s18 = smov 0   ;;  %s2643_s19 = smov 0   ;;  %s3225_s0 = inlined_call_operand.vmem [shape: bf16[2,256,640], index: 0, kind: input, shape index: {}]   ;;  %s3226_s1 = inlined_call_operand.vmem [shape: bf16[640,32], index: 1, kind: input, shape index: {}]   ;;  %s3227_s2 = inlined_call_operand.vmem [shape: f32[1,32], index: 2, kind: input, shape index: {}]   ;;  %s3228_s3 = inlined_call_operand.vmem [shape: f32[2,256,32], index: 3, kind: output, shape index: {0}]   ;;  %s3229_s4 = inlined_call_operand.vmem [shape: f32[2,1,32], index: 4, kind: output, shape index: {1}]   ;;  %s3230_s5 = inlined_call_operand.vmem [shape: f32[2,1,32], index: 5, kind: output, shape index: {2}]  }
   0x1   :  { %s2645_s20 = smov 0  }
   0x2 LB: > { %s28_s21 = sadd.s32 1, %s2604_s19  ;;  %p1968_p0 = scmp.ge.s32.totalorder %s2608_s20, 1  ;;  %s2608_s20 = sphi %s2645_s20, %s16_s20   ;;  %s2604_s19 = sphi %s2643_s19, %s3232_s19   ;;  %s2600_s18 = sphi %s2641_s18, %s3231_s18  }
   0x3   : > { %p30_p1 = scmp.ge.s32.totalorder %s28_s21, 2  ;;  %p214_p2 = scmp.lt.s32.totalorder %s2608_s20, 3 }
   0x5   : > { %s3234_s21 = smov (%p30_p1, %s28_s21), 0  ;;  %p215_p3 = pnand %p1968_p0, %p214_p2 }
   0x6   : > { %v2434_v0 = vld [vmem:[%s3226_s1 + $0x40] sm:$0xff] (!%p215_p3)   ;;  %v2436_v2 = vld [vmem:[%s3226_s1 + $0x48] sm:$0xff] (!%p215_p3)   ;;  %p258_p4 = scmp.lt.s32.totalorder (!%p215_p3), %s2600_s18, 1  ;;  %v2438_v4 = vld [vmem:[%s3226_s1 + $0x50] sm:$0xff] (!%p215_p3)   ;;  %vm289_vm0 = vcmask (!%p215_p3), 253952   ;;  %vm1614_vm1 = vcmask (!%p215_p3), 261120  }
   0x7   : > { %218 = sbr.rel (%p215_p3) target bundleno = 434 (0x1b2), region = 32  ;;  %v2435_v1 = vld [vmem:[%s3226_s1] sm:$0xff] (!%p215_p3)   ;;  %2096 = vmatprep.subr.bf16.mxu0 (!%p215_p3), %v2434_v0  ;;  %2392 = vmatprep.subr.bf16.mxu1 (!%p215_p3), %v2434_v0  ;;  %v2437_v3 = vld [vmem:[%s3226_s1 + $0x8] sm:$0xff] (!%p215_p3)   ;;  %v2439_v5 = vld [vmem:[%s3226_s1 + $0x10] sm:$0xff] (!%p215_p3)  }
   0x8   : > { %2097 = vmatpush3.bf16.msra.mxu0 (!%p215_p3), %v2435_v1  ;;  %2400 = vmatpush3.bf16.msra.mxu1 (!%p215_p3), %v2435_v1  ;;  %v2440_v6 = vld [vmem:[%s3226_s1 + $0x58] sm:$0xff] (!%p215_p3)   ;;  %v2442_v8 = vld [vmem:[%s3226_s1 + $0x60] sm:$0xff] (!%p215_p3)   ;;  %v2444_v10 = vld [vmem:[%s3226_s1 + $0x68] sm:$0xff] (!%p215_p3)  }
   0x9   : > { %2098 = vmatprep.subr.bf16.mxu0 (!%p215_p3), %v2436_v2  ;;  %2393 = vmatprep.subr.bf16.mxu1 (!%p215_p3), %v2436_v2  ;;  %v2441_v7 = vld [vmem:[%s3226_s1 + $0x18] sm:$0xff] (!%p215_p3)   ;;  %v2443_v9 = vld [vmem:[%s3226_s1 + $0x20] sm:$0xff] (!%p215_p3)   ;;  %v2445_v13 = vld [vmem:[%s3226_s1 + $0x28] sm:$0xff] (!%p215_p3)  }
   0xa   : > { %v2446_v14 = vld [vmem:[%s3226_s1 + $0x70] sm:$0xff] (!%p215_p3)   ;;  %v2448_v16 = vld [vmem:[%s3226_s1 + $0x78] sm:$0xff] (!%p215_p3)   ;;  %v2456_v18 = vld [vmem:[%s3226_s1 + $0xc0] sm:$0xff] (!%p215_p3)  }
   0xb   : > { %v2447_v15 = vld [vmem:[%s3226_s1 + $0x30] sm:$0xff] (!%p215_p3)   ;;  %v2449_v17 = vld [vmem:[%s3226_s1 + $0x38] sm:$0xff] (!%p215_p3)   ;;  %v2457_v20 = vld [vmem:[%s3226_s1 + $0x100] sm:$0xff] (!%p215_p3)  }
   0xc   : > { %2099 = vmatpush3.bf16.msra.mxu0 (!%p215_p3), %v2437_v3  ;;  %2401 = vmatpush3.bf16.msra.mxu1 (!%p215_p3), %v2437_v3  ;;  %v2458_v22 = vld [vmem:[%s3226_s1 + $0x80] sm:$0xff] (!%p215_p3)   ;;  %v2459_v23 = vld [vmem:[%s3226_s1 + $0xc8] sm:$0xff] (!%p215_p3)   ;;  %v2467_v29 = vld [vmem:[%s3226_s1 + $0xd0] sm:$0xff] (!%p215_p3)  }
   0xd   : > { %2100 = vmatprep.subr.bf16.mxu0 (!%p215_p3), %v2438_v4  ;;  %2394 = vmatprep.subr.bf16.mxu1 (!%p215_p3), %v2438_v4  ;;  %v2470_v26 = vld [vmem:[%s3226_s1 + $0x108] sm:$0xff] (!%p215_p3)   ;;  %v2468_v31 = vld [vmem:[%s3226_s1 + $0x90] sm:$0xff] (!%p215_p3)   ;;  %v2469_v33 = vld [vmem:[%s3226_s1 + $0xd8] sm:$0xff] (!%p215_p3)  }
   0xe   : > { %s3236_s18 = smov (!%p258_p4, %s2600_s18), 1  ;;  %v2460_v27 = vld [vmem:[%s3226_s1 + $0x88] sm:$0xff]   ;;  %v2489_v35 = vld [vmem:[%s3226_s1 + $0x110] sm:$0xff]   ;;  %v2471_v36 = vld [vmem:[%s3226_s1 + $0x98] sm:$0xff]  }
   0xf   : > { %s2408_s11 = smul.u32 640, %s3236_s18  ;;  %v2478_v38 = vld [vmem:[%s3226_s1 + $0xe0] sm:$0xff]   ;;  %v2480_v41 = vld [vmem:[%s3226_s1 + $0xe8] sm:$0xff]   ;;  %v2499_v44 = vld [vmem:[%s3226_s1 + $0x118] sm:$0xff]   ;;  %s2908_s28 = scalar_lea.vmem %s3229_s4, %s3236_s18 }
  0x10   : > { %2101 = vmatpush3.bf16.msra.mxu0 %v2439_v5  ;;  %2402 = vmatpush3.bf16.msra.mxu1 %v2439_v5  ;;  %v2479_v40 = vld [vmem:[%s3226_s1 + $0xa0] sm:$0xff]   ;;  %v2481_v45 = vld [vmem:[%s3226_s1 + $0xa8] sm:$0xff]   ;;  %v2488_v48 = vld [vmem:[%s3226_s1 + $0xf0] sm:$0xff]   ;;  %s2914_s6 = scalar_lea.vmem %s3230_s5, %s3236_s18  ;;  %s2095_s7 = sshll.u32 %s3236_s18, 8 }
  0x11   : > { %2102 = vmatprep.subr.bf16.mxu0 %v2440_v6  ;;  %2395 = vmatprep.subr.bf16.mxu1 %v2440_v6  ;;  %s2692_s22 = scalar_lea.vmem %s3225_s0, %s2408_s11  ;;  %v2490_v49 = vld [vmem:[%s3226_s1 + $0xb0] sm:$0xff]   ;;  %v2491_v50 = vld [vmem:[%s3226_s1 + $0xf8] sm:$0xff]   ;;  %v2512_v52 = vld [vmem:[%s3226_s1 + $0x120] sm:$0xff]   ;;  %s3008_s10 = scalar_lea.vmem %s3228_s3, %s2095_s7 }
  0x12   : > { %v2452_v11 = vld [vmem:[%s2692_s22 + $0x4] ss:$20 sps:$4 sm:$0xff]   ;;  %v2450_v19 = vld [vmem:[%s2692_s22] ss:$20 sps:$4 sm:$0xff]   ;;  %v2465_v28 = vld [vmem:[%s2692_s22 + $0x28] ss:$20 sps:$4 sm:$0xff]  }
  0x13   : > { %v2455_v12 = vld [vmem:[%s2692_s22 + $0x1e4] ss:$20 sps:$4 sm:$0xff]   ;;  %1163 = vmatprep.mubr.bf16.mxu0 %v2452_v11  ;;  %v2453_v21 = vld [vmem:[%s2692_s22 + $0x1e0] ss:$20 sps:$4 sm:$0xff]   ;;  %v2466_v30 = vld [vmem:[%s2692_s22 + $0x208] ss:$20 sps:$4 sm:$0xff]  }
  0x14   : > { %2103 = vmatpush3.bf16.msra.mxu0 %v2441_v7  ;;  %2403 = vmatpush3.bf16.msra.mxu1 %v2441_v7  ;;  %v2461_v24 = vld [vmem:[%s2692_s22 + $0x2c] ss:$20 sps:$4 sm:$0xff]   ;;  %v2472_v32 = vld [vmem:[%s2692_s22 + $0x54] ss:$20 sps:$4 sm:$0xff]   ;;  %v2476_v37 = vld [vmem:[%s2692_s22 + $0x50] ss:$20 sps:$4 sm:$0xff]  }
  0x15   : > { %2104 = vmatprep.subr.bf16.mxu0 %v2442_v8  ;;  %2396 = vmatprep.subr.bf16.mxu1 %v2442_v8  ;;  %v2463_v25 = vld [vmem:[%s2692_s22 + $0x20c] ss:$20 sps:$4 sm:$0xff]   ;;  %v2474_v34 = vld [vmem:[%s2692_s22 + $0x234] ss:$20 sps:$4 sm:$0xff]   ;;  %v2477_v39 = vld [vmem:[%s2692_s22 + $0x230] ss:$20 sps:$4 sm:$0xff]  }
  0x16   : > { %1259 = vmatprep.mubr.bf16.mxu1 %v2455_v12  ;;  %v2482_v42 = vld [vmem:[%s2692_s22 + $0x7c] ss:$20 sps:$4 sm:$0xff]   ;;  %v2486_v46 = vld [vmem:[%s2692_s22 + $0x78] ss:$20 sps:$4 sm:$0xff]   ;;  %v2498_v57 = vld [vmem:[%s2692_s22 + $0xa0] ss:$20 sps:$4 sm:$0xff]  }
  0x17   : > { %v2484_v43 = vld [vmem:[%s2692_s22 + $0x25c] ss:$20 sps:$4 sm:$0xff]   ;;  %v2487_v47 = vld [vmem:[%s2692_s22 + $0x258] ss:$20 sps:$4 sm:$0xff]   ;;  %v2502_v59 = vld [vmem:[%s2692_s22 + $0x34] ss:$20 sps:$4 sm:$0xff]  }
  0x18   : > { %2105 = vmatpush3.bf16.msra.mxu0 %v2443_v9  ;;  %2404 = vmatpush3.bf16.msra.mxu1 %v2443_v9  ;;  %v2493_v51 = vld [vmem:[%s2692_s22 + $0xa4] ss:$20 sps:$4 sm:$0xff]   ;;  %v2497_v53 = vld [vmem:[%s2692_s22 + $0xc] ss:$20 sps:$4 sm:$0xff]   ;;  %v2495_v56 = vld [vmem:[%s2692_s22 + $0x8] ss:$20 sps:$4 sm:$0xff]  }
  0x19   : > { %2106 = vmatprep.subr.bf16.mxu0 %v2444_v10  ;;  %2397 = vmatprep.subr.bf16.mxu1 %v2444_v10  ;;  %v2492_v54 = vld [vmem:[%s3226_s1 + $0xb8] sm:$0xff]   ;;  %v2519_v55 = vld [vmem:[%s3226_s1 + $0x128] sm:$0xff]   ;;  %v2532_v60 = vld [vmem:[%s3226_s1 + $0x130] sm:$0xff]  }
  0x1a   : > { %v2500_v58 = vld [vmem:[%s2692_s22 + $0xcc] ss:$20 sps:$4 sm:$0xff]   ;;  %v2504_v61 = vld [vmem:[%s2692_s22 + $0xc8] ss:$20 sps:$4 sm:$0xff]   ;;  %v2505_v63 = vld [vmem:[%s2692_s22 + $0x30] ss:$20 sps:$4 sm:$0xff]  }
  0x1b   : > { %v2539_v62 = vld [vmem:[%s3226_s1 + $0x138] sm:$0xff]   ;;  %v2506_v0 = vld [vmem:[%s2692_s22 + $0xf4] ss:$20 sps:$4 sm:$0xff]   ;;  %v2510_v2 = vld [vmem:[%s2692_s22 + $0xf0] ss:$20 sps:$4 sm:$0xff]  }
  0x1c   : > { %2107 = vmatpush3.bf16.msra.mxu0 %v2445_v13  ;;  %2405 = vmatpush3.bf16.msra.mxu1 %v2445_v13  ;;  %v2508_v1 = vld [vmem:[%s2692_s22 + $0x5c] ss:$20 sps:$4 sm:$0xff]   ;;  %v2511_v3 = vld [vmem:[%s2692_s22 + $0x58] ss:$20 sps:$4 sm:$0xff]   ;;  %v2518_v7 = vld [vmem:[%s2692_s22 + $0x80] ss:$20 sps:$4 sm:$0xff]  }
  0x1d   : > { %2108 = vmatprep.subr.bf16.mxu0 %v2446_v14  ;;  %2398 = vmatprep.subr.bf16.mxu1 %v2446_v14  ;;  %v2513_v4 = vld [vmem:[%s2692_s22 + $0x11c] ss:$20 sps:$4 sm:$0xff]   ;;  %v2515_v5 = vld [vmem:[%s2692_s22 + $0x84] ss:$20 sps:$4 sm:$0xff]   ;;  %v2522_v9 = vld [vmem:[%s2692_s22 + $0xac] ss:$20 sps:$4 sm:$0xff]  }
  0x1e   : > { %v2517_v6 = vld [vmem:[%s2692_s22 + $0x118] ss:$20 sps:$4 sm:$0xff]   ;;  %v2524_v10 = vld [vmem:[%s2692_s22 + $0x140] ss:$20 sps:$4 sm:$0xff]   ;;  %v2525_v11 = vld [vmem:[%s2692_s22 + $0xa8] ss:$20 sps:$4 sm:$0xff]  }
  0x1f   : > { %v2520_v8 = vld [vmem:[%s2692_s22 + $0x144] ss:$20 sps:$4 sm:$0xff]   ;;  %v2526_v12 = vld [vmem:[%s2692_s22 + $0x16c] ss:$20 sps:$4 sm:$0xff]   ;;  %v2528_v13 = vld [vmem:[%s2692_s22 + $0xd4] ss:$20 sps:$4 sm:$0xff]  }
  0x20   : > { %2109 = vmatpush3.bf16.msra.mxu0 %v2447_v15  ;;  %2406 = vmatpush3.bf16.msra.mxu1 %v2447_v15  ;;  %v2530_v14 = vld [vmem:[%s2692_s22 + $0x168] ss:$20 sps:$4 sm:$0xff]   ;;  %v2531_v15 = vld [vmem:[%s2692_s22 + $0xd0] ss:$20 sps:$4 sm:$0xff]  }
  0x21   : > { %2110 = vmatprep.subr.bf16.mxu0 %v2448_v16  ;;  %2399 = vmatprep.subr.bf16.mxu1 %v2448_v16  ;;  %v2533_v16 = vld [vmem:[%s2692_s22 + $0x194] ss:$20 sps:$4 sm:$0xff]  }
  0x24   : > { %2111 = vmatpush3.bf16.msra.mxu0 %v2449_v17  ;;  %2407 = vmatpush3.bf16.msra.mxu1 %v2449_v17  ;;  %v2535_v17 = vld [vmem:[%s2692_s22 + $0xfc] ss:$20 sps:$4 sm:$0xff]  }
  0x25   : > { %2208 = vmatprep.subr.bf16.mxu1 %v2456_v18  ;;  %2344 = vmatprep.subr.bf16.mxu0 %v2457_v20  ;;  %v2537_v18 = vld [vmem:[%s2692_s22 + $0x190] ss:$20 sps:$4 sm:$0xff]  }
  0x27   : > { %1164 = vmatmul.mubr.bf16.vlgmr.msra.gmra.mrb[0].mxu0 %v2450_v19  ;;  %1260 = vmatmul.mubr.bf16.vlgmr.msra.gmra.mrb[0].mxu1 %v2453_v21  ;;  %v2538_v19 = vld [vmem:[%s2692_s22 + $0xf8] ss:$20 sps:$4 sm:$0xff]  }
  0x28   : > { %2209 = vmatpush3.bf16.msra.mxu1 %v2458_v22  ;;  %2345 = vmatpush3.bf16.msra.mxu0 %v2457_v20  ;;  %v2540_v20 = vld [vmem:[%s2692_s22 + $0x1bc] ss:$20 sps:$4 sm:$0xff]   ;;  %v2542_v21 = vld [vmem:[%s2692_s22 + $0x124] ss:$20 sps:$4 sm:$0xff]  }
  0x29   : > { %2210 = vmatprep.subr.bf16.mxu1 %v2459_v23  ;;  %1171 = vmatprep.mubr.bf16.mxu0 %v2461_v24  ;;  %v2544_v22 = vld [vmem:[%s2692_s22 + $0x1b8] ss:$20 sps:$4 sm:$0xff]   ;;  %v2545_v23 = vld [vmem:[%s2692_s22 + $0x120] ss:$20 sps:$4 sm:$0xff]  }
  0x2a   : > { %1267 = vmatprep.mubr.bf16.mxu1 %v2463_v25  ;;  %2346 = vmatprep.subr.bf16.mxu0 %v2470_v26  ;;  %v2546_v24 = vld [vmem:[%s2692_s22 + $0x14c] ss:$20 sps:$4 sm:$0xff]   ;;  %v2548_v25 = vld [vmem:[%s2692_s22 + $0x10] ss:$20 sps:$4 sm:$0xff]  }
  0x2c   : > { %2211 = vmatpush3.bf16.msra.mxu1 %v2460_v27  ;;  %2347 = vmatpush3.bf16.msra.mxu0 %v2470_v26  ;;  %v2549_v26 = vld [vmem:[%s2692_s22 + $0x148] ss:$20 sps:$4 sm:$0xff]   ;;  %v2550_v27 = vld [vmem:[%s2692_s22 + $0x38] ss:$20 sps:$4 sm:$0xff]  }
  0x2d   : > { %2212 = vmatprep.subr.bf16.mxu1 %v2467_v29  ;;  %2348 = vmatprep.subr.bf16.mxu0 %v2489_v35  ;;  %v2553_v29 = vld [vmem:[%s2692_s22 + $0x60] ss:$20 sps:$4 sm:$0xff]  }
  0x2f   : > { %1172 = vmatmul.mubr.bf16.gmra.mrb[4].mxu0 %v2465_v28  ;;  %1268 = vmatmul.mubr.bf16.gmra.mrb[4].mxu1 %v2466_v30  ;;  %v2551_v28 = vld [vmem:[%s2692_s22 + $0x174] ss:$20 sps:$4 sm:$0xff]   ;;  %v2554_v30 = vld [vmem:[%s2692_s22 + $0x170] ss:$20 sps:$4 sm:$0xff]  }
  0x30   : > { %2213 = vmatpush3.bf16.msra.mxu1 %v2468_v31  ;;  %1179 = vmatprep.mubr.bf16.mxu0 %v2472_v32  ;;  %v2555_v31 = vld [vmem:[%s2692_s22 + $0x88] ss:$20 sps:$4 sm:$0xff]  }
  0x31   : > { %2214 = vmatprep.subr.bf16.mxu1 %v2469_v33  ;;  %1275 = vmatprep.mubr.bf16.mxu1 %v2474_v34  ;;  %v2556_v32 = vld [vmem:[%s2692_s22 + $0x19c] ss:$20 sps:$4 sm:$0xff]   ;;  %v2559_v34 = vld [vmem:[%s2692_s22 + $0x198] ss:$20 sps:$4 sm:$0xff]  }
  0x32   : > { %2349 = vmatpush3.bf16.msra.mxu0 %v2489_v35  ;;  %v2558_v33 = vld [vmem:[%s2692_s22 + $0xb0] ss:$20 sps:$4 sm:$0xff]   ;;  %v2560_v35 = vld [vmem:[%s2692_s22 + $0xd8] ss:$20 sps:$4 sm:$0xff]  }
  0x33   : > { %2350 = vmatprep.subr.bf16.mxu0 %v2499_v44 }
  0x34   : > { %2215 = vmatpush3.bf16.msra.mxu1 %v2471_v36  ;;  %v2561_v36 = vld [vmem:[%s2692_s22 + $0x1c4] ss:$20 sps:$4 sm:$0xff]  }
  0x35   : > { %2216 = vmatprep.subr.bf16.mxu1 %v2478_v38  ;;  %v2564_v38 = vld [vmem:[%s2692_s22 + $0x1c0] ss:$20 sps:$4 sm:$0xff]  }
  0x36   : > { %2351 = vmatpush3.bf16.msra.mxu0 %v2499_v44  ;;  %v2571_v44 = vld [vmem:[%s2692_s22 + $0x214] ss:$20 sps:$4 sm:$0xff]  }
  0x37   : > { %1180 = vmatmul.mubr.bf16.gmra.mrb[8].mxu0 %v2476_v37  ;;  %1276 = vmatmul.mubr.bf16.gmra.mrb[8].mxu1 %v2477_v39  ;;  %v2563_v37 = vld [vmem:[%s2692_s22 + $0x100] ss:$20 sps:$4 sm:$0xff]   ;;  %v2565_v39 = vld [vmem:[%s2692_s22 + $0x128] ss:$20 sps:$4 sm:$0xff]  }
  0x38   : > { %2217 = vmatpush3.bf16.msra.mxu1 %v2479_v40  ;;  %1187 = vmatprep.mubr.bf16.mxu0 %v2482_v42  ;;  %v2566_v40 = vld [vmem:[%s2692_s22 + $0x1ec] ss:$20 sps:$4 sm:$0xff]   ;;  %v2569_v42 = vld [vmem:[%s2692_s22 + $0x1e8] ss:$20 sps:$4 sm:$0xff]  }
  0x39   : > { %2218 = vmatprep.subr.bf16.mxu1 %v2480_v41  ;;  %1283 = vmatprep.mubr.bf16.mxu1 %v2484_v43  ;;  %v2568_v41 = vld [vmem:[%s2692_s22 + $0x150] ss:$20 sps:$4 sm:$0xff]   ;;  %v2570_v43 = vld [vmem:[%s2692_s22 + $0x178] ss:$20 sps:$4 sm:$0xff]  }
  0x3a   : > { %2352 = vmatprep.subr.bf16.mxu0 %v2512_v52 }
  0x3b   : > { %2353 = vmatpush3.bf16.msra.mxu0 %v2512_v52  ;;  %v2581_v52 = vld [vmem:[%s2692_s22 + $0x264] ss:$20 sps:$4 sm:$0xff]  }
  0x3c   : > { %2219 = vmatpush3.bf16.msra.mxu1 %v2481_v45  ;;  %2354 = vmatprep.subr.bf16.mxu0 %v2519_v55  ;;  %v2573_v45 = vld [vmem:[%s2692_s22 + $0x1a0] ss:$20 sps:$4 sm:$0xff]  }
  0x3d   : > { %2220 = vmatprep.subr.bf16.mxu1 %v2488_v48  ;;  %v2576_v48 = vld [vmem:[%s2692_s22 + $0x23c] ss:$20 sps:$4 sm:$0xff]  }
  0x3f   : > { %1188 = vmatmul.mubr.bf16.gmra.mrb[12].mxu0 %v2486_v46  ;;  %1284 = vmatmul.mubr.bf16.gmra.mrb[12].mxu1 %v2487_v47  ;;  %v2574_v46 = vld [vmem:[%s2692_s22 + $0x210] ss:$20 sps:$4 sm:$0xff]   ;;  %v2575_v47 = vld [vmem:[%s2692_s22 + $0x1c8] ss:$20 sps:$4 sm:$0xff]  }
  0x40   : > { %2221 = vmatpush3.bf16.msra.mxu1 %v2490_v49  ;;  %1195 = vmatprep.mubr.bf16.mxu0 %v2493_v51  ;;  %v2578_v49 = vld [vmem:[%s2692_s22 + $0x1f0] ss:$20 sps:$4 sm:$0xff]   ;;  %v2580_v51 = vld [vmem:[%s2692_s22 + $0x218] ss:$20 sps:$4 sm:$0xff]  }
  0x41   : > { %2222 = vmatprep.subr.bf16.mxu1 %v2491_v50  ;;  %1324 = vmatprep.mubr.bf16.mxu1 %v2497_v53  ;;  %v2579_v50 = vld [vmem:[%s2692_s22 + $0x238] ss:$20 sps:$4 sm:$0xff]   ;;  %v2583_v53 = vld [vmem:[%s2692_s22 + $0x240] ss:$20 sps:$4 sm:$0xff]  }
  0x42   : > { %2355 = vmatpush3.bf16.msra.mxu0 %v2519_v55  ;;  %v2585_v55 = vld [vmem:[%s2692_s22 + $0x268] ss:$20 sps:$4 sm:$0xff]  }
  0x43   : > { %2356 = vmatprep.subr.bf16.mxu0 %v2532_v60 }
  0x44   : > { %2223 = vmatpush3.bf16.msra.mxu1 %v2492_v54  ;;  %v2584_v54 = vld [vmem:[%s2692_s22 + $0x260] ss:$20 sps:$4 sm:$0xff]  }
  0x46   : > { %2357 = vmatpush3.bf16.msra.mxu0 %v2532_v60 }
  0x47   : > { %1196 = vmatmul.mubr.bf16.gmra.mrb[16].mxu0 %v2498_v57  ;;  %1325 = vmatmul.mubr.bf16.vlgmr.msra.gmra.mrb[16].mxu1 %v2495_v56 }
  0x48   : > { %1203 = vmatprep.mubr.bf16.mxu0 %v2500_v58  ;;  %1332 = vmatprep.mubr.bf16.mxu1 %v2502_v59 }
  0x49   : > { %2358 = vmatprep.subr.bf16.mxu0 %v2539_v62 }
  0x4a   : > { %2359 = vmatpush3.bf16.msra.mxu0 %v2539_v62 }
  0x4f   : > { %1204 = vmatmul.mubr.bf16.gmra.mrb[20].mxu0 %v2504_v61  ;;  %1333 = vmatmul.mubr.bf16.gmra.mrb[20].mxu1 %v2505_v63 }
  0x50   : > { %1211 = vmatprep.mubr.bf16.mxu0 %v2506_v0  ;;  %1340 = vmatprep.mubr.bf16.mxu1 %v2508_v1 }
  0x57   : > { %1212 = vmatmul.mubr.bf16.gmra.mrb[24].mxu0 %v2510_v2  ;;  %1341 = vmatmul.mubr.bf16.gmra.mrb[24].mxu1 %v2511_v3 }
  0x58   : > { %1219 = vmatprep.mubr.bf16.mxu0 %v2513_v4  ;;  %1348 = vmatprep.mubr.bf16.mxu1 %v2515_v5 }
  0x5f   : > { %1220 = vmatmul.mubr.bf16.gmra.mrb[28].mxu0 %v2517_v6  ;;  %1349 = vmatmul.mubr.bf16.gmra.mrb[28].mxu1 %v2518_v7 }
  0x60   : > { %1227 = vmatprep.mubr.bf16.mxu0 %v2520_v8  ;;  %1356 = vmatprep.mubr.bf16.mxu1 %v2522_v9 }
  0x67   : > { %1228 = vmatmul.mubr.bf16.gmra.mrb[32].mxu0 %v2524_v10  ;;  %1357 = vmatmul.mubr.bf16.gmra.mrb[32].mxu1 %v2525_v11 }
  0x68   : > { %1235 = vmatprep.mubr.bf16.mxu0 %v2526_v12  ;;  %1364 = vmatprep.mubr.bf16.mxu1 %v2528_v13 }
  0x6f   : > { %1236 = vmatmul.mubr.bf16.gmra.mrb[36].mxu0 %v2530_v14  ;;  %1365 = vmatmul.mubr.bf16.gmra.mrb[36].mxu1 %v2531_v15 }
  0x70   : > { %1243 = vmatprep.mubr.bf16.mxu0 %v2533_v16  ;;  %1372 = vmatprep.mubr.bf16.mxu1 %v2535_v17 }
  0x77   : > { %1244 = vmatmul.mubr.bf16.gmra.mrb[40].mxu0 %v2537_v18  ;;  %1373 = vmatmul.mubr.bf16.gmra.mrb[40].mxu1 %v2538_v19 }
  0x78   : > { %1251 = vmatprep.mubr.bf16.mxu0 %v2540_v20  ;;  %1380 = vmatprep.mubr.bf16.mxu1 %v2542_v21 }
  0x7f   : > { %1252 = vmatmul.mubr.bf16.gmra.mrb[44].mxu0 %v2544_v22  ;;  %1381 = vmatmul.mubr.bf16.gmra.mrb[44].mxu1 %v2545_v23 }
  0x80   : > { %1388 = vmatprep.mubr.bf16.mxu1 %v2546_v24  ;;  %2360 = vmatprep.mubr.bf16.mxu0 %v2548_v25 }
  0x87   : > { %1389 = vmatmul.mubr.bf16.gmra.mrb[48].mxu1 %v2549_v26  ;;  %2361 = vmatmul.mubr.bf16.vlgmr.msra.gmra.mrb[48].mxu0 %v2550_v27 }
  0x88   : > { %1396 = vmatprep.mubr.bf16.mxu1 %v2551_v28  ;;  %2364 = vmatprep.mubr.bf16.mxu0 %v2553_v29 }
  0x8f   : > { %1397 = vmatmul.mubr.bf16.gmra.mrb[52].mxu1 %v2554_v30  ;;  %2365 = vmatmul.mubr.bf16.gmra.mrb[52].mxu0 %v2555_v31 }
  0x90   : > { %1404 = vmatprep.mubr.bf16.mxu1 %v2556_v32  ;;  %2368 = vmatprep.mubr.bf16.mxu0 %v2558_v33 }
  0x97   : > { %1405 = vmatmul.mubr.bf16.gmra.mrb[56].mxu1 %v2559_v34  ;;  %2369 = vmatmul.mubr.bf16.gmra.mrb[56].mxu0 %v2560_v35 }
  0x98   : > { %1412 = vmatprep.mubr.bf16.mxu1 %v2561_v36  ;;  %2372 = vmatprep.mubr.bf16.mxu0 %v2563_v37 }
  0x9f   : > { %1413 = vmatmul.mubr.bf16.gmra.mrb[60].mxu1 %v2564_v38  ;;  %2373 = vmatmul.mubr.bf16.gmra.mrb[60].mxu0 %v2565_v39 }
  0xa0   : > { %1420 = vmatprep.mubr.bf16.mxu1 %v2566_v40  ;;  %2376 = vmatprep.mubr.bf16.mxu0 %v2568_v41  ;;  %v2894_v40 = vld [vmem:[%s3227_s2] ss:$0 sm:$0xff] }
  0xa7   : > { %1421 = vmatmul.mubr.bf16.gmra.mrb[64].mxu1 %v2569_v42  ;;  %2377 = vmatmul.mubr.bf16.gmra.mrb[64].mxu0 %v2570_v43 }
  0xa8   : > { %1428 = vmatprep.mubr.bf16.mxu1 %v2571_v44  ;;  %2380 = vmatprep.mubr.bf16.mxu0 %v2573_v45 }
  0xaf   : > { %1429 = vmatmul.mubr.bf16.gmra.mrb[68].mxu1 %v2574_v46  ;;  %2381 = vmatmul.mubr.bf16.gmra.mrb[68].mxu0 %v2575_v47 }
  0xb0   : > { %1436 = vmatprep.mubr.bf16.mxu1 %v2576_v48  ;;  %2384 = vmatprep.mubr.bf16.mxu0 %v2578_v49 }
  0xb7   : > { %1437 = vmatmul.mubr.bf16.gmra.mrb[72].mxu1 %v2579_v50  ;;  %2385 = vmatmul.mubr.bf16.gmra.mrb[72].mxu0 %v2580_v51 }
  0xb8   : > { %1444 = vmatprep.mubr.bf16.mxu1 %v2581_v52  ;;  %2388 = vmatprep.mubr.bf16.mxu0 %v2583_v53 }
  0xbf   : > { %1445 = vmatmul.mubr.bf16.gmra.mrb[76].mxu1 %v2584_v54  ;;  %2389 = vmatmul.mubr.bf16.gmra.mrb[76].mxu0 %v2585_v55 }
  0xfa   : > { %v2112_v56 = vpop.f32.mrb[0].mxu0  ;;  %v2184_v57 = vpop.f32.mrb[0].mxu1 }
  0xfb   : > { %v2113_v58 = vpop.f32.mrb[1].mxu0  ;;  %v2185_v59 = vpop.f32.mrb[1].mxu1 }
  0xfc   : > { %v2114_v60 = vadd.f32 %v2113_v58, %v2112_v56  ;;  %v2867_v61 = vadd.f32 %v2185_v59, %v2184_v57  ;;  %v2115_v62 = vpop.f32.mrb[2].mxu0  ;;  %v2187_v63 = vpop.f32.mrb[2].mxu1  ;;  %v2610_v57 = vmov 0.0  }
  0xfd   : > { %v2116_v0 = vpop.f32.mrb[3].mxu0  ;;  %v2188_v1 = vpop.f32.mrb[3].mxu1  ;;  %290 = vst.msk [vmem:[%s2908_s28] sm:$0x1] %vm289_vm0, %v2610_v57  ;;  %291 = vst.msk [vmem:[%s2914_s6] sm:$0x1] %vm289_vm0, %v2610_v57 }
  0xfe   : > { %v2117_v2 = vadd.f32 %v2116_v0, %v2115_v62  ;;  %v2869_v3 = vadd.f32 %v2188_v1, %v2187_v63  ;;  %v1166_v45 = vadd.f32 %v2114_v60, %v2894_v40 }
 0x100   : > { %v1169_v52 = vadd.f32 %v2117_v2, %v2894_v40 }
 0x102   : > { %v2118_v4 = vpop.f32.mrb[4].mxu0  ;;  %v2190_v5 = vpop.f32.mrb[4].mxu1 }
 0x103   : > { %v2119_v6 = vpop.f32.mrb[5].mxu0  ;;  %v2191_v7 = vpop.f32.mrb[5].mxu1 }
 0x104   : > { %v2120_v8 = vadd.f32 %v2119_v6, %v2118_v4  ;;  %v2871_v9 = vadd.f32 %v2191_v7, %v2190_v5  ;;  %v2121_v10 = vpop.f32.mrb[6].mxu0  ;;  %v2193_v11 = vpop.f32.mrb[6].mxu1 }
 0x105   : > { %v2122_v12 = vpop.f32.mrb[7].mxu0  ;;  %v2194_v13 = vpop.f32.mrb[7].mxu1 }
 0x106   : > { %v2123_v14 = vadd.f32 %v2122_v12, %v2121_v10  ;;  %v2873_v15 = vadd.f32 %v2194_v13, %v2193_v11  ;;  %v1174_v63 = vadd.f32 %v2120_v8, %v2894_v40 }
 0x108   : > { %v1177_v7 = vadd.f32 %v2123_v14, %v2894_v40 }
 0x10a   : > { %v2124_v16 = vpop.f32.mrb[8].mxu0  ;;  %v2196_v17 = vpop.f32.mrb[8].mxu1 }
 0x10b   : > { %v2125_v18 = vpop.f32.mrb[9].mxu0  ;;  %v2197_v19 = vpop.f32.mrb[9].mxu1 }
 0x10c   : > { %v2875_v20 = vadd.f32 %v2125_v18, %v2124_v16  ;;  %v2877_v21 = vadd.f32 %v2197_v19, %v2196_v17  ;;  %v2127_v22 = vpop.f32.mrb[10].mxu0  ;;  %v2199_v23 = vpop.f32.mrb[10].mxu1 }
 0x10d   : > { %v2128_v24 = vpop.f32.mrb[11].mxu0  ;;  %v2200_v25 = vpop.f32.mrb[11].mxu1 }
 0x10e   : > { %v2879_v26 = vadd.f32 %v2128_v24, %v2127_v22  ;;  %v2881_v27 = vadd.f32 %v2200_v25, %v2199_v23  ;;  %v1182_v19 = vadd.f32 %v2875_v20, %v2894_v40 }
 0x112   : > { %v2130_v28 = vpop.f32.mrb[12].mxu0  ;;  %v2202_v29 = vpop.f32.mrb[12].mxu1 }
 0x113   : > { %v2131_v30 = vpop.f32.mrb[13].mxu0  ;;  %v2203_v31 = vpop.f32.mrb[13].mxu1 }
 0x114   : > { %v2883_v32 = vadd.f32 %v2131_v30, %v2130_v28  ;;  %v2885_v33 = vadd.f32 %v2203_v31, %v2202_v29  ;;  %v2133_v34 = vpop.f32.mrb[14].mxu0  ;;  %v2205_v35 = vpop.f32.mrb[14].mxu1  ;;  %v1185_v29 = vadd.f32 %v2879_v26, %v2894_v40 }
 0x115   : > { %v2134_v36 = vpop.f32.mrb[15].mxu0  ;;  %v2206_v37 = vpop.f32.mrb[15].mxu1 }
 0x116   : > { %v2887_v38 = vadd.f32 %v2134_v36, %v2133_v34  ;;  %v2889_v39 = vadd.f32 %v2206_v37, %v2205_v35 }
 0x11a   : > { %v2136_v41 = vpop.f32.mrb[16].mxu0  ;;  %v2224_v42 = vpop.f32.mrb[16].mxu1 }
 0x11b   : > { %v2137_v43 = vpop.f32.mrb[17].mxu0  ;;  %v2225_v44 = vpop.f32.mrb[17].mxu1 }
 0x11c   : > { %v2897_v46 = vadd.f32 %v2137_v43, %v2136_v41  ;;  %v2226_v47 = vadd.f32 %v2225_v44, %v2224_v42  ;;  %v2139_v48 = vpop.f32.mrb[18].mxu0  ;;  %v2227_v49 = vpop.f32.mrb[18].mxu1  ;;  %v1190_v42 = vadd.f32 %v2883_v32, %v2894_v40 }
 0x11d   : > { %v2140_v50 = vpop.f32.mrb[19].mxu0  ;;  %v2228_v51 = vpop.f32.mrb[19].mxu1 }
 0x11e   : > { %v2900_v53 = vadd.f32 %v2140_v50, %v2139_v48  ;;  %v2229_v54 = vadd.f32 %v2228_v51, %v2227_v49  ;;  %v2902_v55 = vadd.f32 %v2226_v47, %v1166_v45  ;;  %v1193_v49 = vadd.f32 %v2887_v38, %v2894_v40 }
 0x120   : > { %v2916_v56 = vadd.f32 %v2229_v54, %v1169_v52 }
 0x122   : > { %v2142_v58 = vpop.f32.mrb[20].mxu0  ;;  %v2230_v59 = vpop.f32.mrb[20].mxu1 }
 0x123   : > { %v2143_v60 = vpop.f32.mrb[21].mxu0  ;;  %v2231_v62 = vpop.f32.mrb[21].mxu1 }
 0x124   : > { %v2923_v0 = vadd.f32 %v2143_v60, %v2142_v58  ;;  %v2232_v1 = vadd.f32 %v2231_v62, %v2230_v59  ;;  %v2145_v2 = vpop.f32.mrb[22].mxu0  ;;  %v2233_v4 = vpop.f32.mrb[22].mxu1  ;;  %v1198_v60 = vadd.f32 %v2897_v46, %v2894_v40 }
 0x125   : > { %v2146_v5 = vpop.f32.mrb[23].mxu0  ;;  %v2234_v6 = vpop.f32.mrb[23].mxu1 }
 0x126   : > { %v2926_v10 = vadd.f32 %v2146_v5, %v2145_v2  ;;  %v2235_v11 = vadd.f32 %v2234_v6, %v2233_v4  ;;  %v2928_v12 = vadd.f32 %v2232_v1, %v1174_v63  ;;  %v1201_v5 = vadd.f32 %v2900_v53, %v2894_v40 }
 0x128   : > { %v2930_v13 = vadd.f32 %v2235_v11, %v1177_v7 }
 0x12a   : > { %v2148_v16 = vpop.f32.mrb[24].mxu0  ;;  %v2236_v17 = vpop.f32.mrb[24].mxu1 }
 0x12b   : > { %v2149_v18 = vpop.f32.mrb[25].mxu0  ;;  %v2237_v8 = vpop.f32.mrb[25].mxu1 }
 0x12c   : > { %v2934_v22 = vadd.f32 %v2149_v18, %v2148_v16  ;;  %v2238_v23 = vadd.f32 %v2237_v8, %v2236_v17  ;;  %v2151_v24 = vpop.f32.mrb[26].mxu0  ;;  %v2239_v25 = vpop.f32.mrb[26].mxu1 }
 0x12d   : > { %v2152_v14 = vpop.f32.mrb[27].mxu0  ;;  %v2240_v28 = vpop.f32.mrb[27].mxu1 }
 0x12e   : > { %v2938_v30 = vadd.f32 %v2152_v14, %v2151_v24  ;;  %v2241_v31 = vadd.f32 %v2240_v28, %v2239_v25  ;;  %v2940_v34 = vadd.f32 %v2238_v23, %v1182_v19  ;;  %v1206_v19 = vadd.f32 %v2923_v0, %v2894_v40 }
 0x130   : > { %v2942_v35 = vadd.f32 %v2241_v31, %v1185_v29  ;;  %v1209_v29 = vadd.f32 %v2926_v10, %v2894_v40 }
 0x132   : > { %v2154_v36 = vpop.f32.mrb[28].mxu0  ;;  %v2242_v37 = vpop.f32.mrb[28].mxu1 }
 0x133   : > { %v2155_v20 = vpop.f32.mrb[29].mxu0  ;;  %v2243_v41 = vpop.f32.mrb[29].mxu1 }
 0x134   : > { %v2946_v43 = vadd.f32 %v2155_v20, %v2154_v36  ;;  %v2244_v44 = vadd.f32 %v2243_v41, %v2242_v37  ;;  %v2157_v45 = vpop.f32.mrb[30].mxu0  ;;  %v2245_v47 = vpop.f32.mrb[30].mxu1 }
 0x135   : > { %v2158_v26 = vpop.f32.mrb[31].mxu0  ;;  %v2246_v48 = vpop.f32.mrb[31].mxu1 }
 0x136   : > { %v2950_v50 = vadd.f32 %v2158_v26, %v2157_v45  ;;  %v2247_v51 = vadd.f32 %v2246_v48, %v2245_v47  ;;  %v2952_v52 = vadd.f32 %v2244_v44, %v1190_v42  ;;  %v1214_v45 = vadd.f32 %v2934_v22, %v2894_v40 }
 0x138   : > { %v2954_v54 = vadd.f32 %v2247_v51, %v1193_v49 }
 0x13a   : > { %v2160_v57 = vpop.f32.mrb[32].mxu0  ;;  %v2248_v58 = vpop.f32.mrb[32].mxu1 }
 0x13b   : > { %v2161_v32 = vpop.f32.mrb[33].mxu0  ;;  %v2249_v59 = vpop.f32.mrb[33].mxu1 }
 0x13c   : > { %v2958_v62 = vadd.f32 %v2161_v32, %v2160_v57  ;;  %v2250_v63 = vadd.f32 %v2249_v59, %v2248_v58  ;;  %v2163_v1 = vpop.f32.mrb[34].mxu0  ;;  %v2251_v2 = vpop.f32.mrb[34].mxu1  ;;  %v1217_v57 = vadd.f32 %v2938_v30, %v2894_v40 }
 0x13d   : > { %v2164_v38 = vpop.f32.mrb[35].mxu0  ;;  %v2252_v4 = vpop.f32.mrb[35].mxu1 }
 0x13e   : > { %v2962_v6 = vadd.f32 %v2164_v38, %v2163_v1  ;;  %v2253_v7 = vadd.f32 %v2252_v4, %v2251_v2  ;;  %v2964_v11 = vadd.f32 %v2250_v63, %v1198_v60  ;;  %v1222_v38 = vadd.f32 %v2946_v43, %v2894_v40 }
 0x140   : > { %v2966_v16 = vadd.f32 %v2253_v7, %v1201_v5 }
 0x142   : > { %v2166_v17 = vpop.f32.mrb[36].mxu0  ;;  %v2254_v18 = vpop.f32.mrb[36].mxu1 }
 0x143   : > { %v2167_v46 = vpop.f32.mrb[37].mxu0  ;;  %v2255_v8 = vpop.f32.mrb[37].mxu1 }
 0x144   : > { %v2970_v23 = vadd.f32 %v2167_v46, %v2166_v17  ;;  %v2256_v24 = vadd.f32 %v2255_v8, %v2254_v18  ;;  %v2169_v25 = vpop.f32.mrb[38].mxu0  ;;  %v2257_v14 = vpop.f32.mrb[38].mxu1  ;;  %v1225_v46 = vadd.f32 %v2950_v50, %v2894_v40 }
 0x145   : > { %v2170_v53 = vpop.f32.mrb[39].mxu0  ;;  %v2258_v28 = vpop.f32.mrb[39].mxu1 }
 0x146   : > { %v2974_v31 = vadd.f32 %v2170_v53, %v2169_v25  ;;  %v2259_v36 = vadd.f32 %v2258_v28, %v2257_v14  ;;  %v2976_v37 = vadd.f32 %v2256_v24, %v1206_v19 }
 0x148   : > { %v2978_v20 = vadd.f32 %v2259_v36, %v1209_v29 }
 0x14a   : > { %v2172_v41 = vpop.f32.mrb[40].mxu0  ;;  %v2260_v42 = vpop.f32.mrb[40].mxu1 }
 0x14b   : > { %v2173_v0 = vpop.f32.mrb[41].mxu0  ;;  %v2261_v44 = vpop.f32.mrb[41].mxu1 }
 0x14c   : > { %v2982_v47 = vadd.f32 %v2173_v0, %v2172_v41  ;;  %v2262_v26 = vadd.f32 %v2261_v44, %v2260_v42  ;;  %v2175_v48 = vpop.f32.mrb[42].mxu0  ;;  %v2263_v49 = vpop.f32.mrb[42].mxu1  ;;  %v1230_v0 = vadd.f32 %v2958_v62, %v2894_v40 }
 0x14d   : > { %v2176_v10 = vpop.f32.mrb[43].mxu0  ;;  %v2264_v51 = vpop.f32.mrb[43].mxu1 }
 0x14e   : > { %v2986_v58 = vadd.f32 %v2176_v10, %v2175_v48  ;;  %v2265_v32 = vadd.f32 %v2264_v51, %v2263_v49  ;;  %v2988_v59 = vadd.f32 %v2262_v26, %v1214_v45 }
 0x150   : > { %v2990_v60 = vadd.f32 %v2265_v32, %v1217_v57 }
 0x152   : > { %v2178_v63 = vpop.f32.mrb[44].mxu0  ;;  %v2266_v22 = vpop.f32.mrb[44].mxu1 }
 0x153   : > { %v2179_v1 = vpop.f32.mrb[45].mxu0  ;;  %v2267_v2 = vpop.f32.mrb[45].mxu1 }
 0x154   : > { %v2994_v4 = vadd.f32 %v2179_v1, %v2178_v63  ;;  %v2268_v5 = vadd.f32 %v2267_v2, %v2266_v22  ;;  %v2181_v7 = vpop.f32.mrb[46].mxu0  ;;  %v2269_v30 = vpop.f32.mrb[46].mxu1 }
 0x155   : > { %v2182_v17 = vpop.f32.mrb[47].mxu0  ;;  %v2270_v18 = vpop.f32.mrb[47].mxu1 }
 0x156   : > { %v2998_v8 = vadd.f32 %v2182_v17, %v2181_v7  ;;  %v2271_v19 = vadd.f32 %v2270_v18, %v2269_v30  ;;  %v3000_v24 = vadd.f32 %v2268_v5, %v1222_v38 }
 0x158   : > { %v3003_v25 = vadd.f32 %v2271_v19, %v1225_v46 }
 0x15a   : > { %v2272_v14 = vpop.f32.mrb[48].mxu1  ;;  %v2362_v43 = vpop.f32.mrb[48].mxu0 }
 0x15b   : > { %v1496_v50 = vadd.f32 %v2362_v43, %v2928_v12  ;;  %v2273_v53 = vpop.f32.mrb[49].mxu1  ;;  %v1487_v28 = vpop.f32.mrb[49].mxu0  ;;  %v1233_v12 = vadd.f32 %v2962_v6, %v2894_v40 }
 0x15c   : > { %v2274_v29 = vadd.f32 %v2273_v53, %v2272_v14  ;;  %v1488_v36 = vadd.f32 %v1487_v28, %v2902_v55  ;;  %v2275_v41 = vpop.f32.mrb[50].mxu1  ;;  %v2363_v42 = vpop.f32.mrb[50].mxu0  ;;  %v1238_v28 = vadd.f32 %v2970_v23, %v2894_v40  ;;  %v1241_v23 = vadd.f32 %v2974_v31, %v2894_v40 }
 0x15d   : > { %1617 = vst.msk [vmem:[%s3008_s10 + $0x10] sm:$0xff] %vm1614_vm1, %v1496_v50  ;;  %v1499_v44 = vadd.f32 %v2363_v42, %v2930_v13  ;;  %v2276_v45 = vpop.f32.mrb[51].mxu1  ;;  %v1490_v26 = vpop.f32.mrb[51].mxu0  ;;  %v1723_v10 = vmul.f32 %v1496_v50, %v1496_v50  ;;  %v1651_v22 = vsel %vm1614_vm1, %v1496_v50, 0.0 }
 0x15e   : > { %1615 = vst.msk [vmem:[%s3008_s10] sm:$0xff] %vm1614_vm1, %v1488_v36  ;;  %v1721_v48 = vmul.f32 %v1488_v36, %v1488_v36  ;;  %v2277_v49 = vadd.f32 %v2276_v45, %v2275_v41  ;;  %v1491_v55 = vadd.f32 %v1490_v26, %v2916_v56  ;;  %v3024_v51 = vadd.f32 %v2274_v29, %v1230_v0 }
 0x15f   : > { %1618 = vst.msk [vmem:[%s3008_s10 + $0x18] sm:$0xff] %vm1614_vm1, %v1499_v44  ;;  %v1648_v62 = vsel %vm1614_vm1, %v1488_v36, 0.0  ;;  %v1724_v6 = vmul.f32 %v1499_v44, %v1499_v44  ;;  %v1756_v46 = vsel %vm1614_vm1, %v1723_v10, 0.0  ;;  %v1653_v19 = vsel %vm1614_vm1, %v1499_v44, 0.0 }
 0x160   : > { %1616 = vst.msk [vmem:[%s3008_s10 + $0x8] sm:$0xff] %vm1614_vm1, %v1491_v55  ;;  %v1649_v13 = vsel %vm1614_vm1, %v1491_v55, 0.0  ;;  %v1722_v57 = vmul.f32 %v1491_v55, %v1491_v55  ;;  %v3030_v32 = vadd.f32 %v2277_v49, %v1233_v12  ;;  %v1753_v56 = vsel %vm1614_vm1, %v1721_v48, 0.0 }
 0x161   : > { %v1650_v63 = vadd.f32 %v1649_v13, %v1648_v62  ;;  %v1758_v29 = vsel %vm1614_vm1, %v1724_v6, 0.0 }
 0x162   : > { %v1754_v1 = vsel %vm1614_vm1, %v1722_v57, 0.0  ;;  %v2278_v2 = vpop.f32.mrb[52].mxu1  ;;  %v2366_v38 = vpop.f32.mrb[52].mxu0 }
 0x163   : > { %v1652_v5 = vadd.f32 %v1651_v22, %v1650_v63  ;;  %v1755_v7 = vadd.f32 %v1754_v1, %v1753_v56  ;;  %v1512_v30 = vadd.f32 %v2366_v38, %v2952_v52  ;;  %v2279_v17 = vpop.f32.mrb[53].mxu1  ;;  %v1503_v18 = vpop.f32.mrb[53].mxu0 }
 0x164   : > { %v2280_v14 = vadd.f32 %v2279_v17, %v2278_v2  ;;  %v1504_v43 = vadd.f32 %v1503_v18, %v2940_v34  ;;  %v2281_v50 = vpop.f32.mrb[54].mxu1  ;;  %v2367_v53 = vpop.f32.mrb[54].mxu0 }
 0x165   : > { %v1757_v36 = vadd.f32 %v1756_v46, %v1755_v7  ;;  %1621 = vst.msk [vmem:[%s3008_s10 + $0x30] sm:$0xff] %vm1614_vm1, %v1512_v30  ;;  %v1654_v52 = vadd.f32 %v1653_v19, %v1652_v5  ;;  %v2282_v41 = vpop.f32.mrb[55].mxu1  ;;  %v1506_v42 = vpop.f32.mrb[55].mxu0  ;;  %v1515_v44 = vadd.f32 %v2367_v53, %v2954_v54  ;;  %v1727_v49 = vmul.f32 %v1512_v30, %v1512_v30 }
 0x166   : > { %1619 = vst.msk [vmem:[%s3008_s10 + $0x20] sm:$0xff] %vm1614_vm1, %v1504_v43  ;;  %v1655_v0 = vsel %vm1614_vm1, %v1504_v43, 0.0  ;;  %v1725_v34 = vmul.f32 %v1504_v43, %v1504_v43  ;;  %v2283_v45 = vadd.f32 %v2282_v41, %v2281_v50  ;;  %v1507_v48 = vadd.f32 %v1506_v42, %v2942_v35 }
 0x167   : > { %v1656_v26 = vadd.f32 %v1655_v0, %v1654_v52  ;;  %v1759_v12 = vadd.f32 %v1758_v29, %v1757_v36  ;;  %1622 = vst.msk [vmem:[%s3008_s10 + $0x38] sm:$0xff] %vm1614_vm1, %v1515_v44  ;;  %v3054_v10 = vadd.f32 %v2280_v14, %v1238_v28  ;;  %v1659_v35 = vsel %vm1614_vm1, %v1512_v30, 0.0 }
 0x168   : > { %v1760_v55 = vsel %vm1614_vm1, %v1725_v34, 0.0  ;;  %1620 = vst.msk [vmem:[%s3008_s10 + $0x28] sm:$0xff] %vm1614_vm1, %v1507_v48  ;;  %v1657_v54 = vsel %vm1614_vm1, %v1507_v48, 0.0  ;;  %v1726_v13 = vmul.f32 %v1507_v48, %v1507_v48  ;;  %v3059_v57 = vadd.f32 %v2283_v45, %v1241_v23 }
 0x169   : > { %v1761_v62 = vadd.f32 %v1760_v55, %v1759_v12  ;;  %v1658_v31 = vadd.f32 %v1657_v54, %v1656_v26  ;;  %v1728_v22 = vmul.f32 %v1515_v44, %v1515_v44  ;;  %v1764_v14 = vsel %vm1614_vm1, %v1727_v49, 0.0 }
 0x16a   : > { %v2284_v6 = vpop.f32.mrb[56].mxu1  ;;  %v2370_v63 = vpop.f32.mrb[56].mxu0  ;;  %v1762_v56 = vsel %vm1614_vm1, %v1726_v13, 0.0  ;;  %v1661_v30 = vsel %vm1614_vm1, %v1515_v44, 0.0  ;;  %v1246_v36 = vadd.f32 %v2982_v47, %v2894_v40  ;;  %v1249_v52 = vadd.f32 %v2986_v58, %v2894_v40 }
 0x16b   : > { %v1528_v1 = vadd.f32 %v2370_v63, %v2976_v37  ;;  %v2285_v2 = vpop.f32.mrb[57].mxu1  ;;  %v1519_v38 = vpop.f32.mrb[57].mxu0  ;;  %v1660_v5 = vadd.f32 %v1659_v35, %v1658_v31  ;;  %v1763_v7 = vadd.f32 %v1762_v56, %v1761_v62  ;;  %v1766_v41 = vsel %vm1614_vm1, %v1728_v22, 0.0 }
 0x16c   : > { %v2286_v17 = vadd.f32 %v2285_v2, %v2284_v6  ;;  %v1520_v18 = vadd.f32 %v1519_v38, %v2964_v11  ;;  %v2287_v46 = vpop.f32.mrb[58].mxu1  ;;  %v2371_v19 = vpop.f32.mrb[58].mxu0  ;;  %v1254_v55 = vadd.f32 %v2994_v4, %v2894_v40 }
 0x16d   : > { %1625 = vst.msk [vmem:[%s3008_s10 + $0x50] sm:$0xff] %vm1614_vm1, %v1528_v1  ;;  %v1531_v43 = vadd.f32 %v2371_v19, %v2978_v20  ;;  %v2288_v37 = vpop.f32.mrb[59].mxu1  ;;  %v1522_v50 = vpop.f32.mrb[59].mxu0  ;;  %v1765_v53 = vadd.f32 %v1764_v14, %v1763_v7  ;;  %v1662_v28 = vadd.f32 %v1661_v30, %v1660_v5  ;;  %v1731_v45 = vmul.f32 %v1528_v1, %v1528_v1 }
 0x16e   : > { %1623 = vst.msk [vmem:[%s3008_s10 + $0x40] sm:$0xff] %vm1614_vm1, %v1520_v18  ;;  %v1663_v11 = vsel %vm1614_vm1, %v1520_v18, 0.0  ;;  %v1729_v29 = vmul.f32 %v1520_v18, %v1520_v18  ;;  %v2289_v20 = vadd.f32 %v2288_v37, %v2287_v46  ;;  %v1523_v44 = vadd.f32 %v1522_v50, %v2966_v16 }
 0x16f   : > { %1626 = vst.msk [vmem:[%s3008_s10 + $0x58] sm:$0xff] %vm1614_vm1, %v1531_v43  ;;  %v1664_v42 = vadd.f32 %v1663_v11, %v1662_v28  ;;  %v1767_v0 = vadd.f32 %v1766_v41, %v1765_v53  ;;  %v3082_v23 = vadd.f32 %v2286_v17, %v1246_v36  ;;  %v1667_v62 = vsel %vm1614_vm1, %v1528_v1, 0.0 }
 0x170   : > { %v1768_v34 = vsel %vm1614_vm1, %v1729_v29, 0.0  ;;  %v3084_v26 = vadd.f32 %v2289_v20, %v1249_v52  ;;  %1624 = vst.msk [vmem:[%s3008_s10 + $0x48] sm:$0xff] %vm1614_vm1, %v1523_v44  ;;  %v1665_v58 = vsel %vm1614_vm1, %v1523_v44, 0.0  ;;  %v1730_v12 = vmul.f32 %v1523_v44, %v1523_v44 }
 0x171   : > { %v1769_v47 = vadd.f32 %v1768_v34, %v1767_v0  ;;  %v1666_v16 = vadd.f32 %v1665_v58, %v1664_v42  ;;  %v1732_v6 = vmul.f32 %v1531_v43, %v1531_v43  ;;  %v1772_v38 = vsel %vm1614_vm1, %v1731_v45, 0.0 }
 0x172   : > { %v2290_v48 = vpop.f32.mrb[60].mxu1  ;;  %v2374_v49 = vpop.f32.mrb[60].mxu0  ;;  %v1770_v63 = vsel %vm1614_vm1, %v1730_v12, 0.0  ;;  %v1669_v4 = vsel %vm1614_vm1, %v1531_v43, 0.0  ;;  %v1257_v19 = vadd.f32 %v2998_v8, %v2894_v40  ;;  %v1262_v8 = vadd.f32 %v2867_v61, %v2894_v40 }
 0x173   : > { %v1544_v54 = vadd.f32 %v2374_v49, %v3000_v24  ;;  %v2291_v13 = vpop.f32.mrb[61].mxu1  ;;  %v1535_v31 = vpop.f32.mrb[61].mxu0  ;;  %v1668_v5 = vadd.f32 %v1667_v62, %v1666_v16  ;;  %v1771_v1 = vadd.f32 %v1770_v63, %v1769_v47  ;;  %v1774_v37 = vsel %vm1614_vm1, %v1732_v6, 0.0 }
 0x174   : > { %v2292_v35 = vadd.f32 %v2291_v13, %v2290_v48  ;;  %v1536_v22 = vadd.f32 %v1535_v31, %v2988_v59  ;;  %v2293_v56 = vpop.f32.mrb[62].mxu1  ;;  %v2375_v2 = vpop.f32.mrb[62].mxu0 }
 0x175   : > { %1629 = vst.msk [vmem:[%s3008_s10 + $0x70] sm:$0xff] %vm1614_vm1, %v1544_v54  ;;  %v2294_v24 = vpop.f32.mrb[63].mxu1  ;;  %v1538_v7 = vpop.f32.mrb[63].mxu0  ;;  %v1547_v59 = vadd.f32 %v2375_v2, %v3003_v25  ;;  %v1773_v14 = vadd.f32 %v1772_v38, %v1771_v1  ;;  %v1670_v30 = vadd.f32 %v1669_v4, %v1668_v5  ;;  %v1735_v50 = vmul.f32 %v1544_v54, %v1544_v54 }
 0x176   : > { %1627 = vst.msk [vmem:[%s3008_s10 + $0x60] sm:$0xff] %vm1614_vm1, %v1536_v22  ;;  %v1671_v17 = vsel %vm1614_vm1, %v1536_v22, 0.0  ;;  %v1733_v18 = vmul.f32 %v1536_v22, %v1536_v22  ;;  %v2295_v46 = vadd.f32 %v2294_v24, %v2293_v56  ;;  %v1539_v43 = vadd.f32 %v1538_v7, %v2990_v60 }
 0x177   : > { %1630 = vst.msk [vmem:[%s3008_s10 + $0x78] sm:$0xff] %vm1614_vm1, %v1547_v59  ;;  %v1415_v28 = vadd.f32 %v2292_v35, %v1254_v55  ;;  %v1672_v11 = vadd.f32 %v1671_v17, %v1670_v30  ;;  %v1775_v29 = vadd.f32 %v1774_v37, %v1773_v14  ;;  %v1675_v47 = vsel %vm1614_vm1, %v1544_v54, 0.0 }
 0x178   : > { %v1776_v53 = vsel %vm1614_vm1, %v1733_v18, 0.0  ;;  %1628 = vst.msk [vmem:[%s3008_s10 + $0x68] sm:$0xff] %vm1614_vm1, %v1539_v43  ;;  %v1673_v25 = vsel %vm1614_vm1, %v1539_v43, 0.0  ;;  %v1734_v36 = vmul.f32 %v1539_v43, %v1539_v43  ;;  %v3115_v41 = vadd.f32 %v2295_v46, %v1257_v19 }
 0x179   : > { %v1777_v20 = vadd.f32 %v1776_v53, %v1775_v29  ;;  %v1674_v42 = vadd.f32 %v1673_v25, %v1672_v11  ;;  %v1736_v58 = vmul.f32 %v1547_v59, %v1547_v59  ;;  %v1780_v55 = vsel %vm1614_vm1, %v1735_v50, 0.0 }
 0x17a   : > { %v2296_v52 = vpop.f32.mrb[64].mxu1  ;;  %v2378_v60 = vpop.f32.mrb[64].mxu0  ;;  %v1778_v0 = vsel %vm1614_vm1, %v1734_v36, 0.0  ;;  %v1677_v62 = vsel %vm1614_vm1, %v1547_v59, 0.0  ;;  %v1265_v35 = vadd.f32 %v2869_v3, %v2894_v40  ;;  %v1270_v3 = vadd.f32 %v2871_v9, %v2894_v40 }
 0x17b   : > { %v1560_v34 = vadd.f32 %v2378_v60, %v3054_v10  ;;  %v2297_v44 = vpop.f32.mrb[65].mxu1  ;;  %v1551_v45 = vpop.f32.mrb[65].mxu0  ;;  %v1676_v16 = vadd.f32 %v1675_v47, %v1674_v42  ;;  %v1779_v13 = vadd.f32 %v1778_v0, %v1777_v20  ;;  %v1782_v38 = vsel %vm1614_vm1, %v1736_v58, 0.0 }
 0x17c   : > { %v2298_v12 = vadd.f32 %v2297_v44, %v2296_v52  ;;  %v1552_v61 = vadd.f32 %v1551_v45, %v3024_v51  ;;  %v2299_v48 = vpop.f32.mrb[66].mxu1  ;;  %v2379_v49 = vpop.f32.mrb[66].mxu0  ;;  %v1273_v44 = vadd.f32 %v2873_v15, %v2894_v40  ;;  %v1278_v15 = vadd.f32 %v2877_v21, %v2894_v40 }
 0x17d   : > { %1633 = vst.msk [vmem:[%s3008_s10 + $0x90] sm:$0xff] %vm1614_vm1, %v1560_v34  ;;  %v2300_v10 = vpop.f32.mrb[67].mxu1  ;;  %v1554_v31 = vpop.f32.mrb[67].mxu0  ;;  %v1563_v51 = vadd.f32 %v2379_v49, %v3059_v57  ;;  %v1781_v22 = vadd.f32 %v1780_v55, %v1779_v13  ;;  %v1678_v56 = vadd.f32 %v1677_v62, %v1676_v16  ;;  %v1739_v4 = vmul.f32 %v1560_v34, %v1560_v34 }
 0x17e   : > { %1631 = vst.msk [vmem:[%s3008_s10 + $0x80] sm:$0xff] %vm1614_vm1, %v1552_v61  ;;  %v1679_v54 = vsel %vm1614_vm1, %v1552_v61, 0.0  ;;  %v1737_v6 = vmul.f32 %v1552_v61, %v1552_v61  ;;  %v2301_v63 = vadd.f32 %v2300_v10, %v2299_v48  ;;  %v1555_v2 = vadd.f32 %v1554_v31, %v3030_v32 }
 0x17f   : > { %1634 = vst.msk [vmem:[%s3008_s10 + $0x98] sm:$0xff] %vm1614_vm1, %v1563_v51  ;;  %v1423_v1 = vadd.f32 %v2298_v12, %v1262_v8  ;;  %v1680_v24 = vadd.f32 %v1679_v54, %v1678_v56  ;;  %v1783_v7 = vadd.f32 %v1782_v38, %v1781_v22  ;;  %v1683_v50 = vsel %vm1614_vm1, %v1560_v34, 0.0 }
 0x180   : > { %v1784_v5 = vsel %vm1614_vm1, %v1737_v6, 0.0  ;;  %1632 = vst.msk [vmem:[%s3008_s10 + $0x88] sm:$0xff] %vm1614_vm1, %v1555_v2  ;;  %v1681_v57 = vsel %vm1614_vm1, %v1555_v2, 0.0  ;;  %v1738_v17 = vmul.f32 %v1555_v2, %v1555_v2  ;;  %v3141_v59 = vadd.f32 %v2301_v63, %v1265_v35 }
 0x181   : > { %v1785_v46 = vadd.f32 %v1784_v5, %v1783_v7  ;;  %v1682_v19 = vadd.f32 %v1681_v57, %v1680_v24  ;;  %v1740_v53 = vmul.f32 %v1563_v51, %v1563_v51  ;;  %v1788_v36 = vsel %vm1614_vm1, %v1739_v4, 0.0 }
 0x182   : > { %v2302_v18 = vpop.f32.mrb[68].mxu1  ;;  %v2382_v32 = vpop.f32.mrb[68].mxu0  ;;  %v1786_v14 = vsel %vm1614_vm1, %v1738_v17, 0.0  ;;  %v1685_v8 = vsel %vm1614_vm1, %v1563_v51, 0.0 }
 0x183   : > { %v1576_v30 = vadd.f32 %v2382_v32, %v1415_v28  ;;  %v2303_v43 = vpop.f32.mrb[69].mxu1  ;;  %v1567_v37 = vpop.f32.mrb[69].mxu0  ;;  %v1684_v52 = vadd.f32 %v1683_v50, %v1682_v19  ;;  %v1787_v60 = vadd.f32 %v1786_v14, %v1785_v46  ;;  %v1790_v12 = vsel %vm1614_vm1, %v1740_v53, 0.0 }
 0x184   : > { %v2304_v11 = vadd.f32 %v2303_v43, %v2302_v18  ;;  %v1568_v29 = vadd.f32 %v1567_v37, %v3082_v23  ;;  %v2305_v9 = vpop.f32.mrb[70].mxu1  ;;  %v2383_v25 = vpop.f32.mrb[70].mxu0  ;;  %v1281_v19 = vadd.f32 %v2881_v27, %v2894_v40  ;;  %v1286_v27 = vadd.f32 %v2885_v33, %v2894_v40 }
 0x185   : > { %1637 = vst.msk [vmem:[%s3008_s10 + $0xb0] sm:$0xff] %vm1614_vm1, %v1576_v30  ;;  %v2306_v28 = vpop.f32.mrb[71].mxu1  ;;  %v1570_v20 = vpop.f32.mrb[71].mxu0  ;;  %v1579_v23 = vadd.f32 %v2383_v25, %v3115_v41  ;;  %v1789_v45 = vadd.f32 %v1788_v36, %v1787_v60  ;;  %v1686_v47 = vadd.f32 %v1685_v8, %v1684_v52  ;;  %v1743_v61 = vmul.f32 %v1576_v30, %v1576_v30 }
 0x186   : > { %1635 = vst.msk [vmem:[%s3008_s10 + $0xa0] sm:$0xff] %vm1614_vm1, %v1568_v29  ;;  %v1687_v42 = vsel %vm1614_vm1, %v1568_v29, 0.0  ;;  %v1741_v0 = vmul.f32 %v1568_v29, %v1568_v29  ;;  %v2307_v34 = vadd.f32 %v2306_v28, %v2305_v9  ;;  %v1571_v58 = vadd.f32 %v1570_v20, %v3084_v26 }
 0x187   : > { %1638 = vst.msk [vmem:[%s3008_s10 + $0xb8] sm:$0xff] %vm1614_vm1, %v1579_v23  ;;  %v1431_v49 = vadd.f32 %v2304_v11, %v1270_v3  ;;  %v1688_v55 = vadd.f32 %v1687_v42, %v1686_v47  ;;  %v1791_v62 = vadd.f32 %v1790_v12, %v1789_v45  ;;  %v1691_v22 = vsel %vm1614_vm1, %v1576_v30, 0.0 }
 0x188   : > { %v1792_v48 = vsel %vm1614_vm1, %v1741_v0, 0.0  ;;  %1636 = vst.msk [vmem:[%s3008_s10 + $0xa8] sm:$0xff] %vm1614_vm1, %v1571_v58  ;;  %v1689_v41 = vsel %vm1614_vm1, %v1571_v58, 0.0  ;;  %v1742_v16 = vmul.f32 %v1571_v58, %v1571_v58  ;;  %v1434_v10 = vadd.f32 %v2307_v34, %v1273_v44 }
 0x189   : > { %v1793_v31 = vadd.f32 %v1792_v48, %v1791_v62  ;;  %v1690_v54 = vadd.f32 %v1689_v41, %v1688_v55  ;;  %v1744_v56 = vmul.f32 %v1579_v23, %v1579_v23  ;;  %v1796_v21 = vsel %vm1614_vm1, %v1743_v61, 0.0 }
 0x18a   : > { %v2308_v13 = vpop.f32.mrb[72].mxu1  ;;  %v2386_v26 = vpop.f32.mrb[72].mxu0  ;;  %v1794_v6 = vsel %vm1614_vm1, %v1742_v16, 0.0  ;;  %v1693_v24 = vsel %vm1614_vm1, %v1579_v23, 0.0  ;;  %v1289_v60 = vadd.f32 %v2889_v39, %v2894_v40 }
 0x18b   : > { %v1592_v51 = vadd.f32 %v2386_v26, %v1431_v49  ;;  %v2309_v63 = vpop.f32.mrb[73].mxu1  ;;  %v1583_v35 = vpop.f32.mrb[73].mxu0  ;;  %v1692_v7 = vadd.f32 %v1691_v22, %v1690_v54  ;;  %v1795_v57 = vadd.f32 %v1794_v6, %v1793_v31  ;;  %v1798_v37 = vsel %vm1614_vm1, %v1744_v56, 0.0 }
 0x18c   : > { %v2310_v2 = vadd.f32 %v2309_v63, %v2308_v13  ;;  %v1584_v38 = vadd.f32 %v1583_v35, %v1423_v1  ;;  %v2311_v4 = vpop.f32.mrb[74].mxu1  ;;  %v2387_v5 = vpop.f32.mrb[74].mxu0 }
 0x18d   : > { %1641 = vst.msk [vmem:[%s3008_s10 + $0xd0] sm:$0xff] %vm1614_vm1, %v1592_v51  ;;  %v2312_v17 = vpop.f32.mrb[75].mxu1  ;;  %v1586_v3 = vpop.f32.mrb[75].mxu0  ;;  %v1595_v1 = vadd.f32 %v2387_v5, %v1434_v10  ;;  %v1797_v14 = vadd.f32 %v1796_v21, %v1795_v57  ;;  %v1694_v30 = vadd.f32 %v1693_v24, %v1692_v7  ;;  %v1747_v50 = vmul.f32 %v1592_v51, %v1592_v51 }
 0x18e   : > { %1639 = vst.msk [vmem:[%s3008_s10 + $0xc0] sm:$0xff] %vm1614_vm1, %v1584_v38  ;;  %v1695_v18 = vsel %vm1614_vm1, %v1584_v38, 0.0  ;;  %v1745_v32 = vmul.f32 %v1584_v38, %v1584_v38  ;;  %v2313_v46 = vadd.f32 %v2312_v17, %v2311_v4  ;;  %v1587_v43 = vadd.f32 %v1586_v3, %v3141_v59 }
 0x18f   : > { %1642 = vst.msk [vmem:[%s3008_s10 + $0xd8] sm:$0xff] %vm1614_vm1, %v1595_v1  ;;  %v1439_v11 = vadd.f32 %v2310_v2, %v1278_v15  ;;  %v1696_v29 = vadd.f32 %v1695_v18, %v1694_v30  ;;  %v1799_v9 = vadd.f32 %v1798_v37, %v1797_v14  ;;  %v1699_v34 = vsel %vm1614_vm1, %v1592_v51, 0.0 }
 0x190   : > { %v1800_v53 = vsel %vm1614_vm1, %v1745_v32, 0.0  ;;  %1640 = vst.msk [vmem:[%s3008_s10 + $0xc8] sm:$0xff] %vm1614_vm1, %v1587_v43  ;;  %v1697_v25 = vsel %vm1614_vm1, %v1587_v43, 0.0  ;;  %v1746_v36 = vmul.f32 %v1587_v43, %v1587_v43  ;;  %v1442_v52 = vadd.f32 %v2313_v46, %v1281_v19 }
 0x191   : > { %v1801_v28 = vadd.f32 %v1800_v53, %v1799_v9  ;;  %v1698_v20 = vadd.f32 %v1697_v25, %v1696_v29  ;;  %v1748_v44 = vmul.f32 %v1595_v1, %v1595_v1  ;;  %v1804_v12 = vsel %vm1614_vm1, %v1747_v50, 0.0  ;;  %v1647_v9 = vld [vmem:[%s2908_s28] sm:$0x1] }
 0x192   : > { %v2314_v8 = vpop.f32.mrb[76].mxu1  ;;  %v2390_v59 = vpop.f32.mrb[76].mxu0  ;;  %v1802_v42 = vsel %vm1614_vm1, %v1746_v36, 0.0  ;;  %v1701_v61 = vsel %vm1614_vm1, %v1595_v1, 0.0 }
 0x193   : > { %v2315_v0 = vpop.f32.mrb[77].mxu1  ;;  %v1599_v23 = vpop.f32.mrb[77].mxu0  ;;  %v1700_v48 = vadd.f32 %v1699_v34, %v1698_v20  ;;  %v1803_v39 = vadd.f32 %v1802_v42, %v1801_v28  ;;  %v1806_v10 = vsel %vm1614_vm1, %v1748_v44, 0.0 }
 0x194   : > { %v2316_v45 = vadd.f32 %v2315_v0, %v2314_v8  ;;  %v1600_v47 = vadd.f32 %v1599_v23, %v1439_v11  ;;  %v2317_v58 = vpop.f32.mrb[78].mxu1  ;;  %v2391_v33 = vpop.f32.mrb[78].mxu0 }
 0x195   : > { %v2318_v40 = vpop.f32.mrb[79].mxu1  ;;  %v1602_v49 = vpop.f32.mrb[79].mxu0  ;;  %v1805_v15 = vadd.f32 %v1804_v12, %v1803_v39  ;;  %v1702_v13 = vadd.f32 %v1701_v61, %v1700_v48 }
 0x196   : > { %v1447_v55 = vadd.f32 %v2316_v45, %v1286_v27  ;;  %1643 = vst.msk [vmem:[%s3008_s10 + $0xe0] sm:$0xff] %vm1614_vm1, %v1600_v47  ;;  %v1703_v62 = vsel %vm1614_vm1, %v1600_v47, 0.0  ;;  %v1749_v41 = vmul.f32 %v1600_v47, %v1600_v47  ;;  %v2319_v16 = vadd.f32 %v2318_v40, %v2317_v58  ;;  %v1720_v27 = vld [vmem:[%s2914_s6] sm:$0x1] }
 0x197   : > { %v1603_v26 = vadd.f32 %v1602_v49, %v1442_v52  ;;  %v1704_v51 = vadd.f32 %v1703_v62, %v1702_v13  ;;  %v1807_v63 = vadd.f32 %v1806_v10, %v1805_v15 }
 0x198   : > { %v1608_v31 = vadd.f32 %v2390_v59, %v1447_v55  ;;  %v1808_v54 = vsel %vm1614_vm1, %v1749_v41, 0.0  ;;  %v1450_v6 = vadd.f32 %v2319_v16, %v1289_v60 }
 0x199   : > { %1644 = vst.msk [vmem:[%s3008_s10 + $0xe8] sm:$0xff] %vm1614_vm1, %v1603_v26  ;;  %v1705_v35 = vsel %vm1614_vm1, %v1603_v26, 0.0  ;;  %v1750_v22 = vmul.f32 %v1603_v26, %v1603_v26  ;;  %v1809_v4 = vadd.f32 %v1808_v54, %v1807_v63 }
 0x19a   : > { %1645 = vst.msk [vmem:[%s3008_s10 + $0xf0] sm:$0xff] %vm1614_vm1, %v1608_v31  ;;  %v1751_v56 = vmul.f32 %v1608_v31, %v1608_v31  ;;  %v1611_v2 = vadd.f32 %v2391_v33, %v1450_v6  ;;  %v1707_v38 = vsel %vm1614_vm1, %v1608_v31, 0.0  ;;  %v1706_v5 = vadd.f32 %v1705_v35, %v1704_v51 }
 0x19b   : > { %v1810_v21 = vsel %vm1614_vm1, %v1750_v22, 0.0 }
 0x19c   : > { %1646 = vst.msk [vmem:[%s3008_s10 + $0xf8] sm:$0xff] %vm1614_vm1, %v1611_v2  ;;  %v1709_v24 = vsel %vm1614_vm1, %v1611_v2, 0.0  ;;  %v1752_v7 = vmul.f32 %v1611_v2, %v1611_v2  ;;  %v1812_v57 = vsel %vm1614_vm1, %v1751_v56, 0.0  ;;  %v1708_v17 = vadd.f32 %v1707_v38, %v1706_v5 }
 0x19d   : > { %v1811_v3 = vadd.f32 %v1810_v21, %v1809_v4 }
 0x19e   : > { %v1814_v18 = vsel %vm1614_vm1, %v1752_v7, 0.0  ;;  %v1710_v32 = vadd.f32 %v1709_v24, %v1708_v17 }
 0x19f   : > { %v1813_v1 = vadd.f32 %v1812_v57, %v1811_v3 }
 0x1a0   : > { %v1711_v46 = vrot.slane %v1710_v32, 4 }
 0x1a1   : > { %v1815_v19 = vadd.f32 %v1814_v18, %v1813_v1 }
 0x1a2   : > { %v1712_v14 = vadd.f32 %v1711_v46, %v1710_v32 }
 0x1a3   : > { %v1816_v30 = vrot.slane %v1815_v19, 4 }
 0x1a4   : > { %v1713_v43 = vrot.slane %v1712_v14, 2 }
 0x1a5   : > { %v1817_v37 = vadd.f32 %v1816_v30, %v1815_v19 }
 0x1a6   : > { %v1714_v50 = vadd.f32 %v1713_v43, %v1712_v14 }
 0x1a7   : > { %v1818_v53 = vrot.slane %v1817_v37, 2 }
 0x1a8   : > { %v1715_v11 = vrot.slane %v1714_v50, 1 }
 0x1a9   : > { %v1819_v29 = vadd.f32 %v1818_v53, %v1817_v37 }
 0x1aa   : > { %v1716_v25 = vadd.f32 %v1715_v11, %v1714_v50 }
 0x1ab   : > { %v1820_v36 = vrot.slane %v1819_v29, 1 }
 0x1ac   : > { %v1717_v8 = vadd.f32 %v1716_v25, %v1647_v9 }
 0x1ad   : > { %v1821_v59 = vadd.f32 %v1820_v36, %v1819_v29 }
 0x1ae   : > { %1719 = vst.msk [vmem:[%s2908_s28] sm:$0x1] %vm289_vm0, %v1717_v8 }
 0x1af   : > { %v1822_v52 = vadd.f32 %v1821_v59, %v1720_v27 }
 0x1b1   : > { %1823 = vst.msk [vmem:[%s2914_s6] sm:$0x1] %vm289_vm0, %v1822_v52 }
 0x1b2 PF: > { %s16_s20 = sadd.s32 1, %s2608_s20   ;;  %s3231_s18 = smov %s2604_s19 }
 0x1b3   : > { %p13_p5 = scmp.ge.s32.totalorder %s16_s20, 4   ;;  %s3232_s19 = smov %s3234_s21 }
 0x1b5   :  { %15 = sbr.rel (!%p13_p5) target bundleno = 2 (0x2), region = 90 }

// kernel: transform_net.41
= control target key start
LH: loop header
LB: loop body
LE: loop exit
PB: predicated region body
PF: predicated region fallthrough
CT: control target
= control target key end

     0   :  { %s7965_s12 = smov 0   ;;  %s7967_s13 = smov 0   ;;  %s9874_s0 = inlined_call_operand.vmem [shape: bf16[2,256,2688], index: 0, kind: input, shape index: {}]   ;;  %s9875_s1 = inlined_call_operand.vmem [shape: bf16[2688,3], index: 1, kind: input, shape index: {}]   ;;  %s9876_s2 = inlined_call_operand.vmem [shape: f32[1,3], index: 2, kind: input, shape index: {}]   ;;  %s9877_s3 = inlined_call_operand.vmem [shape: f32[2,256,3], index: 3, kind: output, shape index: {}]  }
   0x1   :  { %s7969_s14 = smov 0  }
   0x2 LB: > { %s25_s15 = sadd.s32 1, %s7939_s13  ;;  %p5511_p0 = scmp.ge.s32.totalorder %s7943_s14, 1  ;;  %s7943_s14 = sphi %s7969_s14, %s13_s14   ;;  %s7939_s13 = sphi %s7967_s13, %s9879_s13   ;;  %s7935_s12 = sphi %s7965_s12, %s9878_s12  }
   0x3   : > { %p27_p1 = scmp.ge.s32.totalorder %s25_s15, 2  ;;  %p159_p2 = scmp.lt.s32.totalorder %s7943_s14, 3 }
   0x5   : > { %s9881_s15 = smov (%p27_p1, %s25_s15), 0  ;;  %p160_p3 = pnand %p5511_p0, %p159_p2 }
   0x6   : > { %v7256_v0 = vld [vmem:[%s9875_s1 + $0x40] sm:$0xff] (!%p160_p3)   ;;  %v7258_v2 = vld [vmem:[%s9875_s1 + $0x48] sm:$0xff] (!%p160_p3)   ;;  %p193_p4 = scmp.lt.s32.totalorder (!%p160_p3), %s7935_s12, 1  ;;  %v7260_v4 = vld [vmem:[%s9875_s1 + $0x50] sm:$0xff] (!%p160_p3)   ;;  %vm5384_vm0 = vcmask (!%p160_p3), 23552  }
   0x7   : > { %163 = sbr.rel (%p160_p3) target bundleno = 925 (0x39d), region = 32  ;;  %v7257_v1 = vld [vmem:[%s9875_s1] sm:$0xff] (!%p160_p3)   ;;  %6023 = vmatprep.subr.bf16.mxu0 (!%p160_p3), %v7256_v0  ;;  %7215 = vmatprep.subr.bf16.mxu1 (!%p160_p3), %v7256_v0  ;;  %v7259_v3 = vld [vmem:[%s9875_s1 + $0x8] sm:$0xff] (!%p160_p3)   ;;  %v7261_v5 = vld [vmem:[%s9875_s1 + $0x10] sm:$0xff] (!%p160_p3)  }
   0x8   : > { %6024 = vmatpush3.bf16.msra.mxu0 (!%p160_p3), %v7257_v1  ;;  %7223 = vmatpush3.bf16.msra.mxu1 (!%p160_p3), %v7257_v1  ;;  %v7262_v6 = vld [vmem:[%s9875_s1 + $0x58] sm:$0xff] (!%p160_p3)   ;;  %v7264_v8 = vld [vmem:[%s9875_s1 + $0x60] sm:$0xff] (!%p160_p3)   ;;  %v7266_v10 = vld [vmem:[%s9875_s1 + $0x68] sm:$0xff] (!%p160_p3)  }
   0x9   : > { %6025 = vmatprep.subr.bf16.mxu0 (!%p160_p3), %v7258_v2  ;;  %7216 = vmatprep.subr.bf16.mxu1 (!%p160_p3), %v7258_v2  ;;  %v7263_v7 = vld [vmem:[%s9875_s1 + $0x18] sm:$0xff] (!%p160_p3)   ;;  %v7265_v9 = vld [vmem:[%s9875_s1 + $0x20] sm:$0xff] (!%p160_p3)   ;;  %v7267_v13 = vld [vmem:[%s9875_s1 + $0x28] sm:$0xff] (!%p160_p3)  }
   0xa   : > { %v7268_v14 = vld [vmem:[%s9875_s1 + $0x70] sm:$0xff] (!%p160_p3)   ;;  %v7270_v16 = vld [vmem:[%s9875_s1 + $0x78] sm:$0xff] (!%p160_p3)   ;;  %v7278_v18 = vld [vmem:[%s9875_s1 + $0xc0] sm:$0xff] (!%p160_p3)  }
   0xb   : > { %v7269_v15 = vld [vmem:[%s9875_s1 + $0x30] sm:$0xff] (!%p160_p3)   ;;  %v7271_v17 = vld [vmem:[%s9875_s1 + $0x38] sm:$0xff] (!%p160_p3)   ;;  %v7281_v21 = vld [vmem:[%s9875_s1 + $0x140] sm:$0xff] (!%p160_p3)  }
   0xc   : > { %6026 = vmatpush3.bf16.msra.mxu0 (!%p160_p3), %v7259_v3  ;;  %7224 = vmatpush3.bf16.msra.mxu1 (!%p160_p3), %v7259_v3  ;;  %v7279_v22 = vld [vmem:[%s9875_s1 + $0x80] sm:$0xff] (!%p160_p3)   ;;  %v7280_v23 = vld [vmem:[%s9875_s1 + $0xc8] sm:$0xff] (!%p160_p3)   ;;  %v7290_v31 = vld [vmem:[%s9875_s1 + $0xd0] sm:$0xff] (!%p160_p3)  }
   0xd   : > { %6027 = vmatprep.subr.bf16.mxu0 (!%p160_p3), %v7260_v4  ;;  %7217 = vmatprep.subr.bf16.mxu1 (!%p160_p3), %v7260_v4  ;;  %v7283_v24 = vld [vmem:[%s9875_s1 + $0x100] sm:$0xff] (!%p160_p3)   ;;  %v7282_v27 = vld [vmem:[%s9875_s1 + $0x88] sm:$0xff] (!%p160_p3)   ;;  %v7291_v32 = vld [vmem:[%s9875_s1 + $0x90] sm:$0xff] (!%p160_p3)  }
   0xe   : > { %s9883_s12 = smov (!%p193_p4, %s7935_s12), 1  ;;  %v7301_v28 = vld [vmem:[%s9875_s1 + $0x148] sm:$0xff]   ;;  %v7292_v34 = vld [vmem:[%s9875_s1 + $0xd8] sm:$0xff]   ;;  %v7300_v40 = vld [vmem:[%s9875_s1 + $0xe0] sm:$0xff]  }
   0xf   : > { %s7231_s30 = smul.u32 2688, %s9883_s12  ;;  %v7303_v33 = vld [vmem:[%s9875_s1 + $0x108] sm:$0xff]   ;;  %v7293_v37 = vld [vmem:[%s9875_s1 + $0x98] sm:$0xff]   ;;  %v7302_v41 = vld [vmem:[%s9875_s1 + $0xa0] sm:$0xff]  }
  0x10   : > { %6028 = vmatpush3.bf16.msra.mxu0 %v7261_v5  ;;  %7225 = vmatpush3.bf16.msra.mxu1 %v7261_v5  ;;  %v7304_v42 = vld [vmem:[%s9875_s1 + $0xe8] sm:$0xff]   ;;  %v7315_v43 = vld [vmem:[%s9875_s1 + $0x150] sm:$0xff]   ;;  %v7314_v52 = vld [vmem:[%s9875_s1 + $0xf8] sm:$0xff]  }
  0x11   : > { %6029 = vmatprep.subr.bf16.mxu0 %v7262_v6  ;;  %7218 = vmatprep.subr.bf16.mxu1 %v7262_v6  ;;  %s8016_s10 = scalar_lea.vmem %s9874_s0, %s7231_s30  ;;  %v7317_v46 = vld [vmem:[%s9875_s1 + $0x110] sm:$0xff]   ;;  %v7305_v47 = vld [vmem:[%s9875_s1 + $0xa8] sm:$0xff]   ;;  %v7332_v55 = vld [vmem:[%s9875_s1 + $0x158] sm:$0xff]  }
  0x12   : > { %v7274_v11 = vld [vmem:[%s8016_s10 + $0x4] ss:$84 sps:$4 sm:$0xff]   ;;  %v7272_v19 = vld [vmem:[%s8016_s10] ss:$84 sps:$4 sm:$0xff]   ;;  %v7288_v29 = vld [vmem:[%s8016_s10 + $0xa8] ss:$84 sps:$4 sm:$0xff]  }
  0x13   : > { %v7277_v12 = vld [vmem:[%s8016_s10 + $0x7e4] ss:$84 sps:$4 sm:$0xff]   ;;  %3645 = vmatprep.mubr.bf16.mxu0 %v7274_v11  ;;  %v7275_v20 = vld [vmem:[%s8016_s10 + $0x7e0] ss:$84 sps:$4 sm:$0xff]   ;;  %v7289_v30 = vld [vmem:[%s8016_s10 + $0x888] ss:$84 sps:$4 sm:$0xff]  }
  0x14   : > { %6030 = vmatpush3.bf16.msra.mxu0 %v7263_v7  ;;  %7226 = vmatpush3.bf16.msra.mxu1 %v7263_v7  ;;  %v7284_v25 = vld [vmem:[%s8016_s10 + $0xac] ss:$84 sps:$4 sm:$0xff]   ;;  %v7294_v35 = vld [vmem:[%s8016_s10 + $0x154] ss:$84 sps:$4 sm:$0xff]   ;;  %v7298_v38 = vld [vmem:[%s8016_s10 + $0x150] ss:$84 sps:$4 sm:$0xff]  }
  0x15   : > { %6031 = vmatprep.subr.bf16.mxu0 %v7264_v8  ;;  %7219 = vmatprep.subr.bf16.mxu1 %v7264_v8  ;;  %v7286_v26 = vld [vmem:[%s8016_s10 + $0x88c] ss:$84 sps:$4 sm:$0xff]   ;;  %v7296_v36 = vld [vmem:[%s8016_s10 + $0x934] ss:$84 sps:$4 sm:$0xff]   ;;  %v7299_v39 = vld [vmem:[%s8016_s10 + $0x930] ss:$84 sps:$4 sm:$0xff]  }
  0x16   : > { %3741 = vmatprep.mubr.bf16.mxu1 %v7277_v12  ;;  %v7306_v44 = vld [vmem:[%s8016_s10 + $0x1fc] ss:$84 sps:$4 sm:$0xff]   ;;  %v7310_v49 = vld [vmem:[%s8016_s10 + $0x1f8] ss:$84 sps:$4 sm:$0xff]   ;;  %v7323_v59 = vld [vmem:[%s8016_s10 + $0x2a0] ss:$84 sps:$4 sm:$0xff]  }
  0x17   : > { %v7308_v45 = vld [vmem:[%s8016_s10 + $0x9dc] ss:$84 sps:$4 sm:$0xff]   ;;  %v7311_v50 = vld [vmem:[%s8016_s10 + $0x9d8] ss:$84 sps:$4 sm:$0xff]   ;;  %v7324_v60 = vld [vmem:[%s9875_s1 + $0x1c0] sm:$0xff]  }
  0x18   : > { %6032 = vmatpush3.bf16.msra.mxu0 %v7265_v9  ;;  %7227 = vmatpush3.bf16.msra.mxu1 %v7265_v9  ;;  %v7312_v48 = vld [vmem:[%s9875_s1 + $0xf0] sm:$0xff]   ;;  %v7318_v53 = vld [vmem:[%s8016_s10 + $0x2a4] ss:$84 sps:$4 sm:$0xff]   ;;  %v7322_v54 = vld [vmem:[%s8016_s10 + $0xc] ss:$84 sps:$4 sm:$0xff]  }
  0x19   : > { %6033 = vmatprep.subr.bf16.mxu0 %v7266_v10  ;;  %7220 = vmatprep.subr.bf16.mxu1 %v7266_v10  ;;  %v7313_v51 = vld [vmem:[%s9875_s1 + $0xb0] sm:$0xff]   ;;  %v7333_v56 = vld [vmem:[%s9875_s1 + $0x118] sm:$0xff]   ;;  %v7325_v61 = vld [vmem:[%s9875_s1 + $0x180] sm:$0xff]  }
  0x1a   : > { %v7316_v57 = vld [vmem:[%s9875_s1 + $0xb8] sm:$0xff]   ;;  %v7326_v62 = vld [vmem:[%s8016_s10 + $0x34c] ss:$84 sps:$4 sm:$0xff]   ;;  %v7328_v63 = vld [vmem:[%s8016_s10 + $0xb4] ss:$84 sps:$4 sm:$0xff]  }
  0x1b   : > { %v7320_v58 = vld [vmem:[%s8016_s10 + $0x8] ss:$84 sps:$4 sm:$0xff]   ;;  %v7342_v0 = vld [vmem:[%s9875_s1 + $0x160] sm:$0xff]   ;;  %v7357_v9 = vld [vmem:[%s9875_s1 + $0x1d0] sm:$0xff]  }
  0x1c   : > { %6034 = vmatpush3.bf16.msra.mxu0 %v7267_v13  ;;  %7228 = vmatpush3.bf16.msra.mxu1 %v7267_v13  ;;  %v7340_v1 = vld [vmem:[%s9875_s1 + $0x1c8] sm:$0xff]   ;;  %v7343_v2 = vld [vmem:[%s9875_s1 + $0x120] sm:$0xff]   ;;  %v7336_v7 = vld [vmem:[%s8016_s10 + $0x15c] ss:$84 sps:$4 sm:$0xff]  }
  0x1d   : > { %6035 = vmatprep.subr.bf16.mxu0 %v7268_v14  ;;  %7221 = vmatprep.subr.bf16.mxu1 %v7268_v14  ;;  %v7341_v3 = vld [vmem:[%s9875_s1 + $0x188] sm:$0xff]   ;;  %v7331_v5 = vld [vmem:[%s8016_s10 + $0xb0] ss:$84 sps:$4 sm:$0xff]  }
  0x1e   : > { %v7330_v4 = vld [vmem:[%s8016_s10 + $0x348] ss:$84 sps:$4 sm:$0xff]   ;;  %v7359_v11 = vld [vmem:[%s9875_s1 + $0x190] sm:$0xff]   ;;  %v7339_v13 = vld [vmem:[%s8016_s10 + $0x158] ss:$84 sps:$4 sm:$0xff]  }
  0x1f   : > { %v7334_v6 = vld [vmem:[%s8016_s10 + $0x3f4] ss:$84 sps:$4 sm:$0xff]   ;;  %v7338_v12 = vld [vmem:[%s8016_s10 + $0x3f0] ss:$84 sps:$4 sm:$0xff]  }
  0x20   : > { %6036 = vmatpush3.bf16.msra.mxu0 %v7269_v15  ;;  %7229 = vmatpush3.bf16.msra.mxu1 %v7269_v15  ;;  %v7356_v8 = vld [vmem:[%s9875_s1 + $0x168] sm:$0xff]   ;;  %v7344_v14 = vld [vmem:[%s8016_s10 + $0x49c] ss:$84 sps:$4 sm:$0xff]  }
  0x21   : > { %6037 = vmatprep.subr.bf16.mxu0 %v7270_v16  ;;  %7222 = vmatprep.subr.bf16.mxu1 %v7270_v16  ;;  %v7358_v10 = vld [vmem:[%s9875_s1 + $0x128] sm:$0xff]   ;;  %v7366_v15 = vld [vmem:[%s9875_s1 + $0x170] sm:$0xff]  }
  0x22   : > { %v7367_v16 = vld [vmem:[%s9875_s1 + $0x130] sm:$0xff]  }
  0x24   : > { %6038 = vmatpush3.bf16.msra.mxu0 %v7271_v17  ;;  %7230 = vmatpush3.bf16.msra.mxu1 %v7271_v17  ;;  %v7346_v17 = vld [vmem:[%s8016_s10 + $0x204] ss:$84 sps:$4 sm:$0xff]  }
  0x25   : > { %6135 = vmatprep.subr.bf16.mxu1 %v7278_v18  ;;  %6247 = vmatprep.subr.bf16.mxu0 %v7281_v21  ;;  %v7374_v18 = vld [vmem:[%s9875_s1 + $0x1d8] sm:$0xff]   ;;  %v7349_v21 = vld [vmem:[%s8016_s10 + $0x200] ss:$84 sps:$4 sm:$0xff]  }
  0x27   : > { %3646 = vmatmul.mubr.bf16.vlgmr.msra.gmra.mrb[0].mxu0 %v7272_v19  ;;  %3742 = vmatmul.mubr.bf16.vlgmr.msra.gmra.mrb[0].mxu1 %v7275_v20  ;;  %v7375_v19 = vld [vmem:[%s9875_s1 + $0x198] sm:$0xff]  }
  0x28   : > { %6136 = vmatpush3.bf16.msra.mxu1 %v7279_v22  ;;  %6248 = vmatpush3.bf16.msra.mxu0 %v7283_v24  ;;  %v7348_v20 = vld [vmem:[%s8016_s10 + $0x498] ss:$84 sps:$4 sm:$0xff]  }
  0x29   : > { %6137 = vmatprep.subr.bf16.mxu1 %v7280_v23  ;;  %3653 = vmatprep.mubr.bf16.mxu0 %v7284_v25  ;;  %v7350_v22 = vld [vmem:[%s8016_s10 + $0x544] ss:$84 sps:$4 sm:$0xff]   ;;  %v7352_v23 = vld [vmem:[%s8016_s10 + $0x2ac] ss:$84 sps:$4 sm:$0xff]  }
  0x2a   : > { %3749 = vmatprep.mubr.bf16.mxu1 %v7286_v26  ;;  %6249 = vmatprep.subr.bf16.mxu0 %v7301_v28  ;;  %v7382_v24 = vld [vmem:[%s9875_s1 + $0x178] sm:$0xff]   ;;  %v7390_v26 = vld [vmem:[%s9875_s1 + $0x1e0] sm:$0xff]  }
  0x2b   : > { %v7383_v25 = vld [vmem:[%s9875_s1 + $0x138] sm:$0xff]  }
  0x2c   : > { %6138 = vmatpush3.bf16.msra.mxu1 %v7282_v27  ;;  %6250 = vmatpush3.bf16.msra.mxu0 %v7303_v33  ;;  %v7354_v27 = vld [vmem:[%s8016_s10 + $0x540] ss:$84 sps:$4 sm:$0xff]   ;;  %v7355_v28 = vld [vmem:[%s8016_s10 + $0x2a8] ss:$84 sps:$4 sm:$0xff]  }
  0x2d   : > { %6139 = vmatprep.subr.bf16.mxu1 %v7290_v31  ;;  %6251 = vmatprep.subr.bf16.mxu0 %v7315_v43  ;;  %v7360_v31 = vld [vmem:[%s8016_s10 + $0x5ec] ss:$84 sps:$4 sm:$0xff]   ;;  %v7364_v33 = vld [vmem:[%s8016_s10 + $0x5e8] ss:$84 sps:$4 sm:$0xff]   ;;  %v7422_v43 = vld [vmem:[%s9875_s1 + $0x1f0] sm:$0xff]  }
  0x2f   : > { %3654 = vmatmul.mubr.bf16.gmra.mrb[4].mxu0 %v7288_v29  ;;  %3750 = vmatmul.mubr.bf16.gmra.mrb[4].mxu1 %v7289_v30  ;;  %v7391_v29 = vld [vmem:[%s9875_s1 + $0x1a0] sm:$0xff]  }
  0x30   : > { %6140 = vmatpush3.bf16.msra.mxu1 %v7291_v32  ;;  %3661 = vmatprep.mubr.bf16.mxu0 %v7294_v35  ;;  %v7392_v30 = vld [vmem:[%s9875_s1 + $0x240] sm:$0xff]   ;;  %v7362_v32 = vld [vmem:[%s8016_s10 + $0x354] ss:$84 sps:$4 sm:$0xff]  }
  0x31   : > { %6141 = vmatprep.subr.bf16.mxu1 %v7292_v34  ;;  %3757 = vmatprep.mubr.bf16.mxu1 %v7296_v36  ;;  %v7365_v34 = vld [vmem:[%s8016_s10 + $0x350] ss:$84 sps:$4 sm:$0xff]   ;;  %v7406_v35 = vld [vmem:[%s9875_s1 + $0x1e8] sm:$0xff]  }
  0x32   : > { %6252 = vmatpush3.bf16.msra.mxu0 %v7317_v46  ;;  %v7407_v36 = vld [vmem:[%s9875_s1 + $0x1a8] sm:$0xff]   ;;  %v7381_v46 = vld [vmem:[%s8016_s10 + $0x4a0] ss:$84 sps:$4 sm:$0xff]  }
  0x33   : > { %6253 = vmatprep.subr.bf16.mxu0 %v7332_v55  ;;  %v7396_v55 = vld [vmem:[%s8016_s10 + $0xbc] ss:$84 sps:$4 sm:$0xff]  }
  0x34   : > { %6142 = vmatpush3.bf16.msra.mxu1 %v7293_v37  ;;  %v7368_v37 = vld [vmem:[%s8016_s10 + $0x694] ss:$84 sps:$4 sm:$0xff]  }
  0x35   : > { %6143 = vmatprep.subr.bf16.mxu1 %v7300_v40  ;;  %v7373_v40 = vld [vmem:[%s8016_s10 + $0x3f8] ss:$84 sps:$4 sm:$0xff]  }
  0x36   : > { %6254 = vmatpush3.bf16.msra.mxu0 %v7333_v56  ;;  %v7408_v56 = vld [vmem:[%s9875_s1 + $0x248] sm:$0xff]  }
  0x37   : > { %3662 = vmatmul.mubr.bf16.gmra.mrb[8].mxu0 %v7298_v38  ;;  %3758 = vmatmul.mubr.bf16.gmra.mrb[8].mxu1 %v7299_v39  ;;  %v7370_v38 = vld [vmem:[%s8016_s10 + $0x3fc] ss:$84 sps:$4 sm:$0xff]  }
  0x38   : > { %6144 = vmatpush3.bf16.msra.mxu1 %v7302_v41  ;;  %3669 = vmatprep.mubr.bf16.mxu0 %v7306_v44  ;;  %v7372_v39 = vld [vmem:[%s8016_s10 + $0x690] ss:$84 sps:$4 sm:$0xff]  }
  0x39   : > { %6145 = vmatprep.subr.bf16.mxu1 %v7304_v42  ;;  %3765 = vmatprep.mubr.bf16.mxu1 %v7308_v45  ;;  %v7376_v41 = vld [vmem:[%s8016_s10 + $0x73c] ss:$84 sps:$4 sm:$0xff]   ;;  %v7378_v42 = vld [vmem:[%s8016_s10 + $0x4a4] ss:$84 sps:$4 sm:$0xff]  }
  0x3a   : > { %6255 = vmatprep.subr.bf16.mxu0 %v7342_v0  ;;  %v7423_v44 = vld [vmem:[%s9875_s1 + $0x1b0] sm:$0xff]   ;;  %v7380_v45 = vld [vmem:[%s8016_s10 + $0x738] ss:$84 sps:$4 sm:$0xff]  }
  0x3b   : > { %6256 = vmatpush3.bf16.msra.mxu0 %v7343_v2  ;;  %v7425_v0 = vld [vmem:[%s9875_s1 + $0x210] sm:$0xff]   ;;  %v7404_v2 = vld [vmem:[%s8016_s10 + $0x698] ss:$84 sps:$4 sm:$0xff]  }
  0x3c   : > { %6146 = vmatpush3.bf16.msra.mxu1 %v7305_v47  ;;  %6257 = vmatprep.subr.bf16.mxu0 %v7356_v8  ;;  %v7384_v47 = vld [vmem:[%s8016_s10 + $0x54c] ss:$84 sps:$4 sm:$0xff]  }
  0x3d   : > { %6147 = vmatprep.subr.bf16.mxu1 %v7312_v48  ;;  %v7388_v48 = vld [vmem:[%s8016_s10 + $0x14] ss:$84 sps:$4 sm:$0xff]   ;;  %v7457_v8 = vld [vmem:[%s9875_s1 + $0x220] sm:$0xff]  }
  0x3f   : > { %3670 = vmatmul.mubr.bf16.gmra.mrb[12].mxu0 %v7310_v49  ;;  %3766 = vmatmul.mubr.bf16.gmra.mrb[12].mxu1 %v7311_v50  ;;  %v7438_v49 = vld [vmem:[%s9875_s1 + $0x1f8] sm:$0xff]  }
  0x40   : > { %6148 = vmatpush3.bf16.msra.mxu1 %v7313_v51  ;;  %3677 = vmatprep.mubr.bf16.mxu0 %v7318_v53  ;;  %v7439_v50 = vld [vmem:[%s9875_s1 + $0x1b8] sm:$0xff]   ;;  %v7386_v51 = vld [vmem:[%s8016_s10 + $0x10] ss:$84 sps:$4 sm:$0xff]  }
  0x41   : > { %6149 = vmatprep.subr.bf16.mxu1 %v7314_v52  ;;  %3806 = vmatprep.mubr.bf16.mxu1 %v7322_v54  ;;  %v7389_v52 = vld [vmem:[%s8016_s10 + $0x548] ss:$84 sps:$4 sm:$0xff]   ;;  %v7393_v53 = vld [vmem:[%s9875_s1 + $0x200] sm:$0xff]  }
  0x42   : > { %6258 = vmatpush3.bf16.msra.mxu0 %v7358_v10  ;;  %v7394_v54 = vld [vmem:[%s8016_s10 + $0x5f4] ss:$84 sps:$4 sm:$0xff]  }
  0x43   : > { %6259 = vmatprep.subr.bf16.mxu0 %v7366_v15  ;;  %v7414_v10 = vld [vmem:[%s8016_s10 + $0x740] ss:$84 sps:$4 sm:$0xff]  }
  0x44   : > { %6150 = vmatpush3.bf16.msra.mxu1 %v7316_v57  ;;  %v7454_v57 = vld [vmem:[%s9875_s1 + $0x2c0] sm:$0xff]   ;;  %v7418_v15 = vld [vmem:[%s8016_s10 + $0x2b4] ss:$84 sps:$4 sm:$0xff]  }
  0x45   : > { %6359 = vmatprep.subr.bf16.mxu1 %v7324_v60  ;;  %v7398_v60 = vld [vmem:[%s8016_s10 + $0x5f0] ss:$84 sps:$4 sm:$0xff]  }
  0x46   : > { %6260 = vmatpush3.bf16.msra.mxu0 %v7367_v16  ;;  %v7489_v16 = vld [vmem:[%s9875_s1 + $0x230] sm:$0xff]  }
  0x47   : > { %3678 = vmatmul.mubr.bf16.gmra.mrb[16].mxu0 %v7323_v59  ;;  %3807 = vmatmul.mubr.bf16.vlgmr.msra.gmra.mrb[16].mxu1 %v7320_v58  ;;  %v7409_v58 = vld [vmem:[%s9875_s1 + $0x208] sm:$0xff]   ;;  %v7424_v59 = vld [vmem:[%s9875_s1 + $0x250] sm:$0xff]  }
  0x48   : > { %6360 = vmatpush3.bf16.msra.mxu1 %v7325_v61  ;;  %3685 = vmatprep.mubr.bf16.mxu0 %v7326_v62  ;;  %v7399_v61 = vld [vmem:[%s8016_s10 + $0xb8] ss:$84 sps:$4 sm:$0xff]   ;;  %v7400_v62 = vld [vmem:[%s8016_s10 + $0x69c] ss:$84 sps:$4 sm:$0xff]  }
  0x49   : > { %3814 = vmatprep.mubr.bf16.mxu1 %v7328_v63  ;;  %6361 = vmatprep.subr.bf16.mxu1 %v7340_v1  ;;  %v7402_v63 = vld [vmem:[%s8016_s10 + $0x164] ss:$84 sps:$4 sm:$0xff]  }
  0x4a   : > { %6261 = vmatprep.subr.bf16.mxu0 %v7382_v24  ;;  %v7440_v1 = vld [vmem:[%s9875_s1 + $0x258] sm:$0xff]  }
  0x4b   : > { %6262 = vmatpush3.bf16.msra.mxu0 %v7383_v25  ;;  %v7431_v24 = vld [vmem:[%s8016_s10 + $0x358] ss:$84 sps:$4 sm:$0xff]   ;;  %v7432_v25 = vld [vmem:[%s8016_s10 + $0x93c] ss:$84 sps:$4 sm:$0xff]  }
  0x4c   : > { %6362 = vmatpush3.bf16.msra.mxu1 %v7341_v3  ;;  %6471 = vmatprep.subr.bf16.mxu0 %v7392_v30  ;;  %v7441_v3 = vld [vmem:[%s9875_s1 + $0x218] sm:$0xff]  }
  0x4d   : > { %6363 = vmatprep.subr.bf16.mxu1 %v7357_v9  ;;  %v7472_v9 = vld [vmem:[%s9875_s1 + $0x268] sm:$0xff]   ;;  %v7442_v30 = vld [vmem:[%s8016_s10 + $0x9e4] ss:$84 sps:$4 sm:$0xff]  }
  0x4f   : > { %3686 = vmatmul.mubr.bf16.gmra.mrb[20].mxu0 %v7330_v4  ;;  %3815 = vmatmul.mubr.bf16.gmra.mrb[20].mxu1 %v7331_v5  ;;  %v7456_v4 = vld [vmem:[%s9875_s1 + $0x260] sm:$0xff]  }
  0x50   : > { %3693 = vmatprep.mubr.bf16.mxu0 %v7334_v6  ;;  %3822 = vmatprep.mubr.bf16.mxu1 %v7336_v7  ;;  %v7405_v5 = vld [vmem:[%s8016_s10 + $0x160] ss:$84 sps:$4 sm:$0xff]   ;;  %v7410_v6 = vld [vmem:[%s8016_s10 + $0x744] ss:$84 sps:$4 sm:$0xff]  }
  0x51   : > { %6364 = vmatpush3.bf16.msra.mxu1 %v7359_v11  ;;  %v7412_v7 = vld [vmem:[%s8016_s10 + $0x20c] ss:$84 sps:$4 sm:$0xff]   ;;  %v7415_v11 = vld [vmem:[%s8016_s10 + $0x208] ss:$84 sps:$4 sm:$0xff]  }
  0x52   : > { %6365 = vmatprep.subr.bf16.mxu1 %v7374_v18  ;;  %v7421_v18 = vld [vmem:[%s8016_s10 + $0x2b0] ss:$84 sps:$4 sm:$0xff]  }
  0x55   : > { %6366 = vmatpush3.bf16.msra.mxu1 %v7375_v19  ;;  %v7426_v19 = vld [vmem:[%s8016_s10 + $0x894] ss:$84 sps:$4 sm:$0xff]  }
  0x56   : > { %6367 = vmatprep.subr.bf16.mxu1 %v7390_v26  ;;  %v7434_v26 = vld [vmem:[%s8016_s10 + $0x404] ss:$84 sps:$4 sm:$0xff]  }
  0x57   : > { %3694 = vmatmul.mubr.bf16.gmra.mrb[24].mxu0 %v7338_v12  ;;  %3823 = vmatmul.mubr.bf16.gmra.mrb[24].mxu1 %v7339_v13  ;;  %v7473_v12 = vld [vmem:[%s9875_s1 + $0x228] sm:$0xff]   ;;  %v7488_v13 = vld [vmem:[%s9875_s1 + $0x270] sm:$0xff]  }
  0x58   : > { %3701 = vmatprep.mubr.bf16.mxu0 %v7344_v14  ;;  %3830 = vmatprep.mubr.bf16.mxu1 %v7346_v17  ;;  %v7416_v14 = vld [vmem:[%s8016_s10 + $0x7ec] ss:$84 sps:$4 sm:$0xff]   ;;  %v7420_v17 = vld [vmem:[%s8016_s10 + $0x7e8] ss:$84 sps:$4 sm:$0xff]  }
  0x59   : > { %6368 = vmatpush3.bf16.msra.mxu1 %v7391_v29  ;;  %v7437_v29 = vld [vmem:[%s8016_s10 + $0x400] ss:$84 sps:$4 sm:$0xff]  }
  0x5a   : > { %6369 = vmatprep.subr.bf16.mxu1 %v7406_v35  ;;  %v7452_v35 = vld [vmem:[%s8016_s10 + $0x1c] ss:$84 sps:$4 sm:$0xff]  }
  0x5d   : > { %6370 = vmatpush3.bf16.msra.mxu1 %v7407_v36  ;;  %v7450_v36 = vld [vmem:[%s8016_s10 + $0x18] ss:$84 sps:$4 sm:$0xff]  }
  0x5e   : > { %6371 = vmatprep.subr.bf16.mxu1 %v7422_v43  ;;  %v7486_v43 = vld [vmem:[%s9875_s1 + $0x2d0] sm:$0xff]  }
  0x5f   : > { %3702 = vmatmul.mubr.bf16.gmra.mrb[28].mxu0 %v7348_v20  ;;  %3831 = vmatmul.mubr.bf16.gmra.mrb[28].mxu1 %v7349_v21  ;;  %v7428_v20 = vld [vmem:[%s8016_s10 + $0x35c] ss:$84 sps:$4 sm:$0xff]  }
  0x60   : > { %3709 = vmatprep.mubr.bf16.mxu0 %v7350_v22  ;;  %3838 = vmatprep.mubr.bf16.mxu1 %v7352_v23  ;;  %v7504_v21 = vld [vmem:[%s9875_s1 + $0x278] sm:$0xff]   ;;  %v7430_v23 = vld [vmem:[%s8016_s10 + $0x890] ss:$84 sps:$4 sm:$0xff]  }
  0x61   : > { %6372 = vmatpush3.bf16.msra.mxu1 %v7423_v44  ;;  %v7505_v22 = vld [vmem:[%s9875_s1 + $0x238] sm:$0xff]  }
  0x62   : > { %6373 = vmatprep.subr.bf16.mxu1 %v7438_v49  ;;  %v7462_v44 = vld [vmem:[%s8016_s10 + $0x5f8] ss:$84 sps:$4 sm:$0xff]  }
  0x63   : > { %v7502_v49 = vld [vmem:[%s9875_s1 + $0x2d8] sm:$0xff]  }
  0x65   : > { %6374 = vmatpush3.bf16.msra.mxu1 %v7439_v50  ;;  %v7468_v50 = vld [vmem:[%s8016_s10 + $0x6a0] ss:$84 sps:$4 sm:$0xff]  }
  0x66   : > { %6583 = vmatprep.subr.bf16.mxu1 %v7454_v57  ;;  %v7534_v57 = vld [vmem:[%s9875_s1 + $0x2e8] sm:$0xff]  }
  0x67   : > { %3710 = vmatmul.mubr.bf16.gmra.mrb[32].mxu0 %v7354_v27  ;;  %3839 = vmatmul.mubr.bf16.gmra.mrb[32].mxu1 %v7355_v28  ;;  %v7520_v27 = vld [vmem:[%s9875_s1 + $0x340] sm:$0xff]   ;;  %v7436_v28 = vld [vmem:[%s8016_s10 + $0x938] ss:$84 sps:$4 sm:$0xff]  }
  0x68   : > { %3717 = vmatprep.mubr.bf16.mxu0 %v7360_v31  ;;  %3846 = vmatprep.mubr.bf16.mxu1 %v7362_v32  ;;  %v7444_v31 = vld [vmem:[%s8016_s10 + $0x4ac] ss:$84 sps:$4 sm:$0xff]  }
  0x69   : > { %v7446_v32 = vld [vmem:[%s8016_s10 + $0x9e0] ss:$84 sps:$4 sm:$0xff]  }
  0x6f   : > { %3718 = vmatmul.mubr.bf16.gmra.mrb[36].mxu0 %v7364_v33  ;;  %3847 = vmatmul.mubr.bf16.gmra.mrb[36].mxu1 %v7365_v34  ;;  %v7447_v33 = vld [vmem:[%s8016_s10 + $0x4a8] ss:$84 sps:$4 sm:$0xff]  }
  0x70   : > { %3725 = vmatprep.mubr.bf16.mxu0 %v7368_v37  ;;  %3854 = vmatprep.mubr.bf16.mxu1 %v7370_v38  ;;  %v7448_v34 = vld [vmem:[%s8016_s10 + $0x554] ss:$84 sps:$4 sm:$0xff]   ;;  %v7453_v37 = vld [vmem:[%s8016_s10 + $0x550] ss:$84 sps:$4 sm:$0xff]  }
  0x71   : > { %v7455_v38 = vld [vmem:[%s9875_s1 + $0x280] sm:$0xff]  }
  0x77   : > { %3726 = vmatmul.mubr.bf16.gmra.mrb[40].mxu0 %v7372_v39  ;;  %3855 = vmatmul.mubr.bf16.gmra.mrb[40].mxu1 %v7373_v40  ;;  %v7458_v39 = vld [vmem:[%s8016_s10 + $0x5fc] ss:$84 sps:$4 sm:$0xff]   ;;  %v7460_v40 = vld [vmem:[%s8016_s10 + $0xc4] ss:$84 sps:$4 sm:$0xff]  }
  0x78   : > { %3733 = vmatprep.mubr.bf16.mxu0 %v7376_v41  ;;  %3862 = vmatprep.mubr.bf16.mxu1 %v7378_v42  ;;  %v7470_v41 = vld [vmem:[%s9875_s1 + $0x2c8] sm:$0xff]  }
  0x79   : > { %v7471_v42 = vld [vmem:[%s9875_s1 + $0x288] sm:$0xff]  }
  0x7f   : > { %3734 = vmatmul.mubr.bf16.gmra.mrb[44].mxu0 %v7380_v45  ;;  %3863 = vmatmul.mubr.bf16.gmra.mrb[44].mxu1 %v7381_v46  ;;  %v7463_v45 = vld [vmem:[%s8016_s10 + $0xc0] ss:$84 sps:$4 sm:$0xff]   ;;  %v7464_v46 = vld [vmem:[%s8016_s10 + $0x6a4] ss:$84 sps:$4 sm:$0xff]  }
  0x80   : > { %3870 = vmatprep.mubr.bf16.mxu1 %v7384_v47  ;;  %3967 = vmatprep.mubr.bf16.mxu0 %v7388_v48  ;;  %v7466_v47 = vld [vmem:[%s8016_s10 + $0x16c] ss:$84 sps:$4 sm:$0xff]   ;;  %v7487_v48 = vld [vmem:[%s9875_s1 + $0x290] sm:$0xff]  }
  0x87   : > { %3871 = vmatmul.mubr.bf16.gmra.mrb[48].mxu1 %v7389_v52  ;;  %3968 = vmatmul.mubr.bf16.vlgmr.msra.gmra.mrb[48].mxu0 %v7386_v51  ;;  %v7469_v51 = vld [vmem:[%s8016_s10 + $0x168] ss:$84 sps:$4 sm:$0xff]  }
  0x88   : > { %6472 = vmatpush3.bf16.msra.mxu0 %v7393_v53  ;;  %3878 = vmatprep.mubr.bf16.mxu1 %v7394_v54  ;;  %v7503_v52 = vld [vmem:[%s9875_s1 + $0x298] sm:$0xff]   ;;  %v7518_v53 = vld [vmem:[%s9875_s1 + $0x2e0] sm:$0xff]  }
  0x89   : > { %3975 = vmatprep.mubr.bf16.mxu0 %v7396_v55  ;;  %6473 = vmatprep.subr.bf16.mxu0 %v7408_v56  ;;  %v7474_v54 = vld [vmem:[%s8016_s10 + $0x74c] ss:$84 sps:$4 sm:$0xff]   ;;  %v7476_v55 = vld [vmem:[%s8016_s10 + $0x214] ss:$84 sps:$4 sm:$0xff]  }
  0x8a   : > { %v7519_v56 = vld [vmem:[%s9875_s1 + $0x2a0] sm:$0xff]  }
  0x8c   : > { %6474 = vmatpush3.bf16.msra.mxu0 %v7409_v58  ;;  %v7478_v58 = vld [vmem:[%s8016_s10 + $0x748] ss:$84 sps:$4 sm:$0xff]  }
  0x8d   : > { %6475 = vmatprep.subr.bf16.mxu0 %v7424_v59  ;;  %v7479_v59 = vld [vmem:[%s8016_s10 + $0x210] ss:$84 sps:$4 sm:$0xff]  }
  0x8f   : > { %3879 = vmatmul.mubr.bf16.gmra.mrb[52].mxu1 %v7398_v60  ;;  %3976 = vmatmul.mubr.bf16.gmra.mrb[52].mxu0 %v7399_v61  ;;  %v7535_v60 = vld [vmem:[%s9875_s1 + $0x2a8] sm:$0xff]   ;;  %v7550_v61 = vld [vmem:[%s9875_s1 + $0x2f0] sm:$0xff]  }
  0x90   : > { %3886 = vmatprep.mubr.bf16.mxu1 %v7400_v62  ;;  %3983 = vmatprep.mubr.bf16.mxu0 %v7402_v63  ;;  %v7480_v62 = vld [vmem:[%s8016_s10 + $0x7f4] ss:$84 sps:$4 sm:$0xff]   ;;  %v7482_v63 = vld [vmem:[%s8016_s10 + $0x2bc] ss:$84 sps:$4 sm:$0xff]  }
  0x91   : > { %6476 = vmatpush3.bf16.msra.mxu0 %v7425_v0  ;;  %v7551_v0 = vld [vmem:[%s9875_s1 + $0x2b0] sm:$0xff]  }
  0x92   : > { %6477 = vmatprep.subr.bf16.mxu0 %v7440_v1  ;;  %v7566_v1 = vld [vmem:[%s9875_s1 + $0x2f8] sm:$0xff]  }
  0x95   : > { %6478 = vmatpush3.bf16.msra.mxu0 %v7441_v3  ;;  %v7582_v3 = vld [vmem:[%s9875_s1 + $0x3c0] sm:$0xff]  }
  0x96   : > { %6479 = vmatprep.subr.bf16.mxu0 %v7456_v4  ;;  %v7484_v4 = vld [vmem:[%s8016_s10 + $0x7f0] ss:$84 sps:$4 sm:$0xff]  }
  0x97   : > { %3887 = vmatmul.mubr.bf16.gmra.mrb[56].mxu1 %v7404_v2  ;;  %3984 = vmatmul.mubr.bf16.gmra.mrb[56].mxu0 %v7405_v5  ;;  %v7567_v2 = vld [vmem:[%s9875_s1 + $0x2b8] sm:$0xff]  }
  0x98   : > { %3894 = vmatprep.mubr.bf16.mxu1 %v7410_v6  ;;  %3991 = vmatprep.mubr.bf16.mxu0 %v7412_v7  ;;  %v7485_v5 = vld [vmem:[%s8016_s10 + $0x2b8] ss:$84 sps:$4 sm:$0xff]   ;;  %v7490_v6 = vld [vmem:[%s8016_s10 + $0x89c] ss:$84 sps:$4 sm:$0xff]  }
  0x99   : > { %6480 = vmatpush3.bf16.msra.mxu0 %v7457_v8  ;;  %v7492_v7 = vld [vmem:[%s8016_s10 + $0x364] ss:$84 sps:$4 sm:$0xff]  }
  0x9a   : > { %6481 = vmatprep.subr.bf16.mxu0 %v7472_v9  ;;  %v7494_v8 = vld [vmem:[%s8016_s10 + $0x898] ss:$84 sps:$4 sm:$0xff]   ;;  %v7495_v9 = vld [vmem:[%s8016_s10 + $0x360] ss:$84 sps:$4 sm:$0xff]  }
  0x9d   : > { %6482 = vmatpush3.bf16.msra.mxu0 %v7473_v12  ;;  %v7500_v12 = vld [vmem:[%s8016_s10 + $0x940] ss:$84 sps:$4 sm:$0xff]  }
  0x9e   : > { %6483 = vmatprep.subr.bf16.mxu0 %v7488_v13  ;;  %v7501_v13 = vld [vmem:[%s8016_s10 + $0x408] ss:$84 sps:$4 sm:$0xff]  }
  0x9f   : > { %3895 = vmatmul.mubr.bf16.gmra.mrb[60].mxu1 %v7414_v10  ;;  %3992 = vmatmul.mubr.bf16.gmra.mrb[60].mxu0 %v7415_v11  ;;  %v7496_v10 = vld [vmem:[%s8016_s10 + $0x944] ss:$84 sps:$4 sm:$0xff]   ;;  %v7498_v11 = vld [vmem:[%s8016_s10 + $0x40c] ss:$84 sps:$4 sm:$0xff]  }
  0xa0   : > { %3902 = vmatprep.mubr.bf16.mxu1 %v7416_v14  ;;  %3999 = vmatprep.mubr.bf16.mxu0 %v7418_v15  ;;  %v7506_v14 = vld [vmem:[%s8016_s10 + $0x9ec] ss:$84 sps:$4 sm:$0xff]   ;;  %v7508_v15 = vld [vmem:[%s8016_s10 + $0x4b4] ss:$84 sps:$4 sm:$0xff]  }
  0xa1   : > { %6484 = vmatpush3.bf16.msra.mxu0 %v7489_v16  ;;  %v7510_v16 = vld [vmem:[%s8016_s10 + $0x9e8] ss:$84 sps:$4 sm:$0xff]  }
  0xa2   : > { %6485 = vmatprep.subr.bf16.mxu0 %v7504_v21 }
  0xa5   : > { %6486 = vmatpush3.bf16.msra.mxu0 %v7505_v22 }
  0xa6   : > { %6695 = vmatprep.subr.bf16.mxu0 %v7520_v27  ;;  %v7516_v27 = vld [vmem:[%s8016_s10 + $0x24] ss:$84 sps:$4 sm:$0xff]  }
  0xa7   : > { %3903 = vmatmul.mubr.bf16.gmra.mrb[64].mxu1 %v7420_v17  ;;  %4000 = vmatmul.mubr.bf16.gmra.mrb[64].mxu0 %v7421_v18  ;;  %v7511_v17 = vld [vmem:[%s8016_s10 + $0x4b0] ss:$84 sps:$4 sm:$0xff]  }
  0xa8   : > { %3910 = vmatprep.mubr.bf16.mxu1 %v7426_v19  ;;  %4007 = vmatprep.mubr.bf16.mxu0 %v7428_v20 }
  0xaf   : > { %3911 = vmatmul.mubr.bf16.gmra.mrb[68].mxu1 %v7430_v23  ;;  %4008 = vmatmul.mubr.bf16.gmra.mrb[68].mxu0 %v7431_v24 }
  0xb0   : > { %3918 = vmatprep.mubr.bf16.mxu1 %v7432_v25  ;;  %4015 = vmatprep.mubr.bf16.mxu0 %v7434_v26  ;;  %v7512_v26 = vld [vmem:[%s8016_s10 + $0x55c] ss:$84 sps:$4 sm:$0xff]  }
  0xb7   : > { %3919 = vmatmul.mubr.bf16.gmra.mrb[72].mxu1 %v7436_v28  ;;  %4016 = vmatmul.mubr.bf16.gmra.mrb[72].mxu0 %v7437_v29 }
  0xb8   : > { %3926 = vmatprep.mubr.bf16.mxu1 %v7442_v30  ;;  %4023 = vmatprep.mubr.bf16.mxu0 %v7444_v31 }
  0xbf   : > { %3927 = vmatmul.mubr.bf16.gmra.mrb[76].mxu1 %v7446_v32  ;;  %4024 = vmatmul.mubr.bf16.gmra.mrb[76].mxu0 %v7447_v33  ;;  %v7514_v32 = vld [vmem:[%s8016_s10 + $0x20] ss:$84 sps:$4 sm:$0xff]   ;;  %v7517_v33 = vld [vmem:[%s8016_s10 + $0x558] ss:$84 sps:$4 sm:$0xff]  }
  0xc0   : > { %4031 = vmatprep.mubr.bf16.mxu0 %v7448_v34  ;;  %4128 = vmatprep.mubr.bf16.mxu1 %v7452_v35 }
  0xc7   : > { %4032 = vmatmul.mubr.bf16.gmra.mrb[80].mxu0 %v7453_v37  ;;  %4129 = vmatmul.mubr.bf16.vlgmr.msra.gmra.mrb[80].mxu1 %v7450_v36 }
  0xc8   : > { %6584 = vmatpush3.bf16.msra.mxu1 %v7455_v38  ;;  %4039 = vmatprep.mubr.bf16.mxu0 %v7458_v39 }
  0xc9   : > { %4136 = vmatprep.mubr.bf16.mxu1 %v7460_v40  ;;  %6585 = vmatprep.subr.bf16.mxu1 %v7470_v41 }
  0xcc   : > { %6586 = vmatpush3.bf16.msra.mxu1 %v7471_v42  ;;  %v7521_v42 = vld [vmem:[%s9875_s1 + $0x300] sm:$0xff]  }
  0xcd   : > { %6587 = vmatprep.subr.bf16.mxu1 %v7486_v43  ;;  %v7522_v43 = vld [vmem:[%s8016_s10 + $0x604] ss:$84 sps:$4 sm:$0xff]  }
  0xcf   : > { %4040 = vmatmul.mubr.bf16.gmra.mrb[84].mxu0 %v7462_v44  ;;  %4137 = vmatmul.mubr.bf16.gmra.mrb[84].mxu1 %v7463_v45 }
  0xd0   : > { %4047 = vmatprep.mubr.bf16.mxu0 %v7464_v46  ;;  %4144 = vmatprep.mubr.bf16.mxu1 %v7466_v47  ;;  %v7524_v46 = vld [vmem:[%s8016_s10 + $0xcc] ss:$84 sps:$4 sm:$0xff]  }
  0xd1   : > { %6588 = vmatpush3.bf16.msra.mxu1 %v7487_v48  ;;  %v7536_v47 = vld [vmem:[%s9875_s1 + $0x348] sm:$0xff]  }
  0xd2   : > { %6589 = vmatprep.subr.bf16.mxu1 %v7502_v49 }
  0xd5   : > { %6590 = vmatpush3.bf16.msra.mxu1 %v7503_v52  ;;  %v7526_v52 = vld [vmem:[%s8016_s10 + $0x600] ss:$84 sps:$4 sm:$0xff]  }
  0xd6   : > { %6591 = vmatprep.subr.bf16.mxu1 %v7518_v53  ;;  %v7527_v53 = vld [vmem:[%s8016_s10 + $0xc8] ss:$84 sps:$4 sm:$0xff]  }
  0xd7   : > { %4048 = vmatmul.mubr.bf16.gmra.mrb[88].mxu0 %v7468_v50  ;;  %4145 = vmatmul.mubr.bf16.gmra.mrb[88].mxu1 %v7469_v51  ;;  %v7537_v50 = vld [vmem:[%s9875_s1 + $0x308] sm:$0xff]   ;;  %v7552_v51 = vld [vmem:[%s9875_s1 + $0x350] sm:$0xff]  }
  0xd8   : > { %4055 = vmatprep.mubr.bf16.mxu0 %v7474_v54  ;;  %4152 = vmatprep.mubr.bf16.mxu1 %v7476_v55 }
  0xd9   : > { %6592 = vmatpush3.bf16.msra.mxu1 %v7519_v56 }
  0xda   : > { %6593 = vmatprep.subr.bf16.mxu1 %v7534_v57 }
  0xdd   : > { %6594 = vmatpush3.bf16.msra.mxu1 %v7535_v60 }
  0xde   : > { %6595 = vmatprep.subr.bf16.mxu1 %v7550_v61 }
  0xdf   : > { %4056 = vmatmul.mubr.bf16.gmra.mrb[92].mxu0 %v7478_v58  ;;  %4153 = vmatmul.mubr.bf16.gmra.mrb[92].mxu1 %v7479_v59 }
  0xe0   : > { %4063 = vmatprep.mubr.bf16.mxu0 %v7480_v62  ;;  %4160 = vmatprep.mubr.bf16.mxu1 %v7482_v63  ;;  %v7528_v62 = vld [vmem:[%s8016_s10 + $0x6ac] ss:$84 sps:$4 sm:$0xff]   ;;  %v7530_v63 = vld [vmem:[%s8016_s10 + $0x174] ss:$84 sps:$4 sm:$0xff]  }
  0xe1   : > { %6596 = vmatpush3.bf16.msra.mxu1 %v7551_v0 }
  0xe2   : > { %6597 = vmatprep.subr.bf16.mxu1 %v7566_v1 }
  0xe5   : > { %6598 = vmatpush3.bf16.msra.mxu1 %v7567_v2  ;;  %v7553_v2 = vld [vmem:[%s9875_s1 + $0x310] sm:$0xff]  }
  0xe6   : > { %6807 = vmatprep.subr.bf16.mxu1 %v7582_v3 }
  0xe7   : > { %4064 = vmatmul.mubr.bf16.gmra.mrb[96].mxu0 %v7484_v4  ;;  %4161 = vmatmul.mubr.bf16.gmra.mrb[96].mxu1 %v7485_v5  ;;  %v7568_v5 = vld [vmem:[%s9875_s1 + $0x358] sm:$0xff]  }
  0xe8   : > { %4071 = vmatprep.mubr.bf16.mxu0 %v7490_v6  ;;  %4168 = vmatprep.mubr.bf16.mxu1 %v7492_v7  ;;  %v7569_v6 = vld [vmem:[%s9875_s1 + $0x318] sm:$0xff]   ;;  %v7584_v7 = vld [vmem:[%s9875_s1 + $0x360] sm:$0xff]  }
  0xef   : > { %4072 = vmatmul.mubr.bf16.gmra.mrb[100].mxu0 %v7494_v8  ;;  %4169 = vmatmul.mubr.bf16.gmra.mrb[100].mxu1 %v7495_v9  ;;  %v7532_v8 = vld [vmem:[%s8016_s10 + $0x6a8] ss:$84 sps:$4 sm:$0xff]   ;;  %v7533_v9 = vld [vmem:[%s8016_s10 + $0x170] ss:$84 sps:$4 sm:$0xff]  }
  0xf0   : > { %4079 = vmatprep.mubr.bf16.mxu0 %v7496_v10  ;;  %4176 = vmatprep.mubr.bf16.mxu1 %v7498_v11 }
  0xf7   : > { %4080 = vmatmul.mubr.bf16.gmra.mrb[104].mxu0 %v7500_v12  ;;  %4177 = vmatmul.mubr.bf16.gmra.mrb[104].mxu1 %v7501_v13 }
  0xf8   : > { %4087 = vmatprep.mubr.bf16.mxu0 %v7506_v14  ;;  %4184 = vmatprep.mubr.bf16.mxu1 %v7508_v15 }
  0xfa   : > { %v6111_v18 = vpop.f32.mrb[0].mxu1  ;;  %v6039_v19 = vpop.f32.mrb[0].mxu0 }
  0xfb   : > { %v6112_v20 = vpop.f32.mrb[1].mxu1  ;;  %v6040_v21 = vpop.f32.mrb[1].mxu0 }
  0xfc   : > { %v8397_v22 = vadd.f32 %v6112_v20, %v6111_v18  ;;  %v6114_v23 = vpop.f32.mrb[2].mxu1  ;;  %v8399_v24 = vadd.f32 %v6040_v21, %v6039_v19  ;;  %v6042_v25 = vpop.f32.mrb[2].mxu0  ;;  %v7538_v18 = vld [vmem:[%s8016_s10 + $0x754] ss:$84 sps:$4 sm:$0xff]   ;;  %v7540_v19 = vld [vmem:[%s8016_s10 + $0x21c] ss:$84 sps:$4 sm:$0xff]  }
  0xfd   : > { %v6115_v28 = vpop.f32.mrb[3].mxu1  ;;  %v6043_v29 = vpop.f32.mrb[3].mxu0 }
  0xfe   : > { %v8403_v30 = vadd.f32 %v6115_v28, %v6114_v23  ;;  %v8405_v31 = vadd.f32 %v6043_v29, %v6042_v25  ;;  %v7585_v23 = vld [vmem:[%s9875_s1 + $0x320] sm:$0xff]   ;;  %v7600_v25 = vld [vmem:[%s9875_s1 + $0x368] sm:$0xff]   ;;  %v7616_v29 = vld [vmem:[%s9875_s1 + $0x370] sm:$0xff]  }
  0xff   : > { %4088 = vmatmul.mubr.bf16.gmra.mrb[108].mxu0 %v7510_v16  ;;  %4185 = vmatmul.mubr.bf16.gmra.mrb[108].mxu1 %v7511_v17  ;;  %v7601_v28 = vld [vmem:[%s9875_s1 + $0x328] sm:$0xff]  }
 0x100   : > { %4192 = vmatprep.mubr.bf16.mxu1 %v7512_v26  ;;  %4289 = vmatprep.mubr.bf16.mxu0 %v7516_v27 }
 0x102   : > { %v6117_v34 = vpop.f32.mrb[4].mxu1  ;;  %v6045_v35 = vpop.f32.mrb[4].mxu0 }
 0x103   : > { %v6118_v36 = vpop.f32.mrb[5].mxu1  ;;  %v6046_v37 = vpop.f32.mrb[5].mxu0 }
 0x104   : > { %v8409_v38 = vadd.f32 %v6118_v36, %v6117_v34  ;;  %v6120_v39 = vpop.f32.mrb[6].mxu1  ;;  %v8411_v40 = vadd.f32 %v6046_v37, %v6045_v35  ;;  %v6048_v41 = vpop.f32.mrb[6].mxu0  ;;  %v7543_v34 = vld [vmem:[%s8016_s10 + $0x218] ss:$84 sps:$4 sm:$0xff]  }
 0x105   : > { %v6121_v44 = vpop.f32.mrb[7].mxu1  ;;  %v6049_v45 = vpop.f32.mrb[7].mxu0 }
 0x106   : > { %v8421_v48 = vadd.f32 %v6121_v44, %v6120_v39  ;;  %v8423_v49 = vadd.f32 %v6049_v45, %v6048_v41 }
 0x107   : > { %4193 = vmatmul.mubr.bf16.gmra.mrb[112].mxu1 %v7517_v33  ;;  %4290 = vmatmul.mubr.bf16.vlgmr.msra.gmra.mrb[112].mxu0 %v7514_v32  ;;  %v8482_v32 = vld [vmem:[%s9876_s2] ss:$0 sm:$0xff]  ;;  %v7542_v33 = vld [vmem:[%s8016_s10 + $0x750] ss:$84 sps:$4 sm:$0xff]  }
 0x108   : > { %6696 = vmatpush3.bf16.msra.mxu0 %v7521_v42  ;;  %4200 = vmatprep.mubr.bf16.mxu1 %v7522_v43  ;;  %v3648_v41 = vadd.f32 %v8399_v24, %v8482_v32 }
 0x109   : > { %4297 = vmatprep.mubr.bf16.mxu0 %v7524_v46  ;;  %6697 = vmatprep.subr.bf16.mxu0 %v7536_v47  ;;  %v7544_v46 = vld [vmem:[%s8016_s10 + $0x7fc] ss:$84 sps:$4 sm:$0xff]   ;;  %v7546_v47 = vld [vmem:[%s8016_s10 + $0x2c4] ss:$84 sps:$4 sm:$0xff]  }
 0x10a   : > { %v6123_v54 = vpop.f32.mrb[8].mxu1  ;;  %v6051_v55 = vpop.f32.mrb[8].mxu0 }
 0x10b   : > { %v6124_v56 = vpop.f32.mrb[9].mxu1  ;;  %v6052_v57 = vpop.f32.mrb[9].mxu0 }
 0x10c   : > { %v8433_v58 = vadd.f32 %v6124_v56, %v6123_v54  ;;  %v6126_v59 = vpop.f32.mrb[10].mxu1  ;;  %v8435_v60 = vadd.f32 %v6052_v57, %v6051_v55  ;;  %v6054_v61 = vpop.f32.mrb[10].mxu0  ;;  %6698 = vmatpush3.bf16.msra.mxu0 %v7537_v50  ;;  %v7632_v56 = vld [vmem:[%s9875_s1 + $0x378] sm:$0xff]  }
 0x10d   : > { %v6127_v0 = vpop.f32.mrb[11].mxu1  ;;  %v6055_v1 = vpop.f32.mrb[11].mxu0  ;;  %6699 = vmatprep.subr.bf16.mxu0 %v7552_v51  ;;  %v7633_v57 = vld [vmem:[%s9875_s1 + $0x338] sm:$0xff]  }
 0x10e   : > { %v8442_v3 = vadd.f32 %v6127_v0, %v6126_v59  ;;  %v8444_v4 = vadd.f32 %v6055_v1, %v6054_v61  ;;  %v7548_v61 = vld [vmem:[%s8016_s10 + $0x7f8] ss:$84 sps:$4 sm:$0xff]  }
 0x10f   : > { %4201 = vmatmul.mubr.bf16.gmra.mrb[116].mxu1 %v7526_v52  ;;  %4298 = vmatmul.mubr.bf16.gmra.mrb[116].mxu0 %v7527_v53  ;;  %v7617_v52 = vld [vmem:[%s9875_s1 + $0x330] sm:$0xff]   ;;  %v3651_v53 = vadd.f32 %v8405_v31, %v8482_v32  ;;  %v7648_v31 = vld [vmem:[%s9875_s1 + $0x440] sm:$0xff]  }
 0x110   : > { %4208 = vmatprep.mubr.bf16.mxu1 %v7528_v62  ;;  %4305 = vmatprep.mubr.bf16.mxu0 %v7530_v63  ;;  %v7549_v62 = vld [vmem:[%s8016_s10 + $0x2c0] ss:$84 sps:$4 sm:$0xff]  }
 0x111   : > { %6700 = vmatpush3.bf16.msra.mxu0 %v7553_v2 }
 0x112   : > { %v6129_v10 = vpop.f32.mrb[12].mxu1  ;;  %v6057_v11 = vpop.f32.mrb[12].mxu0  ;;  %6701 = vmatprep.subr.bf16.mxu0 %v7568_v5  ;;  %v3656_v5 = vadd.f32 %v8411_v40, %v8482_v32 }
 0x113   : > { %v6130_v12 = vpop.f32.mrb[13].mxu1  ;;  %v6058_v13 = vpop.f32.mrb[13].mxu0 }
 0x114   : > { %v8457_v14 = vadd.f32 %v6130_v12, %v6129_v10  ;;  %v6132_v15 = vpop.f32.mrb[14].mxu1  ;;  %v8459_v16 = vadd.f32 %v6058_v13, %v6057_v11  ;;  %v6060_v17 = vpop.f32.mrb[14].mxu0  ;;  %v7554_v10 = vld [vmem:[%s8016_s10 + $0x8a4] ss:$84 sps:$4 sm:$0xff]   ;;  %v7556_v11 = vld [vmem:[%s8016_s10 + $0x36c] ss:$84 sps:$4 sm:$0xff]  }
 0x115   : > { %v6133_v20 = vpop.f32.mrb[15].mxu1  ;;  %v6061_v21 = vpop.f32.mrb[15].mxu0  ;;  %6702 = vmatpush3.bf16.msra.mxu0 %v7569_v6 }
 0x116   : > { %v8469_v26 = vadd.f32 %v6133_v20, %v6132_v15  ;;  %v8471_v27 = vadd.f32 %v6061_v21, %v6060_v17  ;;  %6703 = vmatprep.subr.bf16.mxu0 %v7584_v7  ;;  %v3659_v15 = vadd.f32 %v8423_v49, %v8482_v32  ;;  %v7558_v20 = vld [vmem:[%s8016_s10 + $0x8a0] ss:$84 sps:$4 sm:$0xff]   ;;  %v7559_v21 = vld [vmem:[%s8016_s10 + $0x368] ss:$84 sps:$4 sm:$0xff]  }
 0x117   : > { %4209 = vmatmul.mubr.bf16.gmra.mrb[120].mxu1 %v7532_v8  ;;  %4306 = vmatmul.mubr.bf16.gmra.mrb[120].mxu0 %v7533_v9 }
 0x118   : > { %4216 = vmatprep.mubr.bf16.mxu1 %v7538_v18  ;;  %4313 = vmatprep.mubr.bf16.mxu0 %v7540_v19 }
 0x119   : > { %6704 = vmatpush3.bf16.msra.mxu0 %v7585_v23 }
 0x11a   : > { %v6151_v35 = vpop.f32.mrb[16].mxu1  ;;  %v6063_v36 = vpop.f32.mrb[16].mxu0  ;;  %6705 = vmatprep.subr.bf16.mxu0 %v7600_v25 }
 0x11b   : > { %v6152_v37 = vpop.f32.mrb[17].mxu1  ;;  %v6064_v39 = vpop.f32.mrb[17].mxu0 }
 0x11c   : > { %v6153_v42 = vadd.f32 %v6152_v37, %v6151_v35  ;;  %v6154_v43 = vpop.f32.mrb[18].mxu1  ;;  %v8488_v44 = vadd.f32 %v6064_v39, %v6063_v36  ;;  %v6066_v45 = vpop.f32.mrb[18].mxu0  ;;  %v7560_v37 = vld [vmem:[%s8016_s10 + $0x94c] ss:$84 sps:$4 sm:$0xff]   ;;  %v7562_v39 = vld [vmem:[%s8016_s10 + $0x414] ss:$84 sps:$4 sm:$0xff]  }
 0x11d   : > { %v6155_v50 = vpop.f32.mrb[19].mxu1  ;;  %v6067_v51 = vpop.f32.mrb[19].mxu0  ;;  %6706 = vmatpush3.bf16.msra.mxu0 %v7601_v28 }
 0x11e   : > { %v8497_v24 = vadd.f32 %v6153_v42, %v3648_v41  ;;  %v6156_v54 = vadd.f32 %v6155_v50, %v6154_v43  ;;  %v8499_v55 = vadd.f32 %v6067_v51, %v6066_v45  ;;  %6707 = vmatprep.subr.bf16.mxu0 %v7616_v29  ;;  %v3664_v29 = vadd.f32 %v8435_v60, %v8482_v32  ;;  %v7564_v50 = vld [vmem:[%s8016_s10 + $0x948] ss:$84 sps:$4 sm:$0xff]   ;;  %v7565_v51 = vld [vmem:[%s8016_s10 + $0x410] ss:$84 sps:$4 sm:$0xff]  }
 0x11f   : > { %4217 = vmatmul.mubr.bf16.gmra.mrb[124].mxu1 %v7542_v33  ;;  %4314 = vmatmul.mubr.bf16.gmra.mrb[124].mxu0 %v7543_v34  ;;  %v3667_v43 = vadd.f32 %v8444_v4, %v8482_v32  ;;  %v3672_v4 = vadd.f32 %v8459_v16, %v8482_v32 }
 0x120   : > { %v8507_v59 = vadd.f32 %v6156_v54, %v3651_v53  ;;  %4224 = vmatprep.mubr.bf16.mxu1 %v7544_v46  ;;  %4321 = vmatprep.mubr.bf16.mxu0 %v7546_v47 }
 0x121   : > { %6708 = vmatpush3.bf16.msra.mxu0 %v7617_v52 }
 0x122   : > { %v6157_v63 = vpop.f32.mrb[20].mxu1  ;;  %v6069_v0 = vpop.f32.mrb[20].mxu0  ;;  %6709 = vmatprep.subr.bf16.mxu0 %v7632_v56 }
 0x123   : > { %v6158_v1 = vpop.f32.mrb[21].mxu1  ;;  %v6070_v2 = vpop.f32.mrb[21].mxu0 }
 0x124   : > { %v6159_v6 = vadd.f32 %v6158_v1, %v6157_v63  ;;  %v6160_v7 = vpop.f32.mrb[22].mxu1  ;;  %v8516_v8 = vadd.f32 %v6070_v2, %v6069_v0  ;;  %v6072_v9 = vpop.f32.mrb[22].mxu0  ;;  %v7570_v63 = vld [vmem:[%s8016_s10 + $0x9f4] ss:$84 sps:$4 sm:$0xff]   ;;  %v7572_v0 = vld [vmem:[%s8016_s10 + $0x4bc] ss:$84 sps:$4 sm:$0xff]  }
 0x125   : > { %v6161_v12 = vpop.f32.mrb[23].mxu1  ;;  %v6073_v13 = vpop.f32.mrb[23].mxu0  ;;  %6710 = vmatpush3.bf16.msra.mxu0 %v7633_v57 }
 0x126   : > { %v8522_v17 = vadd.f32 %v6159_v6, %v3656_v5  ;;  %v6162_v18 = vadd.f32 %v6161_v12, %v6160_v7  ;;  %v8524_v19 = vadd.f32 %v6073_v13, %v6072_v9  ;;  %6919 = vmatprep.subr.bf16.mxu0 %v7648_v31  ;;  %v3675_v5 = vadd.f32 %v8471_v27, %v8482_v32 }
 0x127   : > { %4225 = vmatmul.mubr.bf16.gmra.mrb[128].mxu1 %v7548_v61  ;;  %4322 = vmatmul.mubr.bf16.gmra.mrb[128].mxu0 %v7549_v62  ;;  %v3680_v27 = vadd.f32 %v8488_v44, %v8482_v32 }
 0x128   : > { %v8526_v40 = vadd.f32 %v6162_v18, %v3659_v15  ;;  %4232 = vmatprep.mubr.bf16.mxu1 %v7554_v10  ;;  %4329 = vmatprep.mubr.bf16.mxu0 %v7556_v11  ;;  %v7574_v10 = vld [vmem:[%s8016_s10 + $0x9f0] ss:$84 sps:$4 sm:$0xff]   ;;  %v7575_v11 = vld [vmem:[%s8016_s10 + $0x4b8] ss:$84 sps:$4 sm:$0xff]  }
 0x12a   : > { %v6163_v23 = vpop.f32.mrb[24].mxu1  ;;  %v6075_v25 = vpop.f32.mrb[24].mxu0 }
 0x12b   : > { %v6164_v28 = vpop.f32.mrb[25].mxu1  ;;  %v6076_v49 = vpop.f32.mrb[25].mxu0 }
 0x12c   : > { %v6165_v33 = vadd.f32 %v6164_v28, %v6163_v23  ;;  %v6166_v34 = vpop.f32.mrb[26].mxu1  ;;  %v8532_v35 = vadd.f32 %v6076_v49, %v6075_v25  ;;  %v6078_v36 = vpop.f32.mrb[26].mxu0  ;;  %v7576_v28 = vld [vmem:[%s8016_s10 + $0x564] ss:$84 sps:$4 sm:$0xff]   ;;  %v7580_v49 = vld [vmem:[%s8016_s10 + $0x2c] ss:$84 sps:$4 sm:$0xff]  }
 0x12d   : > { %v6167_v41 = vpop.f32.mrb[27].mxu1  ;;  %v6079_v42 = vpop.f32.mrb[27].mxu0 }
 0x12e   : > { %v8538_v45 = vadd.f32 %v6165_v33, %v3664_v29  ;;  %v6168_v46 = vadd.f32 %v6167_v41, %v6166_v34  ;;  %v8540_v47 = vadd.f32 %v6079_v42, %v6078_v36  ;;  %v3683_v34 = vadd.f32 %v8499_v55, %v8482_v32  ;;  %v7578_v41 = vld [vmem:[%s8016_s10 + $0x28] ss:$84 sps:$4 sm:$0xff]   ;;  %v7581_v42 = vld [vmem:[%s8016_s10 + $0x560] ss:$84 sps:$4 sm:$0xff]  }
 0x12f   : > { %4233 = vmatmul.mubr.bf16.gmra.mrb[132].mxu1 %v7558_v20  ;;  %4330 = vmatmul.mubr.bf16.gmra.mrb[132].mxu0 %v7559_v21  ;;  %v3688_v55 = vadd.f32 %v8516_v8, %v8482_v32  ;;  %v3691_v8 = vadd.f32 %v8524_v19, %v8482_v32  ;;  %v7614_v19 = vld [vmem:[%s9875_s1 + $0x3d0] sm:$0xff]  }
 0x130   : > { %v8542_v60 = vadd.f32 %v6168_v46, %v3667_v43  ;;  %4240 = vmatprep.mubr.bf16.mxu1 %v7560_v37  ;;  %4337 = vmatprep.mubr.bf16.mxu0 %v7562_v39 }
 0x132   : > { %v6169_v52 = vpop.f32.mrb[28].mxu1  ;;  %v6081_v53 = vpop.f32.mrb[28].mxu0 }
 0x133   : > { %v6170_v54 = vpop.f32.mrb[29].mxu1  ;;  %v6082_v56 = vpop.f32.mrb[29].mxu0 }
 0x134   : > { %v6171_v57 = vadd.f32 %v6170_v54, %v6169_v52  ;;  %v6172_v31 = vpop.f32.mrb[30].mxu1  ;;  %v8548_v61 = vadd.f32 %v6082_v56, %v6081_v53  ;;  %v6084_v62 = vpop.f32.mrb[30].mxu0 }
 0x135   : > { %v6173_v1 = vpop.f32.mrb[31].mxu1  ;;  %v6085_v2 = vpop.f32.mrb[31].mxu0 }
 0x136   : > { %v8554_v6 = vadd.f32 %v6171_v57, %v3672_v4  ;;  %v6174_v7 = vadd.f32 %v6173_v1, %v6172_v31  ;;  %v8556_v9 = vadd.f32 %v6085_v2, %v6084_v62  ;;  %v7583_v4 = vld [vmem:[%s9875_s1 + $0x380] sm:$0xff]  }
 0x137   : > { %4241 = vmatmul.mubr.bf16.gmra.mrb[136].mxu1 %v7564_v50  ;;  %4338 = vmatmul.mubr.bf16.gmra.mrb[136].mxu0 %v7565_v51  ;;  %v7586_v57 = vld [vmem:[%s8016_s10 + $0x60c] ss:$84 sps:$4 sm:$0xff]  }
 0x138   : > { %v8558_v16 = vadd.f32 %v6174_v7, %v3675_v5  ;;  %4248 = vmatprep.mubr.bf16.mxu1 %v7570_v63  ;;  %4345 = vmatprep.mubr.bf16.mxu0 %v7572_v0  ;;  %v7588_v63 = vld [vmem:[%s8016_s10 + $0xd4] ss:$84 sps:$4 sm:$0xff]  }
 0x139   : > { %v7598_v0 = vld [vmem:[%s9875_s1 + $0x3c8] sm:$0xff]  }
 0x13a   : > { %v6175_v12 = vpop.f32.mrb[32].mxu1  ;;  %v6087_v13 = vpop.f32.mrb[32].mxu0 }
 0x13b   : > { %v6176_v15 = vpop.f32.mrb[33].mxu1  ;;  %v6088_v18 = vpop.f32.mrb[33].mxu0 }
 0x13c   : > { %v6177_v20 = vadd.f32 %v6176_v15, %v6175_v12  ;;  %v6178_v21 = vpop.f32.mrb[34].mxu1  ;;  %v8564_v23 = vadd.f32 %v6088_v18, %v6087_v13  ;;  %v6090_v25 = vpop.f32.mrb[34].mxu0  ;;  %v7591_v12 = vld [vmem:[%s8016_s10 + $0xd0] ss:$84 sps:$4 sm:$0xff]  }
 0x13d   : > { %v6179_v29 = vpop.f32.mrb[35].mxu1  ;;  %v6091_v33 = vpop.f32.mrb[35].mxu0 }
 0x13e   : > { %v8570_v36 = vadd.f32 %v6177_v20, %v3680_v27  ;;  %v6180_v37 = vadd.f32 %v6179_v29, %v6178_v21  ;;  %v8572_v39 = vadd.f32 %v6091_v33, %v6090_v25  ;;  %v3696_v20 = vadd.f32 %v8532_v35, %v8482_v32  ;;  %v7592_v29 = vld [vmem:[%s8016_s10 + $0x6b4] ss:$84 sps:$4 sm:$0xff]   ;;  %v7594_v33 = vld [vmem:[%s8016_s10 + $0x17c] ss:$84 sps:$4 sm:$0xff]  }
 0x13f   : > { %4249 = vmatmul.mubr.bf16.gmra.mrb[140].mxu1 %v7574_v10  ;;  %4346 = vmatmul.mubr.bf16.gmra.mrb[140].mxu0 %v7575_v11  ;;  %v7599_v10 = vld [vmem:[%s9875_s1 + $0x388] sm:$0xff]   ;;  %v3699_v35 = vadd.f32 %v8540_v47, %v8482_v32  ;;  %v7646_v47 = vld [vmem:[%s9875_s1 + $0x3e0] sm:$0xff]  }
 0x140   : > { %v8574_v44 = vadd.f32 %v6180_v37, %v3683_v34  ;;  %4353 = vmatprep.mubr.bf16.mxu0 %v7576_v28  ;;  %4450 = vmatprep.mubr.bf16.mxu1 %v7580_v49  ;;  %v7590_v11 = vld [vmem:[%s8016_s10 + $0x608] ss:$84 sps:$4 sm:$0xff]  }
 0x142   : > { %v6181_v43 = vpop.f32.mrb[36].mxu1  ;;  %v6093_v46 = vpop.f32.mrb[36].mxu0 }
 0x143   : > { %v6182_v50 = vpop.f32.mrb[37].mxu1  ;;  %v6094_v51 = vpop.f32.mrb[37].mxu0 }
 0x144   : > { %v6183_v52 = vadd.f32 %v6182_v50, %v6181_v43  ;;  %v6184_v53 = vpop.f32.mrb[38].mxu1  ;;  %v8580_v54 = vadd.f32 %v6094_v51, %v6093_v46  ;;  %v6096_v56 = vpop.f32.mrb[38].mxu0  ;;  %v7630_v50 = vld [vmem:[%s9875_s1 + $0x3d8] sm:$0xff]  }
 0x145   : > { %v6185_v31 = vpop.f32.mrb[39].mxu1  ;;  %v6097_v62 = vpop.f32.mrb[39].mxu0  ;;  %v7631_v51 = vld [vmem:[%s9875_s1 + $0x398] sm:$0xff]  }
 0x146   : > { %v8592_v1 = vadd.f32 %v6183_v52, %v3688_v55  ;;  %v6186_v2 = vadd.f32 %v6185_v31, %v6184_v53  ;;  %v8594_v5 = vadd.f32 %v6097_v62, %v6096_v56  ;;  %v7596_v52 = vld [vmem:[%s8016_s10 + $0x6b0] ss:$84 sps:$4 sm:$0xff]   ;;  %v7597_v53 = vld [vmem:[%s8016_s10 + $0x178] ss:$84 sps:$4 sm:$0xff]   ;;  %v3704_v62 = vadd.f32 %v8548_v61, %v8482_v32 }
 0x147   : > { %4354 = vmatmul.mubr.bf16.gmra.mrb[144].mxu0 %v7581_v42  ;;  %4451 = vmatmul.mubr.bf16.vlgmr.msra.gmra.mrb[144].mxu1 %v7578_v41  ;;  %v7615_v41 = vld [vmem:[%s9875_s1 + $0x390] sm:$0xff]   ;;  %v7662_v61 = vld [vmem:[%s9875_s1 + $0x3e8] sm:$0xff]  }
 0x148   : > { %v8596_v7 = vadd.f32 %v6186_v2, %v3691_v8  ;;  %6808 = vmatpush3.bf16.msra.mxu1 %v7583_v4  ;;  %4361 = vmatprep.mubr.bf16.mxu0 %v7586_v57 }
 0x149   : > { %4458 = vmatprep.mubr.bf16.mxu1 %v7588_v63  ;;  %6809 = vmatprep.subr.bf16.mxu1 %v7598_v0 }
 0x14a   : > { %v6187_v13 = vpop.f32.mrb[40].mxu1  ;;  %v6099_v15 = vpop.f32.mrb[40].mxu0 }
 0x14b   : > { %v6188_v18 = vpop.f32.mrb[41].mxu1  ;;  %v6100_v27 = vpop.f32.mrb[41].mxu0 }
 0x14c   : > { %v6189_v21 = vadd.f32 %v6188_v18, %v6187_v13  ;;  %v6190_v25 = vpop.f32.mrb[42].mxu1  ;;  %v8608_v28 = vadd.f32 %v6100_v27, %v6099_v15  ;;  %v6102_v49 = vpop.f32.mrb[42].mxu0  ;;  %6810 = vmatpush3.bf16.msra.mxu1 %v7599_v10  ;;  %v7602_v10 = vld [vmem:[%s8016_s10 + $0x75c] ss:$84 sps:$4 sm:$0xff]   ;;  %v7647_v13 = vld [vmem:[%s9875_s1 + $0x3a0] sm:$0xff]   ;;  %v3707_v15 = vadd.f32 %v8556_v9, %v8482_v32 }
 0x14d   : > { %v6191_v34 = vpop.f32.mrb[43].mxu1  ;;  %v6103_v37 = vpop.f32.mrb[43].mxu0  ;;  %6811 = vmatprep.subr.bf16.mxu1 %v7614_v19  ;;  %v7604_v19 = vld [vmem:[%s8016_s10 + $0x224] ss:$84 sps:$4 sm:$0xff]   ;;  %v7678_v9 = vld [vmem:[%s9875_s1 + $0x3f0] sm:$0xff]  }
 0x14e   : > { %v8617_v42 = vadd.f32 %v6189_v21, %v3696_v20  ;;  %v6192_v43 = vadd.f32 %v6191_v34, %v6190_v25  ;;  %v8619_v46 = vadd.f32 %v6103_v37, %v6102_v49  ;;  %v7663_v25 = vld [vmem:[%s9875_s1 + $0x3a8] sm:$0xff]  }
 0x14f   : > { %4362 = vmatmul.mubr.bf16.gmra.mrb[148].mxu0 %v7590_v11  ;;  %4459 = vmatmul.mubr.bf16.gmra.mrb[148].mxu1 %v7591_v12  ;;  %v7606_v49 = vld [vmem:[%s8016_s10 + $0x758] ss:$84 sps:$4 sm:$0xff]  }
 0x150   : > { %v8627_v55 = vadd.f32 %v6192_v43, %v3699_v35  ;;  %4369 = vmatprep.mubr.bf16.mxu0 %v7592_v29  ;;  %4466 = vmatprep.mubr.bf16.mxu1 %v7594_v33  ;;  %v7607_v29 = vld [vmem:[%s8016_s10 + $0x220] ss:$84 sps:$4 sm:$0xff]   ;;  %v3712_v35 = vadd.f32 %v8564_v23, %v8482_v32 }
 0x151   : > { %6812 = vmatpush3.bf16.msra.mxu1 %v7615_v41 }
 0x152   : > { %v6193_v56 = vpop.f32.mrb[44].mxu1  ;;  %v6105_v4 = vpop.f32.mrb[44].mxu0  ;;  %6813 = vmatprep.subr.bf16.mxu1 %v7630_v50 }
 0x153   : > { %v6194_v57 = vpop.f32.mrb[45].mxu1  ;;  %v6106_v31 = vpop.f32.mrb[45].mxu0 }
 0x154   : > { %v6195_v63 = vadd.f32 %v6194_v57, %v6193_v56  ;;  %v6196_v0 = vpop.f32.mrb[46].mxu1  ;;  %v8636_v8 = vadd.f32 %v6106_v31, %v6105_v4  ;;  %v6108_v2 = vpop.f32.mrb[46].mxu0  ;;  %v3715_v56 = vadd.f32 %v8572_v39, %v8482_v32  ;;  %v7679_v31 = vld [vmem:[%s9875_s1 + $0x3b0] sm:$0xff]   ;;  %v7694_v39 = vld [vmem:[%s9875_s1 + $0x3f8] sm:$0xff]  }
 0x155   : > { %v6197_v11 = vpop.f32.mrb[47].mxu1  ;;  %v6109_v12 = vpop.f32.mrb[47].mxu0  ;;  %6814 = vmatpush3.bf16.msra.mxu1 %v7631_v51 }
 0x156   : > { %v8648_v18 = vadd.f32 %v6195_v63, %v3704_v62  ;;  %v6198_v27 = vadd.f32 %v6197_v11, %v6196_v0  ;;  %v8650_v20 = vadd.f32 %v6109_v12, %v6108_v2  ;;  %6815 = vmatprep.subr.bf16.mxu1 %v7646_v47  ;;  %v7695_v2 = vld [vmem:[%s9875_s1 + $0x3b8] sm:$0xff]   ;;  %v7612_v11 = vld [vmem:[%s8016_s10 + $0x800] ss:$84 sps:$4 sm:$0xff]  }
 0x157   : > { %4370 = vmatmul.mubr.bf16.gmra.mrb[152].mxu0 %v7596_v52  ;;  %4467 = vmatmul.mubr.bf16.gmra.mrb[152].mxu1 %v7597_v53  ;;  %v7608_v52 = vld [vmem:[%s8016_s10 + $0x804] ss:$84 sps:$4 sm:$0xff]   ;;  %v7610_v53 = vld [vmem:[%s8016_s10 + $0x2cc] ss:$84 sps:$4 sm:$0xff]   ;;  %v7613_v12 = vld [vmem:[%s8016_s10 + $0x2c8] ss:$84 sps:$4 sm:$0xff]  }
 0x158   : > { %v8652_v21 = vadd.f32 %v6198_v27, %v3707_v15  ;;  %4377 = vmatprep.mubr.bf16.mxu0 %v7602_v10  ;;  %4474 = vmatprep.mubr.bf16.mxu1 %v7604_v19 }
 0x159   : > { %6816 = vmatpush3.bf16.msra.mxu1 %v7647_v13 }
 0x15a   : > { %v6199_v33 = vpop.f32.mrb[48].mxu1  ;;  %v6263_v34 = vpop.f32.mrb[48].mxu0  ;;  %6817 = vmatprep.subr.bf16.mxu1 %v7662_v61 }
 0x15b   : > { %v6200_v37 = vpop.f32.mrb[49].mxu1  ;;  %v6264_v41 = vpop.f32.mrb[49].mxu0 }
 0x15c   : > { %v6201_v43 = vadd.f32 %v6200_v37, %v6199_v33  ;;  %v6265_v50 = vadd.f32 %v6264_v41, %v6263_v34  ;;  %v6202_v51 = vpop.f32.mrb[50].mxu1  ;;  %v6266_v47 = vpop.f32.mrb[50].mxu0  ;;  %v7618_v33 = vld [vmem:[%s8016_s10 + $0x8ac] ss:$84 sps:$4 sm:$0xff]   ;;  %v7620_v34 = vld [vmem:[%s8016_s10 + $0x374] ss:$84 sps:$4 sm:$0xff]   ;;  %v3723_v37 = vadd.f32 %v8594_v5, %v8482_v32 }
 0x15d   : > { %v6203_v4 = vpop.f32.mrb[51].mxu1  ;;  %v6267_v57 = vpop.f32.mrb[51].mxu0  ;;  %6818 = vmatpush3.bf16.msra.mxu1 %v7663_v25  ;;  %v3720_v25 = vadd.f32 %v8580_v54, %v8482_v32 }
 0x15e   : > { %v6204_v62 = vadd.f32 %v6203_v4, %v6202_v51  ;;  %v6268_v23 = vadd.f32 %v6267_v57, %v6266_v47  ;;  %v8671_v63 = vadd.f32 %v6201_v43, %v3712_v35  ;;  %v8674_v0 = vadd.f32 %v6265_v50, %v8497_v24  ;;  %6819 = vmatprep.subr.bf16.mxu1 %v7678_v9  ;;  %v7710_v24 = vld [vmem:[%s9875_s1 + $0x4c0] sm:$0xff]  }
 0x15f   : > { %4378 = vmatmul.mubr.bf16.gmra.mrb[156].mxu0 %v7606_v49  ;;  %4475 = vmatmul.mubr.bf16.gmra.mrb[156].mxu1 %v7607_v29 }
 0x160   : > { %4385 = vmatprep.mubr.bf16.mxu0 %v7608_v52  ;;  %4482 = vmatprep.mubr.bf16.mxu1 %v7610_v53  ;;  %v8682_v10 = vadd.f32 %v6204_v62, %v3715_v56  ;;  %v8685_v19 = vadd.f32 %v6268_v23, %v8507_v59  ;;  %v7622_v52 = vld [vmem:[%s8016_s10 + $0x8a8] ss:$84 sps:$4 sm:$0xff]   ;;  %v7623_v53 = vld [vmem:[%s8016_s10 + $0x370] ss:$84 sps:$4 sm:$0xff]  }
 0x161   : > { %6820 = vmatpush3.bf16.msra.mxu1 %v7679_v31 }
 0x162   : > { %v6205_v13 = vpop.f32.mrb[52].mxu1  ;;  %v6269_v61 = vpop.f32.mrb[52].mxu0  ;;  %6821 = vmatprep.subr.bf16.mxu1 %v7694_v39 }
 0x163   : > { %v6206_v15 = vpop.f32.mrb[53].mxu1  ;;  %v6270_v27 = vpop.f32.mrb[53].mxu0 }
 0x164   : > { %v6207_v9 = vadd.f32 %v6206_v15, %v6205_v13  ;;  %v6271_v49 = vadd.f32 %v6270_v27, %v6269_v61  ;;  %v6208_v59 = vpop.f32.mrb[54].mxu1  ;;  %v6272_v29 = vpop.f32.mrb[54].mxu0 }
 0x165   : > { %v6209_v41 = vpop.f32.mrb[55].mxu1  ;;  %v6273_v35 = vpop.f32.mrb[55].mxu0  ;;  %6822 = vmatpush3.bf16.msra.mxu1 %v7695_v2 }
 0x166   : > { %v6210_v43 = vadd.f32 %v6209_v41, %v6208_v59  ;;  %v6274_v50 = vadd.f32 %v6273_v35, %v6272_v29  ;;  %v8698_v51 = vadd.f32 %v6207_v9, %v3720_v25  ;;  %v8701_v54 = vadd.f32 %v6271_v49, %v8522_v17  ;;  %7031 = vmatprep.subr.bf16.mxu1 %v7710_v24  ;;  %v7624_v24 = vld [vmem:[%s8016_s10 + $0x954] ss:$84 sps:$4 sm:$0xff]   ;;  %v7629_v49 = vld [vmem:[%s8016_s10 + $0x418] ss:$84 sps:$4 sm:$0xff]  }
 0x167   : > { %4386 = vmatmul.mubr.bf16.gmra.mrb[160].mxu0 %v7612_v11  ;;  %4483 = vmatmul.mubr.bf16.gmra.mrb[160].mxu1 %v7613_v12  ;;  %v3728_v17 = vadd.f32 %v8608_v28, %v8482_v32  ;;  %v7626_v11 = vld [vmem:[%s8016_s10 + $0x41c] ss:$84 sps:$4 sm:$0xff]  }
 0x168   : > { %4393 = vmatprep.mubr.bf16.mxu0 %v7618_v33  ;;  %4490 = vmatprep.mubr.bf16.mxu1 %v7620_v34  ;;  %v8703_v47 = vadd.f32 %v6210_v43, %v3723_v37  ;;  %v8706_v5 = vadd.f32 %v6274_v50, %v8526_v40  ;;  %v3731_v40 = vadd.f32 %v8619_v46, %v8482_v32  ;;  %v7628_v46 = vld [vmem:[%s8016_s10 + $0x950] ss:$84 sps:$4 sm:$0xff]  }
 0x169   : > { %v7634_v50 = vld [vmem:[%s8016_s10 + $0x9fc] ss:$84 sps:$4 sm:$0xff]  }
 0x16a   : > { %v6211_v56 = vpop.f32.mrb[56].mxu1  ;;  %v6275_v4 = vpop.f32.mrb[56].mxu0 }
 0x16b   : > { %v6212_v57 = vpop.f32.mrb[57].mxu1  ;;  %v6276_v31 = vpop.f32.mrb[57].mxu0 }
 0x16c   : > { %v6213_v62 = vadd.f32 %v6212_v57, %v6211_v56  ;;  %v6277_v23 = vadd.f32 %v6276_v31, %v6275_v4  ;;  %v6214_v39 = vpop.f32.mrb[58].mxu1  ;;  %v6278_v2 = vpop.f32.mrb[58].mxu0 }
 0x16d   : > { %v6215_v12 = vpop.f32.mrb[59].mxu1  ;;  %v6279_v13 = vpop.f32.mrb[59].mxu0 }
 0x16e   : > { %v6216_v61 = vadd.f32 %v6215_v12, %v6214_v39  ;;  %v6280_v15 = vadd.f32 %v6279_v13, %v6278_v2  ;;  %v8716_v27 = vadd.f32 %v6213_v62, %v3728_v17  ;;  %v8719_v25 = vadd.f32 %v6277_v23, %v8538_v45  ;;  %v7638_v2 = vld [vmem:[%s8016_s10 + $0x9f8] ss:$84 sps:$4 sm:$0xff]  }
 0x16f   : > { %4394 = vmatmul.mubr.bf16.gmra.mrb[164].mxu0 %v7622_v52  ;;  %4491 = vmatmul.mubr.bf16.gmra.mrb[164].mxu1 %v7623_v53  ;;  %v3736_v45 = vadd.f32 %v8636_v8, %v8482_v32  ;;  %v7636_v52 = vld [vmem:[%s8016_s10 + $0x4c4] ss:$84 sps:$4 sm:$0xff]   ;;  %v3739_v53 = vadd.f32 %v8650_v20, %v8482_v32 }
 0x170   : > { %4401 = vmatprep.mubr.bf16.mxu0 %v7624_v24  ;;  %4498 = vmatprep.mubr.bf16.mxu1 %v7626_v11  ;;  %v8721_v28 = vadd.f32 %v6216_v61, %v3731_v40  ;;  %v8724_v9 = vadd.f32 %v6280_v15, %v8542_v60  ;;  %v7639_v24 = vld [vmem:[%s8016_s10 + $0x4c0] ss:$84 sps:$4 sm:$0xff]  }
 0x171   : > { %v7644_v15 = vld [vmem:[%s8016_s10 + $0x34] ss:$84 sps:$4 sm:$0xff]  }
 0x172   : > { %v6217_v59 = vpop.f32.mrb[60].mxu1  ;;  %v6281_v29 = vpop.f32.mrb[60].mxu0 }
 0x173   : > { %v6218_v33 = vpop.f32.mrb[61].mxu1  ;;  %v6282_v34 = vpop.f32.mrb[61].mxu0 }
 0x174   : > { %v6219_v37 = vadd.f32 %v6218_v33, %v6217_v59  ;;  %v6283_v41 = vadd.f32 %v6282_v34, %v6281_v29  ;;  %v6220_v35 = vpop.f32.mrb[62].mxu1  ;;  %v6284_v43 = vpop.f32.mrb[62].mxu0 }
 0x175   : > { %v6221_v60 = vpop.f32.mrb[63].mxu1  ;;  %v6285_v56 = vpop.f32.mrb[63].mxu0 }
 0x176   : > { %v6222_v4 = vadd.f32 %v6221_v60, %v6220_v35  ;;  %v6286_v57 = vadd.f32 %v6285_v56, %v6284_v43  ;;  %v8734_v31 = vadd.f32 %v6219_v37, %v3736_v45  ;;  %v8737_v17 = vadd.f32 %v6283_v41, %v8554_v6  ;;  %v8749_v6 = vld [vmem:[%s9876_s2] ss:$0 sm:$0xff] }
 0x177   : > { %4402 = vmatmul.mubr.bf16.gmra.mrb[168].mxu0 %v7628_v46  ;;  %4499 = vmatmul.mubr.bf16.gmra.mrb[168].mxu1 %v7629_v49  ;;  %v3744_v11 = vadd.f32 %v8749_v6, %v8397_v22  ;;  %v3747_v46 = vadd.f32 %v8749_v6, %v8403_v30 }
 0x178   : > { %4409 = vmatprep.mubr.bf16.mxu0 %v7634_v50  ;;  %4506 = vmatprep.mubr.bf16.mxu1 %v7636_v52  ;;  %v8739_v8 = vadd.f32 %v6222_v4, %v3739_v53  ;;  %v8742_v32 = vadd.f32 %v6286_v57, %v8558_v16  ;;  %v7640_v16 = vld [vmem:[%s8016_s10 + $0x56c] ss:$84 sps:$4 sm:$0xff]   ;;  %v7642_v50 = vld [vmem:[%s8016_s10 + $0x30] ss:$84 sps:$4 sm:$0xff]   ;;  %v7645_v52 = vld [vmem:[%s8016_s10 + $0x568] ss:$84 sps:$4 sm:$0xff]  }
 0x179   : > { %v7649_v57 = vld [vmem:[%s9875_s1 + $0x400] sm:$0xff]  }
 0x17a   : > { %v6223_v20 = vpop.f32.mrb[64].mxu1  ;;  %v6287_v62 = vpop.f32.mrb[64].mxu0 }
 0x17b   : > { %v6224_v23 = vpop.f32.mrb[65].mxu1  ;;  %v6288_v39 = vpop.f32.mrb[65].mxu0 }
 0x17c   : > { %v6225_v40 = vadd.f32 %v6224_v23, %v6223_v20  ;;  %v6289_v12 = vadd.f32 %v6288_v39, %v6287_v62  ;;  %v6226_v13 = vpop.f32.mrb[66].mxu1  ;;  %v6290_v61 = vpop.f32.mrb[66].mxu0  ;;  %v3755_v20 = vadd.f32 %v8749_v6, %v8421_v48  ;;  %v7652_v39 = vld [vmem:[%s8016_s10 + $0xdc] ss:$84 sps:$4 sm:$0xff]   ;;  %v7665_v48 = vld [vmem:[%s9875_s1 + $0x408] sm:$0xff]  }
 0x17d   : > { %v6227_v49 = vpop.f32.mrb[67].mxu1  ;;  %v6291_v59 = vpop.f32.mrb[67].mxu0 }
 0x17e   : > { %v6228_v29 = vadd.f32 %v6227_v49, %v6226_v13  ;;  %v6292_v33 = vadd.f32 %v6291_v59, %v6290_v61  ;;  %v8757_v34 = vadd.f32 %v6225_v40, %v3744_v11  ;;  %v8760_v45 = vadd.f32 %v6289_v12, %v8570_v36  ;;  %v7654_v49 = vld [vmem:[%s8016_s10 + $0x610] ss:$84 sps:$4 sm:$0xff]   ;;  %v7655_v59 = vld [vmem:[%s8016_s10 + $0xd8] ss:$84 sps:$4 sm:$0xff]  }
 0x17f   : > { %4410 = vmatmul.mubr.bf16.gmra.mrb[172].mxu0 %v7638_v2  ;;  %4507 = vmatmul.mubr.bf16.gmra.mrb[172].mxu1 %v7639_v24  ;;  %v3752_v36 = vadd.f32 %v8749_v6, %v8409_v38  ;;  %v7664_v2 = vld [vmem:[%s9875_s1 + $0x448] sm:$0xff]  }
 0x180   : > { %4514 = vmatprep.mubr.bf16.mxu1 %v7640_v16  ;;  %4611 = vmatprep.mubr.bf16.mxu0 %v7644_v15  ;;  %v8762_v22 = vadd.f32 %v6228_v29, %v3747_v46  ;;  %v8765_v30 = vadd.f32 %v6292_v33, %v8574_v44  ;;  %v7650_v44 = vld [vmem:[%s8016_s10 + $0x614] ss:$84 sps:$4 sm:$0xff]   ;;  %v3760_v29 = vadd.f32 %v8749_v6, %v8433_v58  ;;  %v7696_v58 = vld [vmem:[%s9875_s1 + $0x458] sm:$0xff]  }
 0x182   : > { %v6229_v37 = vpop.f32.mrb[68].mxu1  ;;  %v6293_v41 = vpop.f32.mrb[68].mxu0 }
 0x183   : > { %v6230_v35 = vpop.f32.mrb[69].mxu1  ;;  %v6294_v43 = vpop.f32.mrb[69].mxu0 }
 0x184   : > { %v6231_v53 = vadd.f32 %v6230_v35, %v6229_v37  ;;  %v6295_v60 = vadd.f32 %v6294_v43, %v6293_v41  ;;  %v6232_v56 = vpop.f32.mrb[70].mxu1  ;;  %v6296_v4 = vpop.f32.mrb[70].mxu0  ;;  %v7656_v35 = vld [vmem:[%s8016_s10 + $0x6bc] ss:$84 sps:$4 sm:$0xff]   ;;  %v7658_v43 = vld [vmem:[%s8016_s10 + $0x184] ss:$84 sps:$4 sm:$0xff]  }
 0x185   : > { %v6233_v62 = vpop.f32.mrb[71].mxu1  ;;  %v6297_v23 = vpop.f32.mrb[71].mxu0 }
 0x186   : > { %v6234_v38 = vadd.f32 %v6233_v62, %v6232_v56  ;;  %v6298_v24 = vadd.f32 %v6297_v23, %v6296_v4  ;;  %v8781_v11 = vadd.f32 %v6231_v53, %v3752_v36  ;;  %v8784_v40 = vadd.f32 %v6295_v60, %v8592_v1  ;;  %v7680_v1 = vld [vmem:[%s9875_s1 + $0x450] sm:$0xff]   ;;  %v7712_v23 = vld [vmem:[%s9875_s1 + $0x460] sm:$0xff]  }
 0x187   : > { %4515 = vmatmul.mubr.bf16.gmra.mrb[176].mxu1 %v7645_v52  ;;  %4612 = vmatmul.mubr.bf16.vlgmr.msra.gmra.mrb[176].mxu0 %v7642_v50  ;;  %v3763_v50 = vadd.f32 %v8749_v6, %v8442_v3  ;;  %v7681_v53 = vld [vmem:[%s9875_s1 + $0x410] sm:$0xff]  }
 0x188   : > { %6920 = vmatpush3.bf16.msra.mxu0 %v7649_v57  ;;  %4522 = vmatprep.mubr.bf16.mxu1 %v7650_v44  ;;  %v8789_v12 = vadd.f32 %v6234_v38, %v3755_v20  ;;  %v8792_v13 = vadd.f32 %v6298_v24, %v8596_v7  ;;  %v7697_v20 = vld [vmem:[%s9875_s1 + $0x418] sm:$0xff]   ;;  %v7661_v24 = vld [vmem:[%s8016_s10 + $0x180] ss:$84 sps:$4 sm:$0xff]  }
 0x189   : > { %4619 = vmatprep.mubr.bf16.mxu0 %v7652_v39  ;;  %6921 = vmatprep.subr.bf16.mxu0 %v7664_v2  ;;  %v7660_v38 = vld [vmem:[%s8016_s10 + $0x6b8] ss:$84 sps:$4 sm:$0xff]  }
 0x18a   : > { %v6235_v61 = vpop.f32.mrb[72].mxu1  ;;  %v6299_v16 = vpop.f32.mrb[72].mxu0 }
 0x18b   : > { %v6236_v15 = vpop.f32.mrb[73].mxu1  ;;  %v6300_v46 = vpop.f32.mrb[73].mxu0 }
 0x18c   : > { %v6237_v33 = vadd.f32 %v6236_v15, %v6235_v61  ;;  %v6301_v37 = vadd.f32 %v6300_v46, %v6299_v16  ;;  %v6238_v7 = vpop.f32.mrb[74].mxu1  ;;  %v6302_v41 = vpop.f32.mrb[74].mxu0  ;;  %6922 = vmatpush3.bf16.msra.mxu0 %v7665_v48  ;;  %v7666_v15 = vld [vmem:[%s8016_s10 + $0x764] ss:$84 sps:$4 sm:$0xff]   ;;  %v7668_v46 = vld [vmem:[%s8016_s10 + $0x22c] ss:$84 sps:$4 sm:$0xff]  }
 0x18d   : > { %v6239_v52 = vpop.f32.mrb[75].mxu1  ;;  %v6303_v36 = vpop.f32.mrb[75].mxu0  ;;  %6923 = vmatprep.subr.bf16.mxu0 %v7680_v1 }
 0x18e   : > { %v6240_v60 = vadd.f32 %v6239_v52, %v6238_v7  ;;  %v6304_v56 = vadd.f32 %v6303_v36, %v6302_v41  ;;  %v8811_v4 = vadd.f32 %v6237_v33, %v3760_v29  ;;  %v8814_v57 = vadd.f32 %v6301_v37, %v8617_v42  ;;  %v7713_v33 = vld [vmem:[%s9875_s1 + $0x420] sm:$0xff]   ;;  %v7744_v52 = vld [vmem:[%s9875_s1 + $0x470] sm:$0xff]  }
 0x18f   : > { %4523 = vmatmul.mubr.bf16.gmra.mrb[180].mxu1 %v7654_v49  ;;  %4620 = vmatmul.mubr.bf16.gmra.mrb[180].mxu0 %v7655_v59  ;;  %v3771_v49 = vadd.f32 %v8749_v6, %v8469_v26  ;;  %v7728_v26 = vld [vmem:[%s9875_s1 + $0x468] sm:$0xff]  }
 0x190   : > { %4530 = vmatprep.mubr.bf16.mxu1 %v7656_v35  ;;  %4627 = vmatprep.mubr.bf16.mxu0 %v7658_v43  ;;  %v8816_v3 = vadd.f32 %v6240_v60, %v3763_v50  ;;  %v8819_v44 = vadd.f32 %v6304_v56, %v8627_v55  ;;  %v3768_v55 = vadd.f32 %v8749_v6, %v8457_v14  ;;  %v7670_v60 = vld [vmem:[%s8016_s10 + $0x760] ss:$84 sps:$4 sm:$0xff]   ;;  %v7671_v56 = vld [vmem:[%s8016_s10 + $0x228] ss:$84 sps:$4 sm:$0xff]  }
 0x191   : > { %6924 = vmatpush3.bf16.msra.mxu0 %v7681_v53 }
 0x192   : > { %v6241_v62 = vpop.f32.mrb[76].mxu1  ;;  %v6305_v42 = vpop.f32.mrb[76].mxu0  ;;  %6925 = vmatprep.subr.bf16.mxu0 %v7696_v58 }
 0x193   : > { %v6242_v39 = vpop.f32.mrb[77].mxu1  ;;  %v6306_v2 = vpop.f32.mrb[77].mxu0 }
 0x194   : > { %v6243_v48 = vadd.f32 %v6242_v39, %v6241_v62  ;;  %v6307_v1 = vadd.f32 %v6306_v2, %v6305_v42  ;;  %v6244_v61 = vpop.f32.mrb[78].mxu1  ;;  %v6308_v16 = vpop.f32.mrb[78].mxu0  ;;  %v7672_v42 = vld [vmem:[%s8016_s10 + $0x80c] ss:$84 sps:$4 sm:$0xff]  }
 0x195   : > { %v6245_v59 = vpop.f32.mrb[79].mxu1  ;;  %v6309_v29 = vpop.f32.mrb[79].mxu0  ;;  %6926 = vmatpush3.bf16.msra.mxu0 %v7697_v20 }
 0x196   : > { %v6246_v37 = vadd.f32 %v6245_v59, %v6244_v61  ;;  %v6310_v7 = vadd.f32 %v6309_v29, %v6308_v16  ;;  %6927 = vmatprep.subr.bf16.mxu0 %v7712_v23  ;;  %v8838_v14 = vadd.f32 %v6243_v48, %v3768_v55  ;;  %v8841_v41 = vadd.f32 %v6307_v1, %v8648_v18  ;;  %v7729_v18 = vld [vmem:[%s9875_s1 + $0x428] sm:$0xff]   ;;  %v7760_v61 = vld [vmem:[%s9875_s1 + $0x478] sm:$0xff]   ;;  %v7677_v29 = vld [vmem:[%s8016_s10 + $0x2d0] ss:$84 sps:$4 sm:$0xff]  }
 0x197   : > { %4531 = vmatmul.mubr.bf16.gmra.mrb[184].mxu1 %v7660_v38  ;;  %4628 = vmatmul.mubr.bf16.gmra.mrb[184].mxu0 %v7661_v24  ;;  %v7674_v23 = vld [vmem:[%s8016_s10 + $0x2d4] ss:$84 sps:$4 sm:$0xff]  }
 0x198   : > { %4538 = vmatprep.mubr.bf16.mxu1 %v7666_v15  ;;  %4635 = vmatprep.mubr.bf16.mxu0 %v7668_v46  ;;  %v8846_v6 = vadd.f32 %v6246_v37, %v3771_v49  ;;  %v8849_v35 = vadd.f32 %v6310_v7, %v8652_v21  ;;  %v7745_v38 = vld [vmem:[%s9875_s1 + $0x430] sm:$0xff]   ;;  %v7676_v59 = vld [vmem:[%s8016_s10 + $0x808] ss:$84 sps:$4 sm:$0xff]  }
 0x199   : > { %6928 = vmatpush3.bf16.msra.mxu0 %v7713_v33 }
 0x19a   : > { %v6311_v43 = vpop.f32.mrb[80].mxu0  ;;  %v6375_v50 = vpop.f32.mrb[80].mxu1  ;;  %6929 = vmatprep.subr.bf16.mxu0 %v7728_v26 }
 0x19b   : > { %v6312_v36 = vpop.f32.mrb[81].mxu0  ;;  %v6376_v53 = vpop.f32.mrb[81].mxu1 }
 0x19c   : > { %v6313_v58 = vadd.f32 %v6312_v36, %v6311_v43  ;;  %v6377_v21 = vadd.f32 %v6376_v53, %v6375_v50  ;;  %v6314_v20 = vpop.f32.mrb[82].mxu0  ;;  %v6378_v62 = vpop.f32.mrb[82].mxu1  ;;  %v7684_v43 = vld [vmem:[%s8016_s10 + $0x37c] ss:$84 sps:$4 sm:$0xff]  }
 0x19d   : > { %v6315_v39 = vpop.f32.mrb[83].mxu0  ;;  %v6379_v2 = vpop.f32.mrb[83].mxu1  ;;  %6930 = vmatpush3.bf16.msra.mxu0 %v7729_v18  ;;  %v7682_v18 = vld [vmem:[%s8016_s10 + $0x8b4] ss:$84 sps:$4 sm:$0xff]  }
 0x19e   : > { %v8865_v24 = vadd.f32 %v6313_v58, %v8671_v63  ;;  %v8868_v55 = vadd.f32 %v6377_v21, %v8674_v0  ;;  %v6316_v48 = vadd.f32 %v6315_v39, %v6314_v20  ;;  %v6380_v1 = vadd.f32 %v6379_v2, %v6378_v62  ;;  %6931 = vmatprep.subr.bf16.mxu0 %v7744_v52  ;;  %v7761_v0 = vld [vmem:[%s9875_s1 + $0x438] sm:$0xff]  }
 0x19f   : > { %4539 = vmatmul.mubr.bf16.gmra.mrb[188].mxu1 %v7670_v60  ;;  %4636 = vmatmul.mubr.bf16.gmra.mrb[188].mxu0 %v7671_v56 }
 0x1a0   : > { %v8874_v16 = vadd.f32 %v6316_v48, %v8682_v10  ;;  %v8877_v63 = vadd.f32 %v6380_v1, %v8685_v19  ;;  %4546 = vmatprep.mubr.bf16.mxu1 %v7672_v42  ;;  %4643 = vmatprep.mubr.bf16.mxu0 %v7674_v23  ;;  %v8885_v10 = vld [vmem:[%s9875_s1 + $0x500] sm:$0xff]   ;;  %v7687_v23 = vld [vmem:[%s8016_s10 + $0x378] ss:$84 sps:$4 sm:$0xff]   ;;  %v7688_v1 = vld [vmem:[%s8016_s10 + $0x95c] ss:$84 sps:$4 sm:$0xff]  }
 0x1a1   : > { %6932 = vmatpush3.bf16.msra.mxu0 %v7745_v38  ;;  %v7686_v42 = vld [vmem:[%s8016_s10 + $0x8b0] ss:$84 sps:$4 sm:$0xff]  }
 0x1a2   : > { %v6317_v15 = vpop.f32.mrb[84].mxu0  ;;  %v6381_v46 = vpop.f32.mrb[84].mxu1  ;;  %6933 = vmatprep.subr.bf16.mxu0 %v7760_v61  ;;  %v7690_v61 = vld [vmem:[%s8016_s10 + $0x424] ss:$84 sps:$4 sm:$0xff]  }
 0x1a3   : > { %v6318_v49 = vpop.f32.mrb[85].mxu0  ;;  %v6382_v19 = vpop.f32.mrb[85].mxu1 }
 0x1a4   : > { %v6319_v33 = vadd.f32 %v6318_v49, %v6317_v15  ;;  %v6383_v37 = vadd.f32 %v6382_v19, %v6381_v46  ;;  %v6320_v7 = vpop.f32.mrb[86].mxu0  ;;  %v6384_v26 = vpop.f32.mrb[86].mxu1 }
 0x1a5   : > { %v6321_v50 = vpop.f32.mrb[87].mxu0  ;;  %v6385_v52 = vpop.f32.mrb[87].mxu1  ;;  %6934 = vmatpush3.bf16.msra.mxu0 %v7761_v0 }
 0x1a6   : > { %v8892_v36 = vadd.f32 %v6319_v33, %v8698_v51  ;;  %v8895_v53 = vadd.f32 %v6383_v37, %v8701_v54  ;;  %v6322_v60 = vadd.f32 %v6321_v50, %v6320_v7  ;;  %v6386_v56 = vadd.f32 %v6385_v52, %v6384_v26  ;;  %7167 = vmatprep.subr.bf16.mxu0 %v8885_v10  ;;  %v7693_v7 = vld [vmem:[%s8016_s10 + $0x420] ss:$84 sps:$4 sm:$0xff]   ;;  %v7698_v52 = vld [vmem:[%s8016_s10 + $0xa04] ss:$84 sps:$4 sm:$0xff]  }
 0x1a7   : > { %4547 = vmatmul.mubr.bf16.gmra.mrb[192].mxu1 %v7676_v59  ;;  %4644 = vmatmul.mubr.bf16.gmra.mrb[192].mxu0 %v7677_v29 }
 0x1a8   : > { %v8899_v58 = vadd.f32 %v6322_v60, %v8703_v47  ;;  %v8902_v21 = vadd.f32 %v6386_v56, %v8706_v5  ;;  %4554 = vmatprep.mubr.bf16.mxu1 %v7682_v18  ;;  %4651 = vmatprep.mubr.bf16.mxu0 %v7684_v43  ;;  %v7700_v60 = vld [vmem:[%s8016_s10 + $0x4cc] ss:$84 sps:$4 sm:$0xff]  }
 0x1aa   : > { %v6323_v51 = vpop.f32.mrb[88].mxu0  ;;  %v6387_v20 = vpop.f32.mrb[88].mxu1 }
 0x1ab   : > { %v6324_v54 = vpop.f32.mrb[89].mxu0  ;;  %v6388_v62 = vpop.f32.mrb[89].mxu1 }
 0x1ac   : > { %v6325_v39 = vadd.f32 %v6324_v54, %v6323_v51  ;;  %v6389_v2 = vadd.f32 %v6388_v62, %v6387_v20  ;;  %v6326_v38 = vpop.f32.mrb[90].mxu0  ;;  %v6390_v48 = vpop.f32.mrb[90].mxu1 }
 0x1ad   : > { %v6327_v0 = vpop.f32.mrb[91].mxu0  ;;  %v6391_v47 = vpop.f32.mrb[91].mxu1 }
 0x1ae   : > { %v8909_v5 = vadd.f32 %v6325_v39, %v8716_v27  ;;  %v8912_v15 = vadd.f32 %v6389_v2, %v8719_v25  ;;  %v6328_v46 = vadd.f32 %v6327_v0, %v6326_v38  ;;  %v6392_v49 = vadd.f32 %v6391_v47, %v6390_v48  ;;  %v7692_v25 = vld [vmem:[%s8016_s10 + $0x958] ss:$84 sps:$4 sm:$0xff]   ;;  %v7703_v38 = vld [vmem:[%s8016_s10 + $0x4c8] ss:$84 sps:$4 sm:$0xff]  }
 0x1af   : > { %4555 = vmatmul.mubr.bf16.gmra.mrb[196].mxu1 %v7686_v42  ;;  %4652 = vmatmul.mubr.bf16.gmra.mrb[196].mxu0 %v7687_v23  ;;  %v7704_v47 = vld [vmem:[%s8016_s10 + $0x574] ss:$84 sps:$4 sm:$0xff]  }
 0x1b0   : > { %v8915_v19 = vadd.f32 %v6328_v46, %v8721_v28  ;;  %v8918_v59 = vadd.f32 %v6392_v49, %v8724_v9  ;;  %4562 = vmatprep.mubr.bf16.mxu1 %v7688_v1  ;;  %4659 = vmatprep.mubr.bf16.mxu0 %v7690_v61  ;;  %v7708_v46 = vld [vmem:[%s8016_s10 + $0x3c] ss:$84 sps:$4 sm:$0xff]  }
 0x1b2   : > { %v6329_v29 = vpop.f32.mrb[92].mxu0  ;;  %v6393_v27 = vpop.f32.mrb[92].mxu1 }
 0x1b3   : > { %v6330_v33 = vpop.f32.mrb[93].mxu0  ;;  %v6394_v37 = vpop.f32.mrb[93].mxu1 }
 0x1b4   : > { %v6331_v26 = vadd.f32 %v6330_v33, %v6329_v29  ;;  %v6395_v18 = vadd.f32 %v6394_v37, %v6393_v27  ;;  %v6332_v43 = vpop.f32.mrb[94].mxu0  ;;  %v6396_v50 = vpop.f32.mrb[94].mxu1 }
 0x1b5   : > { %v6333_v56 = vpop.f32.mrb[95].mxu0  ;;  %v6397_v28 = vpop.f32.mrb[95].mxu1 }
 0x1b6   : > { %v8925_v9 = vadd.f32 %v6331_v26, %v8734_v31  ;;  %v8928_v51 = vadd.f32 %v6395_v18, %v8737_v17  ;;  %v6334_v20 = vadd.f32 %v6333_v56, %v6332_v43  ;;  %v6398_v54 = vadd.f32 %v6397_v28, %v6396_v50  ;;  %v7702_v17 = vld [vmem:[%s8016_s10 + $0xa00] ss:$84 sps:$4 sm:$0xff]   ;;  %v7709_v43 = vld [vmem:[%s8016_s10 + $0x570] ss:$84 sps:$4 sm:$0xff]  }
 0x1b7   : > { %4563 = vmatmul.mubr.bf16.gmra.mrb[200].mxu1 %v7692_v25  ;;  %4660 = vmatmul.mubr.bf16.gmra.mrb[200].mxu0 %v7693_v7  ;;  %v7714_v28 = vld [vmem:[%s8016_s10 + $0x61c] ss:$84 sps:$4 sm:$0xff]  }
 0x1b8   : > { %v8931_v62 = vadd.f32 %v6334_v20, %v8739_v8  ;;  %v8934_v42 = vadd.f32 %v6398_v54, %v8742_v32  ;;  %4570 = vmatprep.mubr.bf16.mxu1 %v7698_v52  ;;  %4667 = vmatprep.mubr.bf16.mxu0 %v7700_v60  ;;  %v7716_v54 = vld [vmem:[%s8016_s10 + $0xe4] ss:$84 sps:$4 sm:$0xff]  }
 0x1ba   : > { %v6335_v23 = vpop.f32.mrb[96].mxu0  ;;  %v6399_v31 = vpop.f32.mrb[96].mxu1 }
 0x1bb   : > { %v6336_v39 = vpop.f32.mrb[97].mxu0  ;;  %v6400_v2 = vpop.f32.mrb[97].mxu1 }
 0x1bc   : > { %v6337_v48 = vadd.f32 %v6336_v39, %v6335_v23  ;;  %v6401_v1 = vadd.f32 %v6400_v2, %v6399_v31  ;;  %v6338_v61 = vpop.f32.mrb[98].mxu0  ;;  %v6402_v0 = vpop.f32.mrb[98].mxu1  ;;  %v7726_v23 = vld [vmem:[%s9875_s1 + $0x4c8] sm:$0xff]  }
 0x1bd   : > { %v6339_v49 = vpop.f32.mrb[99].mxu0  ;;  %v6403_v8 = vpop.f32.mrb[99].mxu1 }
 0x1be   : > { %v8941_v32 = vadd.f32 %v6337_v48, %v8757_v34  ;;  %v8944_v29 = vadd.f32 %v6401_v1, %v8760_v45  ;;  %v6340_v27 = vadd.f32 %v6339_v49, %v6338_v61  ;;  %v6404_v33 = vadd.f32 %v6403_v8, %v6402_v0  ;;  %v7706_v45 = vld [vmem:[%s8016_s10 + $0x38] ss:$84 sps:$4 sm:$0xff]  }
 0x1bf   : > { %4571 = vmatmul.mubr.bf16.gmra.mrb[204].mxu1 %v7702_v17  ;;  %4668 = vmatmul.mubr.bf16.gmra.mrb[204].mxu0 %v7703_v38 }
 0x1c0   : > { %v8947_v37 = vadd.f32 %v6340_v27, %v8762_v22  ;;  %v8950_v25 = vadd.f32 %v6404_v33, %v8765_v30  ;;  %4675 = vmatprep.mubr.bf16.mxu0 %v7704_v47  ;;  %4772 = vmatprep.mubr.bf16.mxu1 %v7708_v46  ;;  %v7711_v22 = vld [vmem:[%s9875_s1 + $0x480] sm:$0xff]  }
 0x1c1   : > { %v7719_v47 = vld [vmem:[%s8016_s10 + $0xe0] ss:$84 sps:$4 sm:$0xff]   ;;  %v7720_v33 = vld [vmem:[%s8016_s10 + $0x6c4] ss:$84 sps:$4 sm:$0xff]  }
 0x1c2   : > { %v6341_v7 = vpop.f32.mrb[100].mxu0  ;;  %v6405_v34 = vpop.f32.mrb[100].mxu1 }
 0x1c3   : > { %v6342_v26 = vpop.f32.mrb[101].mxu0  ;;  %v6406_v18 = vpop.f32.mrb[101].mxu1 }
 0x1c4   : > { %v6343_v50 = vadd.f32 %v6342_v26, %v6341_v7  ;;  %v6407_v52 = vadd.f32 %v6406_v18, %v6405_v34  ;;  %v6344_v60 = vpop.f32.mrb[102].mxu0  ;;  %v6408_v56 = vpop.f32.mrb[102].mxu1  ;;  %v7722_v7 = vld [vmem:[%s8016_s10 + $0x18c] ss:$84 sps:$4 sm:$0xff]   ;;  %v7743_v18 = vld [vmem:[%s9875_s1 + $0x490] sm:$0xff]  }
 0x1c5   : > { %v6345_v30 = vpop.f32.mrb[103].mxu0  ;;  %v6409_v20 = vpop.f32.mrb[103].mxu1 }
 0x1c6   : > { %v8963_v31 = vadd.f32 %v6343_v50, %v8781_v11  ;;  %v8966_v39 = vadd.f32 %v6407_v52, %v8784_v40  ;;  %v6346_v2 = vadd.f32 %v6345_v30, %v6344_v60  ;;  %v6410_v17 = vadd.f32 %v6409_v20, %v6408_v56  ;;  %v7727_v11 = vld [vmem:[%s9875_s1 + $0x488] sm:$0xff]   ;;  %v7742_v40 = vld [vmem:[%s9875_s1 + $0x4d0] sm:$0xff]   ;;  %v7758_v60 = vld [vmem:[%s9875_s1 + $0x4d8] sm:$0xff]  }
 0x1c7   : > { %4676 = vmatmul.mubr.bf16.gmra.mrb[208].mxu0 %v7709_v43  ;;  %4773 = vmatmul.mubr.bf16.vlgmr.msra.gmra.mrb[208].mxu1 %v7706_v45 }
 0x1c8   : > { %v8969_v38 = vadd.f32 %v6346_v2, %v8789_v12  ;;  %v8972_v48 = vadd.f32 %v6410_v17, %v8792_v13  ;;  %7032 = vmatpush3.bf16.msra.mxu1 %v7711_v22  ;;  %4683 = vmatprep.mubr.bf16.mxu0 %v7714_v28  ;;  %v7718_v13 = vld [vmem:[%s8016_s10 + $0x618] ss:$84 sps:$4 sm:$0xff]  }
 0x1c9   : > { %4780 = vmatprep.mubr.bf16.mxu1 %v7716_v54  ;;  %7033 = vmatprep.subr.bf16.mxu1 %v7726_v23  ;;  %v7725_v54 = vld [vmem:[%s8016_s10 + $0x188] ss:$84 sps:$4 sm:$0xff]  }
 0x1ca   : > { %v6347_v1 = vpop.f32.mrb[104].mxu0  ;;  %v6411_v12 = vpop.f32.mrb[104].mxu1 }
 0x1cb   : > { %v6348_v61 = vpop.f32.mrb[105].mxu0  ;;  %v6412_v0 = vpop.f32.mrb[105].mxu1 }
 0x1cc   : > { %v6349_v46 = vadd.f32 %v6348_v61, %v6347_v1  ;;  %v6413_v49 = vadd.f32 %v6412_v0, %v6411_v12  ;;  %v6350_v8 = vpop.f32.mrb[106].mxu0  ;;  %v6414_v27 = vpop.f32.mrb[106].mxu1  ;;  %7034 = vmatpush3.bf16.msra.mxu1 %v7727_v11  ;;  %v7732_v1 = vld [vmem:[%s8016_s10 + $0x234] ss:$84 sps:$4 sm:$0xff]   ;;  %v7775_v0 = vld [vmem:[%s9875_s1 + $0x4a0] sm:$0xff]  }
 0x1cd   : > { %v6351_v34 = vpop.f32.mrb[107].mxu0  ;;  %v6415_v26 = vpop.f32.mrb[107].mxu1  ;;  %7035 = vmatprep.subr.bf16.mxu1 %v7742_v40  ;;  %v7730_v40 = vld [vmem:[%s8016_s10 + $0x76c] ss:$84 sps:$4 sm:$0xff]  }
 0x1ce   : > { %v8988_v45 = vadd.f32 %v6349_v46, %v8811_v4  ;;  %v8991_v43 = vadd.f32 %v6413_v49, %v8814_v57  ;;  %v6352_v50 = vadd.f32 %v6351_v34, %v6350_v8  ;;  %v6416_v52 = vadd.f32 %v6415_v26, %v6414_v27  ;;  %v7759_v4 = vld [vmem:[%s9875_s1 + $0x498] sm:$0xff]   ;;  %v7789_v8 = vld [vmem:[%s9875_s1 + $0x4e8] sm:$0xff]  }
 0x1cf   : > { %4684 = vmatmul.mubr.bf16.gmra.mrb[212].mxu0 %v7718_v13  ;;  %4781 = vmatmul.mubr.bf16.gmra.mrb[212].mxu1 %v7719_v47 }
 0x1d0   : > { %v8997_v56 = vadd.f32 %v6352_v50, %v8816_v3  ;;  %v9000_v22 = vadd.f32 %v6416_v52, %v8819_v44  ;;  %4691 = vmatprep.mubr.bf16.mxu0 %v7720_v33  ;;  %4788 = vmatprep.mubr.bf16.mxu1 %v7722_v7  ;;  %v7774_v3 = vld [vmem:[%s9875_s1 + $0x4e0] sm:$0xff]  }
 0x1d1   : > { %7036 = vmatpush3.bf16.msra.mxu1 %v7743_v18  ;;  %v7724_v44 = vld [vmem:[%s8016_s10 + $0x6c0] ss:$84 sps:$4 sm:$0xff]   ;;  %v7735_v18 = vld [vmem:[%s8016_s10 + $0x230] ss:$84 sps:$4 sm:$0xff]  }
 0x1d2   : > { %v6353_v57 = vpop.f32.mrb[108].mxu0  ;;  %v6417_v28 = vpop.f32.mrb[108].mxu1  ;;  %7037 = vmatprep.subr.bf16.mxu1 %v7758_v60 }
 0x1d3   : > { %v6354_v30 = vpop.f32.mrb[109].mxu0  ;;  %v6418_v20 = vpop.f32.mrb[109].mxu1 }
 0x1d4   : > { %v6355_v23 = vadd.f32 %v6354_v30, %v6353_v57  ;;  %v6419_v2 = vadd.f32 %v6418_v20, %v6417_v28  ;;  %v6356_v17 = vpop.f32.mrb[110].mxu0  ;;  %v6420_v11 = vpop.f32.mrb[110].mxu1  ;;  %v7736_v57 = vld [vmem:[%s8016_s10 + $0x814] ss:$84 sps:$4 sm:$0xff]   ;;  %v7738_v28 = vld [vmem:[%s8016_s10 + $0x2dc] ss:$84 sps:$4 sm:$0xff]  }
 0x1d5   : > { %v6357_v12 = vpop.f32.mrb[111].mxu0  ;;  %v6421_v61 = vpop.f32.mrb[111].mxu1  ;;  %7038 = vmatpush3.bf16.msra.mxu1 %v7759_v4  ;;  %v7805_v20 = vld [vmem:[%s9875_s1 + $0x4b0] sm:$0xff]  }
 0x1d6   : > { %v9016_v13 = vadd.f32 %v6355_v23, %v8838_v14  ;;  %v9019_v47 = vadd.f32 %v6419_v2, %v8841_v41  ;;  %v6358_v46 = vadd.f32 %v6357_v12, %v6356_v17  ;;  %v6422_v49 = vadd.f32 %v6421_v61, %v6420_v11  ;;  %7039 = vmatprep.subr.bf16.mxu1 %v7774_v3  ;;  %v7790_v41 = vld [vmem:[%s9875_s1 + $0x4a8] sm:$0xff]   ;;  %v7819_v17 = vld [vmem:[%s9875_s1 + $0x4f8] sm:$0xff]  }
 0x1d7   : > { %4692 = vmatmul.mubr.bf16.gmra.mrb[216].mxu0 %v7724_v44  ;;  %4789 = vmatmul.mubr.bf16.gmra.mrb[216].mxu1 %v7725_v54 }
 0x1d8   : > { %v9025_v27 = vadd.f32 %v6358_v46, %v8846_v6  ;;  %v9028_v14 = vadd.f32 %v6422_v49, %v8849_v35  ;;  %4699 = vmatprep.mubr.bf16.mxu0 %v7730_v40  ;;  %4796 = vmatprep.mubr.bf16.mxu1 %v7732_v1  ;;  %v7804_v6 = vld [vmem:[%s9875_s1 + $0x4f0] sm:$0xff]   ;;  %v7734_v35 = vld [vmem:[%s8016_s10 + $0x768] ss:$84 sps:$4 sm:$0xff]  }
 0x1d9   : > { %7040 = vmatpush3.bf16.msra.mxu1 %v7775_v0  ;;  %v7740_v0 = vld [vmem:[%s8016_s10 + $0x810] ss:$84 sps:$4 sm:$0xff]  }
 0x1da   : > { %v6423_v33 = vpop.f32.mrb[112].mxu1  ;;  %v6487_v7 = vpop.f32.mrb[112].mxu0  ;;  %7041 = vmatprep.subr.bf16.mxu1 %v7789_v8 }
 0x1db   : > { %v6424_v34 = vpop.f32.mrb[113].mxu1  ;;  %v6488_v26 = vpop.f32.mrb[113].mxu0 }
 0x1dc   : > { %v6425_v50 = vadd.f32 %v6424_v34, %v6423_v33  ;;  %v6489_v52 = vadd.f32 %v6488_v26, %v6487_v7  ;;  %v6426_v60 = vpop.f32.mrb[114].mxu1  ;;  %v6490_v4 = vpop.f32.mrb[114].mxu0  ;;  %v7748_v33 = vld [vmem:[%s8016_s10 + $0x384] ss:$84 sps:$4 sm:$0xff]  }
 0x1dd   : > { %v6427_v3 = vpop.f32.mrb[115].mxu1  ;;  %v6491_v30 = vpop.f32.mrb[115].mxu0  ;;  %7042 = vmatpush3.bf16.msra.mxu1 %v7790_v41  ;;  %v7746_v41 = vld [vmem:[%s8016_s10 + $0x8bc] ss:$84 sps:$4 sm:$0xff]  }
 0x1de   : > { %v9044_v44 = vadd.f32 %v6425_v50, %v8865_v24  ;;  %v9047_v54 = vadd.f32 %v6489_v52, %v8868_v55  ;;  %v6428_v23 = vadd.f32 %v6427_v3, %v6426_v60  ;;  %v6492_v2 = vadd.f32 %v6491_v30, %v6490_v4  ;;  %7043 = vmatprep.subr.bf16.mxu1 %v7804_v6  ;;  %v7820_v55 = vld [vmem:[%s9875_s1 + $0x4b8] sm:$0xff]  }
 0x1df   : > { %4700 = vmatmul.mubr.bf16.gmra.mrb[220].mxu0 %v7734_v35  ;;  %4797 = vmatmul.mubr.bf16.gmra.mrb[220].mxu1 %v7735_v18 }
 0x1e0   : > { %v9053_v11 = vadd.f32 %v6428_v23, %v8874_v16  ;;  %v9056_v24 = vadd.f32 %v6492_v2, %v8877_v63  ;;  %4707 = vmatprep.mubr.bf16.mxu0 %v7736_v57  ;;  %4804 = vmatprep.mubr.bf16.mxu1 %v7738_v28  ;;  %v7741_v16 = vld [vmem:[%s8016_s10 + $0x2d8] ss:$84 sps:$4 sm:$0xff]   ;;  %v7751_v28 = vld [vmem:[%s8016_s10 + $0x380] ss:$84 sps:$4 sm:$0xff]  }
 0x1e1   : > { %7044 = vmatpush3.bf16.msra.mxu1 %v7805_v20  ;;  %v7752_v2 = vld [vmem:[%s8016_s10 + $0x964] ss:$84 sps:$4 sm:$0xff]  }
 0x1e2   : > { %v6429_v40 = vpop.f32.mrb[116].mxu1  ;;  %v6493_v1 = vpop.f32.mrb[116].mxu0  ;;  %7045 = vmatprep.subr.bf16.mxu1 %v7819_v17  ;;  %v7754_v17 = vld [vmem:[%s8016_s10 + $0x42c] ss:$84 sps:$4 sm:$0xff]  }
 0x1e3   : > { %v6430_v12 = vpop.f32.mrb[117].mxu1  ;;  %v6494_v61 = vpop.f32.mrb[117].mxu0 }
 0x1e4   : > { %v6431_v46 = vadd.f32 %v6430_v12, %v6429_v40  ;;  %v6495_v49 = vadd.f32 %v6494_v61, %v6493_v1  ;;  %v6432_v63 = vpop.f32.mrb[118].mxu1  ;;  %v6496_v8 = vpop.f32.mrb[118].mxu0 }
 0x1e5   : > { %v6433_v7 = vpop.f32.mrb[119].mxu1  ;;  %v6497_v6 = vpop.f32.mrb[119].mxu0  ;;  %7046 = vmatpush3.bf16.msra.mxu1 %v7820_v55 }
 0x1e6   : > { %v9066_v34 = vadd.f32 %v6431_v46, %v8892_v36  ;;  %v9069_v26 = vadd.f32 %v6495_v49, %v8895_v53  ;;  %v6434_v35 = vadd.f32 %v6433_v7, %v6432_v63  ;;  %v6498_v18 = vadd.f32 %v6497_v6, %v6496_v8  ;;  %v7750_v53 = vld [vmem:[%s8016_s10 + $0x8b8] ss:$84 sps:$4 sm:$0xff]   ;;  %v7757_v63 = vld [vmem:[%s8016_s10 + $0x428] ss:$84 sps:$4 sm:$0xff]  }
 0x1e7   : > { %4708 = vmatmul.mubr.bf16.gmra.mrb[224].mxu0 %v7740_v0  ;;  %4805 = vmatmul.mubr.bf16.gmra.mrb[224].mxu1 %v7741_v16  ;;  %v7762_v6 = vld [vmem:[%s8016_s10 + $0xa0c] ss:$84 sps:$4 sm:$0xff]  }
 0x1e8   : > { %v9072_v50 = vadd.f32 %v6434_v35, %v8899_v58  ;;  %v9075_v52 = vadd.f32 %v6498_v18, %v8902_v21  ;;  %4715 = vmatprep.mubr.bf16.mxu0 %v7746_v41  ;;  %4812 = vmatprep.mubr.bf16.mxu1 %v7748_v33  ;;  %v7764_v35 = vld [vmem:[%s8016_s10 + $0x4d4] ss:$84 sps:$4 sm:$0xff]  }
 0x1ea   : > { %v6435_v60 = vpop.f32.mrb[120].mxu1  ;;  %v6499_v36 = vpop.f32.mrb[120].mxu0 }
 0x1eb   : > { %v6436_v4 = vpop.f32.mrb[121].mxu1  ;;  %v6500_v57 = vpop.f32.mrb[121].mxu0 }
 0x1ec   : > { %v6437_v3 = vadd.f32 %v6436_v4, %v6435_v60  ;;  %v6501_v30 = vadd.f32 %v6500_v57, %v6499_v36  ;;  %v6438_v20 = vpop.f32.mrb[122].mxu1  ;;  %v6502_v23 = vpop.f32.mrb[122].mxu0 }
 0x1ed   : > { %v6439_v55 = vpop.f32.mrb[123].mxu1  ;;  %v6503_v58 = vpop.f32.mrb[123].mxu0 }
 0x1ee   : > { %v9082_v21 = vadd.f32 %v6437_v3, %v8909_v5  ;;  %v9085_v40 = vadd.f32 %v6501_v30, %v8912_v15  ;;  %v6440_v1 = vadd.f32 %v6439_v55, %v6438_v20  ;;  %v6504_v12 = vadd.f32 %v6503_v58, %v6502_v23  ;;  %v7756_v15 = vld [vmem:[%s8016_s10 + $0x960] ss:$84 sps:$4 sm:$0xff]   ;;  %v7767_v20 = vld [vmem:[%s8016_s10 + $0x4d0] ss:$84 sps:$4 sm:$0xff]  }
 0x1ef   : > { %4716 = vmatmul.mubr.bf16.gmra.mrb[228].mxu0 %v7750_v53  ;;  %4813 = vmatmul.mubr.bf16.gmra.mrb[228].mxu1 %v7751_v28  ;;  %v7768_v58 = vld [vmem:[%s8016_s10 + $0x57c] ss:$84 sps:$4 sm:$0xff]  }
 0x1f0   : > { %v9088_v61 = vadd.f32 %v6440_v1, %v8915_v19  ;;  %v9091_v0 = vadd.f32 %v6504_v12, %v8918_v59  ;;  %4723 = vmatprep.mubr.bf16.mxu0 %v7752_v2  ;;  %4820 = vmatprep.mubr.bf16.mxu1 %v7754_v17  ;;  %v7772_v1 = vld [vmem:[%s8016_s10 + $0x44] ss:$84 sps:$4 sm:$0xff]  }
 0x1f2   : > { %v6441_v16 = vpop.f32.mrb[124].mxu1  ;;  %v6505_v5 = vpop.f32.mrb[124].mxu0 }
 0x1f3   : > { %v6442_v46 = vpop.f32.mrb[125].mxu1  ;;  %v6506_v49 = vpop.f32.mrb[125].mxu0 }
 0x1f4   : > { %v6443_v8 = vadd.f32 %v6442_v46, %v6441_v16  ;;  %v6507_v41 = vadd.f32 %v6506_v49, %v6505_v5  ;;  %v6444_v33 = vpop.f32.mrb[126].mxu1  ;;  %v6508_v7 = vpop.f32.mrb[126].mxu0 }
 0x1f5   : > { %v6445_v18 = vpop.f32.mrb[127].mxu1  ;;  %v6509_v19 = vpop.f32.mrb[127].mxu0 }
 0x1f6   : > { %v9098_v59 = vadd.f32 %v6443_v8, %v8925_v9  ;;  %v9101_v60 = vadd.f32 %v6507_v41, %v8928_v51  ;;  %v6446_v36 = vadd.f32 %v6445_v18, %v6444_v33  ;;  %v6510_v4 = vadd.f32 %v6509_v19, %v6508_v7  ;;  %v7766_v51 = vld [vmem:[%s8016_s10 + $0xa08] ss:$84 sps:$4 sm:$0xff]   ;;  %v7773_v33 = vld [vmem:[%s8016_s10 + $0x578] ss:$84 sps:$4 sm:$0xff]  }
 0x1f7   : > { %4724 = vmatmul.mubr.bf16.gmra.mrb[232].mxu0 %v7756_v15  ;;  %4821 = vmatmul.mubr.bf16.gmra.mrb[232].mxu1 %v7757_v63  ;;  %v7777_v19 = vld [vmem:[%s8016_s10 + $0x624] ss:$84 sps:$4 sm:$0xff]  }
 0x1f8   : > { %v9104_v57 = vadd.f32 %v6446_v36, %v8931_v62  ;;  %v9107_v53 = vadd.f32 %v6510_v4, %v8934_v42  ;;  %4731 = vmatprep.mubr.bf16.mxu0 %v7762_v6  ;;  %4828 = vmatprep.mubr.bf16.mxu1 %v7764_v35  ;;  %v7779_v4 = vld [vmem:[%s8016_s10 + $0xec] ss:$84 sps:$4 sm:$0xff]  }
 0x1fa   : > { %v6447_v28 = vpop.f32.mrb[128].mxu1  ;;  %v6511_v9 = vpop.f32.mrb[128].mxu0 }
 0x1fb   : > { %v6448_v3 = vpop.f32.mrb[129].mxu1  ;;  %v6512_v30 = vpop.f32.mrb[129].mxu0 }
 0x1fc   : > { %v6449_v23 = vadd.f32 %v6448_v3, %v6447_v28  ;;  %v6513_v2 = vadd.f32 %v6512_v30, %v6511_v9  ;;  %v6450_v17 = vpop.f32.mrb[130].mxu1  ;;  %v6514_v55 = vpop.f32.mrb[130].mxu0 }
 0x1fd   : > { %v6451_v12 = vpop.f32.mrb[131].mxu1  ;;  %v6515_v62 = vpop.f32.mrb[131].mxu0 }
 0x1fe   : > { %v9114_v42 = vadd.f32 %v6449_v23, %v8941_v32  ;;  %v9117_v16 = vadd.f32 %v6513_v2, %v8944_v29  ;;  %v6452_v5 = vadd.f32 %v6451_v12, %v6450_v17  ;;  %v6516_v46 = vadd.f32 %v6515_v62, %v6514_v55  ;;  %v7770_v29 = vld [vmem:[%s8016_s10 + $0x40] ss:$84 sps:$4 sm:$0xff]   ;;  %v7782_v55 = vld [vmem:[%s8016_s10 + $0xe8] ss:$84 sps:$4 sm:$0xff]  }
 0x1ff   : > { %4732 = vmatmul.mubr.bf16.gmra.mrb[236].mxu0 %v7766_v51  ;;  %4829 = vmatmul.mubr.bf16.gmra.mrb[236].mxu1 %v7767_v20  ;;  %v7783_v62 = vld [vmem:[%s8016_s10 + $0x6cc] ss:$84 sps:$4 sm:$0xff]  }
 0x200   : > { %v9120_v49 = vadd.f32 %v6452_v5, %v8947_v37  ;;  %v9123_v15 = vadd.f32 %v6516_v46, %v8950_v25  ;;  %4836 = vmatprep.mubr.bf16.mxu1 %v7768_v58  ;;  %4933 = vmatprep.mubr.bf16.mxu0 %v7772_v1  ;;  %v7791_v25 = vld [vmem:[%s9875_s1 + $0x508] sm:$0xff]  }
 0x202   : > { %v6453_v63 = vpop.f32.mrb[132].mxu1  ;;  %v6517_v32 = vpop.f32.mrb[132].mxu0 }
 0x203   : > { %v6454_v8 = vpop.f32.mrb[133].mxu1  ;;  %v6518_v41 = vpop.f32.mrb[133].mxu0 }
 0x204   : > { %v6455_v7 = vadd.f32 %v6454_v8, %v6453_v63  ;;  %v6519_v6 = vadd.f32 %v6518_v41, %v6517_v32  ;;  %v6456_v35 = vpop.f32.mrb[134].mxu1  ;;  %v6520_v18 = vpop.f32.mrb[134].mxu0 }
 0x205   : > { %v6457_v36 = vpop.f32.mrb[135].mxu1  ;;  %v6521_v37 = vpop.f32.mrb[135].mxu0 }
 0x206   : > { %v9133_v28 = vadd.f32 %v6455_v7, %v8963_v31  ;;  %v9136_v9 = vadd.f32 %v6519_v6, %v8966_v39  ;;  %v6458_v3 = vadd.f32 %v6457_v36, %v6456_v35  ;;  %v6522_v30 = vadd.f32 %v6521_v37, %v6520_v18  ;;  %v7806_v31 = vld [vmem:[%s9875_s1 + $0x510] sm:$0xff]   ;;  %v7834_v6 = vld [vmem:[%s9875_s1 + $0x520] sm:$0xff]  }
 0x207   : > { %4837 = vmatmul.mubr.bf16.gmra.mrb[240].mxu1 %v7773_v33  ;;  %4934 = vmatmul.mubr.bf16.vlgmr.msra.gmra.mrb[240].mxu0 %v7770_v29  ;;  %v7821_v29 = vld [vmem:[%s9875_s1 + $0x518] sm:$0xff]  }
 0x208   : > { %v9139_v51 = vadd.f32 %v6458_v3, %v8969_v38  ;;  %v9142_v20 = vadd.f32 %v6522_v30, %v8972_v48  ;;  %7168 = vmatpush3.bf16.msra.mxu0 %v8885_v10  ;;  %4844 = vmatprep.mubr.bf16.mxu1 %v7777_v19  ;;  %v7781_v38 = vld [vmem:[%s8016_s10 + $0x620] ss:$84 sps:$4 sm:$0xff]   ;;  %v7787_v19 = vld [vmem:[%s8016_s10 + $0x6c8] ss:$84 sps:$4 sm:$0xff]  }
 0x209   : > { %4941 = vmatprep.mubr.bf16.mxu0 %v7779_v4  ;;  %7169 = vmatprep.subr.bf16.mxu0 %v7791_v25  ;;  %v7785_v10 = vld [vmem:[%s8016_s10 + $0x194] ss:$84 sps:$4 sm:$0xff]   ;;  %v7794_v3 = vld [vmem:[%s8016_s10 + $0x23c] ss:$84 sps:$4 sm:$0xff]  }
 0x20a   : > { %v6459_v39 = vpop.f32.mrb[136].mxu1  ;;  %v6523_v23 = vpop.f32.mrb[136].mxu0 }
 0x20b   : > { %v6460_v2 = vpop.f32.mrb[137].mxu1  ;;  %v6524_v17 = vpop.f32.mrb[137].mxu0 }
 0x20c   : > { %v6461_v58 = vadd.f32 %v6460_v2, %v6459_v39  ;;  %v6525_v48 = vadd.f32 %v6524_v17, %v6523_v23  ;;  %v6462_v1 = vpop.f32.mrb[138].mxu1  ;;  %v6526_v12 = vpop.f32.mrb[138].mxu0  ;;  %7170 = vmatpush3.bf16.msra.mxu0 %v7791_v25  ;;  %v7792_v25 = vld [vmem:[%s8016_s10 + $0x774] ss:$84 sps:$4 sm:$0xff]  }
 0x20d   : > { %v6463_v5 = vpop.f32.mrb[139].mxu1  ;;  %v6527_v46 = vpop.f32.mrb[139].mxu0  ;;  %7171 = vmatprep.subr.bf16.mxu0 %v7806_v31 }
 0x20e   : > { %v9153_v63 = vadd.f32 %v6461_v58, %v8988_v45  ;;  %v9156_v32 = vadd.f32 %v6525_v48, %v8991_v43  ;;  %v6464_v8 = vadd.f32 %v6463_v5, %v6462_v1  ;;  %v6528_v41 = vadd.f32 %v6527_v46, %v6526_v12  ;;  %v7860_v48 = vld [vmem:[%s9875_s1 + $0x530] sm:$0xff]  }
 0x20f   : > { %4845 = vmatmul.mubr.bf16.gmra.mrb[244].mxu1 %v7781_v38  ;;  %4942 = vmatmul.mubr.bf16.gmra.mrb[244].mxu0 %v7782_v55  ;;  %v7847_v38 = vld [vmem:[%s9875_s1 + $0x528] sm:$0xff]  }
 0x210   : > { %v9162_v33 = vadd.f32 %v6464_v8, %v8997_v56  ;;  %v9165_v7 = vadd.f32 %v6528_v41, %v9000_v22  ;;  %4852 = vmatprep.mubr.bf16.mxu1 %v7783_v62  ;;  %4949 = vmatprep.mubr.bf16.mxu0 %v7785_v10  ;;  %v7788_v56 = vld [vmem:[%s8016_s10 + $0x190] ss:$84 sps:$4 sm:$0xff]  }
 0x211   : > { %7172 = vmatpush3.bf16.msra.mxu0 %v7806_v31  ;;  %v7796_v62 = vld [vmem:[%s8016_s10 + $0x770] ss:$84 sps:$4 sm:$0xff]  }
 0x212   : > { %v6465_v45 = vpop.f32.mrb[140].mxu1  ;;  %v6529_v43 = vpop.f32.mrb[140].mxu0  ;;  %7173 = vmatprep.subr.bf16.mxu0 %v7821_v29  ;;  %v7800_v8 = vld [vmem:[%s8016_s10 + $0x81c] ss:$84 sps:$4 sm:$0xff]   ;;  %v7803_v41 = vld [vmem:[%s8016_s10 + $0x2e4] ss:$84 sps:$4 sm:$0xff]  }
 0x213   : > { %v6466_v35 = vpop.f32.mrb[141].mxu1  ;;  %v6530_v18 = vpop.f32.mrb[141].mxu0 }
 0x214   : > { %v6467_v36 = vadd.f32 %v6466_v35, %v6465_v45  ;;  %v6531_v37 = vadd.f32 %v6530_v18, %v6529_v43  ;;  %v6468_v22 = vpop.f32.mrb[142].mxu1  ;;  %v6532_v4 = vpop.f32.mrb[142].mxu0 }
 0x215   : > { %v6469_v30 = vpop.f32.mrb[143].mxu1  ;;  %v6533_v39 = vpop.f32.mrb[143].mxu0  ;;  %7174 = vmatpush3.bf16.msra.mxu0 %v7821_v29 }
 0x216   : > { %v9175_v31 = vadd.f32 %v6467_v36, %v9016_v13  ;;  %v9178_v23 = vadd.f32 %v6531_v37, %v9019_v47  ;;  %v6470_v2 = vadd.f32 %v6469_v30, %v6468_v22  ;;  %v6534_v17 = vadd.f32 %v6533_v39, %v6532_v4  ;;  %7175 = vmatprep.subr.bf16.mxu0 %v7834_v6  ;;  %v7798_v4 = vld [vmem:[%s8016_s10 + $0x818] ss:$84 sps:$4 sm:$0xff]  }
 0x217   : > { %4853 = vmatmul.mubr.bf16.gmra.mrb[248].mxu1 %v7787_v19  ;;  %4950 = vmatmul.mubr.bf16.gmra.mrb[248].mxu0 %v7788_v56  ;;  %v7873_v19 = vld [vmem:[%s9875_s1 + $0x538] sm:$0xff]  }
 0x218   : > { %v9184_v55 = vadd.f32 %v6470_v2, %v9025_v27  ;;  %v9187_v13 = vadd.f32 %v6534_v17, %v9028_v14  ;;  %4860 = vmatprep.mubr.bf16.mxu1 %v7792_v25  ;;  %4957 = vmatprep.mubr.bf16.mxu0 %v7794_v3  ;;  %v7797_v27 = vld [vmem:[%s8016_s10 + $0x238] ss:$84 sps:$4 sm:$0xff]   ;;  %v7801_v25 = vld [vmem:[%s8016_s10 + $0x2e0] ss:$84 sps:$4 sm:$0xff]  }
 0x219   : > { %7176 = vmatpush3.bf16.msra.mxu0 %v7834_v6  ;;  %v7809_v2 = vld [vmem:[%s8016_s10 + $0x8c4] ss:$84 sps:$4 sm:$0xff]   ;;  %v7812_v17 = vld [vmem:[%s8016_s10 + $0x38c] ss:$84 sps:$4 sm:$0xff]  }
 0x21a   : > { %v6535_v47 = vpop.f32.mrb[144].mxu0  ;;  %v6599_v58 = vpop.f32.mrb[144].mxu1  ;;  %7177 = vmatprep.subr.bf16.mxu0 %v7847_v38 }
 0x21b   : > { %v6536_v1 = vpop.f32.mrb[145].mxu0  ;;  %v6600_v12 = vpop.f32.mrb[145].mxu1 }
 0x21c   : > { %v6537_v10 = vadd.f32 %v6536_v1, %v6535_v47  ;;  %v6601_v5 = vadd.f32 %v6600_v12, %v6599_v58  ;;  %v6538_v14 = vpop.f32.mrb[146].mxu0  ;;  %v6602_v46 = vpop.f32.mrb[146].mxu1 }
 0x21d   : > { %v6539_v29 = vpop.f32.mrb[147].mxu0  ;;  %v6603_v45 = vpop.f32.mrb[147].mxu1  ;;  %7178 = vmatpush3.bf16.msra.mxu0 %v7847_v38 }
 0x21e   : > { %v9197_v43 = vadd.f32 %v6537_v10, %v9044_v44  ;;  %v9200_v6 = vadd.f32 %v6601_v5, %v9047_v54  ;;  %v6540_v35 = vadd.f32 %v6539_v29, %v6538_v14  ;;  %v6604_v18 = vadd.f32 %v6603_v45, %v6602_v46  ;;  %7179 = vmatprep.subr.bf16.mxu0 %v7860_v48  ;;  %v7810_v14 = vld [vmem:[%s8016_s10 + $0x388] ss:$84 sps:$4 sm:$0xff]   ;;  %v7815_v45 = vld [vmem:[%s8016_s10 + $0x96c] ss:$84 sps:$4 sm:$0xff]  }
 0x21f   : > { %4861 = vmatmul.mubr.bf16.gmra.mrb[252].mxu1 %v7796_v62  ;;  %4958 = vmatmul.mubr.bf16.gmra.mrb[252].mxu0 %v7797_v27 }
 0x220   : > { %v9206_v56 = vadd.f32 %v6540_v35, %v9053_v11  ;;  %v9209_v44 = vadd.f32 %v6604_v18, %v9056_v24  ;;  %4868 = vmatprep.mubr.bf16.mxu1 %v7800_v8  ;;  %4965 = vmatprep.mubr.bf16.mxu0 %v7803_v41  ;;  %v7818_v35 = vld [vmem:[%s8016_s10 + $0x434] ss:$84 sps:$4 sm:$0xff]  }
 0x221   : > { %7180 = vmatpush3.bf16.msra.mxu0 %v7860_v48 }
 0x222   : > { %v6541_v54 = vpop.f32.mrb[148].mxu0  ;;  %v6605_v36 = vpop.f32.mrb[148].mxu1  ;;  %7181 = vmatprep.subr.bf16.mxu0 %v7873_v19 }
 0x223   : > { %v6542_v37 = vpop.f32.mrb[149].mxu0  ;;  %v6606_v22 = vpop.f32.mrb[149].mxu1 }
 0x224   : > { %v6543_v3 = vadd.f32 %v6542_v37, %v6541_v54  ;;  %v6607_v30 = vadd.f32 %v6606_v22, %v6605_v36  ;;  %v6544_v39 = vpop.f32.mrb[150].mxu0  ;;  %v6608_v11 = vpop.f32.mrb[150].mxu1 }
 0x225   : > { %v6545_v38 = vpop.f32.mrb[151].mxu0  ;;  %v6609_v24 = vpop.f32.mrb[151].mxu1  ;;  %7182 = vmatpush3.bf16.msra.mxu0 %v7873_v19 }
 0x226   : > { %v9216_v47 = vadd.f32 %v6543_v3, %v9066_v34  ;;  %v9219_v58 = vadd.f32 %v6607_v30, %v9069_v26  ;;  %v6546_v48 = vadd.f32 %v6545_v38, %v6544_v39  ;;  %v6610_v1 = vadd.f32 %v6609_v24, %v6608_v11  ;;  %v7807_v26 = vld [vmem:[%s8016_s10 + $0x8c0] ss:$84 sps:$4 sm:$0xff]   ;;  %v7816_v30 = vld [vmem:[%s8016_s10 + $0x430] ss:$84 sps:$4 sm:$0xff]  }
 0x227   : > { %4869 = vmatmul.mubr.bf16.gmra.mrb[0].mxu1 %v7798_v4  ;;  %4966 = vmatmul.mubr.bf16.gmra.mrb[0].mxu0 %v7801_v25  ;;  %v7824_v38 = vld [vmem:[%s8016_s10 + $0xa14] ss:$84 sps:$4 sm:$0xff]   ;;  %v7827_v24 = vld [vmem:[%s8016_s10 + $0x4dc] ss:$84 sps:$4 sm:$0xff]  }
 0x228   : > { %v9222_v12 = vadd.f32 %v6546_v48, %v9072_v50  ;;  %v9225_v62 = vadd.f32 %v6610_v1, %v9075_v52  ;;  %4876 = vmatprep.mubr.bf16.mxu1 %v7809_v2  ;;  %4973 = vmatprep.mubr.bf16.mxu0 %v7812_v17 }
 0x22a   : > { %v6547_v27 = vpop.f32.mrb[152].mxu0  ;;  %v6611_v34 = vpop.f32.mrb[152].mxu1 }
 0x22b   : > { %v6548_v10 = vpop.f32.mrb[153].mxu0  ;;  %v6612_v5 = vpop.f32.mrb[153].mxu1 }
 0x22c   : > { %v6549_v46 = vadd.f32 %v6548_v10, %v6547_v27  ;;  %v6613_v8 = vadd.f32 %v6612_v5, %v6611_v34  ;;  %v6550_v41 = vpop.f32.mrb[154].mxu0  ;;  %v6614_v29 = vpop.f32.mrb[154].mxu1 }
 0x22d   : > { %v6551_v18 = vpop.f32.mrb[155].mxu0  ;;  %v6615_v50 = vpop.f32.mrb[155].mxu1 }
 0x22e   : > { %v9232_v52 = vadd.f32 %v6549_v46, %v9082_v21  ;;  %v9235_v19 = vadd.f32 %v6613_v8, %v9085_v40  ;;  %v6552_v54 = vadd.f32 %v6551_v18, %v6550_v41  ;;  %v6616_v36 = vadd.f32 %v6615_v50, %v6614_v29  ;;  %v7813_v40 = vld [vmem:[%s8016_s10 + $0x968] ss:$84 sps:$4 sm:$0xff]   ;;  %v7825_v8 = vld [vmem:[%s8016_s10 + $0x4d8] ss:$84 sps:$4 sm:$0xff]  }
 0x22f   : > { %4877 = vmatmul.mubr.bf16.gmra.mrb[4].mxu1 %v7807_v26  ;;  %4974 = vmatmul.mubr.bf16.gmra.mrb[4].mxu0 %v7810_v14  ;;  %v7830_v18 = vld [vmem:[%s8016_s10 + $0x584] ss:$84 sps:$4 sm:$0xff]   ;;  %v7833_v50 = vld [vmem:[%s8016_s10 + $0x4c] ss:$84 sps:$4 sm:$0xff]  }
 0x230   : > { %v9238_v37 = vadd.f32 %v6552_v54, %v9088_v61  ;;  %v9241_v22 = vadd.f32 %v6616_v36, %v9091_v0  ;;  %4884 = vmatprep.mubr.bf16.mxu1 %v7815_v45  ;;  %4981 = vmatprep.mubr.bf16.mxu0 %v7818_v35 }
 0x232   : > { %v6553_v4 = vpop.f32.mrb[156].mxu0  ;;  %v6617_v21 = vpop.f32.mrb[156].mxu1 }
 0x233   : > { %v6554_v25 = vpop.f32.mrb[157].mxu0  ;;  %v6618_v3 = vpop.f32.mrb[157].mxu1 }
 0x234   : > { %v6555_v39 = vadd.f32 %v6554_v25, %v6553_v4  ;;  %v6619_v11 = vadd.f32 %v6618_v3, %v6617_v21  ;;  %v6556_v2 = vpop.f32.mrb[158].mxu0  ;;  %v6620_v17 = vpop.f32.mrb[158].mxu1 }
 0x235   : > { %v6557_v48 = vpop.f32.mrb[159].mxu0  ;;  %v6621_v61 = vpop.f32.mrb[159].mxu1 }
 0x236   : > { %v9248_v0 = vadd.f32 %v6555_v39, %v9098_v59  ;;  %v9251_v1 = vadd.f32 %v6619_v11, %v9101_v60  ;;  %v6558_v27 = vadd.f32 %v6557_v48, %v6556_v2  ;;  %v6622_v34 = vadd.f32 %v6621_v61, %v6620_v17  ;;  %v7822_v60 = vld [vmem:[%s8016_s10 + $0xa10] ss:$84 sps:$4 sm:$0xff]   ;;  %v7831_v11 = vld [vmem:[%s8016_s10 + $0x48] ss:$84 sps:$4 sm:$0xff]   ;;  %v7837_v48 = vld [vmem:[%s8016_s10 + $0x62c] ss:$84 sps:$4 sm:$0xff]  }
 0x237   : > { %4885 = vmatmul.mubr.bf16.gmra.mrb[8].mxu1 %v7813_v40  ;;  %4982 = vmatmul.mubr.bf16.gmra.mrb[8].mxu0 %v7816_v30  ;;  %v7840_v61 = vld [vmem:[%s8016_s10 + $0xf4] ss:$84 sps:$4 sm:$0xff]  }
 0x238   : > { %v9254_v10 = vadd.f32 %v6558_v27, %v9104_v57  ;;  %v9257_v5 = vadd.f32 %v6622_v34, %v9107_v53  ;;  %4892 = vmatprep.mubr.bf16.mxu1 %v7824_v38  ;;  %4989 = vmatprep.mubr.bf16.mxu0 %v7827_v24 }
 0x23a   : > { %v6559_v26 = vpop.f32.mrb[160].mxu0  ;;  %v6623_v59 = vpop.f32.mrb[160].mxu1 }
 0x23b   : > { %v6560_v14 = vpop.f32.mrb[161].mxu0  ;;  %v6624_v46 = vpop.f32.mrb[161].mxu1 }
 0x23c   : > { %v6561_v41 = vadd.f32 %v6560_v14, %v6559_v26  ;;  %v6625_v29 = vadd.f32 %v6624_v46, %v6623_v59  ;;  %v6562_v45 = vpop.f32.mrb[162].mxu0  ;;  %v6626_v35 = vpop.f32.mrb[162].mxu1 }
 0x23d   : > { %v6563_v54 = vpop.f32.mrb[163].mxu0  ;;  %v6627_v57 = vpop.f32.mrb[163].mxu1 }
 0x23e   : > { %v9264_v53 = vadd.f32 %v6561_v41, %v9114_v42  ;;  %v9267_v36 = vadd.f32 %v6625_v29, %v9117_v16  ;;  %v6564_v4 = vadd.f32 %v6563_v54, %v6562_v45  ;;  %v6628_v21 = vadd.f32 %v6627_v57, %v6626_v35  ;;  %v7828_v16 = vld [vmem:[%s8016_s10 + $0x580] ss:$84 sps:$4 sm:$0xff]   ;;  %v7838_v29 = vld [vmem:[%s8016_s10 + $0xf0] ss:$84 sps:$4 sm:$0xff]  }
 0x23f   : > { %4893 = vmatmul.mubr.bf16.gmra.mrb[12].mxu1 %v7822_v60  ;;  %4990 = vmatmul.mubr.bf16.gmra.mrb[12].mxu0 %v7825_v8  ;;  %v7843_v54 = vld [vmem:[%s8016_s10 + $0x6d4] ss:$84 sps:$4 sm:$0xff]   ;;  %v7846_v57 = vld [vmem:[%s8016_s10 + $0x19c] ss:$84 sps:$4 sm:$0xff]  }
 0x240   : > { %v9270_v25 = vadd.f32 %v6564_v4, %v9120_v49  ;;  %v9273_v3 = vadd.f32 %v6628_v21, %v9123_v15  ;;  %4997 = vmatprep.mubr.bf16.mxu0 %v7830_v18  ;;  %5094 = vmatprep.mubr.bf16.mxu1 %v7833_v50 }
 0x242   : > { %v6565_v40 = vpop.f32.mrb[164].mxu0  ;;  %v6629_v42 = vpop.f32.mrb[164].mxu1 }
 0x243   : > { %v6566_v30 = vpop.f32.mrb[165].mxu0  ;;  %v6630_v39 = vpop.f32.mrb[165].mxu1 }
 0x244   : > { %v6567_v2 = vadd.f32 %v6566_v30, %v6565_v40  ;;  %v6631_v17 = vadd.f32 %v6630_v39, %v6629_v42  ;;  %v6568_v38 = vpop.f32.mrb[166].mxu0  ;;  %v6632_v24 = vpop.f32.mrb[166].mxu1 }
 0x245   : > { %v6569_v27 = vpop.f32.mrb[167].mxu0  ;;  %v6633_v49 = vpop.f32.mrb[167].mxu1 }
 0x246   : > { %v9280_v15 = vadd.f32 %v6567_v2, %v9133_v28  ;;  %v9283_v34 = vadd.f32 %v6631_v17, %v9136_v9  ;;  %v6570_v26 = vadd.f32 %v6569_v27, %v6568_v38  ;;  %v6634_v59 = vadd.f32 %v6633_v49, %v6632_v24  ;;  %v7835_v9 = vld [vmem:[%s8016_s10 + $0x628] ss:$84 sps:$4 sm:$0xff]   ;;  %v7844_v17 = vld [vmem:[%s8016_s10 + $0x198] ss:$84 sps:$4 sm:$0xff]  }
 0x247   : > { %4998 = vmatmul.mubr.bf16.gmra.mrb[16].mxu0 %v7828_v16  ;;  %5095 = vmatmul.mubr.bf16.vlgmr.msra.gmra.mrb[16].mxu1 %v7831_v11  ;;  %v7850_v27 = vld [vmem:[%s8016_s10 + $0x77c] ss:$84 sps:$4 sm:$0xff]   ;;  %v7853_v49 = vld [vmem:[%s8016_s10 + $0x244] ss:$84 sps:$4 sm:$0xff]  }
 0x248   : > { %v9286_v14 = vadd.f32 %v6570_v26, %v9139_v51  ;;  %v9289_v46 = vadd.f32 %v6634_v59, %v9142_v20  ;;  %5005 = vmatprep.mubr.bf16.mxu0 %v7837_v48  ;;  %5102 = vmatprep.mubr.bf16.mxu1 %v7840_v61 }
 0x24a   : > { %v6571_v60 = vpop.f32.mrb[168].mxu0  ;;  %v6635_v28 = vpop.f32.mrb[168].mxu1 }
 0x24b   : > { %v6572_v8 = vpop.f32.mrb[169].mxu0  ;;  %v6636_v41 = vpop.f32.mrb[169].mxu1 }
 0x24c   : > { %v6573_v45 = vadd.f32 %v6572_v8, %v6571_v60  ;;  %v6637_v35 = vadd.f32 %v6636_v41, %v6635_v28  ;;  %v6574_v18 = vpop.f32.mrb[170].mxu0  ;;  %v6638_v50 = vpop.f32.mrb[170].mxu1 }
 0x24d   : > { %v6575_v4 = vpop.f32.mrb[171].mxu0  ;;  %v6639_v51 = vpop.f32.mrb[171].mxu1 }
 0x24e   : > { %v9296_v20 = vadd.f32 %v6573_v45, %v9153_v63  ;;  %v9299_v21 = vadd.f32 %v6637_v35, %v9156_v32  ;;  %v6576_v40 = vadd.f32 %v6575_v4, %v6574_v18  ;;  %v6640_v42 = vadd.f32 %v6639_v51, %v6638_v50  ;;  %v7841_v32 = vld [vmem:[%s8016_s10 + $0x6d0] ss:$84 sps:$4 sm:$0xff]   ;;  %v7851_v35 = vld [vmem:[%s8016_s10 + $0x240] ss:$84 sps:$4 sm:$0xff]  }
 0x24f   : > { %5006 = vmatmul.mubr.bf16.gmra.mrb[20].mxu0 %v7835_v9  ;;  %5103 = vmatmul.mubr.bf16.gmra.mrb[20].mxu1 %v7838_v29  ;;  %v7856_v4 = vld [vmem:[%s8016_s10 + $0x824] ss:$84 sps:$4 sm:$0xff]   ;;  %v7859_v51 = vld [vmem:[%s8016_s10 + $0x2ec] ss:$84 sps:$4 sm:$0xff]  }
 0x250   : > { %v9302_v30 = vadd.f32 %v6576_v40, %v9162_v33  ;;  %v9305_v39 = vadd.f32 %v6640_v42, %v9165_v7  ;;  %5013 = vmatprep.mubr.bf16.mxu0 %v7843_v54  ;;  %5110 = vmatprep.mubr.bf16.mxu1 %v7846_v57 }
 0x252   : > { %v6577_v16 = vpop.f32.mrb[172].mxu0  ;;  %v6641_v63 = vpop.f32.mrb[172].mxu1 }
 0x253   : > { %v6578_v11 = vpop.f32.mrb[173].mxu0  ;;  %v6642_v2 = vpop.f32.mrb[173].mxu1 }
 0x254   : > { %v6579_v38 = vadd.f32 %v6578_v11, %v6577_v16  ;;  %v6643_v24 = vadd.f32 %v6642_v2, %v6641_v63  ;;  %v6580_v48 = vpop.f32.mrb[174].mxu0  ;;  %v6644_v61 = vpop.f32.mrb[174].mxu1 }
 0x255   : > { %v6581_v26 = vpop.f32.mrb[175].mxu0  ;;  %v6645_v33 = vpop.f32.mrb[175].mxu1 }
 0x256   : > { %v9312_v7 = vadd.f32 %v6579_v38, %v9175_v31  ;;  %v9315_v59 = vadd.f32 %v6643_v24, %v9178_v23  ;;  %v6582_v60 = vadd.f32 %v6581_v26, %v6580_v48  ;;  %v6646_v28 = vadd.f32 %v6645_v33, %v6644_v61  ;;  %v7848_v23 = vld [vmem:[%s8016_s10 + $0x778] ss:$84 sps:$4 sm:$0xff]   ;;  %v7857_v24 = vld [vmem:[%s8016_s10 + $0x2e8] ss:$84 sps:$4 sm:$0xff]  }
 0x257   : > { %5014 = vmatmul.mubr.bf16.gmra.mrb[24].mxu0 %v7841_v32  ;;  %5111 = vmatmul.mubr.bf16.gmra.mrb[24].mxu1 %v7844_v17  ;;  %v7863_v26 = vld [vmem:[%s8016_s10 + $0x8cc] ss:$84 sps:$4 sm:$0xff]   ;;  %v7866_v33 = vld [vmem:[%s8016_s10 + $0x394] ss:$84 sps:$4 sm:$0xff]  }
 0x258   : > { %v9318_v8 = vadd.f32 %v6582_v60, %v9184_v55  ;;  %v9321_v41 = vadd.f32 %v6646_v28, %v9187_v13  ;;  %5021 = vmatprep.mubr.bf16.mxu0 %v7850_v27  ;;  %5118 = vmatprep.mubr.bf16.mxu1 %v7853_v49 }
 0x25a   : > { %v6647_v9 = vpop.f32.mrb[176].mxu1  ;;  %v6711_v31 = vpop.f32.mrb[176].mxu0 }
 0x25b   : > { %v6648_v29 = vpop.f32.mrb[177].mxu1  ;;  %v6712_v45 = vpop.f32.mrb[177].mxu0 }
 0x25c   : > { %v6649_v18 = vadd.f32 %v6648_v29, %v6647_v9  ;;  %v6713_v50 = vadd.f32 %v6712_v45, %v6711_v31  ;;  %v6650_v54 = vpop.f32.mrb[178].mxu1  ;;  %v6714_v57 = vpop.f32.mrb[178].mxu0 }
 0x25d   : > { %v6651_v40 = vpop.f32.mrb[179].mxu1  ;;  %v6715_v55 = vpop.f32.mrb[179].mxu0 }
 0x25e   : > { %v9328_v13 = vadd.f32 %v6649_v18, %v9197_v43  ;;  %v9331_v42 = vadd.f32 %v6713_v50, %v9200_v6  ;;  %v6652_v16 = vadd.f32 %v6651_v40, %v6650_v54  ;;  %v6716_v63 = vadd.f32 %v6715_v55, %v6714_v57  ;;  %v7854_v6 = vld [vmem:[%s8016_s10 + $0x820] ss:$84 sps:$4 sm:$0xff]   ;;  %v7864_v50 = vld [vmem:[%s8016_s10 + $0x390] ss:$84 sps:$4 sm:$0xff]  }
 0x25f   : > { %5022 = vmatmul.mubr.bf16.gmra.mrb[28].mxu0 %v7848_v23  ;;  %5119 = vmatmul.mubr.bf16.gmra.mrb[28].mxu1 %v7851_v35  ;;  %v7869_v40 = vld [vmem:[%s8016_s10 + $0x974] ss:$84 sps:$4 sm:$0xff]   ;;  %v7872_v55 = vld [vmem:[%s8016_s10 + $0x43c] ss:$84 sps:$4 sm:$0xff]  }
 0x260   : > { %v9334_v11 = vadd.f32 %v6652_v16, %v9206_v56  ;;  %v9337_v2 = vadd.f32 %v6716_v63, %v9209_v44  ;;  %5029 = vmatprep.mubr.bf16.mxu0 %v7856_v4  ;;  %5126 = vmatprep.mubr.bf16.mxu1 %v7859_v51 }
 0x262   : > { %v6653_v32 = vpop.f32.mrb[180].mxu1  ;;  %v6717_v43 = vpop.f32.mrb[180].mxu0 }
 0x263   : > { %v6654_v17 = vpop.f32.mrb[181].mxu1  ;;  %v6718_v38 = vpop.f32.mrb[181].mxu0 }
 0x264   : > { %v6655_v48 = vadd.f32 %v6654_v17, %v6653_v32  ;;  %v6719_v61 = vadd.f32 %v6718_v38, %v6717_v43  ;;  %v6656_v27 = vpop.f32.mrb[182].mxu1  ;;  %v6720_v49 = vpop.f32.mrb[182].mxu0 }
 0x265   : > { %v6657_v60 = vpop.f32.mrb[183].mxu1  ;;  %v6721_v56 = vpop.f32.mrb[183].mxu0 }
 0x266   : > { %v9344_v44 = vadd.f32 %v6655_v48, %v9216_v47  ;;  %v9347_v28 = vadd.f32 %v6719_v61, %v9219_v58  ;;  %v6658_v9 = vadd.f32 %v6657_v60, %v6656_v27  ;;  %v6722_v31 = vadd.f32 %v6721_v56, %v6720_v49  ;;  %v7861_v58 = vld [vmem:[%s8016_s10 + $0x8c8] ss:$84 sps:$4 sm:$0xff]   ;;  %v7870_v61 = vld [vmem:[%s8016_s10 + $0x438] ss:$84 sps:$4 sm:$0xff]  }
 0x267   : > { %5030 = vmatmul.mubr.bf16.gmra.mrb[32].mxu0 %v7854_v6  ;;  %5127 = vmatmul.mubr.bf16.gmra.mrb[32].mxu1 %v7857_v24  ;;  %v7876_v60 = vld [vmem:[%s8016_s10 + $0xa1c] ss:$84 sps:$4 sm:$0xff]   ;;  %v7879_v56 = vld [vmem:[%s8016_s10 + $0x4e4] ss:$84 sps:$4 sm:$0xff]  }
 0x268   : > { %v9350_v29 = vadd.f32 %v6658_v9, %v9222_v12  ;;  %v9353_v45 = vadd.f32 %v6722_v31, %v9225_v62  ;;  %5037 = vmatprep.mubr.bf16.mxu0 %v7863_v26  ;;  %5134 = vmatprep.mubr.bf16.mxu1 %v7866_v33 }
 0x26a   : > { %v6659_v23 = vpop.f32.mrb[184].mxu1  ;;  %v6723_v47 = vpop.f32.mrb[184].mxu0 }
 0x26b   : > { %v6660_v35 = vpop.f32.mrb[185].mxu1  ;;  %v6724_v18 = vpop.f32.mrb[185].mxu0 }
 0x26c   : > { %v6661_v54 = vadd.f32 %v6660_v35, %v6659_v23  ;;  %v6725_v57 = vadd.f32 %v6724_v18, %v6723_v47  ;;  %v6662_v4 = vpop.f32.mrb[186].mxu1  ;;  %v6726_v51 = vpop.f32.mrb[186].mxu0 }
 0x26d   : > { %v6663_v16 = vpop.f32.mrb[187].mxu1  ;;  %v6727_v12 = vpop.f32.mrb[187].mxu0 }
 0x26e   : > { %v9360_v62 = vadd.f32 %v6661_v54, %v9232_v52  ;;  %v9363_v63 = vadd.f32 %v6725_v57, %v9235_v19  ;;  %v6664_v32 = vadd.f32 %v6663_v16, %v6662_v4  ;;  %v6728_v43 = vadd.f32 %v6727_v12, %v6726_v51  ;;  %v7867_v19 = vld [vmem:[%s8016_s10 + $0x970] ss:$84 sps:$4 sm:$0xff]   ;;  %v7877_v57 = vld [vmem:[%s8016_s10 + $0x4e0] ss:$84 sps:$4 sm:$0xff]  }
 0x26f   : > { %5038 = vmatmul.mubr.bf16.gmra.mrb[36].mxu0 %v7861_v58  ;;  %5135 = vmatmul.mubr.bf16.gmra.mrb[36].mxu1 %v7864_v50  ;;  %v7882_v16 = vld [vmem:[%s8016_s10 + $0x58c] ss:$84 sps:$4 sm:$0xff]   ;;  %v7883_v12 = vld [vmem:[%s8016_s10 + $0x50] ss:$84 sps:$4 sm:$0xff]  }
 0x270   : > { %v9366_v17 = vadd.f32 %v6664_v32, %v9238_v37  ;;  %v9369_v38 = vadd.f32 %v6728_v43, %v9241_v22  ;;  %5045 = vmatprep.mubr.bf16.mxu0 %v7869_v40  ;;  %5142 = vmatprep.mubr.bf16.mxu1 %v7872_v55 }
 0x272   : > { %v6665_v6 = vpop.f32.mrb[188].mxu1  ;;  %v6729_v52 = vpop.f32.mrb[188].mxu0 }
 0x273   : > { %v6666_v24 = vpop.f32.mrb[189].mxu1  ;;  %v6730_v48 = vpop.f32.mrb[189].mxu0 }
 0x274   : > { %v6667_v27 = vadd.f32 %v6666_v24, %v6665_v6  ;;  %v6731_v49 = vadd.f32 %v6730_v48, %v6729_v52  ;;  %v6668_v26 = vpop.f32.mrb[190].mxu1  ;;  %v6732_v33 = vpop.f32.mrb[190].mxu0 }
 0x275   : > { %v6669_v9 = vpop.f32.mrb[191].mxu1  ;;  %v6733_v37 = vpop.f32.mrb[191].mxu0 }
 0x276   : > { %v9376_v22 = vadd.f32 %v6667_v27, %v9248_v0  ;;  %v9379_v31 = vadd.f32 %v6731_v49, %v9251_v1  ;;  %v6670_v23 = vadd.f32 %v6669_v9, %v6668_v26  ;;  %v6734_v47 = vadd.f32 %v6733_v37, %v6732_v33  ;;  %v7874_v1 = vld [vmem:[%s8016_s10 + $0xa18] ss:$84 sps:$4 sm:$0xff]   ;;  %v7887_v9 = vld [vmem:[%s8016_s10 + $0x634] ss:$84 sps:$4 sm:$0xff]  }
 0x277   : > { %5046 = vmatmul.mubr.bf16.gmra.mrb[40].mxu0 %v7867_v19  ;;  %5143 = vmatmul.mubr.bf16.gmra.mrb[40].mxu1 %v7870_v61  ;;  %v7884_v49 = vld [vmem:[%s8016_s10 + $0xf8] ss:$84 sps:$4 sm:$0xff]   ;;  %v7888_v37 = vld [vmem:[%s8016_s10 + $0x1a0] ss:$84 sps:$4 sm:$0xff]  }
 0x278   : > { %v9382_v35 = vadd.f32 %v6670_v23, %v9254_v10  ;;  %v9385_v18 = vadd.f32 %v6734_v47, %v9257_v5  ;;  %5053 = vmatprep.mubr.bf16.mxu0 %v7876_v60  ;;  %5150 = vmatprep.mubr.bf16.mxu1 %v7879_v56 }
 0x27a   : > { %v6671_v58 = vpop.f32.mrb[192].mxu1  ;;  %v6735_v0 = vpop.f32.mrb[192].mxu0 }
 0x27b   : > { %v6672_v50 = vpop.f32.mrb[193].mxu1  ;;  %v6736_v54 = vpop.f32.mrb[193].mxu0 }
 0x27c   : > { %v6673_v4 = vadd.f32 %v6672_v50, %v6671_v58  ;;  %v6737_v51 = vadd.f32 %v6736_v54, %v6735_v0  ;;  %v6674_v40 = vpop.f32.mrb[194].mxu1  ;;  %v6738_v55 = vpop.f32.mrb[194].mxu0 }
 0x27d   : > { %v6675_v32 = vpop.f32.mrb[195].mxu1  ;;  %v6739_v10 = vpop.f32.mrb[195].mxu0 }
 0x27e   : > { %v9392_v5 = vadd.f32 %v6673_v4, %v9264_v53  ;;  %v9395_v43 = vadd.f32 %v6737_v51, %v9267_v36  ;;  %v6676_v6 = vadd.f32 %v6675_v32, %v6674_v40  ;;  %v6740_v52 = vadd.f32 %v6739_v10, %v6738_v55  ;;  %v7880_v36 = vld [vmem:[%s8016_s10 + $0x588] ss:$84 sps:$4 sm:$0xff]   ;;  %v7893_v10 = vld [vmem:[%s8016_s10 + $0x2f0] ss:$84 sps:$4 sm:$0xff]  }
 0x27f   : > { %5054 = vmatmul.mubr.bf16.gmra.mrb[44].mxu0 %v7874_v1  ;;  %5151 = vmatmul.mubr.bf16.gmra.mrb[44].mxu1 %v7877_v57  ;;  %v7889_v51 = vld [vmem:[%s8016_s10 + $0x248] ss:$84 sps:$4 sm:$0xff]  }
 0x280   : > { %v9398_v24 = vadd.f32 %v6676_v6, %v9270_v25  ;;  %v9401_v48 = vadd.f32 %v6740_v52, %v9273_v3  ;;  %5158 = vmatprep.mubr.bf16.mxu1 %v7882_v16  ;;  %7183 = vmatprep.mubr.bf16.mxu0 %v7883_v12  ;;  %v7892_v32 = vld [vmem:[%s8016_s10 + $0x6dc] ss:$84 sps:$4 sm:$0xff]  }
 0x282   : > { %v6677_v19 = vpop.f32.mrb[196].mxu1  ;;  %v6741_v53 = vpop.f32.mrb[196].mxu0 }
 0x283   : > { %v6678_v61 = vpop.f32.mrb[197].mxu1  ;;  %v6742_v27 = vpop.f32.mrb[197].mxu0 }
 0x284   : > { %v6679_v26 = vadd.f32 %v6678_v61, %v6677_v19  ;;  %v6743_v33 = vadd.f32 %v6742_v27, %v6741_v53  ;;  %v6680_v60 = vpop.f32.mrb[198].mxu1  ;;  %v6744_v56 = vpop.f32.mrb[198].mxu0 }
 0x285   : > { %v6681_v23 = vpop.f32.mrb[199].mxu1  ;;  %v6745_v25 = vpop.f32.mrb[199].mxu0 }
 0x286   : > { %v9408_v3 = vadd.f32 %v6679_v26, %v9280_v15  ;;  %v9411_v47 = vadd.f32 %v6743_v33, %v9283_v34  ;;  %v6682_v58 = vadd.f32 %v6681_v23, %v6680_v60  ;;  %v6746_v0 = vadd.f32 %v6745_v25, %v6744_v56  ;;  %v7885_v34 = vld [vmem:[%s8016_s10 + $0x630] ss:$84 sps:$4 sm:$0xff]   ;;  %v7894_v33 = vld [vmem:[%s8016_s10 + $0x398] ss:$84 sps:$4 sm:$0xff]   ;;  %v7898_v25 = vld [vmem:[%s8016_s10 + $0x440] ss:$84 sps:$4 sm:$0xff]  }
 0x287   : > { %5159 = vmatmul.mubr.bf16.gmra.mrb[48].mxu1 %v7880_v36  ;;  %7184 = vmatmul.mubr.bf16.vlgmr.msra.gmra.mrb[48].mxu0 %v7884_v49  ;;  %v7897_v23 = vld [vmem:[%s8016_s10 + $0x784] ss:$84 sps:$4 sm:$0xff]  }
 0x288   : > { %v9414_v50 = vadd.f32 %v6682_v58, %v9286_v14  ;;  %v9417_v54 = vadd.f32 %v6746_v0, %v9289_v46  ;;  %5166 = vmatprep.mubr.bf16.mxu1 %v7887_v9  ;;  %7187 = vmatprep.mubr.bf16.mxu0 %v7888_v37 }
 0x28a   : > { %v6683_v1 = vpop.f32.mrb[200].mxu1  ;;  %v6747_v15 = vpop.f32.mrb[200].mxu0 }
 0x28b   : > { %v6684_v57 = vpop.f32.mrb[201].mxu1  ;;  %v6748_v4 = vpop.f32.mrb[201].mxu0 }
 0x28c   : > { %v6685_v40 = vadd.f32 %v6684_v57, %v6683_v1  ;;  %v6749_v55 = vadd.f32 %v6748_v4, %v6747_v15  ;;  %v6686_v16 = vpop.f32.mrb[202].mxu1  ;;  %v6750_v12 = vpop.f32.mrb[202].mxu0 }
 0x28d   : > { %v6687_v6 = vpop.f32.mrb[203].mxu1  ;;  %v6751_v14 = vpop.f32.mrb[203].mxu0 }
 0x28e   : > { %v9424_v46 = vadd.f32 %v6685_v40, %v9296_v20  ;;  %v9427_v52 = vadd.f32 %v6749_v55, %v9299_v21  ;;  %v6688_v19 = vadd.f32 %v6687_v6, %v6686_v16  ;;  %v6752_v53 = vadd.f32 %v6751_v14, %v6750_v12  ;;  %v7890_v21 = vld [vmem:[%s8016_s10 + $0x6d8] ss:$84 sps:$4 sm:$0xff]   ;;  %v7899_v55 = vld [vmem:[%s8016_s10 + $0x4e8] ss:$84 sps:$4 sm:$0xff]   ;;  %v7903_v14 = vld [vmem:[%s8016_s10 + $0x590] ss:$84 sps:$4 sm:$0xff]  }
 0x28f   : > { %5167 = vmatmul.mubr.bf16.gmra.mrb[52].mxu1 %v7885_v34  ;;  %7188 = vmatmul.mubr.bf16.gmra.mrb[52].mxu0 %v7889_v51  ;;  %v7902_v6 = vld [vmem:[%s8016_s10 + $0x82c] ss:$84 sps:$4 sm:$0xff]  }
 0x290   : > { %v9430_v61 = vadd.f32 %v6688_v19, %v9302_v30  ;;  %v9433_v27 = vadd.f32 %v6752_v53, %v9305_v39  ;;  %5174 = vmatprep.mubr.bf16.mxu1 %v7892_v32  ;;  %7191 = vmatprep.mubr.bf16.mxu0 %v7893_v10 }
 0x292   : > { %v6689_v36 = vpop.f32.mrb[204].mxu1  ;;  %v6753_v20 = vpop.f32.mrb[204].mxu0 }
 0x293   : > { %v6690_v49 = vpop.f32.mrb[205].mxu1  ;;  %v6754_v26 = vpop.f32.mrb[205].mxu0 }
 0x294   : > { %v6691_v60 = vadd.f32 %v6690_v49, %v6689_v36  ;;  %v6755_v56 = vadd.f32 %v6754_v26, %v6753_v20  ;;  %v6692_v9 = vpop.f32.mrb[206].mxu1  ;;  %v6756_v37 = vpop.f32.mrb[206].mxu0 }
 0x295   : > { %v6693_v58 = vpop.f32.mrb[207].mxu1  ;;  %v6757_v30 = vpop.f32.mrb[207].mxu0 }
 0x296   : > { %v9440_v39 = vadd.f32 %v6691_v60, %v9312_v7  ;;  %v9443_v0 = vadd.f32 %v6755_v56, %v9315_v59  ;;  %v6694_v1 = vadd.f32 %v6693_v58, %v6692_v9  ;;  %v6758_v15 = vadd.f32 %v6757_v30, %v6756_v37  ;;  %v7895_v59 = vld [vmem:[%s8016_s10 + $0x780] ss:$84 sps:$4 sm:$0xff]   ;;  %v7904_v56 = vld [vmem:[%s8016_s10 + $0x638] ss:$84 sps:$4 sm:$0xff]  }
 0x297   : > { %5175 = vmatmul.mubr.bf16.gmra.mrb[56].mxu1 %v7890_v21  ;;  %7192 = vmatmul.mubr.bf16.gmra.mrb[56].mxu0 %v7894_v33  ;;  %v7907_v58 = vld [vmem:[%s8016_s10 + $0x8d4] ss:$84 sps:$4 sm:$0xff]  }
 0x298   : > { %v9446_v57 = vadd.f32 %v6694_v1, %v9318_v8  ;;  %v9449_v4 = vadd.f32 %v6758_v15, %v9321_v41  ;;  %5182 = vmatprep.mubr.bf16.mxu1 %v7897_v23  ;;  %7195 = vmatprep.mubr.bf16.mxu0 %v7898_v25  ;;  %v7908_v30 = vld [vmem:[%s8016_s10 + $0x6e0] ss:$84 sps:$4 sm:$0xff]  }
 0x29a   : > { %v6759_v34 = vpop.f32.mrb[208].mxu0  ;;  %v6823_v7 = vpop.f32.mrb[208].mxu1 }
 0x29b   : > { %v6760_v51 = vpop.f32.mrb[209].mxu0  ;;  %v6824_v40 = vpop.f32.mrb[209].mxu1 }
 0x29c   : > { %v6761_v16 = vadd.f32 %v6760_v51, %v6759_v34  ;;  %v6825_v12 = vadd.f32 %v6824_v40, %v6823_v7  ;;  %v6762_v32 = vpop.f32.mrb[210].mxu0  ;;  %v6826_v10 = vpop.f32.mrb[210].mxu1 }
 0x29d   : > { %v6763_v19 = vpop.f32.mrb[211].mxu0  ;;  %v6827_v8 = vpop.f32.mrb[211].mxu1 }
 0x29e   : > { %v9456_v41 = vadd.f32 %v6761_v16, %v9328_v13  ;;  %v9459_v53 = vadd.f32 %v6825_v12, %v9331_v42  ;;  %v6764_v36 = vadd.f32 %v6763_v19, %v6762_v32  ;;  %v6828_v20 = vadd.f32 %v6827_v8, %v6826_v10  ;;  %v7900_v42 = vld [vmem:[%s8016_s10 + $0x828] ss:$84 sps:$4 sm:$0xff]   ;;  %v7913_v8 = vld [vmem:[%s8016_s10 + $0x830] ss:$84 sps:$4 sm:$0xff]  }
 0x29f   : > { %5183 = vmatmul.mubr.bf16.gmra.mrb[60].mxu1 %v7895_v59  ;;  %7196 = vmatmul.mubr.bf16.gmra.mrb[60].mxu0 %v7899_v55  ;;  %v7909_v12 = vld [vmem:[%s8016_s10 + $0x788] ss:$84 sps:$4 sm:$0xff]  }
 0x2a0   : > { %v9462_v49 = vadd.f32 %v6764_v36, %v9334_v11  ;;  %v9465_v26 = vadd.f32 %v6828_v20, %v9337_v2  ;;  %5190 = vmatprep.mubr.bf16.mxu1 %v7902_v6  ;;  %7199 = vmatprep.mubr.bf16.mxu0 %v7903_v14  ;;  %v7912_v19 = vld [vmem:[%s8016_s10 + $0x97c] ss:$84 sps:$4 sm:$0xff]  }
 0x2a2   : > { %v6765_v21 = vpop.f32.mrb[212].mxu0  ;;  %v6829_v13 = vpop.f32.mrb[212].mxu1 }
 0x2a3   : > { %v6766_v33 = vpop.f32.mrb[213].mxu0  ;;  %v6830_v60 = vpop.f32.mrb[213].mxu1 }
 0x2a4   : > { %v6767_v9 = vadd.f32 %v6766_v33, %v6765_v21  ;;  %v6831_v37 = vadd.f32 %v6830_v60, %v6829_v13  ;;  %v6768_v23 = vpop.f32.mrb[214].mxu0  ;;  %v6832_v25 = vpop.f32.mrb[214].mxu1 }
 0x2a5   : > { %v6769_v1 = vpop.f32.mrb[215].mxu0  ;;  %v6833_v11 = vpop.f32.mrb[215].mxu1 }
 0x2a6   : > { %v9472_v2 = vadd.f32 %v6767_v9, %v9344_v44  ;;  %v9475_v15 = vadd.f32 %v6831_v37, %v9347_v28  ;;  %v6770_v34 = vadd.f32 %v6769_v1, %v6768_v23  ;;  %v6834_v7 = vadd.f32 %v6833_v11, %v6832_v25  ;;  %v7905_v28 = vld [vmem:[%s8016_s10 + $0x8d0] ss:$84 sps:$4 sm:$0xff]   ;;  %v7914_v37 = vld [vmem:[%s8016_s10 + $0x8d8] ss:$84 sps:$4 sm:$0xff]   ;;  %v7918_v11 = vld [vmem:[%s8016_s10 + $0x980] ss:$84 sps:$4 sm:$0xff]  }
 0x2a7   : > { %5191 = vmatmul.mubr.bf16.gmra.mrb[64].mxu1 %v7900_v42  ;;  %7200 = vmatmul.mubr.bf16.gmra.mrb[64].mxu0 %v7904_v56  ;;  %v7917_v1 = vld [vmem:[%s8016_s10 + $0xa24] ss:$84 sps:$4 sm:$0xff]  }
 0x2a8   : > { %v9478_v51 = vadd.f32 %v6770_v34, %v9350_v29  ;;  %v9481_v40 = vadd.f32 %v6834_v7, %v9353_v45  ;;  %5198 = vmatprep.mubr.bf16.mxu1 %v7907_v58  ;;  %7203 = vmatprep.mubr.bf16.mxu0 %v7908_v30 }
 0x2aa   : > { %v6771_v59 = vpop.f32.mrb[216].mxu0  ;;  %v6835_v44 = vpop.f32.mrb[216].mxu1 }
 0x2ab   : > { %v6772_v55 = vpop.f32.mrb[217].mxu0  ;;  %v6836_v16 = vpop.f32.mrb[217].mxu1 }
 0x2ac   : > { %v6773_v32 = vadd.f32 %v6772_v55, %v6771_v59  ;;  %v6837_v10 = vadd.f32 %v6836_v16, %v6835_v44  ;;  %v6774_v6 = vpop.f32.mrb[218].mxu0  ;;  %v6838_v14 = vpop.f32.mrb[218].mxu1 }
 0x2ad   : > { %v6775_v36 = vpop.f32.mrb[219].mxu0  ;;  %v6839_v29 = vpop.f32.mrb[219].mxu1 }
 0x2ae   : > { %v9488_v45 = vadd.f32 %v6773_v32, %v9360_v62  ;;  %v9491_v20 = vadd.f32 %v6837_v10, %v9363_v63  ;;  %v6776_v21 = vadd.f32 %v6775_v36, %v6774_v6  ;;  %v6840_v13 = vadd.f32 %v6839_v29, %v6838_v14  ;;  %v7910_v63 = vld [vmem:[%s8016_s10 + $0x978] ss:$84 sps:$4 sm:$0xff]   ;;  %v7915_v10 = vld [vmem:[%s8016_s10 + $0xa20] ss:$84 sps:$4 sm:$0xff]   ;;  %v7919_v6 = vld [vmem:[%s8016_s10 + $0xa28] ss:$84 sps:$4 sm:$0xff]  }
 0x2af   : > { %5199 = vmatmul.mubr.bf16.gmra.mrb[68].mxu1 %v7905_v28  ;;  %7204 = vmatmul.mubr.bf16.gmra.mrb[68].mxu0 %v7909_v12  ;;  %s6022_s10 = sshll.u32 %s9883_s12, 8 }
 0x2b0   : > { %v9494_v33 = vadd.f32 %v6776_v21, %v9366_v17  ;;  %v9497_v60 = vadd.f32 %v6840_v13, %v9369_v38  ;;  %5206 = vmatprep.mubr.bf16.mxu1 %v7912_v19  ;;  %7207 = vmatprep.mubr.bf16.mxu0 %v7913_v8  ;;  %s9761_s4 = scalar_lea.vmem %s9877_s3, %s6022_s10 }
 0x2b2   : > { %v6777_v42 = vpop.f32.mrb[220].mxu0  ;;  %v6841_v62 = vpop.f32.mrb[220].mxu1 }
 0x2b3   : > { %v6778_v56 = vpop.f32.mrb[221].mxu0  ;;  %v6842_v9 = vpop.f32.mrb[221].mxu1 }
 0x2b4   : > { %v6779_v23 = vadd.f32 %v6778_v56, %v6777_v42  ;;  %v6843_v25 = vadd.f32 %v6842_v9, %v6841_v62  ;;  %v6780_v58 = vpop.f32.mrb[222].mxu0  ;;  %v6844_v30 = vpop.f32.mrb[222].mxu1 }
 0x2b5   : > { %v6781_v34 = vpop.f32.mrb[223].mxu0  ;;  %v6845_v17 = vpop.f32.mrb[223].mxu1 }
 0x2b6   : > { %v9504_v38 = vadd.f32 %v6779_v23, %v9376_v22  ;;  %v9507_v7 = vadd.f32 %v6843_v25, %v9379_v31  ;;  %v6782_v59 = vadd.f32 %v6781_v34, %v6780_v58  ;;  %v6846_v44 = vadd.f32 %v6845_v17, %v6844_v30 }
 0x2b7   : > { %5207 = vmatmul.mubr.bf16.gmra.mrb[72].mxu1 %v7910_v63  ;;  %7208 = vmatmul.mubr.bf16.gmra.mrb[72].mxu0 %v7914_v37 }
 0x2b8   : > { %v9510_v55 = vadd.f32 %v6782_v59, %v9382_v35  ;;  %v9513_v16 = vadd.f32 %v6846_v44, %v9385_v18  ;;  %5214 = vmatprep.mubr.bf16.mxu1 %v7917_v1  ;;  %7211 = vmatprep.mubr.bf16.mxu0 %v7918_v11 }
 0x2ba   : > { %v6783_v28 = vpop.f32.mrb[224].mxu0  ;;  %v6847_v12 = vpop.f32.mrb[224].mxu1 }
 0x2bb   : > { %v6784_v32 = vpop.f32.mrb[225].mxu0  ;;  %v6848_v22 = vpop.f32.mrb[225].mxu1 }
 0x2bc   : > { %v6785_v31 = vadd.f32 %v6784_v32, %v6783_v28  ;;  %v6849_v14 = vadd.f32 %v6848_v22, %v6847_v12  ;;  %v6786_v19 = vpop.f32.mrb[226].mxu0  ;;  %v6850_v8 = vpop.f32.mrb[226].mxu1 }
 0x2bd   : > { %v6787_v36 = vpop.f32.mrb[227].mxu0  ;;  %v6851_v29 = vpop.f32.mrb[227].mxu1 }
 0x2be   : > { %v9518_v35 = vadd.f32 %v6785_v31, %v9392_v5  ;;  %v9521_v18 = vadd.f32 %v6849_v14, %v9395_v43  ;;  %v6788_v21 = vadd.f32 %v6787_v36, %v6786_v19  ;;  %v6852_v13 = vadd.f32 %v6851_v29, %v6850_v8 }
 0x2bf   : > { %5215 = vmatmul.mubr.bf16.gmra.mrb[76].mxu1 %v7915_v10  ;;  %7212 = vmatmul.mubr.bf16.gmra.mrb[76].mxu0 %v7919_v6 }
 0x2c0   : > { %v9524_v42 = vadd.f32 %v6788_v21, %v9398_v24  ;;  %v9527_v62 = vadd.f32 %v6852_v13, %v9401_v48 }
 0x2c2   : > { %v6789_v56 = vpop.f32.mrb[228].mxu0  ;;  %v6853_v9 = vpop.f32.mrb[228].mxu1 }
 0x2c3   : > { %v6790_v63 = vpop.f32.mrb[229].mxu0  ;;  %v6854_v37 = vpop.f32.mrb[229].mxu1 }
 0x2c4   : > { %v6791_v23 = vadd.f32 %v6790_v63, %v6789_v56  ;;  %v6855_v5 = vadd.f32 %v6854_v37, %v6853_v9  ;;  %v6792_v25 = vpop.f32.mrb[230].mxu0  ;;  %v6856_v58 = vpop.f32.mrb[230].mxu1 }
 0x2c5   : > { %v6793_v43 = vpop.f32.mrb[231].mxu0  ;;  %v6857_v30 = vpop.f32.mrb[231].mxu1 }
 0x2c6   : > { %v9530_v1 = vadd.f32 %v6791_v23, %v9408_v3  ;;  %v9533_v11 = vadd.f32 %v6855_v5, %v9411_v47  ;;  %v6794_v24 = vadd.f32 %v6793_v43, %v6792_v25  ;;  %v6858_v34 = vadd.f32 %v6857_v30, %v6856_v58 }
 0x2c8   : > { %v9536_v48 = vadd.f32 %v6794_v24, %v9414_v50  ;;  %v9539_v17 = vadd.f32 %v6858_v34, %v9417_v54 }
 0x2ca   : > { %v6795_v59 = vpop.f32.mrb[232].mxu0  ;;  %v6859_v44 = vpop.f32.mrb[232].mxu1 }
 0x2cb   : > { %v6796_v28 = vpop.f32.mrb[233].mxu0  ;;  %v6860_v12 = vpop.f32.mrb[233].mxu1 }
 0x2cc   : > { %v6797_v32 = vadd.f32 %v6796_v28, %v6795_v59  ;;  %v6861_v22 = vadd.f32 %v6860_v12, %v6859_v44  ;;  %v6798_v10 = vpop.f32.mrb[234].mxu0  ;;  %v6862_v3 = vpop.f32.mrb[234].mxu1 }
 0x2cd   : > { %v6799_v6 = vpop.f32.mrb[235].mxu0  ;;  %v6863_v31 = vpop.f32.mrb[235].mxu1 }
 0x2ce   : > { %v9542_v47 = vadd.f32 %v6797_v32, %v9424_v46  ;;  %v9545_v14 = vadd.f32 %v6861_v22, %v9427_v52  ;;  %v6800_v50 = vadd.f32 %v6799_v6, %v6798_v10  ;;  %v6864_v19 = vadd.f32 %v6863_v31, %v6862_v3 }
 0x2d0   : > { %v9548_v54 = vadd.f32 %v6800_v50, %v9430_v61  ;;  %v9551_v8 = vadd.f32 %v6864_v19, %v9433_v27 }
 0x2d2   : > { %v6801_v36 = vpop.f32.mrb[236].mxu0  ;;  %v6865_v29 = vpop.f32.mrb[236].mxu1 }
 0x2d3   : > { %v6802_v21 = vpop.f32.mrb[237].mxu0  ;;  %v6866_v13 = vpop.f32.mrb[237].mxu1 }
 0x2d4   : > { %v6803_v56 = vadd.f32 %v6802_v21, %v6801_v36  ;;  %v6867_v9 = vadd.f32 %v6866_v13, %v6865_v29  ;;  %v6804_v63 = vpop.f32.mrb[238].mxu0  ;;  %v6868_v46 = vpop.f32.mrb[238].mxu1 }
 0x2d5   : > { %v6805_v37 = vpop.f32.mrb[239].mxu0  ;;  %v6869_v23 = vpop.f32.mrb[239].mxu1 }
 0x2d6   : > { %v9554_v52 = vadd.f32 %v6803_v56, %v9440_v39  ;;  %v9557_v5 = vadd.f32 %v6867_v9, %v9443_v0  ;;  %v6806_v61 = vadd.f32 %v6805_v37, %v6804_v63  ;;  %v6870_v25 = vadd.f32 %v6869_v23, %v6868_v46 }
 0x2d8   : > { %v9560_v27 = vadd.f32 %v6806_v61, %v9446_v57  ;;  %v9563_v58 = vadd.f32 %v6870_v25, %v9449_v4 }
 0x2da   : > { %v6871_v43 = vpop.f32.mrb[240].mxu1  ;;  %v6935_v30 = vpop.f32.mrb[240].mxu0 }
 0x2db   : > { %v6872_v24 = vpop.f32.mrb[241].mxu1  ;;  %v6936_v34 = vpop.f32.mrb[241].mxu0 }
 0x2dc   : > { %v6873_v59 = vadd.f32 %v6872_v24, %v6871_v43  ;;  %v6937_v44 = vadd.f32 %v6936_v34, %v6935_v30  ;;  %v6874_v28 = vpop.f32.mrb[242].mxu1  ;;  %v6938_v39 = vpop.f32.mrb[242].mxu0 }
 0x2dd   : > { %v6875_v12 = vpop.f32.mrb[243].mxu1  ;;  %v6939_v32 = vpop.f32.mrb[243].mxu0 }
 0x2de   : > { %v9566_v0 = vadd.f32 %v6873_v59, %v9456_v41  ;;  %v9569_v22 = vadd.f32 %v6937_v44, %v9459_v53  ;;  %v6876_v57 = vadd.f32 %v6875_v12, %v6874_v28  ;;  %v6940_v10 = vadd.f32 %v6939_v32, %v6938_v39 }
 0x2e0   : > { %v9572_v4 = vadd.f32 %v6876_v57, %v9462_v49  ;;  %v9575_v3 = vadd.f32 %v6940_v10, %v9465_v26 }
 0x2e2   : > { %v6877_v6 = vpop.f32.mrb[244].mxu1  ;;  %v6941_v31 = vpop.f32.mrb[244].mxu0 }
 0x2e3   : > { %v6878_v50 = vpop.f32.mrb[245].mxu1  ;;  %v6942_v19 = vpop.f32.mrb[245].mxu0 }
 0x2e4   : > { %v6879_v36 = vadd.f32 %v6878_v50, %v6877_v6  ;;  %v6943_v29 = vadd.f32 %v6942_v19, %v6941_v31  ;;  %v6880_v21 = vpop.f32.mrb[246].mxu1  ;;  %v6944_v41 = vpop.f32.mrb[246].mxu0 }
 0x2e5   : > { %v6881_v13 = vpop.f32.mrb[247].mxu1  ;;  %v6945_v56 = vpop.f32.mrb[247].mxu0 }
 0x2e6   : > { %v9578_v53 = vadd.f32 %v6879_v36, %v9472_v2  ;;  %v9581_v9 = vadd.f32 %v6943_v29, %v9475_v15  ;;  %v6882_v49 = vadd.f32 %v6881_v13, %v6880_v21  ;;  %v6946_v63 = vadd.f32 %v6945_v56, %v6944_v41 }
 0x2e8   : > { %v9584_v26 = vadd.f32 %v6882_v49, %v9478_v51  ;;  %v9587_v46 = vadd.f32 %v6946_v63, %v9481_v40 }
 0x2ea   : > { %v6883_v37 = vpop.f32.mrb[248].mxu1  ;;  %v6947_v23 = vpop.f32.mrb[248].mxu0 }
 0x2eb   : > { %v6884_v61 = vpop.f32.mrb[249].mxu1  ;;  %v6948_v25 = vpop.f32.mrb[249].mxu0 }
 0x2ec   : > { %v6885_v43 = vadd.f32 %v6884_v61, %v6883_v37  ;;  %v6949_v30 = vadd.f32 %v6948_v25, %v6947_v23  ;;  %v6886_v24 = vpop.f32.mrb[250].mxu1  ;;  %v6950_v2 = vpop.f32.mrb[250].mxu0 }
 0x2ed   : > { %v6887_v34 = vpop.f32.mrb[251].mxu1  ;;  %v6951_v59 = vpop.f32.mrb[251].mxu0 }
 0x2ee   : > { %v9590_v15 = vadd.f32 %v6885_v43, %v9488_v45  ;;  %v9593_v44 = vadd.f32 %v6949_v30, %v9491_v20  ;;  %v6888_v51 = vadd.f32 %v6887_v34, %v6886_v24  ;;  %v6952_v28 = vadd.f32 %v6951_v59, %v6950_v2 }
 0x2f0   : > { %v9596_v40 = vadd.f32 %v6888_v51, %v9494_v33  ;;  %v9599_v39 = vadd.f32 %v6952_v28, %v9497_v60 }
 0x2f2   : > { %v6889_v12 = vpop.f32.mrb[252].mxu1  ;;  %v6953_v32 = vpop.f32.mrb[252].mxu0 }
 0x2f3   : > { %v6890_v57 = vpop.f32.mrb[253].mxu1  ;;  %v6954_v10 = vpop.f32.mrb[253].mxu0 }
 0x2f4   : > { %v6891_v6 = vadd.f32 %v6890_v57, %v6889_v12  ;;  %v6955_v31 = vadd.f32 %v6954_v10, %v6953_v32  ;;  %v6892_v50 = vpop.f32.mrb[254].mxu1  ;;  %v6956_v45 = vpop.f32.mrb[254].mxu0 }
 0x2f5   : > { %v6893_v19 = vpop.f32.mrb[255].mxu1  ;;  %v6957_v36 = vpop.f32.mrb[255].mxu0 }
 0x2f6   : > { %v9602_v20 = vadd.f32 %v6891_v6, %v9504_v38  ;;  %v9605_v29 = vadd.f32 %v6955_v31, %v9507_v7  ;;  %v6894_v33 = vadd.f32 %v6893_v19, %v6892_v50  ;;  %v6958_v21 = vadd.f32 %v6957_v36, %v6956_v45 }
 0x2f8   : > { %v9608_v60 = vadd.f32 %v6894_v33, %v9510_v55  ;;  %v9611_v41 = vadd.f32 %v6958_v21, %v9513_v16 }
 0x2fa   : > { %v6895_v13 = vpop.f32.mrb[0].mxu1  ;;  %v6959_v56 = vpop.f32.mrb[0].mxu0 }
 0x2fb   : > { %v6896_v49 = vpop.f32.mrb[1].mxu1  ;;  %v6960_v63 = vpop.f32.mrb[1].mxu0 }
 0x2fc   : > { %v6897_v37 = vadd.f32 %v6896_v49, %v6895_v13  ;;  %v6961_v23 = vadd.f32 %v6960_v63, %v6959_v56  ;;  %v6898_v61 = vpop.f32.mrb[2].mxu1  ;;  %v6962_v38 = vpop.f32.mrb[2].mxu0 }
 0x2fd   : > { %v6899_v25 = vpop.f32.mrb[3].mxu1  ;;  %v6963_v43 = vpop.f32.mrb[3].mxu0 }
 0x2fe   : > { %v9614_v7 = vadd.f32 %v6897_v37, %v9518_v35  ;;  %v9617_v30 = vadd.f32 %v6961_v23, %v9521_v18  ;;  %v6900_v55 = vadd.f32 %v6899_v25, %v6898_v61  ;;  %v6964_v24 = vadd.f32 %v6963_v43, %v6962_v38 }
 0x300   : > { %v9620_v16 = vadd.f32 %v6900_v55, %v9524_v42  ;;  %v9623_v2 = vadd.f32 %v6964_v24, %v9527_v62 }
 0x302   : > { %v6901_v34 = vpop.f32.mrb[4].mxu1  ;;  %v6965_v59 = vpop.f32.mrb[4].mxu0 }
 0x303   : > { %v6902_v51 = vpop.f32.mrb[5].mxu1  ;;  %v6966_v28 = vpop.f32.mrb[5].mxu0 }
 0x304   : > { %v6903_v12 = vadd.f32 %v6902_v51, %v6901_v34  ;;  %v6967_v32 = vadd.f32 %v6966_v28, %v6965_v59  ;;  %v6904_v57 = vpop.f32.mrb[6].mxu1  ;;  %v6968_v35 = vpop.f32.mrb[6].mxu0 }
 0x305   : > { %v6905_v10 = vpop.f32.mrb[7].mxu1  ;;  %v6969_v6 = vpop.f32.mrb[7].mxu0 }
 0x306   : > { %v9626_v18 = vadd.f32 %v6903_v12, %v9530_v1  ;;  %v9629_v31 = vadd.f32 %v6967_v32, %v9533_v11  ;;  %v6906_v42 = vadd.f32 %v6905_v10, %v6904_v57  ;;  %v6970_v50 = vadd.f32 %v6969_v6, %v6968_v35 }
 0x308   : > { %v9632_v62 = vadd.f32 %v6906_v42, %v9536_v48  ;;  %v9635_v45 = vadd.f32 %v6970_v50, %v9539_v17 }
 0x30a   : > { %v6907_v19 = vpop.f32.mrb[8].mxu1  ;;  %v6971_v36 = vpop.f32.mrb[8].mxu0 }
 0x30b   : > { %v6908_v33 = vpop.f32.mrb[9].mxu1  ;;  %v6972_v21 = vpop.f32.mrb[9].mxu0 }
 0x30c   : > { %v6909_v13 = vadd.f32 %v6908_v33, %v6907_v19  ;;  %v6973_v56 = vadd.f32 %v6972_v21, %v6971_v36  ;;  %v6910_v49 = vpop.f32.mrb[10].mxu1  ;;  %v6974_v1 = vpop.f32.mrb[10].mxu0 }
 0x30d   : > { %v6911_v63 = vpop.f32.mrb[11].mxu1  ;;  %v6975_v37 = vpop.f32.mrb[11].mxu0 }
 0x30e   : > { %v9638_v11 = vadd.f32 %v6909_v13, %v9542_v47  ;;  %v9641_v23 = vadd.f32 %v6973_v56, %v9545_v14  ;;  %v6912_v48 = vadd.f32 %v6911_v63, %v6910_v49  ;;  %v6976_v61 = vadd.f32 %v6975_v37, %v6974_v1 }
 0x310   : > { %v9644_v17 = vadd.f32 %v6912_v48, %v9548_v54  ;;  %v9647_v38 = vadd.f32 %v6976_v61, %v9551_v8 }
 0x312   : > { %v6913_v25 = vpop.f32.mrb[12].mxu1  ;;  %v6977_v43 = vpop.f32.mrb[12].mxu0 }
 0x313   : > { %v6914_v55 = vpop.f32.mrb[13].mxu1  ;;  %v6978_v24 = vpop.f32.mrb[13].mxu0 }
 0x314   : > { %v6915_v34 = vadd.f32 %v6914_v55, %v6913_v25  ;;  %v6979_v59 = vadd.f32 %v6978_v24, %v6977_v43  ;;  %v6916_v51 = vpop.f32.mrb[14].mxu1  ;;  %v6980_v47 = vpop.f32.mrb[14].mxu0 }
 0x315   : > { %v6917_v28 = vpop.f32.mrb[15].mxu1  ;;  %v6981_v12 = vpop.f32.mrb[15].mxu0 }
 0x316   : > { %v9650_v14 = vadd.f32 %v6915_v34, %v9554_v52  ;;  %v9653_v32 = vadd.f32 %v6979_v59, %v9557_v5  ;;  %v6918_v54 = vadd.f32 %v6917_v28, %v6916_v51  ;;  %v6982_v57 = vadd.f32 %v6981_v12, %v6980_v47 }
 0x318   : > { %v9656_v8 = vadd.f32 %v6918_v54, %v9560_v27  ;;  %v9659_v35 = vadd.f32 %v6982_v57, %v9563_v58 }
 0x31a   : > { %v6983_v10 = vpop.f32.mrb[16].mxu0  ;;  %v7047_v6 = vpop.f32.mrb[16].mxu1 }
 0x31b   : > { %v6984_v42 = vpop.f32.mrb[17].mxu0  ;;  %v7048_v50 = vpop.f32.mrb[17].mxu1 }
 0x31c   : > { %v6985_v19 = vadd.f32 %v6984_v42, %v6983_v10  ;;  %v7049_v36 = vadd.f32 %v7048_v50, %v7047_v6  ;;  %v6986_v33 = vpop.f32.mrb[18].mxu0  ;;  %v7050_v52 = vpop.f32.mrb[18].mxu1 }
 0x31d   : > { %v6987_v21 = vpop.f32.mrb[19].mxu0  ;;  %v7051_v13 = vpop.f32.mrb[19].mxu1 }
 0x31e   : > { %v9662_v5 = vadd.f32 %v6985_v19, %v9566_v0  ;;  %v6988_v56 = vadd.f32 %v6987_v21, %v6986_v33  ;;  %v7052_v49 = vadd.f32 %v7051_v13, %v7050_v52  ;;  %v9665_v27 = vadd.f32 %v7049_v36, %v9569_v22 }
 0x320   : > { %v9668_v58 = vadd.f32 %v6988_v56, %v9572_v4  ;;  %v9671_v1 = vadd.f32 %v7052_v49, %v9575_v3 }
 0x322   : > { %v6989_v63 = vpop.f32.mrb[20].mxu0  ;;  %v7053_v37 = vpop.f32.mrb[20].mxu1 }
 0x323   : > { %v6990_v48 = vpop.f32.mrb[21].mxu0  ;;  %v7054_v61 = vpop.f32.mrb[21].mxu1 }
 0x324   : > { %v6991_v25 = vadd.f32 %v6990_v48, %v6989_v63  ;;  %v7055_v43 = vadd.f32 %v7054_v61, %v7053_v37  ;;  %v6992_v55 = vpop.f32.mrb[22].mxu0  ;;  %v7056_v0 = vpop.f32.mrb[22].mxu1 }
 0x325   : > { %v6993_v24 = vpop.f32.mrb[23].mxu0  ;;  %v7057_v34 = vpop.f32.mrb[23].mxu1 }
 0x326   : > { %v9674_v59 = vadd.f32 %v6991_v25, %v9578_v53  ;;  %v6994_v22 = vadd.f32 %v6993_v24, %v6992_v55  ;;  %v7058_v51 = vadd.f32 %v7057_v34, %v7056_v0  ;;  %v9677_v4 = vadd.f32 %v7055_v43, %v9581_v9 }
 0x328   : > { %v9680_v3 = vadd.f32 %v6994_v22, %v9584_v26  ;;  %v9683_v47 = vadd.f32 %v7058_v51, %v9587_v46 }
 0x32a   : > { %v6995_v28 = vpop.f32.mrb[24].mxu0  ;;  %v7059_v12 = vpop.f32.mrb[24].mxu1 }
 0x32b   : > { %v6996_v54 = vpop.f32.mrb[25].mxu0  ;;  %v7060_v57 = vpop.f32.mrb[25].mxu1 }
 0x32c   : > { %v6997_v10 = vadd.f32 %v6996_v54, %v6995_v28  ;;  %v7061_v6 = vadd.f32 %v7060_v57, %v7059_v12  ;;  %v6998_v42 = vpop.f32.mrb[26].mxu0  ;;  %v7062_v53 = vpop.f32.mrb[26].mxu1 }
 0x32d   : > { %v6999_v50 = vpop.f32.mrb[27].mxu0  ;;  %v7063_v19 = vpop.f32.mrb[27].mxu1 }
 0x32e   : > { %v9686_v36 = vadd.f32 %v6997_v10, %v9590_v15  ;;  %v7000_v9 = vadd.f32 %v6999_v50, %v6998_v42  ;;  %v7064_v33 = vadd.f32 %v7063_v19, %v7062_v53  ;;  %v9689_v26 = vadd.f32 %v7061_v6, %v9593_v44 }
 0x330   : > { %v9692_v46 = vadd.f32 %v7000_v9, %v9596_v40  ;;  %v9695_v52 = vadd.f32 %v7064_v33, %v9599_v39 }
 0x332   : > { %v7001_v21 = vpop.f32.mrb[28].mxu0  ;;  %v7065_v13 = vpop.f32.mrb[28].mxu1 }
 0x333   : > { %v7002_v56 = vpop.f32.mrb[29].mxu0  ;;  %v7066_v49 = vpop.f32.mrb[29].mxu1 }
 0x334   : > { %v7003_v63 = vadd.f32 %v7002_v56, %v7001_v21  ;;  %v7067_v37 = vadd.f32 %v7066_v49, %v7065_v13  ;;  %v7004_v48 = vpop.f32.mrb[30].mxu0  ;;  %v7068_v15 = vpop.f32.mrb[30].mxu1 }
 0x335   : > { %v7005_v61 = vpop.f32.mrb[31].mxu0  ;;  %v7069_v25 = vpop.f32.mrb[31].mxu1 }
 0x336   : > { %v9698_v43 = vadd.f32 %v7003_v63, %v9602_v20  ;;  %v7006_v44 = vadd.f32 %v7005_v61, %v7004_v48  ;;  %v7070_v55 = vadd.f32 %v7069_v25, %v7068_v15  ;;  %v9701_v40 = vadd.f32 %v7067_v37, %v9605_v29 }
 0x338   : > { %v9704_v39 = vadd.f32 %v7006_v44, %v9608_v60  ;;  %v9707_v0 = vadd.f32 %v7070_v55, %v9611_v41 }
 0x33a   : > { %v7007_v24 = vpop.f32.mrb[32].mxu0  ;;  %v7071_v34 = vpop.f32.mrb[32].mxu1 }
 0x33b   : > { %v7008_v22 = vpop.f32.mrb[33].mxu0  ;;  %v7072_v51 = vpop.f32.mrb[33].mxu1 }
 0x33c   : > { %v7009_v28 = vadd.f32 %v7008_v22, %v7007_v24  ;;  %v7073_v12 = vadd.f32 %v7072_v51, %v7071_v34  ;;  %v7010_v54 = vpop.f32.mrb[34].mxu0  ;;  %v7074_v20 = vpop.f32.mrb[34].mxu1 }
 0x33d   : > { %v7011_v57 = vpop.f32.mrb[35].mxu0  ;;  %v7075_v10 = vpop.f32.mrb[35].mxu1 }
 0x33e   : > { %v9710_v6 = vadd.f32 %v7009_v28, %v9614_v7  ;;  %v7012_v29 = vadd.f32 %v7011_v57, %v7010_v54  ;;  %v7076_v42 = vadd.f32 %v7075_v10, %v7074_v20  ;;  %v9713_v60 = vadd.f32 %v7073_v12, %v9617_v30 }
 0x340   : > { %v9716_v41 = vadd.f32 %v7012_v29, %v9620_v16  ;;  %v9719_v53 = vadd.f32 %v7076_v42, %v9623_v2 }
 0x342   : > { %v7013_v50 = vpop.f32.mrb[36].mxu0  ;;  %v7077_v19 = vpop.f32.mrb[36].mxu1 }
 0x343   : > { %v7014_v9 = vpop.f32.mrb[37].mxu0  ;;  %v7078_v33 = vpop.f32.mrb[37].mxu1 }
 0x344   : > { %v7015_v21 = vadd.f32 %v7014_v9, %v7013_v50  ;;  %v7079_v13 = vadd.f32 %v7078_v33, %v7077_v19  ;;  %v7016_v56 = vpop.f32.mrb[38].mxu0  ;;  %v7080_v7 = vpop.f32.mrb[38].mxu1 }
 0x345   : > { %v7017_v49 = vpop.f32.mrb[39].mxu0  ;;  %v7081_v63 = vpop.f32.mrb[39].mxu1 }
 0x346   : > { %v9722_v37 = vadd.f32 %v7015_v21, %v9626_v18  ;;  %v7018_v30 = vadd.f32 %v7017_v49, %v7016_v56  ;;  %v7082_v48 = vadd.f32 %v7081_v63, %v7080_v7  ;;  %v9725_v16 = vadd.f32 %v7079_v13, %v9629_v31 }
 0x348   : > { %v9728_v2 = vadd.f32 %v7018_v30, %v9632_v62  ;;  %v9731_v15 = vadd.f32 %v7082_v48, %v9635_v45 }
 0x34a   : > { %v7019_v61 = vpop.f32.mrb[40].mxu0  ;;  %v7083_v25 = vpop.f32.mrb[40].mxu1 }
 0x34b   : > { %v7020_v44 = vpop.f32.mrb[41].mxu0  ;;  %v7084_v55 = vpop.f32.mrb[41].mxu1 }
 0x34c   : > { %v7021_v24 = vadd.f32 %v7020_v44, %v7019_v61  ;;  %v7085_v34 = vadd.f32 %v7084_v55, %v7083_v25  ;;  %v7022_v22 = vpop.f32.mrb[42].mxu0  ;;  %v7086_v18 = vpop.f32.mrb[42].mxu1 }
 0x34d   : > { %v7023_v51 = vpop.f32.mrb[43].mxu0  ;;  %v7087_v28 = vpop.f32.mrb[43].mxu1 }
 0x34e   : > { %v9734_v12 = vadd.f32 %v7021_v24, %v9638_v11  ;;  %v7024_v31 = vadd.f32 %v7023_v51, %v7022_v22  ;;  %v7088_v54 = vadd.f32 %v7087_v28, %v7086_v18  ;;  %v9737_v62 = vadd.f32 %v7085_v34, %v9641_v23 }
 0x350   : > { %v9740_v45 = vadd.f32 %v7024_v31, %v9644_v17  ;;  %v9743_v20 = vadd.f32 %v7088_v54, %v9647_v38 }
 0x352   : > { %v7025_v57 = vpop.f32.mrb[44].mxu0  ;;  %v7089_v10 = vpop.f32.mrb[44].mxu1 }
 0x353   : > { %v7026_v29 = vpop.f32.mrb[45].mxu0  ;;  %v7090_v42 = vpop.f32.mrb[45].mxu1 }
 0x354   : > { %v7027_v50 = vadd.f32 %v7026_v29, %v7025_v57  ;;  %v7091_v19 = vadd.f32 %v7090_v42, %v7089_v10  ;;  %v7028_v11 = vpop.f32.mrb[46].mxu0  ;;  %v7092_v9 = vpop.f32.mrb[46].mxu1 }
 0x355   : > { %v7029_v33 = vpop.f32.mrb[47].mxu0  ;;  %v7093_v21 = vpop.f32.mrb[47].mxu1 }
 0x356   : > { %v9746_v23 = vadd.f32 %v7027_v50, %v9650_v14  ;;  %v7030_v13 = vadd.f32 %v7029_v33, %v7028_v11  ;;  %v7094_v17 = vadd.f32 %v7093_v21, %v7092_v9  ;;  %v9749_v56 = vadd.f32 %v7091_v19, %v9653_v32 }
 0x358   : > { %v9753_v38 = vadd.f32 %v7030_v13, %v9656_v8  ;;  %v9756_v7 = vadd.f32 %v7094_v17, %v9659_v35 }
 0x35a   : > { %v7095_v49 = vpop.f32.mrb[48].mxu1  ;;  %v7185_v14 = vpop.f32.mrb[48].mxu0 }
 0x35b   : > { %v5266_v32 = vadd.f32 %v7185_v14, %v9677_v4  ;;  %v7096_v63 = vpop.f32.mrb[49].mxu1  ;;  %v5257_v8 = vpop.f32.mrb[49].mxu0 }
 0x35c   : > { %v7097_v30 = vadd.f32 %v7096_v63, %v7095_v49  ;;  %v5258_v35 = vadd.f32 %v5257_v8, %v9665_v27  ;;  %v7098_v48 = vpop.f32.mrb[50].mxu1  ;;  %v7186_v61 = vpop.f32.mrb[50].mxu0 }
 0x35d   : > { %5387 = vst.msk [vmem:[%s9761_s4 + $0x10] sm:$0xff] %vm5384_vm0, %v5266_v32  ;;  %v5269_v25 = vadd.f32 %v7186_v61, %v9683_v47  ;;  %v7099_v44 = vpop.f32.mrb[51].mxu1  ;;  %v5260_v55 = vpop.f32.mrb[51].mxu0 }
 0x35e   : > { %5385 = vst.msk [vmem:[%s9761_s4] sm:$0xff] %vm5384_vm0, %v5258_v35  ;;  %v7100_v24 = vadd.f32 %v7099_v44, %v7098_v48  ;;  %v5261_v4 = vadd.f32 %v5260_v55, %v9671_v1  ;;  %v9772_v34 = vadd.f32 %v7097_v30, %v9662_v5 }
 0x35f   : > { %5388 = vst.msk [vmem:[%s9761_s4 + $0x18] sm:$0xff] %vm5384_vm0, %v5269_v25 }
 0x360   : > { %5386 = vst.msk [vmem:[%s9761_s4 + $0x8] sm:$0xff] %vm5384_vm0, %v5261_v4  ;;  %v9779_v27 = vadd.f32 %v7100_v24, %v9668_v58 }
 0x362   : > { %v7101_v47 = vpop.f32.mrb[52].mxu1  ;;  %v7189_v22 = vpop.f32.mrb[52].mxu0 }
 0x363   : > { %v5282_v18 = vadd.f32 %v7189_v22, %v9701_v40  ;;  %v7102_v51 = vpop.f32.mrb[53].mxu1  ;;  %v5273_v28 = vpop.f32.mrb[53].mxu0 }
 0x364   : > { %v7103_v1 = vadd.f32 %v7102_v51, %v7101_v47  ;;  %v5274_v5 = vadd.f32 %v5273_v28, %v9689_v26  ;;  %v7104_v31 = vpop.f32.mrb[54].mxu1  ;;  %v7190_v54 = vpop.f32.mrb[54].mxu0 }
 0x365   : > { %5391 = vst.msk [vmem:[%s9761_s4 + $0x30] sm:$0xff] %vm5384_vm0, %v5282_v18  ;;  %v5285_v57 = vadd.f32 %v7190_v54, %v9707_v0  ;;  %v7105_v10 = vpop.f32.mrb[55].mxu1  ;;  %v5276_v58 = vpop.f32.mrb[55].mxu0 }
 0x366   : > { %5389 = vst.msk [vmem:[%s9761_s4 + $0x20] sm:$0xff] %vm5384_vm0, %v5274_v5  ;;  %v7106_v29 = vadd.f32 %v7105_v10, %v7104_v31  ;;  %v5277_v40 = vadd.f32 %v5276_v58, %v9695_v52  ;;  %v5169_v42 = vadd.f32 %v7103_v1, %v9674_v59 }
 0x367   : > { %5392 = vst.msk [vmem:[%s9761_s4 + $0x38] sm:$0xff] %vm5384_vm0, %v5285_v57 }
 0x368   : > { %5390 = vst.msk [vmem:[%s9761_s4 + $0x28] sm:$0xff] %vm5384_vm0, %v5277_v40  ;;  %v5172_v26 = vadd.f32 %v7106_v29, %v9680_v3 }
 0x36a   : > { %v7107_v50 = vpop.f32.mrb[56].mxu1  ;;  %v7193_v19 = vpop.f32.mrb[56].mxu0 }
 0x36b   : > { %v5298_v0 = vadd.f32 %v7193_v19, %v9725_v16  ;;  %v7108_v11 = vpop.f32.mrb[57].mxu1  ;;  %v5289_v9 = vpop.f32.mrb[57].mxu0 }
 0x36c   : > { %v7109_v33 = vadd.f32 %v7108_v11, %v7107_v50  ;;  %v5290_v52 = vadd.f32 %v5289_v9, %v9713_v60  ;;  %v7110_v21 = vpop.f32.mrb[58].mxu1  ;;  %v7194_v59 = vpop.f32.mrb[58].mxu0 }
 0x36d   : > { %5395 = vst.msk [vmem:[%s9761_s4 + $0x50] sm:$0xff] %vm5384_vm0, %v5298_v0  ;;  %v5301_v13 = vadd.f32 %v7194_v59, %v9731_v15  ;;  %v7111_v17 = vpop.f32.mrb[59].mxu1  ;;  %v5292_v49 = vpop.f32.mrb[59].mxu0 }
 0x36e   : > { %5393 = vst.msk [vmem:[%s9761_s4 + $0x40] sm:$0xff] %vm5384_vm0, %v5290_v52  ;;  %v7112_v3 = vadd.f32 %v7111_v17, %v7110_v21  ;;  %v5293_v16 = vadd.f32 %v5292_v49, %v9719_v53  ;;  %v5177_v14 = vadd.f32 %v7109_v33, %v9686_v36 }
 0x36f   : > { %5396 = vst.msk [vmem:[%s9761_s4 + $0x58] sm:$0xff] %vm5384_vm0, %v5301_v13 }
 0x370   : > { %5394 = vst.msk [vmem:[%s9761_s4 + $0x48] sm:$0xff] %vm5384_vm0, %v5293_v16  ;;  %v5180_v60 = vadd.f32 %v7112_v3, %v9692_v46 }
 0x372   : > { %v7113_v32 = vpop.f32.mrb[60].mxu1  ;;  %v7197_v63 = vpop.f32.mrb[60].mxu0 }
 0x373   : > { %v5314_v15 = vadd.f32 %v7197_v63, %v9749_v56  ;;  %v7114_v8 = vpop.f32.mrb[61].mxu1  ;;  %v5305_v30 = vpop.f32.mrb[61].mxu0 }
 0x374   : > { %v7115_v35 = vadd.f32 %v7114_v8, %v7113_v32  ;;  %v5306_v53 = vadd.f32 %v5305_v30, %v9737_v62  ;;  %v7116_v48 = vpop.f32.mrb[62].mxu1  ;;  %v7198_v36 = vpop.f32.mrb[62].mxu0 }
 0x375   : > { %5399 = vst.msk [vmem:[%s9761_s4 + $0x70] sm:$0xff] %vm5384_vm0, %v5314_v15  ;;  %v5317_v61 = vadd.f32 %v7198_v36, %v9756_v7  ;;  %v7117_v25 = vpop.f32.mrb[63].mxu1  ;;  %v5308_v44 = vpop.f32.mrb[63].mxu0 }
 0x376   : > { %5397 = vst.msk [vmem:[%s9761_s4 + $0x60] sm:$0xff] %vm5384_vm0, %v5306_v53  ;;  %v7118_v46 = vadd.f32 %v7117_v25, %v7116_v48  ;;  %v5309_v56 = vadd.f32 %v5308_v44, %v9743_v20  ;;  %v5185_v55 = vadd.f32 %v7115_v35, %v9698_v43 }
 0x377   : > { %5400 = vst.msk [vmem:[%s9761_s4 + $0x78] sm:$0xff] %vm5384_vm0, %v5317_v61 }
 0x378   : > { %5398 = vst.msk [vmem:[%s9761_s4 + $0x68] sm:$0xff] %vm5384_vm0, %v5309_v56  ;;  %v5188_v62 = vadd.f32 %v7118_v46, %v9704_v39 }
 0x37a   : > { %v7119_v24 = vpop.f32.mrb[64].mxu1  ;;  %v7201_v4 = vpop.f32.mrb[64].mxu0 }
 0x37b   : > { %v5330_v7 = vadd.f32 %v7201_v4, %v5169_v42  ;;  %v7120_v47 = vpop.f32.mrb[65].mxu1  ;;  %v5321_v22 = vpop.f32.mrb[65].mxu0 }
 0x37c   : > { %v7121_v18 = vadd.f32 %v7120_v47, %v7119_v24  ;;  %v5322_v51 = vadd.f32 %v5321_v22, %v9772_v34  ;;  %v7122_v20 = vpop.f32.mrb[66].mxu1  ;;  %v7202_v28 = vpop.f32.mrb[66].mxu0 }
 0x37d   : > { %5403 = vst.msk [vmem:[%s9761_s4 + $0x90] sm:$0xff] %vm5384_vm0, %v5330_v7  ;;  %v5333_v43 = vadd.f32 %v7202_v28, %v5172_v26  ;;  %v7123_v1 = vpop.f32.mrb[67].mxu1  ;;  %v5324_v5 = vpop.f32.mrb[67].mxu0 }
 0x37e   : > { %5401 = vst.msk [vmem:[%s9761_s4 + $0x80] sm:$0xff] %vm5384_vm0, %v5322_v51  ;;  %v7124_v39 = vadd.f32 %v7123_v1, %v7122_v20  ;;  %v5325_v31 = vadd.f32 %v5324_v5, %v9779_v27  ;;  %v5193_v54 = vadd.f32 %v7121_v18, %v9710_v6 }
 0x37f   : > { %5404 = vst.msk [vmem:[%s9761_s4 + $0x98] sm:$0xff] %vm5384_vm0, %v5333_v43 }
 0x380   : > { %5402 = vst.msk [vmem:[%s9761_s4 + $0x88] sm:$0xff] %vm5384_vm0, %v5325_v31  ;;  %v5196_v34 = vadd.f32 %v7124_v39, %v9716_v41 }
 0x382   : > { %v7125_v57 = vpop.f32.mrb[68].mxu1  ;;  %v7205_v10 = vpop.f32.mrb[68].mxu0 }
 0x383   : > { %v5346_v58 = vadd.f32 %v7205_v10, %v5185_v55  ;;  %v7126_v29 = vpop.f32.mrb[69].mxu1  ;;  %v5337_v40 = vpop.f32.mrb[69].mxu0 }
 0x384   : > { %v7127_v42 = vadd.f32 %v7126_v29, %v7125_v57  ;;  %v5338_v26 = vadd.f32 %v5337_v40, %v5177_v14  ;;  %v7128_v50 = vpop.f32.mrb[70].mxu1  ;;  %v7206_v27 = vpop.f32.mrb[70].mxu0 }
 0x385   : > { %5407 = vst.msk [vmem:[%s9761_s4 + $0xb0] sm:$0xff] %vm5384_vm0, %v5346_v58  ;;  %v5349_v6 = vadd.f32 %v7206_v27, %v5188_v62  ;;  %v7129_v19 = vpop.f32.mrb[71].mxu1  ;;  %v5340_v0 = vpop.f32.mrb[71].mxu0 }
 0x386   : > { %5405 = vst.msk [vmem:[%s9761_s4 + $0xa0] sm:$0xff] %vm5384_vm0, %v5338_v26  ;;  %v7130_v41 = vadd.f32 %v7129_v19, %v7128_v50  ;;  %v5341_v11 = vadd.f32 %v5340_v0, %v5180_v60  ;;  %v5201_v9 = vadd.f32 %v7127_v42, %v9722_v37 }
 0x387   : > { %5408 = vst.msk [vmem:[%s9761_s4 + $0xb8] sm:$0xff] %vm5384_vm0, %v5349_v6 }
 0x388   : > { %5406 = vst.msk [vmem:[%s9761_s4 + $0xa8] sm:$0xff] %vm5384_vm0, %v5341_v11  ;;  %v5204_v33 = vadd.f32 %v7130_v41, %v9728_v2 }
 0x38a   : > { %v7131_v52 = vpop.f32.mrb[72].mxu1  ;;  %v7209_v21 = vpop.f32.mrb[72].mxu0 }
 0x38b   : > { %v5362_v59 = vadd.f32 %v7209_v21, %v5201_v9  ;;  %v7132_v13 = vpop.f32.mrb[73].mxu1  ;;  %v5353_v17 = vpop.f32.mrb[73].mxu0 }
 0x38c   : > { %v7133_v49 = vadd.f32 %v7132_v13, %v7131_v52  ;;  %v5354_v3 = vadd.f32 %v5353_v17, %v5193_v54  ;;  %v7134_v16 = vpop.f32.mrb[74].mxu1  ;;  %v7210_v14 = vpop.f32.mrb[74].mxu0 }
 0x38d   : > { %5411 = vst.msk [vmem:[%s9761_s4 + $0xd0] sm:$0xff] %vm5384_vm0, %v5362_v59  ;;  %v5365_v37 = vadd.f32 %v7210_v14, %v5204_v33  ;;  %v7135_v60 = vpop.f32.mrb[75].mxu1  ;;  %v5356_v32 = vpop.f32.mrb[75].mxu0 }
 0x38e   : > { %5409 = vst.msk [vmem:[%s9761_s4 + $0xc0] sm:$0xff] %vm5384_vm0, %v5354_v3  ;;  %v7136_v63 = vadd.f32 %v7135_v60, %v7134_v16  ;;  %v5357_v2 = vadd.f32 %v5356_v32, %v5196_v34  ;;  %v5209_v15 = vadd.f32 %v7133_v49, %v9734_v12 }
 0x38f   : > { %5412 = vst.msk [vmem:[%s9761_s4 + $0xd8] sm:$0xff] %vm5384_vm0, %v5365_v37 }
 0x390   : > { %5410 = vst.msk [vmem:[%s9761_s4 + $0xc8] sm:$0xff] %vm5384_vm0, %v5357_v2  ;;  %v5212_v8 = vadd.f32 %v7136_v63, %v9740_v45 }
 0x392   : > { %v7137_v30 = vpop.f32.mrb[76].mxu1  ;;  %v7213_v35 = vpop.f32.mrb[76].mxu0 }
 0x393   : > { %v7138_v53 = vpop.f32.mrb[77].mxu1  ;;  %v5369_v48 = vpop.f32.mrb[77].mxu0 }
 0x394   : > { %v7139_v36 = vadd.f32 %v7138_v53, %v7137_v30  ;;  %v5370_v61 = vadd.f32 %v5369_v48, %v5209_v15  ;;  %v7140_v25 = vpop.f32.mrb[78].mxu1  ;;  %v7214_v44 = vpop.f32.mrb[78].mxu0 }
 0x395   : > { %v7141_v46 = vpop.f32.mrb[79].mxu1  ;;  %v5372_v56 = vpop.f32.mrb[79].mxu0 }
 0x396   : > { %v5217_v12 = vadd.f32 %v7139_v36, %v9746_v23  ;;  %5413 = vst.msk [vmem:[%s9761_s4 + $0xe0] sm:$0xff] %vm5384_vm0, %v5370_v61  ;;  %v7142_v55 = vadd.f32 %v7141_v46, %v7140_v25  ;;  %v5373_v62 = vadd.f32 %v5372_v56, %v5212_v8 }
 0x398   : > { %v5378_v45 = vadd.f32 %v7213_v35, %v5217_v12  ;;  %v5220_v24 = vadd.f32 %v7142_v55, %v9753_v38  ;;  %5414 = vst.msk [vmem:[%s9761_s4 + $0xe8] sm:$0xff] %vm5384_vm0, %v5373_v62 }
 0x39a   : > { %5415 = vst.msk [vmem:[%s9761_s4 + $0xf0] sm:$0xff] %vm5384_vm0, %v5378_v45  ;;  %v5381_v4 = vadd.f32 %v7214_v44, %v5220_v24 }
 0x39c   : > { %5416 = vst.msk [vmem:[%s9761_s4 + $0xf8] sm:$0xff] %vm5384_vm0, %v5381_v4 }
 0x39d PF: > { %s13_s14 = sadd.s32 1, %s7943_s14   ;;  %s9878_s12 = smov %s7939_s13 }
 0x39e   : > { %p10_p5 = scmp.ge.s32.totalorder %s13_s14, 4   ;;  %s9879_s13 = smov %s9881_s15 }
 0x3a0   :  { %12 = sbr.rel (!%p10_p5) target bundleno = 2 (0x2), region = 62 }

</bundles_post_ra>
